<compile_context>
chip_gen: v7x
topology: tpu7x:2x2x1
jax: 0.10.0
libtpu: 0.0.40
codegen_flags: <defaults>
</compile_context>

<pallas_src>
import functools

import jax
import jax.numpy as jnp
from jax.experimental import pallas as pl
from jax.experimental.pallas import tpu as pltpu


# ----------------------------- Pallas kernel --------------------------------

def _conv4x4_s2_kernel(z_ref, w_ref, b_ref, o_ref, *, oh, ow, activation):
    """One image of a 4x4/stride-2 conv (+ folded-BN bias + activation).

    z_ref: (1, oh+1, ow+1, 4*Cin) bf16 space-to-depth view of the padded input
    w_ref: (4, 4*Cin, Cout)       bf16 weight blocks; block (a,b) at index 2a+b
    b_ref: (1, Cout)              f32 bias (BN beta - mean*scale, or zeros)
    o_ref: (1, oh, ow, Cout)      output tile
    """
    k4 = z_ref.shape[-1]
    cout = o_ref.shape[-1]
    zz = z_ref[0]                                    # (oh+1, ow+1, 4*Cin)
    bias = b_ref[...]                                # (1, Cout) f32

    def epilogue(acc):
        y = acc + bias
        if activation == "leaky":
            y = jnp.where(y >= 0, y, 0.2 * y)
        elif activation == "sigmoid":
            y = jax.nn.sigmoid(y)
        return y

    if ow % 8 == 0:
        # Flat path: one MXU matmul per (a, b) shift.  The (oh, ow) -> oh*ow
        # merge is layout-preserving because ow is a multiple of the 8-sublane
        # tile, so the reshapes are free relabels.
        acc = jnp.zeros((oh * ow, cout), jnp.float32)
        for a in range(2):
            for b in range(2):
                piece = zz[a:a + oh, b:b + ow, :].reshape(oh * ow, k4)
                acc = acc + jnp.dot(piece, w_ref[2 * a + b],
                                    preferred_element_type=jnp.float32)
        o_ref[...] = epilogue(acc).reshape(1, oh, ow, cout).astype(o_ref.dtype)
    else:
        # Row path (tiny spatial dims, e.g. 4x4): avoid non-tile-aligned
        # reshapes entirely; one small matmul per output row and (a, b) shift.
        for i in range(oh):
            acc = jnp.zeros((ow, cout), jnp.float32)
            for a in range(2):
                for b in range(2):
                    acc = acc + jnp.dot(zz[a + i, b:b + ow, :],
                                        w_ref[2 * a + b],
                                        preferred_element_type=jnp.float32)
            o_ref[0, i] = epilogue(acc).astype(o_ref.dtype)


# ------------------------------- JAX glue ------------------------------------

def space_to_depth_pad(x_nhwc):
    """Zero-pad by 1 and block-2 space-to-depth.

    Returns z with z[n, u, v, r*2C + s*C + c] = x_pad[n, 2u+r, 2v+s, c],
    shape (N, H//2 + 1, W//2 + 1, 4*C), plus (OH, OW) of the conv output.
    """
    n, h, w, c = x_nhwc.shape
    oh, ow = h // 2, w // 2
    xp = jnp.pad(x_nhwc, ((0, 0), (1, 1), (1, 1), (0, 0)))
    z = xp.reshape(n, oh + 1, 2, ow + 1, 2, c)
    z = jnp.transpose(z, (0, 1, 3, 2, 4, 5))
    return z.reshape(n, oh + 1, ow + 1, 4 * c), (oh, ow)


def weight_to_blocks(w_oihw):
    """PyTorch conv weight [Cout, Cin, 4, 4] -> (4, 4*Cin, Cout) shift blocks.

    Block 2a+b holds W[(r, s, cin), cout] = w[cout, cin, 2a+r, 2b+s], matching
    the space-to-depth channel order produced by `space_to_depth_pad`.
    """
    cout, cin = w_oihw.shape[:2]
    w6 = w_oihw.reshape(cout, cin, 2, 2, 2, 2)        # (cout, cin, a, r, b, s)
    w6 = jnp.transpose(w6, (2, 4, 3, 5, 1, 0))        # (a, b, r, s, cin, cout)
    return w6.reshape(4, 4 * cin, cout)


def fold_bn(gamma, beta, running_mean, running_var, eps=1e-5):
    scale = gamma / jnp.sqrt(running_var + eps)
    bias = beta - running_mean * scale
    return scale, bias


def conv4x4_s2_pallas(x_nhwc, w_blocks, bias, activation,
                      out_dtype=jnp.bfloat16):
    """Fused 4x4/stride-2/pad-1 conv + bias + activation, one image per grid step."""
    n = x_nhwc.shape[0]
    z, (oh, ow) = space_to_depth_pad(x_nhwc.astype(jnp.bfloat16))
    k4 = z.shape[-1]
    cout = w_blocks.shape[-1]
    wb = w_blocks.astype(jnp.bfloat16)
    bb = bias.astype(jnp.float32).reshape(1, cout)

    # VMEM budget: double-buffered per-image input/output blocks + resident
    # weights (counted twice, conservatively) + scratch slack.  Clamp to a
    # range that is safe on every generation (v7x has 64 MiB physical VMEM).
    out_bytes = jnp.dtype(out_dtype).itemsize
    vmem_est = (2 * (oh + 1) * (ow + 1) * k4 * 2
                + 2 * 4 * k4 * cout * 2 + 2 * cout * 4
                + 2 * oh * ow * cout * out_bytes
                + (8 << 20))
    vmem_limit = max(16 << 20, min(vmem_est, 40 << 20))

    return pl.pallas_call(
        functools.partial(_conv4x4_s2_kernel, oh=oh, ow=ow,
                          activation=activation),
        out_shape=jax.ShapeDtypeStruct((n, oh, ow, cout), out_dtype),
        grid=(n,),
        in_specs=[
            pl.BlockSpec((1, oh + 1, ow + 1, k4), lambda i: (i, 0, 0, 0)),
            pl.BlockSpec((4, k4, cout), lambda i: (0, 0, 0)),   # VMEM-resident
            pl.BlockSpec((1, cout), lambda i: (0, 0)),          # VMEM-resident
        ],
        out_specs=pl.BlockSpec((1, oh, ow, cout), lambda i: (i, 0, 0, 0)),
        compiler_params=pltpu.CompilerParams(
            dimension_semantics=("parallel",),   # one image per TC on v7x
            vmem_limit_bytes=vmem_limit),
    )(z, wb, bb)


def init_params(key):
    """DCGAN init: conv weights ~ N(0, 0.02); BN gamma ~ N(1, 0.02), beta = 0."""
    ndf = 64
    conv_shapes = [(ndf, 3, 4, 4),
                   (ndf * 2, ndf, 4, 4),
                   (ndf * 4, ndf * 2, 4, 4),
                   (1, ndf * 4, 4, 4)]
    bn_channels = [None, ndf * 2, ndf * 4, None]
    params = []
    for i, shp in enumerate(conv_shapes):
        key, kw_, kg_ = jax.random.split(key, 3)
        layer = {"w": 0.02 * jax.random.normal(kw_, shp, jnp.float32)}
        if bn_channels[i] is not None:
            c = bn_channels[i]
            layer["bn"] = {
                "gamma": 1.0 + 0.02 * jax.random.normal(kg_, (c,), jnp.float32),
                "beta": jnp.zeros((c,), jnp.float32),
                "mean": jnp.zeros((c,), jnp.float32),
                "var": jnp.ones((c,), jnp.float32),
            }
        params.append(layer)
    return params


def discriminator_forward(x_nchw, params):
    # NCHW in -> NHWC bf16 internally -> NCHW f32 out.
    x = jnp.transpose(x_nchw, (0, 2, 3, 1)).astype(jnp.bfloat16)

    # Layers 1-3: fused conv (+folded BN) + LeakyReLU Pallas kernels.
    for layer in params[:3]:
        w_blocks = weight_to_blocks(layer["w"])
        cout = w_blocks.shape[-1]
        if "bn" in layer:
            bn = layer["bn"]
            scale, bias = fold_bn(bn["gamma"], bn["beta"], bn["mean"], bn["var"])
            w_blocks = w_blocks * scale          # fold BN scale into weights
        else:
            bias = jnp.zeros((cout,), jnp.float32)
        x = conv4x4_s2_pallas(x, w_blocks, bias, "leaky")
        # Dropout2d(0.25): eval-mode identity.

    # Layer 4 (Conv 256->1, 2x2 output, M=8): plain XLA dot -- a pallas_call
    # launch and 1->128 Cout padding would dwarf the actual math.
    w4 = weight_to_blocks(params[3]["w"]).astype(jnp.float32)      # (4, 4C, 1)
    z, (oh, ow) = space_to_depth_pad(x)
    n = x.shape[0]
    k4 = z.shape[-1]
    acc = jnp.zeros((n * oh * ow, 1), jnp.float32)
    for a in range(2):
        for b in range(2):
            piece = z[:, a:a + oh, b:b + ow, :].reshape(n * oh * ow, k4)
            acc = acc + jnp.dot(piece.astype(jnp.float32), w4[2 * a + b])
    y = jax.nn.sigmoid(acc).reshape(n, oh, ow, 1)
    return jnp.transpose(y, (0, 3, 1, 2)).astype(jnp.float32)       # NCHW


def reference_forward(x_nchw, params):
    """Pure-JAX f32 reference (lax conv) for correctness checking."""
    x = x_nchw.astype(jnp.float32)
    activations = ["leaky", "leaky", "leaky", "sigmoid"]
    for layer, act in zip(params, activations):
        x = jax.lax.conv_general_dilated(
            x, layer["w"], window_strides=(2, 2), padding=((1, 1), (1, 1)),
            dimension_numbers=("NCHW", "OIHW", "NCHW"))
        if "bn" in layer:
            bn = layer["bn"]
            scale, bias = fold_bn(bn["gamma"], bn["beta"], bn["mean"], bn["var"])
            x = x * scale[None, :, None, None] + bias[None, :, None, None]
        if act == "leaky":
            x = jnp.where(x >= 0, x, 0.2 * x)
        else:
            x = jax.nn.sigmoid(x)
    return x


if __name__ == "__main__":
    key = jax.random.PRNGKey(0)
    kp, kx = jax.random.split(key)
    params = init_params(kp)

    # Smallest input the four stride-2 convs support cleanly: NCHW, 3 ch, 32x32.
    x = jax.random.normal(kx, (2, 3, 32, 32), jnp.float32)

    fwd = jax.jit(discriminator_forward)
    out = jax.block_until_ready(fwd(x, params))
    assert out.shape == (2, 1, 2, 2), out.shape

    ref = jax.block_until_ready(reference_forward(x, params))
    err = float(jnp.max(jnp.abs(out - ref)))
    assert jnp.allclose(out, ref, atol=2e-2, rtol=2e-2), err

    print("KERNEL_OK")
</pallas_src>

<mosaic_0001>
module attributes {stable_mosaic.version = 11 : i64} {
  func.func @_conv4x4_s2_kernel(%arg0: i32, %arg1: memref<1x17x17x12xbf16, #tpu.memory_space<vmem>>, %arg2: memref<4x12x64xbf16, #tpu.memory_space<vmem>>, %arg3: memref<1x64xf32, #tpu.memory_space<vmem>>, %arg4: memref<1x16x16x64xbf16, #tpu.memory_space<vmem>>) attributes {dimension_semantics = [#tpu.dimension_semantics<parallel>], iteration_bounds = array<i64: 2>, scalar_prefetch = 0 : i64, scratch_operands = 0 : i64, tpu.core_type = #tpu.core_type<tc>, window_params = [{transform_indices = @transform_0, window_bounds = array<i64: 1, 17, 17, 12>}, {pipeline_mode = #tpu.pipeline_mode<synchronous>, transform_indices = @transform_1, window_bounds = array<i64: 4, 12, 64>}, {pipeline_mode = #tpu.pipeline_mode<synchronous>, transform_indices = @transform_2, window_bounds = array<i64: 1, 64>}, {transform_indices = @transform_3, window_bounds = array<i64: 1, 16, 16, 64>}]} {
    %c0 = arith.constant 0 : index
    %c0_0 = arith.constant 0 : index
    %c0_1 = arith.constant 0 : index
    %c0_2 = arith.constant 0 : index
    %0 = vector.load %arg1[%c0, %c0_0, %c0_1, %c0_2] : memref<1x17x17x12xbf16, #tpu.memory_space<vmem>>, vector<1x17x17x12xbf16>
    %1 = vector.shape_cast %0 : vector<1x17x17x12xbf16> to vector<17x17x12xbf16>
    %c0_3 = arith.constant 0 : index
    %c0_4 = arith.constant 0 : index
    %2 = vector.load %arg3[%c0_3, %c0_4] : memref<1x64xf32, #tpu.memory_space<vmem>>, vector<1x64xf32>
    %cst = arith.constant 0.000000e+00 : f32
    %3 = vector.broadcast %cst : f32 to vector<256x64xf32>
    %4 = vector.extract_strided_slice %1 {offsets = [0, 0, 0], sizes = [16, 16, 12], strides = [1, 1, 1]} : vector<17x17x12xbf16> to vector<16x16x12xbf16>
    %5 = vector.shape_cast %4 : vector<16x16x12xbf16> to vector<256x12xbf16>
    %c0_5 = arith.constant 0 : index
    %c0_6 = arith.constant 0 : index
    %c0_7 = arith.constant 0 : index
    %6 = vector.load %arg2[%c0_5, %c0_6, %c0_7] : memref<4x12x64xbf16, #tpu.memory_space<vmem>>, vector<1x12x64xbf16>
    %7 = vector.shape_cast %6 : vector<1x12x64xbf16> to vector<12x64xbf16>
    %cst_8 = arith.constant dense<0.000000e+00> : vector<256x64xf32>
    %8 = tpu.matmul %5, %7, %cst_8 {dimension_numbers = #tpu.dot_dimension_numbers<[1], [0], [0], [1], [0, 0, 1, 1], [], []>} : vector<256x12xbf16>, vector<12x64xbf16>, vector<256x64xf32> -> vector<256x64xf32>
    %9 = arith.addf %3, %8 : vector<256x64xf32>
    %10 = vector.extract_strided_slice %1 {offsets = [0, 1, 0], sizes = [16, 16, 12], strides = [1, 1, 1]} : vector<17x17x12xbf16> to vector<16x16x12xbf16>
    %11 = vector.shape_cast %10 : vector<16x16x12xbf16> to vector<256x12xbf16>
    %c1 = arith.constant 1 : index
    %c0_9 = arith.constant 0 : index
    %c0_10 = arith.constant 0 : index
    %12 = vector.load %arg2[%c1, %c0_9, %c0_10] : memref<4x12x64xbf16, #tpu.memory_space<vmem>>, vector<1x12x64xbf16>
    %13 = vector.shape_cast %12 : vector<1x12x64xbf16> to vector<12x64xbf16>
    %cst_11 = arith.constant dense<0.000000e+00> : vector<256x64xf32>
    %14 = tpu.matmul %11, %13, %cst_11 {dimension_numbers = #tpu.dot_dimension_numbers<[1], [0], [0], [1], [0, 0, 1, 1], [], []>} : vector<256x12xbf16>, vector<12x64xbf16>, vector<256x64xf32> -> vector<256x64xf32>
    %15 = arith.addf %9, %14 : vector<256x64xf32>
    %16 = vector.extract_strided_slice %1 {offsets = [1, 0, 0], sizes = [16, 16, 12], strides = [1, 1, 1]} : vector<17x17x12xbf16> to vector<16x16x12xbf16>
    %17 = vector.shape_cast %16 : vector<16x16x12xbf16> to vector<256x12xbf16>
    %c2 = arith.constant 2 : index
    %c0_12 = arith.constant 0 : index
    %c0_13 = arith.constant 0 : index
    %18 = vector.load %arg2[%c2, %c0_12, %c0_13] : memref<4x12x64xbf16, #tpu.memory_space<vmem>>, vector<1x12x64xbf16>
    %19 = vector.shape_cast %18 : vector<1x12x64xbf16> to vector<12x64xbf16>
    %cst_14 = arith.constant dense<0.000000e+00> : vector<256x64xf32>
    %20 = tpu.matmul %17, %19, %cst_14 {dimension_numbers = #tpu.dot_dimension_numbers<[1], [0], [0], [1], [0, 0, 1, 1], [], []>} : vector<256x12xbf16>, vector<12x64xbf16>, vector<256x64xf32> -> vector<256x64xf32>
    %21 = arith.addf %15, %20 : vector<256x64xf32>
    %22 = vector.extract_strided_slice %1 {offsets = [1, 1, 0], sizes = [16, 16, 12], strides = [1, 1, 1]} : vector<17x17x12xbf16> to vector<16x16x12xbf16>
    %23 = vector.shape_cast %22 : vector<16x16x12xbf16> to vector<256x12xbf16>
    %c3 = arith.constant 3 : index
    %c0_15 = arith.constant 0 : index
    %c0_16 = arith.constant 0 : index
    %24 = vector.load %arg2[%c3, %c0_15, %c0_16] : memref<4x12x64xbf16, #tpu.memory_space<vmem>>, vector<1x12x64xbf16>
    %25 = vector.shape_cast %24 : vector<1x12x64xbf16> to vector<12x64xbf16>
    %cst_17 = arith.constant dense<0.000000e+00> : vector<256x64xf32>
    %26 = tpu.matmul %23, %25, %cst_17 {dimension_numbers = #tpu.dot_dimension_numbers<[1], [0], [0], [1], [0, 0, 1, 1], [], []>} : vector<256x12xbf16>, vector<12x64xbf16>, vector<256x64xf32> -> vector<256x64xf32>
    %27 = arith.addf %21, %26 : vector<256x64xf32>
    %28 = vector.broadcast %2 : vector<1x64xf32> to vector<256x64xf32>
    %29 = arith.addf %27, %28 : vector<256x64xf32>
    %cst_18 = arith.constant 0.000000e+00 : f32
    %30 = vector.broadcast %cst_18 : f32 to vector<256x64xf32>
    %31 = arith.cmpf oge, %29, %30 : vector<256x64xf32>
    %cst_19 = arith.constant 2.000000e-01 : f32
    %32 = vector.broadcast %cst_19 : f32 to vector<256x64xf32>
    %33 = arith.mulf %32, %29 : vector<256x64xf32>
    %34 = arith.select %31, %29, %33 : vector<256x64xi1>, vector<256x64xf32>
    %35 = vector.shape_cast %34 : vector<256x64xf32> to vector<1x16x16x64xf32>
    %36 = arith.truncf %35 : vector<1x16x16x64xf32> to vector<1x16x16x64xbf16>
    %c0_20 = arith.constant 0 : index
    %c0_21 = arith.constant 0 : index
    %c0_22 = arith.constant 0 : index
    %c0_23 = arith.constant 0 : index
    %37 = vector.load %arg4[%c0_20, %c0_21, %c0_22, %c0_23] : memref<1x16x16x64xbf16, #tpu.memory_space<vmem>>, vector<1x16x16x64xbf16>
    tpu.vector_store %arg4[%c0_20, %c0_21, %c0_22, %c0_23], %36 {strides = array<i32>} : memref<1x16x16x64xbf16, #tpu.memory_space<vmem>>, vector<1x16x16x64xbf16>,
    return
  }
  func.func @transform_0(%arg0: i32) -> (i32, i32, i32, i32) {
    %c0_i32 = arith.constant 0 : i32
    %c0_i32_0 = arith.constant 0 : i32
    %c0_i32_1 = arith.constant 0 : i32
    %c0_i32_2 = arith.constant 0 : i32
    return %arg0, %c0_i32, %c0_i32_0, %c0_i32_1 : i32, i32, i32, i32
  }
  func.func @transform_1(%arg0: i32) -> (i32, i32, i32) {
    %c0_i32 = arith.constant 0 : i32
    %c0_i32_0 = arith.constant 0 : i32
    %c0_i32_1 = arith.constant 0 : i32
    %c0_i32_2 = arith.constant 0 : i32
    return %c0_i32, %c0_i32_0, %c0_i32_1 : i32, i32, i32
  }
  func.func @transform_2(%arg0: i32) -> (i32, i32) {
    %c0_i32 = arith.constant 0 : i32
    %c0_i32_0 = arith.constant 0 : i32
    %c0_i32_1 = arith.constant 0 : i32
    return %c0_i32, %c0_i32_0 : i32, i32
  }
  func.func @transform_3(%arg0: i32) -> (i32, i32, i32, i32) {
    %c0_i32 = arith.constant 0 : i32
    %c0_i32_0 = arith.constant 0 : i32
    %c0_i32_1 = arith.constant 0 : i32
    %c0_i32_2 = arith.constant 0 : i32
    return %arg0, %c0_i32, %c0_i32_0, %c0_i32_1 : i32, i32, i32, i32
  }
}

module attributes {stable_mosaic.version = 11 : i64} {
  func.func @_conv4x4_s2_kernel(%arg0: i32, %arg1: memref<1x9x9x256xbf16, #tpu.memory_space<vmem>>, %arg2: memref<4x256x128xbf16, #tpu.memory_space<vmem>>, %arg3: memref<1x128xf32, #tpu.memory_space<vmem>>, %arg4: memref<1x8x8x128xbf16, #tpu.memory_space<vmem>>) attributes {dimension_semantics = [#tpu.dimension_semantics<parallel>], iteration_bounds = array<i64: 2>, scalar_prefetch = 0 : i64, scratch_operands = 0 : i64, tpu.core_type = #tpu.core_type<tc>, window_params = [{transform_indices = @transform_0, window_bounds = array<i64: 1, 9, 9, 256>}, {pipeline_mode = #tpu.pipeline_mode<synchronous>, transform_indices = @transform_1, window_bounds = array<i64: 4, 256, 128>}, {pipeline_mode = #tpu.pipeline_mode<synchronous>, transform_indices = @transform_2, window_bounds = array<i64: 1, 128>}, {transform_indices = @transform_3, window_bounds = array<i64: 1, 8, 8, 128>}]} {
    %c0 = arith.constant 0 : index
    %c0_0 = arith.constant 0 : index
    %c0_1 = arith.constant 0 : index
    %c0_2 = arith.constant 0 : index
    %0 = vector.load %arg1[%c0, %c0_0, %c0_1, %c0_2] : memref<1x9x9x256xbf16, #tpu.memory_space<vmem>>, vector<1x9x9x256xbf16>
    %1 = vector.shape_cast %0 : vector<1x9x9x256xbf16> to vector<9x9x256xbf16>
    %c0_3 = arith.constant 0 : index
    %c0_4 = arith.constant 0 : index
    %2 = vector.load %arg3[%c0_3, %c0_4] : memref<1x128xf32, #tpu.memory_space<vmem>>, vector<1x128xf32>
    %cst = arith.constant 0.000000e+00 : f32
    %3 = vector.broadcast %cst : f32 to vector<64x128xf32>
    %4 = vector.extract_strided_slice %1 {offsets = [0, 0, 0], sizes = [8, 8, 256], strides = [1, 1, 1]} : vector<9x9x256xbf16> to vector<8x8x256xbf16>
    %5 = vector.shape_cast %4 : vector<8x8x256xbf16> to vector<64x256xbf16>
    %c0_5 = arith.constant 0 : index
    %c0_6 = arith.constant 0 : index
    %c0_7 = arith.constant 0 : index
    %6 = vector.load %arg2[%c0_5, %c0_6, %c0_7] : memref<4x256x128xbf16, #tpu.memory_space<vmem>>, vector<1x256x128xbf16>
    %7 = vector.shape_cast %6 : vector<1x256x128xbf16> to vector<256x128xbf16>
    %cst_8 = arith.constant dense<0.000000e+00> : vector<64x128xf32>
    %8 = tpu.matmul %5, %7, %cst_8 {dimension_numbers = #tpu.dot_dimension_numbers<[1], [0], [0], [1], [0, 0, 1, 1], [], []>} : vector<64x256xbf16>, vector<256x128xbf16>, vector<64x128xf32> -> vector<64x128xf32>
    %9 = arith.addf %3, %8 : vector<64x128xf32>
    %10 = vector.extract_strided_slice %1 {offsets = [0, 1, 0], sizes = [8, 8, 256], strides = [1, 1, 1]} : vector<9x9x256xbf16> to vector<8x8x256xbf16>
    %11 = vector.shape_cast %10 : vector<8x8x256xbf16> to vector<64x256xbf16>
    %c1 = arith.constant 1 : index
    %c0_9 = arith.constant 0 : index
    %c0_10 = arith.constant 0 : index
    %12 = vector.load %arg2[%c1, %c0_9, %c0_10] : memref<4x256x128xbf16, #tpu.memory_space<vmem>>, vector<1x256x128xbf16>
    %13 = vector.shape_cast %12 : vector<1x256x128xbf16> to vector<256x128xbf16>
    %cst_11 = arith.constant dense<0.000000e+00> : vector<64x128xf32>
    %14 = tpu.matmul %11, %13, %cst_11 {dimension_numbers = #tpu.dot_dimension_numbers<[1], [0], [0], [1], [0, 0, 1, 1], [], []>} : vector<64x256xbf16>, vector<256x128xbf16>, vector<64x128xf32> -> vector<64x128xf32>
    %15 = arith.addf %9, %14 : vector<64x128xf32>
    %16 = vector.extract_strided_slice %1 {offsets = [1, 0, 0], sizes = [8, 8, 256], strides = [1, 1, 1]} : vector<9x9x256xbf16> to vector<8x8x256xbf16>
    %17 = vector.shape_cast %16 : vector<8x8x256xbf16> to vector<64x256xbf16>
    %c2 = arith.constant 2 : index
    %c0_12 = arith.constant 0 : index
    %c0_13 = arith.constant 0 : index
    %18 = vector.load %arg2[%c2, %c0_12, %c0_13] : memref<4x256x128xbf16, #tpu.memory_space<vmem>>, vector<1x256x128xbf16>
    %19 = vector.shape_cast %18 : vector<1x256x128xbf16> to vector<256x128xbf16>
    %cst_14 = arith.constant dense<0.000000e+00> : vector<64x128xf32>
    %20 = tpu.matmul %17, %19, %cst_14 {dimension_numbers = #tpu.dot_dimension_numbers<[1], [0], [0], [1], [0, 0, 1, 1], [], []>} : vector<64x256xbf16>, vector<256x128xbf16>, vector<64x128xf32> -> vector<64x128xf32>
    %21 = arith.addf %15, %20 : vector<64x128xf32>
    %22 = vector.extract_strided_slice %1 {offsets = [1, 1, 0], sizes = [8, 8, 256], strides = [1, 1, 1]} : vector<9x9x256xbf16> to vector<8x8x256xbf16>
    %23 = vector.shape_cast %22 : vector<8x8x256xbf16> to vector<64x256xbf16>
    %c3 = arith.constant 3 : index
    %c0_15 = arith.constant 0 : index
    %c0_16 = arith.constant 0 : index
    %24 = vector.load %arg2[%c3, %c0_15, %c0_16] : memref<4x256x128xbf16, #tpu.memory_space<vmem>>, vector<1x256x128xbf16>
    %25 = vector.shape_cast %24 : vector<1x256x128xbf16> to vector<256x128xbf16>
    %cst_17 = arith.constant dense<0.000000e+00> : vector<64x128xf32>
    %26 = tpu.matmul %23, %25, %cst_17 {dimension_numbers = #tpu.dot_dimension_numbers<[1], [0], [0], [1], [0, 0, 1, 1], [], []>} : vector<64x256xbf16>, vector<256x128xbf16>, vector<64x128xf32> -> vector<64x128xf32>
    %27 = arith.addf %21, %26 : vector<64x128xf32>
    %28 = vector.broadcast %2 : vector<1x128xf32> to vector<64x128xf32>
    %29 = arith.addf %27, %28 : vector<64x128xf32>
    %cst_18 = arith.constant 0.000000e+00 : f32
    %30 = vector.broadcast %cst_18 : f32 to vector<64x128xf32>
    %31 = arith.cmpf oge, %29, %30 : vector<64x128xf32>
    %cst_19 = arith.constant 2.000000e-01 : f32
    %32 = vector.broadcast %cst_19 : f32 to vector<64x128xf32>
    %33 = arith.mulf %32, %29 : vector<64x128xf32>
    %34 = arith.select %31, %29, %33 : vector<64x128xi1>, vector<64x128xf32>
    %35 = vector.shape_cast %34 : vector<64x128xf32> to vector<1x8x8x128xf32>
    %36 = arith.truncf %35 : vector<1x8x8x128xf32> to vector<1x8x8x128xbf16>
    %c0_20 = arith.constant 0 : index
    %c0_21 = arith.constant 0 : index
    %c0_22 = arith.constant 0 : index
    %c0_23 = arith.constant 0 : index
    %37 = vector.load %arg4[%c0_20, %c0_21, %c0_22, %c0_23] : memref<1x8x8x128xbf16, #tpu.memory_space<vmem>>, vector<1x8x8x128xbf16>
    tpu.vector_store %arg4[%c0_20, %c0_21, %c0_22, %c0_23], %36 {strides = array<i32>} : memref<1x8x8x128xbf16, #tpu.memory_space<vmem>>, vector<1x8x8x128xbf16>,
    return
  }
  func.func @transform_0(%arg0: i32) -> (i32, i32, i32, i32) {
    %c0_i32 = arith.constant 0 : i32
    %c0_i32_0 = arith.constant 0 : i32
    %c0_i32_1 = arith.constant 0 : i32
    %c0_i32_2 = arith.constant 0 : i32
    return %arg0, %c0_i32, %c0_i32_0, %c0_i32_1 : i32, i32, i32, i32
  }
  func.func @transform_1(%arg0: i32) -> (i32, i32, i32) {
    %c0_i32 = arith.constant 0 : i32
    %c0_i32_0 = arith.constant 0 : i32
    %c0_i32_1 = arith.constant 0 : i32
    %c0_i32_2 = arith.constant 0 : i32
    return %c0_i32, %c0_i32_0, %c0_i32_1 : i32, i32, i32
  }
  func.func @transform_2(%arg0: i32) -> (i32, i32) {
    %c0_i32 = arith.constant 0 : i32
    %c0_i32_0 = arith.constant 0 : i32
    %c0_i32_1 = arith.constant 0 : i32
    return %c0_i32, %c0_i32_0 : i32, i32
  }
  func.func @transform_3(%arg0: i32) -> (i32, i32, i32, i32) {
    %c0_i32 = arith.constant 0 : i32
    %c0_i32_0 = arith.constant 0 : i32
    %c0_i32_1 = arith.constant 0 : i32
    %c0_i32_2 = arith.constant 0 : i32
    return %arg0, %c0_i32, %c0_i32_0, %c0_i32_1 : i32, i32, i32, i32
  }
}

module attributes {stable_mosaic.version = 11 : i64} {
  func.func @_conv4x4_s2_kernel(%arg0: i32, %arg1: memref<1x5x5x512xbf16, #tpu.memory_space<vmem>>, %arg2: memref<4x512x256xbf16, #tpu.memory_space<vmem>>, %arg3: memref<1x256xf32, #tpu.memory_space<vmem>>, %arg4: memref<1x4x4x256xbf16, #tpu.memory_space<vmem>>) attributes {dimension_semantics = [#tpu.dimension_semantics<parallel>], iteration_bounds = array<i64: 2>, scalar_prefetch = 0 : i64, scratch_operands = 0 : i64, tpu.core_type = #tpu.core_type<tc>, window_params = [{transform_indices = @transform_0, window_bounds = array<i64: 1, 5, 5, 512>}, {pipeline_mode = #tpu.pipeline_mode<synchronous>, transform_indices = @transform_1, window_bounds = array<i64: 4, 512, 256>}, {pipeline_mode = #tpu.pipeline_mode<synchronous>, transform_indices = @transform_2, window_bounds = array<i64: 1, 256>}, {transform_indices = @transform_3, window_bounds = array<i64: 1, 4, 4, 256>}]} {
    %c0 = arith.constant 0 : index
    %c0_0 = arith.constant 0 : index
    %c0_1 = arith.constant 0 : index
    %c0_2 = arith.constant 0 : index
    %0 = vector.load %arg1[%c0, %c0_0, %c0_1, %c0_2] : memref<1x5x5x512xbf16, #tpu.memory_space<vmem>>, vector<1x5x5x512xbf16>
    %1 = vector.shape_cast %0 : vector<1x5x5x512xbf16> to vector<5x5x512xbf16>
    %c0_3 = arith.constant 0 : index
    %c0_4 = arith.constant 0 : index
    %2 = vector.load %arg3[%c0_3, %c0_4] : memref<1x256xf32, #tpu.memory_space<vmem>>, vector<1x256xf32>
    %cst = arith.constant 0.000000e+00 : f32
    %3 = vector.broadcast %cst : f32 to vector<4x256xf32>
    %4 = vector.extract_strided_slice %1 {offsets = [0, 0, 0], sizes = [1, 4, 512], strides = [1, 1, 1]} : vector<5x5x512xbf16> to vector<1x4x512xbf16>
    %5 = vector.shape_cast %4 : vector<1x4x512xbf16> to vector<4x512xbf16>
    %c0_5 = arith.constant 0 : index
    %c0_6 = arith.constant 0 : index
    %c0_7 = arith.constant 0 : index
    %6 = vector.load %arg2[%c0_5, %c0_6, %c0_7] : memref<4x512x256xbf16, #tpu.memory_space<vmem>>, vector<1x512x256xbf16>
    %7 = vector.shape_cast %6 : vector<1x512x256xbf16> to vector<512x256xbf16>
    %cst_8 = arith.constant dense<0.000000e+00> : vector<4x256xf32>
    %8 = tpu.matmul %5, %7, %cst_8 {dimension_numbers = #tpu.dot_dimension_numbers<[1], [0], [0], [1], [0, 0, 1, 1], [], []>} : vector<4x512xbf16>, vector<512x256xbf16>, vector<4x256xf32> -> vector<4x256xf32>
    %9 = arith.addf %3, %8 : vector<4x256xf32>
    %10 = vector.extract_strided_slice %1 {offsets = [0, 1, 0], sizes = [1, 4, 512], strides = [1, 1, 1]} : vector<5x5x512xbf16> to vector<1x4x512xbf16>
    %11 = vector.shape_cast %10 : vector<1x4x512xbf16> to vector<4x512xbf16>
    %c1 = arith.constant 1 : index
    %c0_9 = arith.constant 0 : index
    %c0_10 = arith.constant 0 : index
    %12 = vector.load %arg2[%c1, %c0_9, %c0_10] : memref<4x512x256xbf16, #tpu.memory_space<vmem>>, vector<1x512x256xbf16>
    %13 = vector.shape_cast %12 : vector<1x512x256xbf16> to vector<512x256xbf16>
    %cst_11 = arith.constant dense<0.000000e+00> : vector<4x256xf32>
    %14 = tpu.matmul %11, %13, %cst_11 {dimension_numbers = #tpu.dot_dimension_numbers<[1], [0], [0], [1], [0, 0, 1, 1], [], []>} : vector<4x512xbf16>, vector<512x256xbf16>, vector<4x256xf32> -> vector<4x256xf32>
    %15 = arith.addf %9, %14 : vector<4x256xf32>
    %16 = vector.extract_strided_slice %1 {offsets = [1, 0, 0], sizes = [1, 4, 512], strides = [1, 1, 1]} : vector<5x5x512xbf16> to vector<1x4x512xbf16>
    %17 = vector.shape_cast %16 : vector<1x4x512xbf16> to vector<4x512xbf16>
    %c2 = arith.constant 2 : index
    %c0_12 = arith.constant 0 : index
    %c0_13 = arith.constant 0 : index
    %18 = vector.load %arg2[%c2, %c0_12, %c0_13] : memref<4x512x256xbf16, #tpu.memory_space<vmem>>, vector<1x512x256xbf16>
    %19 = vector.shape_cast %18 : vector<1x512x256xbf16> to vector<512x256xbf16>
    %cst_14 = arith.constant dense<0.000000e+00> : vector<4x256xf32>
    %20 = tpu.matmul %17, %19, %cst_14 {dimension_numbers = #tpu.dot_dimension_numbers<[1], [0], [0], [1], [0, 0, 1, 1], [], []>} : vector<4x512xbf16>, vector<512x256xbf16>, vector<4x256xf32> -> vector<4x256xf32>
    %21 = arith.addf %15, %20 : vector<4x256xf32>
    %22 = vector.extract_strided_slice %1 {offsets = [1, 1, 0], sizes = [1, 4, 512], strides = [1, 1, 1]} : vector<5x5x512xbf16> to vector<1x4x512xbf16>
    %23 = vector.shape_cast %22 : vector<1x4x512xbf16> to vector<4x512xbf16>
    %c3 = arith.constant 3 : index
    %c0_15 = arith.constant 0 : index
    %c0_16 = arith.constant 0 : index
    %24 = vector.load %arg2[%c3, %c0_15, %c0_16] : memref<4x512x256xbf16, #tpu.memory_space<vmem>>, vector<1x512x256xbf16>
    %25 = vector.shape_cast %24 : vector<1x512x256xbf16> to vector<512x256xbf16>
    %cst_17 = arith.constant dense<0.000000e+00> : vector<4x256xf32>
    %26 = tpu.matmul %23, %25, %cst_17 {dimension_numbers = #tpu.dot_dimension_numbers<[1], [0], [0], [1], [0, 0, 1, 1], [], []>} : vector<4x512xbf16>, vector<512x256xbf16>, vector<4x256xf32> -> vector<4x256xf32>
    %27 = arith.addf %21, %26 : vector<4x256xf32>
    %28 = vector.broadcast %2 : vector<1x256xf32> to vector<4x256xf32>
    %29 = arith.addf %27, %28 : vector<4x256xf32>
    %cst_18 = arith.constant 0.000000e+00 : f32
    %30 = vector.broadcast %cst_18 : f32 to vector<4x256xf32>
    %31 = arith.cmpf oge, %29, %30 : vector<4x256xf32>
    %cst_19 = arith.constant 2.000000e-01 : f32
    %32 = vector.broadcast %cst_19 : f32 to vector<4x256xf32>
    %33 = arith.mulf %32, %29 : vector<4x256xf32>
    %34 = arith.select %31, %29, %33 : vector<4x256xi1>, vector<4x256xf32>
    %35 = arith.truncf %34 : vector<4x256xf32> to vector<4x256xbf16>
    %c0_20 = arith.constant 0 : index
    %c0_21 = arith.constant 0 : index
    %c0_22 = arith.constant 0 : index
    %c0_23 = arith.constant 0 : index
    %36 = vector.load %arg4[%c0_20, %c0_21, %c0_22, %c0_23] : memref<1x4x4x256xbf16, #tpu.memory_space<vmem>>, vector<1x1x4x256xbf16>
    %37 = vector.shape_cast %36 : vector<1x1x4x256xbf16> to vector<4x256xbf16>
    %38 = vector.shape_cast %35 : vector<4x256xbf16> to vector<1x1x4x256xbf16>
    tpu.vector_store %arg4[%c0_20, %c0_21, %c0_22, %c0_23], %38 {strides = array<i32>} : memref<1x4x4x256xbf16, #tpu.memory_space<vmem>>, vector<1x1x4x256xbf16>,
    %cst_24 = arith.constant 0.000000e+00 : f32
    %39 = vector.broadcast %cst_24 : f32 to vector<4x256xf32>
    %40 = vector.extract_strided_slice %1 {offsets = [1, 0, 0], sizes = [1, 4, 512], strides = [1, 1, 1]} : vector<5x5x512xbf16> to vector<1x4x512xbf16>
    %41 = vector.shape_cast %40 : vector<1x4x512xbf16> to vector<4x512xbf16>
    %c0_25 = arith.constant 0 : index
    %c0_26 = arith.constant 0 : index
    %c0_27 = arith.constant 0 : index
    %42 = vector.load %arg2[%c0_25, %c0_26, %c0_27] : memref<4x512x256xbf16, #tpu.memory_space<vmem>>, vector<1x512x256xbf16>
    %43 = vector.shape_cast %42 : vector<1x512x256xbf16> to vector<512x256xbf16>
    %cst_28 = arith.constant dense<0.000000e+00> : vector<4x256xf32>
    %44 = tpu.matmul %41, %43, %cst_28 {dimension_numbers = #tpu.dot_dimension_numbers<[1], [0], [0], [1], [0, 0, 1, 1], [], []>} : vector<4x512xbf16>, vector<512x256xbf16>, vector<4x256xf32> -> vector<4x256xf32>
    %45 = arith.addf %39, %44 : vector<4x256xf32>
    %46 = vector.extract_strided_slice %1 {offsets = [1, 1, 0], sizes = [1, 4, 512], strides = [1, 1, 1]} : vector<5x5x512xbf16> to vector<1x4x512xbf16>
    %47 = vector.shape_cast %46 : vector<1x4x512xbf16> to vector<4x512xbf16>
    %c1_29 = arith.constant 1 : index
    %c0_30 = arith.constant 0 : index
    %c0_31 = arith.constant 0 : index
    %48 = vector.load %arg2[%c1_29, %c0_30, %c0_31] : memref<4x512x256xbf16, #tpu.memory_space<vmem>>, vector<1x512x256xbf16>
    %49 = vector.shape_cast %48 : vector<1x512x256xbf16> to vector<512x256xbf16>
    %cst_32 = arith.constant dense<0.000000e+00> : vector<4x256xf32>
    %50 = tpu.matmul %47, %49, %cst_32 {dimension_numbers = #tpu.dot_dimension_numbers<[1], [0], [0], [1], [0, 0, 1, 1], [], []>} : vector<4x512xbf16>, vector<512x256xbf16>, vector<4x256xf32> -> vector<4x256xf32>
    %51 = arith.addf %45, %50 : vector<4x256xf32>
    %52 = vector.extract_strided_slice %1 {offsets = [2, 0, 0], sizes = [1, 4, 512], strides = [1, 1, 1]} : vector<5x5x512xbf16> to vector<1x4x512xbf16>
    %53 = vector.shape_cast %52 : vector<1x4x512xbf16> to vector<4x512xbf16>
    %c2_33 = arith.constant 2 : index
    %c0_34 = arith.constant 0 : index
    %c0_35 = arith.constant 0 : index
    %54 = vector.load %arg2[%c2_33, %c0_34, %c0_35] : memref<4x512x256xbf16, #tpu.memory_space<vmem>>, vector<1x512x256xbf16>
    %55 = vector.shape_cast %54 : vector<1x512x256xbf16> to vector<512x256xbf16>
    %cst_36 = arith.constant dense<0.000000e+00> : vector<4x256xf32>
    %56 = tpu.matmul %53, %55, %cst_36 {dimension_numbers = #tpu.dot_dimension_numbers<[1], [0], [0], [1], [0, 0, 1, 1], [], []>} : vector<4x512xbf16>, vector<512x256xbf16>, vector<4x256xf32> -> vector<4x256xf32>
    %57 = arith.addf %51, %56 : vector<4x256xf32>
    %58 = vector.extract_strided_slice %1 {offsets = [2, 1, 0], sizes = [1, 4, 512], strides = [1, 1, 1]} : vector<5x5x512xbf16> to vector<1x4x512xbf16>
    %59 = vector.shape_cast %58 : vector<1x4x512xbf16> to vector<4x512xbf16>
    %c3_37 = arith.constant 3 : index
    %c0_38 = arith.constant 0 : index
    %c0_39 = arith.constant 0 : index
    %60 = vector.load %arg2[%c3_37, %c0_38, %c0_39] : memref<4x512x256xbf16, #tpu.memory_space<vmem>>, vector<1x512x256xbf16>
    %61 = vector.shape_cast %60 : vector<1x512x256xbf16> to vector<512x256xbf16>
    %cst_40 = arith.constant dense<0.000000e+00> : vector<4x256xf32>
    %62 = tpu.matmul %59, %61, %cst_40 {dimension_numbers = #tpu.dot_dimension_numbers<[1], [0], [0], [1], [0, 0, 1, 1], [], []>} : vector<4x512xbf16>, vector<512x256xbf16>, vector<4x256xf32> -> vector<4x256xf32>
    %63 = arith.addf %57, %62 : vector<4x256xf32>
    %64 = vector.broadcast %2 : vector<1x256xf32> to vector<4x256xf32>
    %65 = arith.addf %63, %64 : vector<4x256xf32>
    %cst_41 = arith.constant 0.000000e+00 : f32
    %66 = vector.broadcast %cst_41 : f32 to vector<4x256xf32>
    %67 = arith.cmpf oge, %65, %66 : vector<4x256xf32>
    %cst_42 = arith.constant 2.000000e-01 : f32
    %68 = vector.broadcast %cst_42 : f32 to vector<4x256xf32>
    %69 = arith.mulf %68, %65 : vector<4x256xf32>
    %70 = arith.select %67, %65, %69 : vector<4x256xi1>, vector<4x256xf32>
    %71 = arith.truncf %70 : vector<4x256xf32> to vector<4x256xbf16>
    %c0_43 = arith.constant 0 : index
    %c1_44 = arith.constant 1 : index
    %c0_45 = arith.constant 0 : index
    %c0_46 = arith.constant 0 : index
    %72 = vector.load %arg4[%c0_43, %c1_44, %c0_45, %c0_46] : memref<1x4x4x256xbf16, #tpu.memory_space<vmem>>, vector<1x1x4x256xbf16>
    %73 = vector.shape_cast %72 : vector<1x1x4x256xbf16> to vector<4x256xbf16>
    %74 = vector.shape_cast %71 : vector<4x256xbf16> to vector<1x1x4x256xbf16>
    tpu.vector_store %arg4[%c0_43, %c1_44, %c0_45, %c0_46], %74 {strides = array<i32>} : memref<1x4x4x256xbf16, #tpu.memory_space<vmem>>, vector<1x1x4x256xbf16>,
    %cst_47 = arith.constant 0.000000e+00 : f32
    %75 = vector.broadcast %cst_47 : f32 to vector<4x256xf32>
    %76 = vector.extract_strided_slice %1 {offsets = [2, 0, 0], sizes = [1, 4, 512], strides = [1, 1, 1]} : vector<5x5x512xbf16> to vector<1x4x512xbf16>
    %77 = vector.shape_cast %76 : vector<1x4x512xbf16> to vector<4x512xbf16>
    %c0_48 = arith.constant 0 : index
    %c0_49 = arith.constant 0 : index
    %c0_50 = arith.constant 0 : index
    %78 = vector.load %arg2[%c0_48, %c0_49, %c0_50] : memref<4x512x256xbf16, #tpu.memory_space<vmem>>, vector<1x512x256xbf16>
    %79 = vector.shape_cast %78 : vector<1x512x256xbf16> to vector<512x256xbf16>
    %cst_51 = arith.constant dense<0.000000e+00> : vector<4x256xf32>
    %80 = tpu.matmul %77, %79, %cst_51 {dimension_numbers = #tpu.dot_dimension_numbers<[1], [0], [0], [1], [0, 0, 1, 1], [], []>} : vector<4x512xbf16>, vector<512x256xbf16>, vector<4x256xf32> -> vector<4x256xf32>
    %81 = arith.addf %75, %80 : vector<4x256xf32>
    %82 = vector.extract_strided_slice %1 {offsets = [2, 1, 0], sizes = [1, 4, 512], strides = [1, 1, 1]} : vector<5x5x512xbf16> to vector<1x4x512xbf16>
    %83 = vector.shape_cast %82 : vector<1x4x512xbf16> to vector<4x512xbf16>
    %c1_52 = arith.constant 1 : index
    %c0_53 = arith.constant 0 : index
    %c0_54 = arith.constant 0 : index
    %84 = vector.load %arg2[%c1_52, %c0_53, %c0_54] : memref<4x512x256xbf16, #tpu.memory_space<vmem>>, vector<1x512x256xbf16>
    %85 = vector.shape_cast %84 : vector<1x512x256xbf16> to vector<512x256xbf16>
    %cst_55 = arith.constant dense<0.000000e+00> : vector<4x256xf32>
    %86 = tpu.matmul %83, %85, %cst_55 {dimension_numbers = #tpu.dot_dimension_numbers<[1], [0], [0], [1], [0, 0, 1, 1], [], []>} : vector<4x512xbf16>, vector<512x256xbf16>, vector<4x256xf32> -> vector<4x256xf32>
    %87 = arith.addf %81, %86 : vector<4x256xf32>
    %88 = vector.extract_strided_slice %1 {offsets = [3, 0, 0], sizes = [1, 4, 512], strides = [1, 1, 1]} : vector<5x5x512xbf16> to vector<1x4x512xbf16>
    %89 = vector.shape_cast %88 : vector<1x4x512xbf16> to vector<4x512xbf16>
    %c2_56 = arith.constant 2 : index
    %c0_57 = arith.constant 0 : index
    %c0_58 = arith.constant 0 : index
    %90 = vector.load %arg2[%c2_56, %c0_57, %c0_58] : memref<4x512x256xbf16, #tpu.memory_space<vmem>>, vector<1x512x256xbf16>
    %91 = vector.shape_cast %90 : vector<1x512x256xbf16> to vector<512x256xbf16>
    %cst_59 = arith.constant dense<0.000000e+00> : vector<4x256xf32>
    %92 = tpu.matmul %89, %91, %cst_59 {dimension_numbers = #tpu.dot_dimension_numbers<[1], [0], [0], [1], [0, 0, 1, 1], [], []>} : vector<4x512xbf16>, vector<512x256xbf16>, vector<4x256xf32> -> vector<4x256xf32>
    %93 = arith.addf %87, %92 : vector<4x256xf32>
    %94 = vector.extract_strided_slice %1 {offsets = [3, 1, 0], sizes = [1, 4, 512], strides = [1, 1, 1]} : vector<5x5x512xbf16> to vector<1x4x512xbf16>
    %95 = vector.shape_cast %94 : vector<1x4x512xbf16> to vector<4x512xbf16>
    %c3_60 = arith.constant 3 : index
    %c0_61 = arith.constant 0 : index
    %c0_62 = arith.constant 0 : index
    %96 = vector.load %arg2[%c3_60, %c0_61, %c0_62] : memref<4x512x256xbf16, #tpu.memory_space<vmem>>, vector<1x512x256xbf16>
    %97 = vector.shape_cast %96 : vector<1x512x256xbf16> to vector<512x256xbf16>
    %cst_63 = arith.constant dense<0.000000e+00> : vector<4x256xf32>
    %98 = tpu.matmul %95, %97, %cst_63 {dimension_numbers = #tpu.dot_dimension_numbers<[1], [0], [0], [1], [0, 0, 1, 1], [], []>} : vector<4x512xbf16>, vector<512x256xbf16>, vector<4x256xf32> -> vector<4x256xf32>
    %99 = arith.addf %93, %98 : vector<4x256xf32>
    %100 = vector.broadcast %2 : vector<1x256xf32> to vector<4x256xf32>
    %101 = arith.addf %99, %100 : vector<4x256xf32>
    %cst_64 = arith.constant 0.000000e+00 : f32
    %102 = vector.broadcast %cst_64 : f32 to vector<4x256xf32>
    %103 = arith.cmpf oge, %101, %102 : vector<4x256xf32>
    %cst_65 = arith.constant 2.000000e-01 : f32
    %104 = vector.broadcast %cst_65 : f32 to vector<4x256xf32>
    %105 = arith.mulf %104, %101 : vector<4x256xf32>
    %106 = arith.select %103, %101, %105 : vector<4x256xi1>, vector<4x256xf32>
    %107 = arith.truncf %106 : vector<4x256xf32> to vector<4x256xbf16>
    %c0_66 = arith.constant 0 : index
    %c2_67 = arith.constant 2 : index
    %c0_68 = arith.constant 0 : index
    %c0_69 = arith.constant 0 : index
    %108 = vector.load %arg4[%c0_66, %c2_67, %c0_68, %c0_69] : memref<1x4x4x256xbf16, #tpu.memory_space<vmem>>, vector<1x1x4x256xbf16>
    %109 = vector.shape_cast %108 : vector<1x1x4x256xbf16> to vector<4x256xbf16>
    %110 = vector.shape_cast %107 : vector<4x256xbf16> to vector<1x1x4x256xbf16>
    tpu.vector_store %arg4[%c0_66, %c2_67, %c0_68, %c0_69], %110 {strides = array<i32>} : memref<1x4x4x256xbf16, #tpu.memory_space<vmem>>, vector<1x1x4x256xbf16>,
    %cst_70 = arith.constant 0.000000e+00 : f32
    %111 = vector.broadcast %cst_70 : f32 to vector<4x256xf32>
    %112 = vector.extract_strided_slice %1 {offsets = [3, 0, 0], sizes = [1, 4, 512], strides = [1, 1, 1]} : vector<5x5x512xbf16> to vector<1x4x512xbf16>
    %113 = vector.shape_cast %112 : vector<1x4x512xbf16> to vector<4x512xbf16>
    %c0_71 = arith.constant 0 : index
    %c0_72 = arith.constant 0 : index
    %c0_73 = arith.constant 0 : index
    %114 = vector.load %arg2[%c0_71, %c0_72, %c0_73] : memref<4x512x256xbf16, #tpu.memory_space<vmem>>, vector<1x512x256xbf16>
    %115 = vector.shape_cast %114 : vector<1x512x256xbf16> to vector<512x256xbf16>
    %cst_74 = arith.constant dense<0.000000e+00> : vector<4x256xf32>
    %116 = tpu.matmul %113, %115, %cst_74 {dimension_numbers = #tpu.dot_dimension_numbers<[1], [0], [0], [1], [0, 0, 1, 1], [], []>} : vector<4x512xbf16>, vector<512x256xbf16>, vector<4x256xf32> -> vector<4x256xf32>
    %117 = arith.addf %111, %116 : vector<4x256xf32>
    %118 = vector.extract_strided_slice %1 {offsets = [3, 1, 0], sizes = [1, 4, 512], strides = [1, 1, 1]} : vector<5x5x512xbf16> to vector<1x4x512xbf16>
    %119 = vector.shape_cast %118 : vector<1x4x512xbf16> to vector<4x512xbf16>
    %c1_75 = arith.constant 1 : index
    %c0_76 = arith.constant 0 : index
    %c0_77 = arith.constant 0 : index
    %120 = vector.load %arg2[%c1_75, %c0_76, %c0_77] : memref<4x512x256xbf16, #tpu.memory_space<vmem>>, vector<1x512x256xbf16>
    %121 = vector.shape_cast %120 : vector<1x512x256xbf16> to vector<512x256xbf16>
    %cst_78 = arith.constant dense<0.000000e+00> : vector<4x256xf32>
    %122 = tpu.matmul %119, %121, %cst_78 {dimension_numbers = #tpu.dot_dimension_numbers<[1], [0], [0], [1], [0, 0, 1, 1], [], []>} : vector<4x512xbf16>, vector<512x256xbf16>, vector<4x256xf32> -> vector<4x256xf32>
    %123 = arith.addf %117, %122 : vector<4x256xf32>
    %124 = vector.extract_strided_slice %1 {offsets = [4, 0, 0], sizes = [1, 4, 512], strides = [1, 1, 1]} : vector<5x5x512xbf16> to vector<1x4x512xbf16>
    %125 = vector.shape_cast %124 : vector<1x4x512xbf16> to vector<4x512xbf16>
    %c2_79 = arith.constant 2 : index
    %c0_80 = arith.constant 0 : index
    %c0_81 = arith.constant 0 : index
    %126 = vector.load %arg2[%c2_79, %c0_80, %c0_81] : memref<4x512x256xbf16, #tpu.memory_space<vmem>>, vector<1x512x256xbf16>
    %127 = vector.shape_cast %126 : vector<1x512x256xbf16> to vector<512x256xbf16>
    %cst_82 = arith.constant dense<0.000000e+00> : vector<4x256xf32>
    %128 = tpu.matmul %125, %127, %cst_82 {dimension_numbers = #tpu.dot_dimension_numbers<[1], [0], [0], [1], [0, 0, 1, 1], [], []>} : vector<4x512xbf16>, vector<512x256xbf16>, vector<4x256xf32> -> vector<4x256xf32>
    %129 = arith.addf %123, %128 : vector<4x256xf32>
    %130 = vector.extract_strided_slice %1 {offsets = [4, 1, 0], sizes = [1, 4, 512], strides = [1, 1, 1]} : vector<5x5x512xbf16> to vector<1x4x512xbf16>
    %131 = vector.shape_cast %130 : vector<1x4x512xbf16> to vector<4x512xbf16>
    %c3_83 = arith.constant 3 : index
    %c0_84 = arith.constant 0 : index
    %c0_85 = arith.constant 0 : index
    %132 = vector.load %arg2[%c3_83, %c0_84, %c0_85] : memref<4x512x256xbf16, #tpu.memory_space<vmem>>, vector<1x512x256xbf16>
    %133 = vector.shape_cast %132 : vector<1x512x256xbf16> to vector<512x256xbf16>
    %cst_86 = arith.constant dense<0.000000e+00> : vector<4x256xf32>
    %134 = tpu.matmul %131, %133, %cst_86 {dimension_numbers = #tpu.dot_dimension_numbers<[1], [0], [0], [1], [0, 0, 1, 1], [], []>} : vector<4x512xbf16>, vector<512x256xbf16>, vector<4x256xf32> -> vector<4x256xf32>
    %135 = arith.addf %129, %134 : vector<4x256xf32>
    %136 = vector.broadcast %2 : vector<1x256xf32> to vector<4x256xf32>
    %137 = arith.addf %135, %136 : vector<4x256xf32>
    %cst_87 = arith.constant 0.000000e+00 : f32
    %138 = vector.broadcast %cst_87 : f32 to vector<4x256xf32>
    %139 = arith.cmpf oge, %137, %138 : vector<4x256xf32>
    %cst_88 = arith.constant 2.000000e-01 : f32
    %140 = vector.broadcast %cst_88 : f32 to vector<4x256xf32>
    %141 = arith.mulf %140, %137 : vector<4x256xf32>
    %142 = arith.select %139, %137, %141 : vector<4x256xi1>, vector<4x256xf32>
    %143 = arith.truncf %142 : vector<4x256xf32> to vector<4x256xbf16>
    %c0_89 = arith.constant 0 : index
    %c3_90 = arith.constant 3 : index
    %c0_91 = arith.constant 0 : index
    %c0_92 = arith.constant 0 : index
    %144 = vector.load %arg4[%c0_89, %c3_90, %c0_91, %c0_92] : memref<1x4x4x256xbf16, #tpu.memory_space<vmem>>, vector<1x1x4x256xbf16>
    %145 = vector.shape_cast %144 : vector<1x1x4x256xbf16> to vector<4x256xbf16>
    %146 = vector.shape_cast %143 : vector<4x256xbf16> to vector<1x1x4x256xbf16>
    tpu.vector_store %arg4[%c0_89, %c3_90, %c0_91, %c0_92], %146 {strides = array<i32>} : memref<1x4x4x256xbf16, #tpu.memory_space<vmem>>, vector<1x1x4x256xbf16>,
    return
  }
  func.func @transform_0(%arg0: i32) -> (i32, i32, i32, i32) {
    %c0_i32 = arith.constant 0 : i32
    %c0_i32_0 = arith.constant 0 : i32
    %c0_i32_1 = arith.constant 0 : i32
    %c0_i32_2 = arith.constant 0 : i32
    return %arg0, %c0_i32, %c0_i32_0, %c0_i32_1 : i32, i32, i32, i32
  }
  func.func @transform_1(%arg0: i32) -> (i32, i32, i32) {
    %c0_i32 = arith.constant 0 : i32
    %c0_i32_0 = arith.constant 0 : i32
    %c0_i32_1 = arith.constant 0 : i32
    %c0_i32_2 = arith.constant 0 : i32
    return %c0_i32, %c0_i32_0, %c0_i32_1 : i32, i32, i32
  }
  func.func @transform_2(%arg0: i32) -> (i32, i32) {
    %c0_i32 = arith.constant 0 : i32
    %c0_i32_0 = arith.constant 0 : i32
    %c0_i32_1 = arith.constant 0 : i32
    return %c0_i32, %c0_i32_0 : i32, i32
  }
  func.func @transform_3(%arg0: i32) -> (i32, i32, i32, i32) {
    %c0_i32 = arith.constant 0 : i32
    %c0_i32_0 = arith.constant 0 : i32
    %c0_i32_1 = arith.constant 0 : i32
    %c0_i32_2 = arith.constant 0 : i32
    return %arg0, %c0_i32, %c0_i32_0, %c0_i32_1 : i32, i32, i32, i32
  }
}

</mosaic_0001>

<bundles_post_ra>
// kernel: discriminator_forward.3
= control target key start
LH: loop header
LB: loop body
LE: loop exit
PB: predicated region body
PF: predicated region fallthrough
CT: control target
= control target key end

     0   :  { %s2522_s12 = smov 0   ;;  %s3182_s0 = inlined_call_operand.vmem [shape: bf16[2,17,17,12], index: 0, kind: input, shape index: {}]   ;;  %s3183_s1 = inlined_call_operand.vmem [shape: bf16[4,12,64], index: 1, kind: input, shape index: {}]   ;;  %s3184_s2 = inlined_call_operand.vmem [shape: f32[1,64], index: 2, kind: input, shape index: {}]   ;;  %s3185_s3 = inlined_call_operand.vmem [shape: bf16[2,16,16,64], index: 3, kind: output, shape index: {}]  }
   0x1 LB: > { %s1976_s13 = sadd.s32 4294967295, %s2500_s12   ;;  %p1980_p0 = scmp.ge.s32.totalorder %s2500_s12, 1  ;;  %s2500_s12 = sphi %s2522_s12, %s13_s12  }
   0x2   : > { %p137_p1 = scmp.lt.s32.totalorder %s2500_s12, 3 }
   0x4   : > { %p138_p2 = pnand %p1980_p0, %p137_p1 }
   0x5   : > { %vm718_vm0 = vcmask (!%p138_p2), 1045504   ;;  %p161_p3 = scmp.lt.s32.totalorder (!%p138_p2), %s1976_s13, 1  ;;  %v2473_v0 = vld [vmem:[%s3183_s1 + $0x10] sm:$0x3f] (!%p138_p2)   ;;  %v2476_v1 = vld [vmem:[%s3183_s1 + $0x8] sm:$0x3f] (!%p138_p2)  }
   0x6   : > { %141 = sbr.rel (%p138_p2) target bundleno = 388 (0x184), region = 32  ;;  %2462 = vmatprep.subr.msk.bf16.mxu0 (!%p138_p2), %vm718_vm0, %v2473_v0  ;;  %v1197_v2 = vsel (!%p138_p2), %vm718_vm0, %v2473_v0, 0  ;;  %2460 = vmatprep.subr.msk.bf16.mxu1 (!%p138_p2), %vm718_vm0, %v2476_v1  ;;  %v720_v3 = vsel (!%p138_p2), %vm718_vm0, %v2476_v1, 0  ;;  %v2546_v4 = vld [vmem:[%s3183_s1] sm:$0x3f] (!%p138_p2)   ;;  %vm669_vm1 = vcmask (!%p138_p2), 97280  }
   0x7   : > { %2297 = vmatpush3.bf16.msra.mxu0 (!%p138_p2), %v1197_v2  ;;  %2229 = vmatpush3.bf16.msra.mxu1 (!%p138_p2), %v720_v3  ;;  %v2556_v5 = vld [vmem:[%s3183_s1 + $0x18] sm:$0x3f] (!%p138_p2)   ;;  %vm226_vm2 = vsmask.f32 (!%p138_p2), 3328  ;;  %vm227_vm3 = vsmask.f32 (!%p138_p2), 7440 }
   0x8   : > { %2461 = vmatprep.subr.msk.bf16.mxu1 (!%p138_p2), %vm718_vm0, %v2546_v4  ;;  %2463 = vmatprep.subr.msk.bf16.mxu0 (!%p138_p2), %vm718_vm0, %v2556_v5  ;;  %vm2611_vm4 = vmor (!%p138_p2), %vm226_vm2, %vm227_vm3  ;;  %vm1888_vm7 = vcmask (!%p138_p2), 519168  }
   0xd   : > { %s3189_s13 = smov (!%p161_p3, %s1976_s13), 1 }
   0xe   : > { %s2464_s18 = smul.u32 204, %s3189_s13  ;;  %s2127_s28 = sshll.u32 %s3189_s13, 7 }
   0xf   : > { %s3021_s4 = scalar_lea.vmem %s3185_s3, %s2127_s28 }
  0x10   : > { %s2551_s23 = scalar_lea.vmem %s3182_s0, %s2464_s18 }
  0x11   : > { %v175_v6 = vld [vmem:[%s2551_s23 + $0xc] sm:$0xf]  ;;  %v176_v7 = vld [vmem:[%s2551_s23 + $0x10] sm:$0xf]  ;;  %v178_v8 = vld [vmem:[%s2551_s23 + $0x18] sm:$0xf] }
  0x12   : > { %v254_v9 = vshrl.u32 %v175_v6, 16  ;;  %v257_v10 = vshll.u32 %v175_v6, 16  ;;  %v263_v11 = vshll.u32 %v176_v7, 16  ;;  %v267_v12 = vshrl.u32 %v176_v7, 16  ;;  %v179_v13 = vld [vmem:[%s2551_s23 + $0x1c] sm:$0xf] }
  0x13   : > { %v2566_v14 = vcombine.low %v175_v6, %v176_v7  ;;  %v278_v15 = vshrl.u32 %v178_v8, 16  ;;  %v281_v16 = vshll.u32 %v178_v8, 16  ;;  %v287_v17 = vshll.u32 %v179_v13, 16  ;;  %v181_v23 = vld [vmem:[%s2551_s23 + $0x24] sm:$0xf] }
  0x14   : > { %v256_v18 = vrot.slane %v254_v9, 4  ;;  %v259_v19 = vrot.slane %v257_v10, 5  ;;  %v2568_v20 = vrot.slane %v263_v11, 5  ;;  %v269_v21 = vrot.slane %v267_v12, 4  ;;  %v182_v24 = vld [vmem:[%s2551_s23 + $0x28] sm:$0xf] }
  0x15   : > { %2298 = vmatprep.mubr.msk.bf16.mxu0 %vm669_vm1, %v2566_v14  ;;  %v291_v22 = vshrl.u32 %v179_v13, 16  ;;  %v2574_v25 = vcombine.low %v178_v8, %v179_v13  ;;  %v2577_v26 = vld [vmem:[%s2551_s23] sm:$0xf]  ;;  %v2580_v29 = vrot.slane %v278_v15, 4  ;;  %v2582_v30 = vrot.slane %v281_v16, 5 }
  0x16   : > { %v260_v27 = vor.u32 %v259_v19, %v256_v18  ;;  %v270_v28 = vor.u32 %v269_v21, %v2568_v20  ;;  %v2585_v31 = vld [vmem:[%s2551_s23 + $0x4] sm:$0xf]  ;;  %v174_v32 = vld [vmem:[%s2551_s23 + $0x8] sm:$0x1]  ;;  %v2588_v33 = vrot.slane %v287_v17, 5  ;;  %v302_v35 = vshrl.u32 %v181_v23, 16 }
  0x17   : > { %v2590_v34 = vrot.slane %v291_v22, 4  ;;  %2299 = vmatmul.mubr.msk.bf16.vlgmr.msra.gmra.mrb[0].mxu0 %vm669_vm1, %v2574_v25  ;;  %v2594_v36 = vcombine.low %v181_v23, %v182_v24  ;;  %v305_v37 = vshll.u32 %v181_v23, 16  ;;  %v311_v38 = vshll.u32 %v182_v24, 16  ;;  %v184_v45 = vld [vmem:[%s2551_s23 + $0x30] sm:$0xf] }
  0x18   : > { %v315_v39 = vshrl.u32 %v182_v24, 16  ;;  %v230_v40 = vshrl.u32 %v2577_v26, 16  ;;  %v233_v41 = vshll.u32 %v2577_v26, 16  ;;  %v239_v42 = vshll.u32 %v2585_v31, 16  ;;  %v185_v49 = vld [vmem:[%s2551_s23 + $0x34] sm:$0xf] }
  0x19   : > { %2302 = vmatprep.mubr.msk.bf16.mxu0 %vm669_vm1, %v2594_v36  ;;  %v243_v43 = vshrl.u32 %v2585_v31, 16  ;;  %v249_v44 = vshll.u32 %v174_v32, 16  ;;  %v261_v46 = vrot.slane %v260_v27, 4  ;;  %v271_v47 = vrot.slane %v270_v28, 4  ;;  %v177_v55 = vld [vmem:[%s2551_s23 + $0x14] sm:$0x1] }
  0x1a   : > { %v232_v48 = vrot.slane %v230_v40, 4  ;;  %v326_v50 = vshrl.u32 %v184_v45, 16  ;;  %v235_v51 = vrot.slane %v233_v41, 5  ;;  %v241_v52 = vrot.slane %v239_v42, 5  ;;  %v187_v1 = vld [vmem:[%s2551_s23 + $0x3c] sm:$0xf] }
  0x1b   : > { %v245_v53 = vrot.slane %v243_v43, 4  ;;  %v329_v54 = vshll.u32 %v184_v45, 16  ;;  %v2605_v56 = vrot.slane %v302_v35, 4  ;;  %v2607_v57 = vrot.slane %v305_v37, 5  ;;  %v188_v2 = vld [vmem:[%s2551_s23 + $0x40] sm:$0xf] }
  0x1c   : > { %v251_v58 = vrot.slane %v249_v44, 5  ;;  %v335_v59 = vshll.u32 %v185_v49, 16  ;;  %v236_v61 = vor.u32 %v235_v51, %v232_v48  ;;  %v339_v63 = vshrl.u32 %v185_v49, 16  ;;  %v190_v28 = vld [vmem:[%s2551_s23 + $0x48] sm:$0xf] }
  0x1d   : > { %v246_v62 = vor.u32 %v245_v53, %v241_v52  ;;  %v2615_v0 = vcombine.low %v184_v45, %v185_v49  ;;  %v2619_v3 = vrot.slane %v311_v38, 5  ;;  %v317_v6 = vrot.slane %v315_v39, 4  ;;  %v191_v32 = vld [vmem:[%s2551_s23 + $0x4c] sm:$0xf]  ;;  %v193_v49 = vld [vmem:[%s2551_s23 + $0x54] sm:$0xf] }
  0x1e   : > { %v273_v7 = vshll.u32 %v177_v55, 16  ;;  %v1431_v8 = vsel %vm718_vm0, %v2556_v5, 0  ;;  %v237_v9 = vrot.slane %v236_v61, 4  ;;  %v2623_v11 = vrot.slane %v326_v50, 4  ;;  %v180_v5 = vld [vmem:[%s2551_s23 + $0x20] sm:$0x1] }
  0x1f   : > { %v247_v10 = vrot.slane %v246_v62, 4  ;;  %v2625_v12 = vrot.slane %v329_v54, 5  ;;  %2303 = vmatmul.mubr.msk.bf16.gmra.mrb[4].mxu0 %vm669_vm1, %v2615_v0  ;;  %v266_v13 = vsel %vm2611_vm4, %v261_v46, %v2568_v20  ;;  %v350_v16 = vshrl.u32 %v187_v1, 16  ;;  %v194_v54 = vld [vmem:[%s2551_s23 + $0x58] sm:$0xf] }
  0x20   : > { %v275_v15 = vrot.slane %v273_v7, 5  ;;  %2331 = vmatpush3.bf16.msra.mxu0 %v1431_v8  ;;  %v2632_v17 = vcombine.low %v187_v1, %v188_v2  ;;  %v242_v18 = vsel %vm2611_vm4, %v237_v9, %v241_v52  ;;  %v2639_v21 = vrot.slane %v335_v59, 5 }
  0x21   : > { %v252_v19 = vsel %vm2611_vm4, %v247_v10, %v251_v58  ;;  %v2641_v22 = vrot.slane %v339_v63, 4  ;;  %v1017_v24 = vsel %vm718_vm0, %v2546_v4, 0  ;;  %v353_v27 = vshll.u32 %v187_v1, 16 }
  0x22   : > { %v1986_v23 = vcombine.low %v242_v18, %v252_v19  ;;  %v276_v20 = vsel %vm2611_vm4, %v271_v47, %v275_v15  ;;  %2306 = vmatprep.mubr.msk.bf16.mxu0 %vm669_vm1, %v2632_v17  ;;  %v284_v37 = vor.u32 %v2582_v30, %v2580_v29  ;;  %v294_v38 = vor.u32 %v2590_v34, %v2588_v33  ;;  %v183_v30 = vld [vmem:[%s2551_s23 + $0x2c] sm:$0x1]  ;;  %v196_v19 = vld [vmem:[%s2551_s23 + $0x60] sm:$0xf] }
  0x23   : > { %v2651_v35 = vcombine.low %v266_v13, %v276_v20  ;;  %v297_v39 = vshll.u32 %v180_v5, 16  ;;  %v2658_v4 = vrot.slane %v350_v16, 4  ;;  %v359_v40 = vshll.u32 %v188_v2, 16 }
  0x24   : > { %2230 = vmatprep.mubr.msk.bf16.mxu1 %vm669_vm1, %v1986_v23  ;;  %v363_v41 = vshrl.u32 %v188_v2, 16  ;;  %v374_v42 = vshrl.u32 %v190_v28, 16  ;;  %v285_v43 = vrot.slane %v284_v37, 4  ;;  %v295_v44 = vrot.slane %v294_v38, 4  ;;  %v186_v2 = vld [vmem:[%s2551_s23 + $0x38] sm:$0x1] }
  0x25   : > { %2231 = vmatmul.mubr.msk.bf16.vlgmr.msra.gmra.mrb[0].mxu1 %vm669_vm1, %v2651_v35  ;;  %v299_v45 = vrot.slane %v297_v39, 5  ;;  %v2662_v29 = vcombine.low %v190_v28, %v191_v32  ;;  %v355_v34 = vrot.slane %v353_v27, 5  ;;  %v377_v46 = vshll.u32 %v190_v28, 16  ;;  %v197_v23 = vld [vmem:[%s2551_s23 + $0x64] sm:$0xf] }
  0x26   : > { %2263 = vmatpush3.bf16.msra.mxu1 %v1017_v24  ;;  %v383_v47 = vshll.u32 %v191_v32, 16  ;;  %v387_v48 = vshrl.u32 %v191_v32, 16  ;;  %v290_v50 = vsel %vm2611_vm4, %v285_v43, %v2588_v33  ;;  %v308_v52 = vor.u32 %v2607_v57, %v2605_v56  ;;  %v189_v37 = vld [vmem:[%s2551_s23 + $0x44] sm:$0x1] }
  0x27   : > { %v300_v51 = vsel %vm2611_vm4, %v295_v44, %v299_v45  ;;  %2307 = vmatmul.mubr.msk.bf16.gmra.mrb[8].mxu0 %vm669_vm1, %v2662_v29  ;;  %v318_v53 = vor.u32 %v317_v6, %v2619_v3  ;;  %v2677_v55 = vrot.slane %v359_v40, 5  ;;  %v365_v58 = vrot.slane %v363_v41, 4  ;;  %v199_v41 = vld [vmem:[%s2551_s23 + $0x6c] sm:$0xf] }
  0x28   : > { %v2679_v59 = vcombine.low %v290_v50, %v300_v51  ;;  %v321_v61 = vshll.u32 %v183_v30, 16  ;;  %v2681_v62 = vrot.slane %v374_v42, 4  ;;  %v309_v33 = vrot.slane %v308_v52, 4  ;;  %v200_v30 = vld [vmem:[%s2551_s23 + $0x70] sm:$0xf] }
  0x29   : > { %v319_v63 = vrot.slane %v318_v53, 4  ;;  %v398_v1 = vshrl.u32 %v193_v49, 16  ;;  %v2686_v56 = vrot.slane %v377_v46, 5  ;;  %v401_v6 = vshll.u32 %v193_v49, 16  ;;  %v192_v53 = vld [vmem:[%s2551_s23 + $0x50] sm:$0x1] }
  0x2a   : > { %2234 = vmatprep.mubr.msk.bf16.mxu1 %vm669_vm1, %v2679_v59  ;;  %v323_v57 = vrot.slane %v321_v61, 5  ;;  %v2688_v7 = vcombine.low %v193_v49, %v194_v54  ;;  %v2690_v8 = vrot.slane %v383_v47, 5  ;;  %v389_v9 = vrot.slane %v387_v48, 4 }
  0x2b   : > { %v314_v10 = vsel %vm2611_vm4, %v309_v33, %v2619_v3  ;;  %v332_v13 = vor.u32 %v2625_v12, %v2623_v11  ;;  %v407_v16 = vshll.u32 %v194_v54, 16  ;;  %v342_v5 = vor.u32 %v2641_v22, %v2639_v21 }
  0x2c   : > { %v324_v15 = vsel %vm2611_vm4, %v319_v63, %v323_v57  ;;  %2310 = vmatprep.mubr.msk.bf16.mxu0 %vm669_vm1, %v2688_v7  ;;  %v345_v18 = vshll.u32 %v186_v2, 16  ;;  %v2707_v3 = vrot.slane %v398_v1, 4  ;;  %v411_v11 = vshrl.u32 %v194_v54, 16 }
  0x2d   : > { %v2705_v20 = vcombine.low %v314_v10, %v324_v15  ;;  %v333_v12 = vrot.slane %v332_v13, 4  ;;  %v2709_v24 = vrot.slane %v401_v6, 5  ;;  %v343_v27 = vrot.slane %v342_v5, 4  ;;  %v202_v13 = vld [vmem:[%s2551_s23 + $0x78] sm:$0xf] }
  0x2e   : > { %v347_v28 = vrot.slane %v345_v18, 5  ;;  %v422_v32 = vshrl.u32 %v196_v19, 16  ;;  %v425_v38 = vshll.u32 %v196_v19, 16  ;;  %v431_v39 = vshll.u32 %v197_v23, 16  ;;  %v203_v15 = vld [vmem:[%s2551_s23 + $0x7c] sm:$0xf] }
  0x2f   : > { %2235 = vmatmul.mubr.msk.bf16.gmra.mrb[4].mxu1 %vm669_vm1, %v2705_v20  ;;  %v338_v22 = vsel %vm2611_vm4, %v333_v12, %v2639_v21  ;;  %v2717_v40 = vcombine.low %v196_v19, %v197_v23  ;;  %v435_v43 = vshrl.u32 %v197_v23, 16  ;;  %v356_v44 = vor.u32 %v355_v34, %v2658_v4 }
  0x30   : > { %v348_v42 = vsel %vm2611_vm4, %v343_v27, %v347_v28  ;;  %v366_v45 = vor.u32 %v365_v58, %v2677_v55  ;;  %v2725_v46 = vrot.slane %v407_v16, 5  ;;  %v413_v47 = vrot.slane %v411_v11, 4  ;;  %v195_v11 = vld [vmem:[%s2551_s23 + $0x5c] sm:$0x1] }
  0x31   : > { %v2727_v48 = vcombine.low %v338_v22, %v348_v42  ;;  %2311 = vmatmul.mubr.msk.bf16.gmra.mrb[12].mxu0 %vm669_vm1, %v2717_v40  ;;  %v369_v21 = vshll.u32 %v189_v37, 16  ;;  %v2731_v49 = vrot.slane %v422_v32, 4  ;;  %v357_v50 = vrot.slane %v356_v44, 4 }
  0x32   : > { %v367_v51 = vrot.slane %v366_v45, 4  ;;  %v446_v52 = vshrl.u32 %v199_v41, 16  ;;  %v2736_v4 = vrot.slane %v425_v38, 5  ;;  %v2738_v34 = vrot.slane %v431_v39, 5  ;;  %v205_v39 = vld [vmem:[%s2551_s23 + $0x84] sm:$0xf] }
  0x33   : > { %2238 = vmatprep.mubr.msk.bf16.mxu1 %vm669_vm1, %v2727_v48  ;;  %v371_v54 = vrot.slane %v369_v21, 5  ;;  %v2740_v58 = vcombine.low %v199_v41, %v200_v30  ;;  %v437_v61 = vrot.slane %v435_v43, 4  ;;  %v362_v33 = vsel %vm2611_vm4, %v357_v50, %v2677_v55 }
  0x34   : > { %v449_v63 = vshll.u32 %v199_v41, 16  ;;  %v380_v1 = vor.u32 %v2686_v56, %v2681_v62  ;;  %v455_v57 = vshll.u32 %v200_v30, 16  ;;  %v390_v6 = vor.u32 %v389_v9, %v2690_v8  ;;  %v206_v41 = vld [vmem:[%s2551_s23 + $0x88] sm:$0xf] }
  0x35   : > { %v372_v2 = vsel %vm2611_vm4, %v367_v51, %v371_v54  ;;  %2314 = vmatprep.mubr.msk.bf16.mxu0 %vm669_vm1, %v2740_v58  ;;  %v393_v10 = vshll.u32 %v192_v53, 16  ;;  %v2756_v55 = vrot.slane %v446_v52, 4  ;;  %v459_v5 = vshrl.u32 %v200_v30, 16 }
  0x36   : > { %v2754_v16 = vcombine.low %v362_v33, %v372_v2  ;;  %v381_v62 = vrot.slane %v380_v1, 4  ;;  %v391_v56 = vrot.slane %v390_v6, 4  ;;  %v470_v19 = vshrl.u32 %v202_v13, 16 }
  0x37   : > { %v395_v18 = vrot.slane %v393_v10, 5  ;;  %v473_v23 = vshll.u32 %v202_v13, 16  ;;  %v2761_v9 = vrot.slane %v449_v63, 5  ;;  %v479_v27 = vshll.u32 %v203_v15, 16  ;;  %v208_v10 = vld [vmem:[%s2551_s23 + $0x90] sm:$0xf] }
  0x38   : > { %2239 = vmatmul.mubr.msk.bf16.gmra.mrb[8].mxu1 %vm669_vm1, %v2754_v16  ;;  %v386_v12 = vsel %vm2611_vm4, %v381_v62, %v2690_v8  ;;  %v2766_v28 = vcombine.low %v202_v13, %v203_v15  ;;  %v483_v37 = vshrl.u32 %v203_v15, 16  ;;  %v404_v22 = vor.u32 %v2709_v24, %v2707_v3  ;;  %v198_v3 = vld [vmem:[%s2551_s23 + $0x68] sm:$0x1]  ;;  %v209_v13 = vld [vmem:[%s2551_s23 + $0x94] sm:$0xf] }
  0x39   : > { %v396_v32 = vsel %vm2611_vm4, %v391_v56, %v395_v18  ;;  %v414_v38 = vor.u32 %v413_v47, %v2725_v46  ;;  %v2775_v42 = vrot.slane %v455_v57, 5  ;;  %v461_v43 = vrot.slane %v459_v5, 4 }
  0x3a   : > { %v2777_v44 = vcombine.low %v386_v12, %v396_v32  ;;  %2315 = vmatmul.mubr.msk.bf16.gmra.mrb[16].mxu0 %vm669_vm1, %v2766_v28  ;;  %v417_v8 = vshll.u32 %v195_v11, 16  ;;  %v2781_v45 = vrot.slane %v470_v19, 4  ;;  %v2783_v30 = vrot.slane %v473_v23, 5  ;;  %v201_v19 = vld [vmem:[%s2551_s23 + $0x74] sm:$0x1] }
  0x3b   : > { %v405_v21 = vrot.slane %v404_v22, 4  ;;  %v415_v50 = vrot.slane %v414_v38, 4  ;;  %v2788_v24 = vrot.slane %v479_v27, 5  ;;  %v494_v51 = vshrl.u32 %v205_v39, 16  ;;  %v211_v38 = vld [vmem:[%s2551_s23 + $0x9c] sm:$0xf] }
  0x3c   : > { %2242 = vmatprep.mubr.msk.bf16.mxu1 %vm669_vm1, %v2777_v44  ;;  %v419_v47 = vrot.slane %v417_v8, 5  ;;  %v2790_v52 = vcombine.low %v205_v39, %v206_v41  ;;  %v485_v53 = vrot.slane %v483_v37, 4  ;;  %v497_v33 = vshll.u32 %v205_v39, 16  ;;  %v212_v39 = vld [vmem:[%s2551_s23 + $0xa0] sm:$0xf] }
  0x3d   : > { %v410_v54 = vsel %vm2611_vm4, %v405_v21, %v2725_v46  ;;  %v428_v63 = vor.u32 %v2736_v4, %v2731_v49  ;;  %v503_v2 = vshll.u32 %v206_v41, 16  ;;  %v438_v57 = vor.u32 %v437_v61, %v2738_v34 }
  0x3e   : > { %v420_v1 = vsel %vm2611_vm4, %v415_v50, %v419_v47  ;;  %2318 = vmatprep.mubr.msk.bf16.mxu0 %vm669_vm1, %v2790_v52  ;;  %v441_v6 = vshll.u32 %v198_v3, 16  ;;  %v507_v46 = vshrl.u32 %v206_v41, 16  ;;  %v518_v62 = vshrl.u32 %v208_v10, 16 }
  0x3f   : > { %v2804_v15 = vcombine.low %v410_v54, %v420_v1  ;;  %v429_v5 = vrot.slane %v428_v63, 4  ;;  %v2806_v49 = vrot.slane %v494_v51, 4  ;;  %v439_v4 = vrot.slane %v438_v57, 4 }
  0x40   : > { %v443_v56 = vrot.slane %v441_v6, 5  ;;  %v521_v18 = vshll.u32 %v208_v10, 16  ;;  %v2811_v61 = vrot.slane %v497_v33, 5  ;;  %v527_v11 = vshll.u32 %v209_v13, 16 }
  0x41   : > { %2243 = vmatmul.mubr.msk.bf16.gmra.mrb[12].mxu1 %vm669_vm1, %v2804_v15  ;;  %v434_v23 = vsel %vm2611_vm4, %v429_v5, %v2738_v34  ;;  %v2816_v12 = vcombine.low %v208_v10, %v209_v13  ;;  %v2818_v27 = vrot.slane %v503_v2, 5  ;;  %v452_v37 = vor.u32 %v2761_v9, %v2756_v55  ;;  %v204_v55 = vld [vmem:[%s2551_s23 + $0x80] sm:$0x1]  ;;  %v214_v5 = vld [vmem:[%s2551_s23 + $0xa8] sm:$0xf] }
  0x42   : > { %v444_v32 = vsel %vm2611_vm4, %v439_v4, %v443_v56  ;;  %v462_v22 = vor.u32 %v461_v43, %v2775_v42  ;;  %v509_v41 = vrot.slane %v507_v46, 4  ;;  %v2829_v34 = vrot.slane %v518_v62, 4  ;;  %v215_v62 = vld [vmem:[%s2551_s23 + $0xac] sm:$0xf] }
  0x43   : > { %v2827_v8 = vcombine.low %v434_v23, %v444_v32  ;;  %2319 = vmatmul.mubr.msk.bf16.gmra.mrb[20].mxu0 %vm669_vm1, %v2816_v12  ;;  %v465_v21 = vshll.u32 %v201_v19, 16  ;;  %v2833_v50 = vrot.slane %v521_v18, 5  ;;  %v531_v3 = vshrl.u32 %v209_v13, 16 }
  0x44   : > { %v453_v47 = vrot.slane %v452_v37, 4  ;;  %v463_v51 = vrot.slane %v462_v22, 4  ;;  %v2838_v9 = vrot.slane %v527_v11, 5  ;;  %v542_v54 = vshrl.u32 %v211_v38, 16  ;;  %v207_v11 = vld [vmem:[%s2551_s23 + $0x8c] sm:$0x1] }
  0x45   : > { %2246 = vmatprep.mubr.msk.bf16.mxu1 %vm669_vm1, %v2827_v8  ;;  %v467_v43 = vrot.slane %v465_v21, 5  ;;  %v2840_v33 = vcombine.low %v211_v38, %v212_v39  ;;  %v545_v1 = vshll.u32 %v211_v38, 16  ;;  %v551_v2 = vshll.u32 %v212_v39, 16  ;;  %v217_v38 = vld [vmem:[%s2551_s23 + $0xb4] sm:$0xf] }
  0x46   : > { %v458_v63 = vsel %vm2611_vm4, %v453_v47, %v2775_v42  ;;  %v476_v57 = vor.u32 %v2783_v30, %v2781_v45  ;;  %v555_v10 = vshrl.u32 %v212_v39, 16  ;;  %v486_v13 = vor.u32 %v485_v53, %v2788_v24 }
  0x47   : > { %v468_v6 = vsel %vm2611_vm4, %v463_v51, %v467_v43  ;;  %2322 = vmatprep.mubr.msk.bf16.mxu0 %vm669_vm1, %v2840_v33  ;;  %v489_v46 = vshll.u32 %v204_v55, 16  ;;  %v533_v42 = vrot.slane %v531_v3, 4  ;;  %v566_v18 = vshrl.u32 %v214_v5, 16  ;;  %v218_v51 = vld [vmem:[%s2551_s23 + $0xb8] sm:$0xf] }
  0x48   : > { %v2854_v4 = vcombine.low %v458_v63, %v468_v6  ;;  %v477_v56 = vrot.slane %v476_v57, 4  ;;  %v544_v45 = vrot.slane %v542_v54, 4  ;;  %v487_v30 = vrot.slane %v486_v13, 4  ;;  %v210_v55 = vld [vmem:[%s2551_s23 + $0x98] sm:$0x1] }
  0x49   : > { %v491_v19 = vrot.slane %v489_v46, 5  ;;  %v569_v23 = vshll.u32 %v214_v5, 16  ;;  %v547_v53 = vrot.slane %v545_v1, 5  ;;  %v2859_v32 = vrot.slane %v551_v2, 5  ;;  %v2879_v1 = vld [vmem:[%s2551_s23 + $0xc0] sm:$0xf] }
  0x4a   : > { %2247 = vmatmul.mubr.msk.bf16.gmra.mrb[16].mxu1 %vm669_vm1, %v2854_v4  ;;  %v482_v37 = vsel %vm2611_vm4, %v477_v56, %v2788_v24  ;;  %v2864_v22 = vcombine.low %v214_v5, %v215_v62  ;;  %v557_v39 = vrot.slane %v555_v10, 4  ;;  %v500_v3 = vor.u32 %v2811_v61, %v2806_v49  ;;  %v2882_v13 = vld [vmem:[%s2551_s23 + $0xc4] sm:$0xf] }
  0x4b   : > { %v492_v21 = vsel %vm2611_vm4, %v487_v30, %v491_v19  ;;  %v510_v47 = vor.u32 %v509_v41, %v2818_v27  ;;  %v568_v54 = vrot.slane %v566_v18, 4  ;;  %v575_v63 = vshll.u32 %v215_v62, 16 }
  0x4c   : > { %v2874_v43 = vcombine.low %v482_v37, %v492_v21  ;;  %2323 = vmatmul.mubr.msk.bf16.gmra.mrb[24].mxu0 %vm669_vm1, %v2864_v22  ;;  %v513_v24 = vshll.u32 %v207_v11, 16  ;;  %v571_v2 = vrot.slane %v569_v23, 5  ;;  %v579_v57 = vshrl.u32 %v215_v62, 16 }
  0x4d   : > { %v501_v6 = vrot.slane %v500_v3, 4  ;;  %v511_v10 = vrot.slane %v510_v47, 4  ;;  %v590_v61 = vshrl.u32 %v217_v38, 16  ;;  %v593_v41 = vshll.u32 %v217_v38, 16 }
  0x4e   : > { %2250 = vmatprep.mubr.msk.bf16.mxu1 %vm669_vm1, %v2874_v43  ;;  %v515_v49 = vrot.slane %v513_v24, 5  ;;  %v2886_v46 = vcombine.low %v217_v38, %v218_v51  ;;  %v599_v56 = vshll.u32 %v218_v51, 16  ;;  %v603_v18 = vshrl.u32 %v218_v51, 16  ;;  %v213_v51 = vld [vmem:[%s2551_s23 + $0xa4] sm:$0x1] }
  0x4f   : > { %v506_v5 = vsel %vm2611_vm4, %v501_v6, %v2818_v27  ;;  %v524_v62 = vor.u32 %v2833_v50, %v2829_v34  ;;  %v534_v19 = vor.u32 %v533_v42, %v2838_v9  ;;  %v537_v23 = vshll.u32 %v210_v55, 16 }
  0x50   : > { %v516_v30 = vsel %vm2611_vm4, %v511_v10, %v515_v49  ;;  %2326 = vmatprep.mubr.msk.bf16.mxu0 %vm669_vm1, %v2886_v46  ;;  %v2054_v11 = vcombine.low %v2879_v1, %v2882_v13  ;;  %v577_v27 = vrot.slane %v575_v63, 5  ;;  %v581_v37 = vrot.slane %v579_v57, 4  ;;  %v216_v57 = vld [vmem:[%s2551_s23 + $0xb0] sm:$0x1] }
  0x51   : > { %v2900_v38 = vcombine.low %v506_v5, %v516_v30  ;;  %v525_v21 = vrot.slane %v524_v62, 4  ;;  %v592_v3 = vrot.slane %v590_v61, 4  ;;  %v595_v34 = vrot.slane %v593_v41, 5 }
  0x52   : > { %v535_v50 = vrot.slane %v534_v19, 4  ;;  %v539_v47 = vrot.slane %v537_v23, 5  ;;  %v601_v42 = vrot.slane %v599_v56, 5  ;;  %v605_v55 = vrot.slane %v603_v18, 4  ;;  %v219_v56 = vld [vmem:[%s2551_s23 + $0xbc] sm:$0x1] }
  0x53   : > { %2251 = vmatmul.mubr.msk.bf16.gmra.mrb[20].mxu1 %vm669_vm1, %v2900_v38  ;;  %v530_v24 = vsel %vm2611_vm4, %v525_v21, %v2838_v9  ;;  %v548_v63 = vor.u32 %v547_v53, %v544_v45  ;;  %v558_v10 = vor.u32 %v557_v39, %v2859_v32  ;;  %v561_v41 = vshll.u32 %v213_v51, 16 }
  0x54   : > { %v540_v6 = vsel %vm2611_vm4, %v535_v50, %v539_v47  ;;  %2327 = vmatmul.mubr.msk.bf16.gmra.mrb[28].mxu0 %vm669_vm1, %v2054_v11  ;;  %v572_v5 = vor.u32 %v571_v2, %v568_v54  ;;  %v582_v62 = vor.u32 %v581_v37, %v577_v27  ;;  %v585_v9 = vshll.u32 %v216_v57, 16 }
  0x55   : > { %v1998_v49 = vcombine.low %v530_v24, %v540_v6  ;;  %v549_v61 = vrot.slane %v548_v63, 4  ;;  %2332 = vmatprep.mubr.msk.bf16.mxu0 %vm669_vm1, %v2651_v35  ;;  %v559_v18 = vrot.slane %v558_v10, 4  ;;  %v596_v45 = vor.u32 %v595_v34, %v592_v3 }
  0x56   : > { %v563_v30 = vrot.slane %v561_v41, 5  ;;  %v573_v39 = vrot.slane %v572_v5, 4  ;;  %v606_v19 = vor.u32 %v605_v55, %v601_v42  ;;  %v583_v23 = vrot.slane %v582_v62, 4 }
  0x57   : > { %2254 = vmatprep.mubr.msk.bf16.mxu1 %vm669_vm1, %v1998_v49  ;;  %v554_v53 = vsel %vm2611_vm4, %v549_v61, %v2859_v32  ;;  %v587_v11 = vrot.slane %v585_v9, 5  ;;  %v609_v21 = vshll.u32 %v219_v56, 16  ;;  %v597_v2 = vrot.slane %v596_v45, 4 }
  0x58   : > { %v564_v35 = vsel %vm2611_vm4, %v559_v18, %v563_v30  ;;  %v578_v54 = vsel %vm2611_vm4, %v573_v39, %v577_v27  ;;  %v607_v37 = vrot.slane %v606_v19, 4  ;;  %v2019_v55 = vcombine.low %v2577_v26, %v2585_v31 }
  0x59   : > { %v1999_v3 = vcombine.low %v554_v53, %v564_v35  ;;  %v588_v34 = vsel %vm2611_vm4, %v583_v23, %v587_v11  ;;  %v611_v50 = vrot.slane %v609_v21, 5  ;;  %v602_v47 = vsel %vm2611_vm4, %v597_v2, %v601_v42 }
  0x5a   : > { %v2000_v32 = vcombine.low %v578_v54, %v588_v34  ;;  %v1402_v26 = vshll.u32 %v2882_v13, 16  ;;  %v1406_v31 = vshrl.u32 %v2882_v13, 16 }
  0x5b   : > { %2255 = vmatmul.mubr.msk.bf16.gmra.mrb[24].mxu1 %vm669_vm1, %v1999_v3  ;;  %v612_v27 = vsel %vm2611_vm4, %v607_v37, %v611_v50 }
  0x5c   : > { %2333 = vmatmul.mubr.msk.bf16.vlgmr.msra.gmra.mrb[0].mxu0 %vm669_vm1, %v2679_v59  ;;  %2258 = vmatprep.mubr.msk.bf16.mxu1 %vm669_vm1, %v2000_v32  ;;  %v2001_v51 = vcombine.low %v602_v47, %v612_v27  ;;  %v1408_v59 = vrot.slane %v1406_v31, 4 }
  0x5d   : > { %2336 = vmatprep.mubr.msk.bf16.mxu0 %vm669_vm1, %v2705_v20  ;;  %v222_v20 = vld [vmem:[%s2551_s23 + $0xc8] sm:$0x1] }
  0x63   : > { %2259 = vmatmul.mubr.msk.bf16.gmra.mrb[28].mxu1 %vm669_vm1, %v2001_v51 }
  0x64   : > { %2337 = vmatmul.mubr.msk.bf16.gmra.mrb[4].mxu0 %vm669_vm1, %v2727_v48  ;;  %2264 = vmatprep.mubr.msk.bf16.mxu1 %vm669_vm1, %v2019_v55 }
  0x65   : > { %2340 = vmatprep.mubr.msk.bf16.mxu0 %vm669_vm1, %v2754_v16  ;;  %v1412_v16 = vshll.u32 %v222_v20, 16 }
  0x6b   : > { %2265 = vmatmul.mubr.msk.bf16.vlgmr.msra.gmra.mrb[0].mxu1 %vm669_vm1, %v2566_v14  ;;  %v1393_v14 = vshrl.u32 %v2879_v1, 16 }
  0x6c   : > { %2341 = vmatmul.mubr.msk.bf16.gmra.mrb[8].mxu0 %vm669_vm1, %v2777_v44  ;;  %2268 = vmatprep.mubr.msk.bf16.mxu1 %vm669_vm1, %v2574_v25  ;;  %v1396_v25 = vshll.u32 %v2879_v1, 16 }
  0x6d   : > { %2344 = vmatprep.mubr.msk.bf16.mxu0 %vm669_vm1, %v2804_v15 }
  0x73   : > { %2269 = vmatmul.mubr.msk.bf16.gmra.mrb[4].mxu1 %vm669_vm1, %v2594_v36  ;;  %v1395_v36 = vrot.slane %v1393_v14, 4 }
  0x74   : > { %2345 = vmatmul.mubr.msk.bf16.gmra.mrb[12].mxu0 %vm669_vm1, %v2827_v8  ;;  %2272 = vmatprep.mubr.msk.bf16.mxu1 %vm669_vm1, %v2615_v0  ;;  %v1398_v0 = vrot.slane %v1396_v25, 5  ;;  %v1414_v8 = vrot.slane %v1412_v16, 5 }
  0x75   : > { %2348 = vmatprep.mubr.msk.bf16.mxu0 %vm669_vm1, %v2854_v4 }
  0x76   : > { %v1399_v48 = vor.u32 %v1398_v0, %v1395_v36 }
  0x78   : > { %v1400_v44 = vrot.slane %v1399_v48, 4 }
  0x7b   : > { %2273 = vmatmul.mubr.msk.bf16.gmra.mrb[8].mxu1 %vm669_vm1, %v2632_v17  ;;  %v1404_v17 = vrot.slane %v1402_v26, 5 }
  0x7c   : > { %2349 = vmatmul.mubr.msk.bf16.gmra.mrb[16].mxu0 %vm669_vm1, %v2874_v43  ;;  %2276 = vmatprep.mubr.msk.bf16.mxu1 %vm669_vm1, %v2662_v29 }
  0x7d   : > { %2352 = vmatprep.mubr.msk.bf16.mxu0 %vm669_vm1, %v2900_v38  ;;  %v1409_v29 = vor.u32 %v1408_v59, %v1404_v17 }
  0x7f   : > { %v1410_v15 = vrot.slane %v1409_v29, 4 }
  0x83   : > { %2277 = vmatmul.mubr.msk.bf16.gmra.mrb[12].mxu1 %vm669_vm1, %v2688_v7  ;;  %v1405_v7 = vsel %vm2611_vm4, %v1400_v44, %v1404_v17 }
  0x84   : > { %2353 = vmatmul.mubr.msk.bf16.gmra.mrb[20].mxu0 %vm669_vm1, %v1998_v49  ;;  %2280 = vmatprep.mubr.msk.bf16.mxu1 %vm669_vm1, %v2717_v40  ;;  %v1415_v40 = vsel %vm2611_vm4, %v1410_v15, %v1414_v8 }
  0x85   : > { %2356 = vmatprep.mubr.msk.bf16.mxu0 %vm669_vm1, %v1999_v3  ;;  %v2074_v4 = vcombine.low %v1405_v7, %v1415_v40 }
  0x8b   : > { %2281 = vmatmul.mubr.msk.bf16.gmra.mrb[16].mxu1 %vm669_vm1, %v2740_v58 }
  0x8c   : > { %2357 = vmatmul.mubr.msk.bf16.gmra.mrb[24].mxu0 %vm669_vm1, %v2000_v32  ;;  %2284 = vmatprep.mubr.msk.bf16.mxu1 %vm669_vm1, %v2766_v28 }
  0x8d   : > { %2360 = vmatprep.mubr.msk.bf16.mxu0 %vm669_vm1, %v2001_v51 }
  0x93   : > { %2285 = vmatmul.mubr.msk.bf16.gmra.mrb[20].mxu1 %vm669_vm1, %v2790_v52 }
  0x94   : > { %2361 = vmatmul.mubr.msk.bf16.gmra.mrb[28].mxu0 %vm669_vm1, %v2074_v4  ;;  %2288 = vmatprep.mubr.msk.bf16.mxu1 %vm669_vm1, %v2816_v12  ;;  %v3003_v12 = vld [vmem:[%s3184_s2] ss:$0 sm:$0xff] }
  0x9b   : > { %2289 = vmatmul.mubr.msk.bf16.gmra.mrb[24].mxu1 %vm669_vm1, %v2840_v33 }
  0x9c   : > { %2292 = vmatprep.mubr.msk.bf16.mxu1 %vm669_vm1, %v2864_v22 }
  0xa3   : > { %2293 = vmatmul.mubr.msk.bf16.gmra.mrb[28].mxu1 %vm669_vm1, %v2886_v46 }
 0x12f   : > { %v2334_v60 = vpop.f32.mrb[0].mxu0 }
 0x130   : > { %v1467_v58 = vpop.f32.mrb[1].mxu0 }
 0x131   : > { %v2335_v28 = vpop.f32.mrb[2].mxu0 }
 0x132   : > { %v1470_v43 = vpop.f32.mrb[3].mxu0 }
 0x137   : > { %v2338_v1 = vpop.f32.mrb[4].mxu0 }
 0x138   : > { %v1483_v52 = vpop.f32.mrb[5].mxu0 }
 0x139   : > { %v2339_v13 = vpop.f32.mrb[6].mxu0 }
 0x13a   : > { %v1486_v38 = vpop.f32.mrb[7].mxu0 }
 0x13e   : > { %v2266_v33 = vpop.f32.mrb[0].mxu1 }
 0x13f   : > { %v3005_v42 = vpop.f32.mrb[8].mxu0  ;;  %v2364_v22 = vadd.f32 %v2334_v60, %v2266_v33  ;;  %v1053_v24 = vpop.f32.mrb[1].mxu1 }
 0x140   : > { %v3007_v46 = vpop.f32.mrb[9].mxu0  ;;  %v2365_v63 = vadd.f32 %v1467_v58, %v1053_v24  ;;  %v2267_v57 = vpop.f32.mrb[2].mxu1 }
 0x141   : > { %v3009_v6 = vpop.f32.mrb[10].mxu0  ;;  %v1634_v10 = vadd.f32 %v2364_v22, %v3003_v12  ;;  %v2366_v49 = vadd.f32 %v2335_v28, %v2267_v57  ;;  %v1056_v61 = vpop.f32.mrb[3].mxu1 }
 0x142   : > { %v3012_v41 = vpop.f32.mrb[11].mxu0  ;;  %v1632_v5 = vadd.f32 %v2365_v63, %v3003_v12  ;;  %v2367_v56 = vadd.f32 %v1470_v43, %v1056_v61 }
 0x143   : > { %vm1666_vm5 = vcmp.ge.f32.partialorder %v1634_v10, 0.0  ;;  %v1698_v18 = vmul.f32 0.2, %v1634_v10  ;;  %v1635_v62 = vadd.f32 %v2366_v49, %v3003_v12 }
 0x144   : > { %vm1664_vm6 = vcmp.ge.f32.partialorder %v1632_v5, 0.0  ;;  %v1696_v9 = vmul.f32 0.2, %v1632_v5  ;;  %v1633_v45 = vadd.f32 %v2367_v56, %v3003_v12 }
 0x145   : > { %v1730_v53 = vsel %vm1666_vm5, %v1634_v10, %v1698_v18  ;;  %vm1667_vm8 = vcmp.ge.f32.partialorder %v1635_v62, 0.0  ;;  %v1699_v30 = vmul.f32 0.2, %v1635_v62 }
 0x146   : > { %v2130_v39 = vpack.c.bf16 %v1730_v53, %v1730_v53  ;;  %v1728_v19 = vsel %vm1664_vm6, %v1632_v5, %v1696_v9  ;;  %vm1665_vm9 = vcmp.ge.f32.partialorder %v1633_v45, 0.0  ;;  %v1697_v23 = vmul.f32 0.2, %v1633_v45  ;;  %v2270_v11 = vpop.f32.mrb[4].mxu1 }
 0x147   : > { %v3023_v21 = vpop.f32.mrb[12].mxu0  ;;  %v2128_v35 = vpack.c.bf16 %v1728_v19, %v1728_v19  ;;  %v1731_v54 = vsel %vm1667_vm8, %v1635_v62, %v1699_v30  ;;  %v2368_v2 = vadd.f32 %v2338_v1, %v2270_v11  ;;  %v1069_v37 = vpop.f32.mrb[5].mxu1 }
 0x148   : > { %v3025_v3 = vpop.f32.mrb[13].mxu0  ;;  %1891 = vst.msk [vmem:[%s3021_s4 + $0x8] sm:$0xf] %vm1888_vm7, %v2130_v39  ;;  %v2131_v34 = vpack.c.bf16 %v1731_v54, %v1731_v54  ;;  %v1729_v50 = vsel %vm1665_vm9, %v1633_v45, %v1697_v23  ;;  %v2369_v32 = vadd.f32 %v1483_v52, %v1069_v37  ;;  %v2271_v47 = vpop.f32.mrb[6].mxu1 }
 0x149   : > { %v3029_v27 = vpop.f32.mrb[14].mxu0  ;;  %1889 = vst.msk [vmem:[%s3021_s4] sm:$0xf] %vm1888_vm7, %v2128_v35  ;;  %v2129_v51 = vpack.c.bf16 %v1729_v50, %v1729_v50  ;;  %v1638_v55 = vadd.f32 %v2368_v2, %v3003_v12  ;;  %v2370_v14 = vadd.f32 %v2339_v13, %v2271_v47  ;;  %v1072_v25 = vpop.f32.mrb[7].mxu1 }
 0x14a   : > { %v3034_v26 = vpop.f32.mrb[15].mxu0  ;;  %1892 = vst.msk [vmem:[%s3021_s4 + $0xc] sm:$0xf] %vm1888_vm7, %v2131_v34  ;;  %v1636_v31 = vadd.f32 %v2369_v32, %v3003_v12  ;;  %v2371_v36 = vadd.f32 %v1486_v38, %v1072_v25 }
 0x14b   : > { %1890 = vst.msk [vmem:[%s3021_s4 + $0x4] sm:$0xf] %vm1888_vm7, %v2129_v51  ;;  %vm1670_vm10 = vcmp.ge.f32.partialorder %v1638_v55, 0.0  ;;  %v1702_v0 = vmul.f32 0.2, %v1638_v55  ;;  %v1639_v17 = vadd.f32 %v2370_v14, %v3003_v12 }
 0x14c   : > { %vm1668_vm11 = vcmp.ge.f32.partialorder %v1636_v31, 0.0  ;;  %v1700_v59 = vmul.f32 0.2, %v1636_v31  ;;  %v1637_v20 = vadd.f32 %v2371_v36, %v3003_v12 }
 0x14d   : > { %v1734_v48 = vsel %vm1670_vm10, %v1638_v55, %v1702_v0  ;;  %vm1671_vm12 = vcmp.ge.f32.partialorder %v1639_v17, 0.0  ;;  %v1703_v29 = vmul.f32 0.2, %v1639_v17 }
 0x14e   : > { %v2134_v16 = vpack.c.bf16 %v1734_v48, %v1734_v48  ;;  %v1732_v44 = vsel %vm1668_vm11, %v1636_v31, %v1700_v59  ;;  %vm1669_vm13 = vcmp.ge.f32.partialorder %v1637_v20, 0.0  ;;  %v1701_v15 = vmul.f32 0.2, %v1637_v20  ;;  %v2274_v8 = vpop.f32.mrb[8].mxu1 }
 0x14f   : > { %v3043_v7 = vpop.f32.mrb[16].mxu0  ;;  %v2132_v40 = vpack.c.bf16 %v1732_v44, %v1732_v44  ;;  %v1735_v4 = vsel %vm1671_vm12, %v1639_v17, %v1703_v29  ;;  %v2372_v60 = vadd.f32 %v3005_v42, %v2274_v8  ;;  %v1085_v58 = vpop.f32.mrb[9].mxu1 }
 0x150   : > { %v3046_v28 = vpop.f32.mrb[17].mxu0  ;;  %1895 = vst.msk [vmem:[%s3021_s4 + $0x18] sm:$0xf] %vm1888_vm7, %v2134_v16  ;;  %v2135_v43 = vpack.c.bf16 %v1735_v4, %v1735_v4  ;;  %v1733_v1 = vsel %vm1669_vm13, %v1637_v20, %v1701_v15  ;;  %v2373_v52 = vadd.f32 %v3007_v46, %v1085_v58  ;;  %v2275_v13 = vpop.f32.mrb[10].mxu1 }
 0x151   : > { %v3051_v38 = vpop.f32.mrb[18].mxu0  ;;  %1893 = vst.msk [vmem:[%s3021_s4 + $0x10] sm:$0xf] %vm1888_vm7, %v2132_v40  ;;  %v2133_v33 = vpack.c.bf16 %v1733_v1, %v1733_v1  ;;  %v1642_v22 = vadd.f32 %v2372_v60, %v3003_v12  ;;  %v2374_v42 = vadd.f32 %v3009_v6, %v2275_v13  ;;  %v1088_v24 = vpop.f32.mrb[11].mxu1 }
 0x152   : > { %v3057_v63 = vpop.f32.mrb[19].mxu0  ;;  %1896 = vst.msk [vmem:[%s3021_s4 + $0x1c] sm:$0xf] %vm1888_vm7, %v2135_v43  ;;  %v1640_v57 = vadd.f32 %v2373_v52, %v3003_v12  ;;  %v2375_v10 = vadd.f32 %v3012_v41, %v1088_v24 }
 0x153   : > { %1894 = vst.msk [vmem:[%s3021_s4 + $0x14] sm:$0xf] %vm1888_vm7, %v2133_v33  ;;  %vm1674_vm14 = vcmp.ge.f32.partialorder %v1642_v22, 0.0  ;;  %v1706_v46 = vmul.f32 0.2, %v1642_v22  ;;  %v1643_v49 = vadd.f32 %v2374_v42, %v3003_v12 }
 0x154   : > { %vm1672_vm15 = vcmp.ge.f32.partialorder %v1640_v57, 0.0  ;;  %v1704_v61 = vmul.f32 0.2, %v1640_v57  ;;  %v1641_v6 = vadd.f32 %v2375_v10, %v3003_v12 }
 0x155   : > { %v1738_v5 = vsel %vm1674_vm14, %v1642_v22, %v1706_v46  ;;  %vm1675_vm0 = vcmp.ge.f32.partialorder %v1643_v49, 0.0  ;;  %v1707_v56 = vmul.f32 0.2, %v1643_v49 }
 0x156   : > { %v2138_v18 = vpack.c.bf16 %v1738_v5, %v1738_v5  ;;  %v1736_v62 = vsel %vm1672_vm15, %v1640_v57, %v1704_v61  ;;  %vm1673_vm1 = vcmp.ge.f32.partialorder %v1641_v6, 0.0  ;;  %v1705_v9 = vmul.f32 0.2, %v1641_v6  ;;  %v2278_v41 = vpop.f32.mrb[12].mxu1 }
 0x157   : > { %v3067_v45 = vpop.f32.mrb[20].mxu0  ;;  %v2136_v53 = vpack.c.bf16 %v1736_v62, %v1736_v62  ;;  %v1739_v30 = vsel %vm1675_vm0, %v1643_v49, %v1707_v56  ;;  %v2376_v39 = vadd.f32 %v3023_v21, %v2278_v41  ;;  %v1101_v19 = vpop.f32.mrb[13].mxu1 }
 0x158   : > { %v3070_v23 = vpop.f32.mrb[21].mxu0  ;;  %1899 = vst.msk [vmem:[%s3021_s4 + $0x28] sm:$0xf] %vm1888_vm7, %v2138_v18  ;;  %v2139_v11 = vpack.c.bf16 %v1739_v30, %v1739_v30  ;;  %v1737_v35 = vsel %vm1673_vm1, %v1641_v6, %v1705_v9  ;;  %v2377_v54 = vadd.f32 %v3025_v3, %v1101_v19  ;;  %v2279_v2 = vpop.f32.mrb[14].mxu1 }
 0x159   : > { %v3075_v37 = vpop.f32.mrb[22].mxu0  ;;  %1897 = vst.msk [vmem:[%s3021_s4 + $0x20] sm:$0xf] %vm1888_vm7, %v2136_v53  ;;  %v2137_v34 = vpack.c.bf16 %v1737_v35, %v1737_v35  ;;  %v1646_v50 = vadd.f32 %v2376_v39, %v3003_v12  ;;  %v2378_v21 = vadd.f32 %v3029_v27, %v2279_v2  ;;  %v1104_v32 = vpop.f32.mrb[15].mxu1 }
 0x15a   : > { %v3081_v47 = vpop.f32.mrb[23].mxu0  ;;  %1900 = vst.msk [vmem:[%s3021_s4 + $0x2c] sm:$0xf] %vm1888_vm7, %v2139_v11  ;;  %v1644_v51 = vadd.f32 %v2377_v54, %v3003_v12  ;;  %v2379_v55 = vadd.f32 %v3034_v26, %v1104_v32 }
 0x15b   : > { %1898 = vst.msk [vmem:[%s3021_s4 + $0x24] sm:$0xf] %vm1888_vm7, %v2137_v34  ;;  %vm1678_vm2 = vcmp.ge.f32.partialorder %v1646_v50, 0.0  ;;  %v1710_v3 = vmul.f32 0.2, %v1646_v50  ;;  %v1647_v14 = vadd.f32 %v2378_v21, %v3003_v12 }
 0x15c   : > { %vm1676_vm3 = vcmp.ge.f32.partialorder %v1644_v51, 0.0  ;;  %v1708_v25 = vmul.f32 0.2, %v1644_v51  ;;  %v1645_v27 = vadd.f32 %v2379_v55, %v3003_v12 }
 0x15d   : > { %v1742_v31 = vsel %vm1678_vm2, %v1646_v50, %v1710_v3  ;;  %vm1679_vm4 = vcmp.ge.f32.partialorder %v1647_v14, 0.0  ;;  %v1711_v36 = vmul.f32 0.2, %v1647_v14 }
 0x15e   : > { %v2142_v0 = vpack.c.bf16 %v1742_v31, %v1742_v31  ;;  %v1740_v17 = vsel %vm1676_vm3, %v1644_v51, %v1708_v25  ;;  %vm1677_vm5 = vcmp.ge.f32.partialorder %v1645_v27, 0.0  ;;  %v1709_v59 = vmul.f32 0.2, %v1645_v27  ;;  %v2282_v26 = vpop.f32.mrb[16].mxu1 }
 0x15f   : > { %v3091_v20 = vpop.f32.mrb[24].mxu0  ;;  %v2140_v48 = vpack.c.bf16 %v1740_v17, %v1740_v17  ;;  %v1743_v29 = vsel %vm1679_vm4, %v1647_v14, %v1711_v36  ;;  %v2380_v16 = vadd.f32 %v3043_v7, %v2282_v26  ;;  %v1117_v44 = vpop.f32.mrb[17].mxu1 }
 0x160   : > { %v3094_v15 = vpop.f32.mrb[25].mxu0  ;;  %1903 = vst.msk [vmem:[%s3021_s4 + $0x38] sm:$0xf] %vm1888_vm7, %v2142_v0  ;;  %v2143_v8 = vpack.c.bf16 %v1743_v29, %v1743_v29  ;;  %v1741_v40 = vsel %vm1677_vm5, %v1645_v27, %v1709_v59  ;;  %v2381_v4 = vadd.f32 %v3046_v28, %v1117_v44  ;;  %v2283_v60 = vpop.f32.mrb[18].mxu1 }
 0x161   : > { %v3099_v58 = vpop.f32.mrb[26].mxu0  ;;  %1901 = vst.msk [vmem:[%s3021_s4 + $0x30] sm:$0xf] %vm1888_vm7, %v2140_v48  ;;  %v2141_v43 = vpack.c.bf16 %v1741_v40, %v1741_v40  ;;  %v1650_v1 = vadd.f32 %v2380_v16, %v3003_v12  ;;  %v2382_v7 = vadd.f32 %v3051_v38, %v2283_v60  ;;  %v1120_v52 = vpop.f32.mrb[19].mxu1 }
 0x162   : > { %v3105_v13 = vpop.f32.mrb[27].mxu0  ;;  %1904 = vst.msk [vmem:[%s3021_s4 + $0x3c] sm:$0xf] %vm1888_vm7, %v2143_v8  ;;  %v1648_v33 = vadd.f32 %v2381_v4, %v3003_v12  ;;  %v2383_v22 = vadd.f32 %v3057_v63, %v1120_v52 }
 0x163   : > { %1902 = vst.msk [vmem:[%s3021_s4 + $0x34] sm:$0xf] %vm1888_vm7, %v2141_v43  ;;  %vm1682_vm6 = vcmp.ge.f32.partialorder %v1650_v1, 0.0  ;;  %v1714_v28 = vmul.f32 0.2, %v1650_v1  ;;  %v1651_v42 = vadd.f32 %v2382_v7, %v3003_v12 }
 0x164   : > { %vm1680_vm8 = vcmp.ge.f32.partialorder %v1648_v33, 0.0  ;;  %v1712_v24 = vmul.f32 0.2, %v1648_v33  ;;  %v1649_v38 = vadd.f32 %v2383_v22, %v3003_v12 }
 0x165   : > { %v1746_v57 = vsel %vm1682_vm6, %v1650_v1, %v1714_v28  ;;  %vm1683_vm9 = vcmp.ge.f32.partialorder %v1651_v42, 0.0  ;;  %v1715_v10 = vmul.f32 0.2, %v1651_v42 }
 0x166   : > { %v2146_v46 = vpack.c.bf16 %v1746_v57, %v1746_v57  ;;  %v1744_v49 = vsel %vm1680_vm8, %v1648_v33, %v1712_v24  ;;  %vm1681_vm10 = vcmp.ge.f32.partialorder %v1649_v38, 0.0  ;;  %v1713_v61 = vmul.f32 0.2, %v1649_v38  ;;  %v2286_v63 = vpop.f32.mrb[20].mxu1 }
 0x167   : > { %v3115_v6 = vpop.f32.mrb[28].mxu0  ;;  %v2144_v5 = vpack.c.bf16 %v1744_v49, %v1744_v49  ;;  %v1747_v56 = vsel %vm1683_vm9, %v1651_v42, %v1715_v10  ;;  %v2384_v18 = vadd.f32 %v3067_v45, %v2286_v63  ;;  %v1133_v62 = vpop.f32.mrb[21].mxu1 }
 0x168   : > { %v3118_v9 = vpop.f32.mrb[29].mxu0  ;;  %1907 = vst.msk [vmem:[%s3021_s4 + $0x48] sm:$0xf] %vm1888_vm7, %v2146_v46  ;;  %v2147_v41 = vpack.c.bf16 %v1747_v56, %v1747_v56  ;;  %v1745_v53 = vsel %vm1681_vm10, %v1649_v38, %v1713_v61  ;;  %v2385_v30 = vadd.f32 %v3070_v23, %v1133_v62  ;;  %v2287_v39 = vpop.f32.mrb[22].mxu1 }
 0x169   : > { %v3123_v19 = vpop.f32.mrb[30].mxu0  ;;  %1905 = vst.msk [vmem:[%s3021_s4 + $0x40] sm:$0xf] %vm1888_vm7, %v2144_v5  ;;  %v2145_v11 = vpack.c.bf16 %v1745_v53, %v1745_v53  ;;  %v1654_v35 = vadd.f32 %v2384_v18, %v3003_v12  ;;  %v2386_v45 = vadd.f32 %v3075_v37, %v2287_v39  ;;  %v1136_v54 = vpop.f32.mrb[23].mxu1 }
 0x16a   : > { %v3129_v2 = vpop.f32.mrb[31].mxu0  ;;  %1908 = vst.msk [vmem:[%s3021_s4 + $0x4c] sm:$0xf] %vm1888_vm7, %v2147_v41  ;;  %v1652_v34 = vadd.f32 %v2385_v30, %v3003_v12  ;;  %v2387_v50 = vadd.f32 %v3081_v47, %v1136_v54 }
 0x16b   : > { %1906 = vst.msk [vmem:[%s3021_s4 + $0x44] sm:$0xf] %vm1888_vm7, %v2145_v11  ;;  %vm1686_vm11 = vcmp.ge.f32.partialorder %v1654_v35, 0.0  ;;  %v1718_v23 = vmul.f32 0.2, %v1654_v35  ;;  %v1655_v21 = vadd.f32 %v2386_v45, %v3003_v12 }
 0x16c   : > { %vm1684_vm12 = vcmp.ge.f32.partialorder %v1652_v34, 0.0  ;;  %v1716_v32 = vmul.f32 0.2, %v1652_v34  ;;  %v1653_v37 = vadd.f32 %v2387_v50, %v3003_v12 }
 0x16d   : > { %v1750_v51 = vsel %vm1686_vm11, %v1654_v35, %v1718_v23  ;;  %vm1687_vm13 = vcmp.ge.f32.partialorder %v1655_v21, 0.0  ;;  %v1719_v55 = vmul.f32 0.2, %v1655_v21 }
 0x16e   : > { %v2150_v3 = vpack.c.bf16 %v1750_v51, %v1750_v51  ;;  %v1748_v14 = vsel %vm1684_vm12, %v1652_v34, %v1716_v32  ;;  %vm1685_vm14 = vcmp.ge.f32.partialorder %v1653_v37, 0.0  ;;  %v1717_v25 = vmul.f32 0.2, %v1653_v37  ;;  %v2290_v47 = vpop.f32.mrb[24].mxu1 }
 0x16f   : > { %v2148_v27 = vpack.c.bf16 %v1748_v14, %v1748_v14  ;;  %v1751_v31 = vsel %vm1687_vm13, %v1655_v21, %v1719_v55  ;;  %v2388_v36 = vadd.f32 %v3091_v20, %v2290_v47  ;;  %v1149_v0 = vpop.f32.mrb[25].mxu1 }
 0x170   : > { %1911 = vst.msk [vmem:[%s3021_s4 + $0x58] sm:$0xf] %vm1888_vm7, %v2150_v3  ;;  %v2151_v17 = vpack.c.bf16 %v1751_v31, %v1751_v31  ;;  %v1749_v59 = vsel %vm1685_vm14, %v1653_v37, %v1717_v25  ;;  %v2389_v26 = vadd.f32 %v3094_v15, %v1149_v0  ;;  %v2291_v48 = vpop.f32.mrb[26].mxu1 }
 0x171   : > { %1909 = vst.msk [vmem:[%s3021_s4 + $0x50] sm:$0xf] %vm1888_vm7, %v2148_v27  ;;  %v2149_v29 = vpack.c.bf16 %v1749_v59, %v1749_v59  ;;  %v1658_v16 = vadd.f32 %v2388_v36, %v3003_v12  ;;  %v2390_v44 = vadd.f32 %v3099_v58, %v2291_v48  ;;  %v1152_v8 = vpop.f32.mrb[27].mxu1 }
 0x172   : > { %1912 = vst.msk [vmem:[%s3021_s4 + $0x5c] sm:$0xf] %vm1888_vm7, %v2151_v17  ;;  %v1656_v20 = vadd.f32 %v2389_v26, %v3003_v12  ;;  %v2391_v40 = vadd.f32 %v3105_v13, %v1152_v8 }
 0x173   : > { %1910 = vst.msk [vmem:[%s3021_s4 + $0x54] sm:$0xf] %vm1888_vm7, %v2149_v29  ;;  %vm1690_vm15 = vcmp.ge.f32.partialorder %v1658_v16, 0.0  ;;  %v1722_v4 = vmul.f32 0.2, %v1658_v16  ;;  %v1659_v15 = vadd.f32 %v2390_v44, %v3003_v12 }
 0x174   : > { %vm1688_vm0 = vcmp.ge.f32.partialorder %v1656_v20, 0.0  ;;  %v1720_v60 = vmul.f32 0.2, %v1656_v20  ;;  %v1657_v43 = vadd.f32 %v2391_v40, %v3003_v12 }
 0x175   : > { %v1754_v1 = vsel %vm1690_vm15, %v1658_v16, %v1722_v4  ;;  %vm1691_vm1 = vcmp.ge.f32.partialorder %v1659_v15, 0.0  ;;  %v1723_v58 = vmul.f32 0.2, %v1659_v15 }
 0x176   : > { %v2154_v7 = vpack.c.bf16 %v1754_v1, %v1754_v1  ;;  %v1752_v52 = vsel %vm1688_vm0, %v1656_v20, %v1720_v60  ;;  %vm1689_vm2 = vcmp.ge.f32.partialorder %v1657_v43, 0.0  ;;  %v1721_v33 = vmul.f32 0.2, %v1657_v43  ;;  %v2294_v13 = vpop.f32.mrb[28].mxu1 }
 0x177   : > { %v2152_v22 = vpack.c.bf16 %v1752_v52, %v1752_v52  ;;  %v1755_v28 = vsel %vm1691_vm1, %v1659_v15, %v1723_v58  ;;  %v2392_v42 = vadd.f32 %v3115_v6, %v2294_v13  ;;  %v1165_v24 = vpop.f32.mrb[29].mxu1 }
 0x178   : > { %1915 = vst.msk [vmem:[%s3021_s4 + $0x68] sm:$0xf] %vm1888_vm7, %v2154_v7  ;;  %v2155_v38 = vpack.c.bf16 %v1755_v28, %v1755_v28  ;;  %v1753_v57 = vsel %vm1689_vm2, %v1657_v43, %v1721_v33  ;;  %v2393_v10 = vadd.f32 %v3118_v9, %v1165_v24  ;;  %v2295_v46 = vpop.f32.mrb[30].mxu1 }
 0x179   : > { %1913 = vst.msk [vmem:[%s3021_s4 + $0x60] sm:$0xf] %vm1888_vm7, %v2152_v22  ;;  %v2153_v49 = vpack.c.bf16 %v1753_v57, %v1753_v57  ;;  %v1662_v61 = vadd.f32 %v2392_v42, %v3003_v12  ;;  %v2394_v63 = vadd.f32 %v3123_v19, %v2295_v46  ;;  %v1168_v5 = vpop.f32.mrb[31].mxu1 }
 0x17a   : > { %1916 = vst.msk [vmem:[%s3021_s4 + $0x6c] sm:$0xf] %vm1888_vm7, %v2155_v38  ;;  %v1660_v6 = vadd.f32 %v2393_v10, %v3003_v12  ;;  %v2395_v56 = vadd.f32 %v3129_v2, %v1168_v5 }
 0x17b   : > { %1914 = vst.msk [vmem:[%s3021_s4 + $0x64] sm:$0xf] %vm1888_vm7, %v2153_v49  ;;  %vm1694_vm3 = vcmp.ge.f32.partialorder %v1662_v61, 0.0  ;;  %v1726_v18 = vmul.f32 0.2, %v1662_v61  ;;  %v1663_v62 = vadd.f32 %v2394_v63, %v3003_v12 }
 0x17c   : > { %vm1692_vm4 = vcmp.ge.f32.partialorder %v1660_v6, 0.0  ;;  %v1724_v9 = vmul.f32 0.2, %v1660_v6  ;;  %v1661_v41 = vadd.f32 %v2395_v56, %v3003_v12 }
 0x17d   : > { %v1758_v53 = vsel %vm1694_vm3, %v1662_v61, %v1726_v18  ;;  %vm1695_vm5 = vcmp.ge.f32.partialorder %v1663_v62, 0.0  ;;  %v1727_v30 = vmul.f32 0.2, %v1663_v62 }
 0x17e   : > { %v2158_v39 = vpack.c.bf16 %v1758_v53, %v1758_v53  ;;  %v1756_v19 = vsel %vm1692_vm4, %v1660_v6, %v1724_v9  ;;  %vm1693_vm6 = vcmp.ge.f32.partialorder %v1661_v41, 0.0  ;;  %v1725_v11 = vmul.f32 0.2, %v1661_v41 }
 0x17f   : > { %v2156_v35 = vpack.c.bf16 %v1756_v19, %v1756_v19  ;;  %v1759_v45 = vsel %vm1695_vm5, %v1663_v62, %v1727_v30 }
 0x180   : > { %1919 = vst.msk [vmem:[%s3021_s4 + $0x78] sm:$0xf] %vm1888_vm7, %v2158_v39  ;;  %v2159_v54 = vpack.c.bf16 %v1759_v45, %v1759_v45  ;;  %v1757_v2 = vsel %vm1693_vm6, %v1661_v41, %v1725_v11 }
 0x181   : > { %1917 = vst.msk [vmem:[%s3021_s4 + $0x70] sm:$0xf] %vm1888_vm7, %v2156_v35  ;;  %v2157_v34 = vpack.c.bf16 %v1757_v2, %v1757_v2 }
 0x182   : > { %1920 = vst.msk [vmem:[%s3021_s4 + $0x7c] sm:$0xf] %vm1888_vm7, %v2159_v54 }
 0x183   : > { %1918 = vst.msk [vmem:[%s3021_s4 + $0x74] sm:$0xf] %vm1888_vm7, %v2157_v34 }
 0x184 PF: > { %s13_s12 = sadd.s32 1, %s2500_s12  }
 0x185   : > { %p10_p4 = scmp.ge.s32.totalorder %s13_s12, 4  }
 0x187   :  { %12 = sbr.rel (!%p10_p4) target bundleno = 1 (0x1), region = 65 }

// kernel: discriminator_forward.4
= control target key start
LH: loop header
LB: loop body
LE: loop exit
PB: predicated region body
PF: predicated region fallthrough
CT: control target
= control target key end

     0   :  { %s1833_s12 = smov 0   ;;  %s2217_s0 = inlined_call_operand.vmem [shape: bf16[2,9,9,256], index: 0, kind: input, shape index: {}]   ;;  %s2218_s1 = inlined_call_operand.vmem [shape: bf16[4,256,128], index: 1, kind: input, shape index: {}]   ;;  %s2219_s2 = inlined_call_operand.vmem [shape: f32[1,128], index: 2, kind: input, shape index: {}]   ;;  %s2220_s3 = inlined_call_operand.vmem [shape: bf16[2,8,8,128], index: 3, kind: output, shape index: {}]  }
   0x1 LB: > { %s1329_s13 = sadd.s32 4294967295, %s1811_s12   ;;  %p1333_p0 = scmp.ge.s32.totalorder %s1811_s12, 1  ;;  %s1811_s12 = sphi %s1833_s12, %s13_s12  }
   0x2   : > { %p137_p1 = scmp.lt.s32.totalorder %s1811_s12, 3 }
   0x4   : > { %p138_p2 = pnand %p1333_p0, %p137_p1 }
   0x5   : > { %v1725_v0 = vld [vmem:[%s2218_s1 + $0xc0] sm:$0xff] (!%p138_p2)   ;;  %v1729_v4 = vld [vmem:[%s2218_s1 + $0xc8] sm:$0xff] (!%p138_p2)   ;;  %v1733_v8 = vld [vmem:[%s2218_s1 + $0xd0] sm:$0xff] (!%p138_p2)   ;;  %p161_p3 = scmp.lt.s32.totalorder (!%p138_p2), %s1329_s13, 1  ;;  %vm223_vm0 = vsmask.f32 (!%p138_p2), 3328 }
   0x6   : > { %141 = sbr.rel (%p138_p2) target bundleno = 324 (0x144), region = 32  ;;  %v1726_v1 = vld [vmem:[%s2218_s1 + $0x40] sm:$0xff] (!%p138_p2)   ;;  %1556 = vmatprep.subr.bf16.mxu0 (!%p138_p2), %v1725_v0  ;;  %v1730_v5 = vld [vmem:[%s2218_s1 + $0x48] sm:$0xff] (!%p138_p2)   ;;  %v1734_v9 = vld [vmem:[%s2218_s1 + $0x50] sm:$0xff] (!%p138_p2)   ;;  %vm224_vm1 = vsmask.f32 (!%p138_p2), 7440 }
   0x7   : > { %v1727_v2 = vld [vmem:[%s2218_s1 + $0x80] sm:$0xff] (!%p138_p2)   ;;  %1596 = vmatprep.subr.bf16.mxu1 (!%p138_p2), %v1726_v1  ;;  %v1731_v6 = vld [vmem:[%s2218_s1 + $0x88] sm:$0xff] (!%p138_p2)   ;;  %v1735_v10 = vld [vmem:[%s2218_s1 + $0x90] sm:$0xff] (!%p138_p2)  }
   0x8   : > { %v1728_v3 = vld [vmem:[%s2218_s1] sm:$0xff] (!%p138_p2)   ;;  %1557 = vmatpush3.bf16.msra.mxu0 (!%p138_p2), %v1727_v2  ;;  %v1732_v7 = vld [vmem:[%s2218_s1 + $0x8] sm:$0xff] (!%p138_p2)   ;;  %v1736_v11 = vld [vmem:[%s2218_s1 + $0x10] sm:$0xff] (!%p138_p2)  }
   0x9   : > { %1597 = vmatpush3.bf16.msra.mxu1 (!%p138_p2), %v1728_v3  ;;  %1558 = vmatprep.subr.bf16.mxu0 (!%p138_p2), %v1729_v4  ;;  %v1737_v12 = vld [vmem:[%s2218_s1 + $0xd8] sm:$0xff] (!%p138_p2)   ;;  %v1741_v16 = vld [vmem:[%s2218_s1 + $0xe0] sm:$0xff] (!%p138_p2)   ;;  %v1745_v20 = vld [vmem:[%s2218_s1 + $0xe8] sm:$0xff] (!%p138_p2)  }
   0xa   : > { %1598 = vmatprep.subr.bf16.mxu1 (!%p138_p2), %v1730_v5  ;;  %v1738_v13 = vld [vmem:[%s2218_s1 + $0x58] sm:$0xff] (!%p138_p2)   ;;  %v1742_v17 = vld [vmem:[%s2218_s1 + $0x60] sm:$0xff] (!%p138_p2)   ;;  %v1746_v21 = vld [vmem:[%s2218_s1 + $0x68] sm:$0xff] (!%p138_p2)  }
   0xb   : > { %v1739_v14 = vld [vmem:[%s2218_s1 + $0x98] sm:$0xff] (!%p138_p2)   ;;  %v1743_v18 = vld [vmem:[%s2218_s1 + $0xa0] sm:$0xff] (!%p138_p2)   ;;  %v1747_v22 = vld [vmem:[%s2218_s1 + $0xa8] sm:$0xff] (!%p138_p2)  }
   0xc   : > { %1559 = vmatpush3.bf16.msra.mxu0 (!%p138_p2), %v1731_v6  ;;  %v1740_v15 = vld [vmem:[%s2218_s1 + $0x18] sm:$0xff] (!%p138_p2)   ;;  %v1744_v19 = vld [vmem:[%s2218_s1 + $0x20] sm:$0xff] (!%p138_p2)   ;;  %v1748_v23 = vld [vmem:[%s2218_s1 + $0x28] sm:$0xff] (!%p138_p2)  }
   0xd   : > { %1599 = vmatpush3.bf16.msra.mxu1 %v1732_v7  ;;  %1560 = vmatprep.subr.bf16.mxu0 %v1733_v8  ;;  %s2224_s13 = smov (!%p161_p3, %s1329_s13), 1  ;;  %v1749_v24 = vld [vmem:[%s2218_s1 + $0xf0] sm:$0xff]   ;;  %v1753_v28 = vld [vmem:[%s2218_s1 + $0xf8] sm:$0xff]   ;;  %v1759_v44 = vld [vmem:[%s2218_s1 + $0x140] sm:$0xff]  }
   0xe   : > { %1600 = vmatprep.subr.bf16.mxu1 %v1734_v9  ;;  %v1750_v25 = vld [vmem:[%s2218_s1 + $0x70] sm:$0xff]   ;;  %s1716_s16 = smul.u32 144, %s2224_s13  ;;  %v1754_v29 = vld [vmem:[%s2218_s1 + $0x78] sm:$0xff]   ;;  %v1760_v57 = vld [vmem:[%s2218_s1 + $0x1c0] sm:$0xff]   ;;  %s1532_s24 = sshll.u32 %s2224_s13, 5 }
   0xf   : > { %v1751_v26 = vld [vmem:[%s2218_s1 + $0xb0] sm:$0xff]   ;;  %v1755_v30 = vld [vmem:[%s2218_s1 + $0xb8] sm:$0xff]   ;;  %vm1973_vm2 = vmor %vm223_vm0, %vm224_vm1  ;;  %s2197_s28 = scalar_lea.vmem %s2220_s3, %s1532_s24 }
  0x10   : > { %1561 = vmatpush3.bf16.msra.mxu0 %v1735_v10  ;;  %v1752_v27 = vld [vmem:[%s2218_s1 + $0x30] sm:$0xff]   ;;  %s1941_s27 = scalar_lea.vmem %s2217_s0, %s1716_s16  ;;  %v1756_v31 = vld [vmem:[%s2218_s1 + $0x38] sm:$0xff]   ;;  %v1762_v0 = vld [vmem:[%s2218_s1 + $0x180] sm:$0xff]  }
  0x11   : > { %1601 = vmatpush3.bf16.msra.mxu1 %v1736_v11  ;;  %1562 = vmatprep.subr.bf16.mxu0 %v1737_v12  ;;  %v172_v32 = vld [vmem:[%s1941_s27] sm:$0xff]  ;;  %v173_v33 = vld [vmem:[%s1941_s27 + $0x8] sm:$0x11]  ;;  %v1952_v34 = vld [vmem:[%s1941_s27 + $0x10] sm:$0xff] }
  0x12   : > { %1602 = vmatprep.subr.bf16.mxu1 %v1738_v13  ;;  %v175_v35 = vld [vmem:[%s1941_s27 + $0x18] sm:$0x11]  ;;  %v1956_v36 = vld [vmem:[%s1941_s27 + $0x20] sm:$0xff]  ;;  %v227_v37 = vshrl.u32 %v172_v32, 16  ;;  %v1394_v38 = vcombine.high %v172_v32, %v1952_v34  ;;  %v1393_v39 = vcombine.low %v172_v32, %v1952_v34  ;;  %v177_v40 = vld [vmem:[%s1941_s27 + $0x28] sm:$0x11] }
  0x13   : > { %v230_v41 = vshll.u32 %v172_v32, 16  ;;  %v236_v42 = vshll.u32 %v173_v33, 16  ;;  %v241_v43 = vshrl.u32 %v1952_v34, 16  ;;  %v244_v46 = vshll.u32 %v1952_v34, 16  ;;  %v1761_v3 = vld [vmem:[%s2218_s1 + $0x100] sm:$0xff]   ;;  %v1764_v4 = vld [vmem:[%s2218_s1 + $0x1c8] sm:$0xff]  }
  0x14   : > { %1563 = vmatpush3.bf16.msra.mxu0 %v1739_v14  ;;  %v229_v45 = vrot.slane %v227_v37, 4  ;;  %v250_v47 = vshll.u32 %v175_v35, 16  ;;  %v255_v48 = vshrl.u32 %v1956_v36, 16  ;;  %732 = vmatprep.mubr.bf16.mxu1 %v1394_v38  ;;  %v258_v51 = vshll.u32 %v1956_v36, 16  ;;  %v1763_v6 = vld [vmem:[%s2218_s1 + $0x148] sm:$0xff]   ;;  %v2001_v12 = vld [vmem:[%s1941_s27 + $0x30] sm:$0xff] }
  0x15   : > { %1603 = vmatpush3.bf16.msra.mxu1 %v1740_v15  ;;  %1564 = vmatprep.subr.bf16.mxu0 %v1741_v16  ;;  %v232_v49 = vrot.slane %v230_v41, 5  ;;  %v243_v50 = vrot.slane %v241_v43, 4  ;;  %v238_v52 = vrot.slane %v236_v42, 5  ;;  %v246_v53 = vrot.slane %v244_v46, 5  ;;  %v1766_v11 = vld [vmem:[%s2218_s1 + $0x188] sm:$0xff]   ;;  %v1776_v33 = vld [vmem:[%s2218_s1 + $0x198] sm:$0xff]  }
  0x16   : > { %1604 = vmatprep.subr.bf16.mxu1 %v1742_v17  ;;  %v257_v54 = vrot.slane %v255_v48, 4  ;;  %v260_v56 = vrot.slane %v258_v51, 5  ;;  %v252_v60 = vrot.slane %v250_v47, 5  ;;  %v264_v61 = vshll.u32 %v177_v40, 16  ;;  %v179_v13 = vld [vmem:[%s1941_s27 + $0x38] sm:$0x11] }
  0x17   : > { %v233_v55 = vor.u32 %v232_v49, %v229_v45  ;;  %v247_v59 = vor.u32 %v246_v53, %v243_v50  ;;  %v269_v14 = vshrl.u32 %v2001_v12, 16  ;;  %v272_v15 = vshll.u32 %v2001_v12, 16  ;;  %v1765_v17 = vld [vmem:[%s2218_s1 + $0x108] sm:$0xff]   ;;  %v2043_v35 = vld [vmem:[%s1941_s27 + $0x40] sm:$0xff]  ;;  %v2054_v41 = vld [vmem:[%s1941_s27 + $0x50] sm:$0xff] }
  0x18   : > { %1565 = vmatpush3.bf16.msra.mxu0 %v1743_v18  ;;  %v261_v63 = vor.u32 %v260_v56, %v257_v54  ;;  %v266_v8 = vrot.slane %v264_v61, 5  ;;  %v1396_v16 = vcombine.high %v1956_v36, %v2001_v12  ;;  %v278_v18 = vshll.u32 %v179_v13, 16  ;;  %v181_v40 = vld [vmem:[%s1941_s27 + $0x48] sm:$0x11]  ;;  %v183_v42 = vld [vmem:[%s1941_s27 + $0x58] sm:$0x11] }
  0x19   : > { %1605 = vmatpush3.bf16.msra.mxu1 %v1744_v19  ;;  %1566 = vmatprep.subr.bf16.mxu0 %v1745_v20  ;;  %v234_v62 = vrot.slane %v233_v55, 4  ;;  %v248_v1 = vrot.slane %v247_v59, 4  ;;  %v1395_v19 = vcombine.low %v1956_v36, %v2001_v12  ;;  %v271_v20 = vrot.slane %v269_v14, 4  ;;  %v1780_v53 = vld [vmem:[%s2218_s1 + $0x1e0] sm:$0xff]   ;;  %v185_v13 = vld [vmem:[%s1941_s27 + $0x68] sm:$0x11] }
  0x1a   : > { %1606 = vmatprep.subr.bf16.mxu1 %v1746_v21  ;;  %v262_v7 = vrot.slane %v261_v63, 4  ;;  %v274_v21 = vrot.slane %v272_v15, 5  ;;  %v283_v43 = vshrl.u32 %v2043_v35, 16  ;;  %v292_v45 = vshll.u32 %v181_v40, 16  ;;  %v1782_v63 = vld [vmem:[%s2218_s1 + $0x1a0] sm:$0xff]   ;;  %v2106_v14 = vld [vmem:[%s1941_s27 + $0x70] sm:$0xff] }
  0x1b   : > { %v239_v2 = vsel %vm1973_vm2, %v234_v62, %v238_v52  ;;  %v1990_v5 = vsel %vm1973_vm2, %v248_v1, %v252_v60  ;;  %v297_v46 = vshrl.u32 %v2054_v41, 16  ;;  %v300_v47 = vshll.u32 %v2054_v41, 16  ;;  %v1779_v52 = vld [vmem:[%s2218_s1 + $0x160] sm:$0xff]   ;;  %v187_v15 = vld [vmem:[%s1941_s27 + $0x78] sm:$0x11] }
  0x1c   : > { %1567 = vmatpush3.bf16.msra.mxu0 %v1747_v22  ;;  %v1369_v9 = vcombine.low %v239_v2, %v1990_v5  ;;  %v1370_v10 = vcombine.high %v239_v2, %v1990_v5  ;;  %v1769_v22 = vld [vmem:[%s2218_s1 + $0x150] sm:$0xff]   ;;  %v285_v48 = vrot.slane %v283_v43, 4  ;;  %v306_v49 = vshll.u32 %v183_v42, 16  ;;  %v1781_v60 = vld [vmem:[%s2218_s1 + $0x120] sm:$0xff]   ;;  %v1783_v2 = vld [vmem:[%s2218_s1 + $0x168] sm:$0xff]  }
  0x1d   : > { %1607 = vmatpush3.bf16.msra.mxu1 %v1748_v23  ;;  %1568 = vmatprep.subr.bf16.mxu0 %v1749_v24  ;;  %v1770_v23 = vld [vmem:[%s2218_s1 + $0x1d0] sm:$0xff]   ;;  %v280_v24 = vrot.slane %v278_v18, 5  ;;  %v1398_v50 = vcombine.high %v2043_v35, %v2054_v41  ;;  %v1397_v51 = vcombine.low %v2043_v35, %v2054_v41  ;;  %v294_v55 = vrot.slane %v292_v45, 5 }
  0x1e   : > { %1608 = vmatprep.subr.bf16.mxu1 %v1750_v25  ;;  %531 = vmatprep.mubr.bf16.mxu0 %v1370_v10  ;;  %v1772_v25 = vld [vmem:[%s2218_s1 + $0x190] sm:$0xff]   ;;  %v299_v56 = vrot.slane %v297_v46, 4  ;;  %v308_v59 = vrot.slane %v306_v49, 5  ;;  %v1786_v10 = vld [vmem:[%s2218_s1 + $0x1a8] sm:$0xff]   ;;  %v320_v18 = vshll.u32 %v185_v13, 16  ;;  %v1794_v46 = vld [vmem:[%s2218_s1 + $0x1f8] sm:$0xff]  }
  0x1f   : > { %v1792_v42 = vld [vmem:[%s2218_s1 + $0x1b0] sm:$0xff]  }
  0x20   : > { %1569 = vmatpush3.bf16.msra.mxu0 %v1751_v26  ;;  %v275_v26 = vor.u32 %v274_v21, %v271_v20  ;;  %v325_v20 = vshrl.u32 %v2106_v14, 16  ;;  %v328_v21 = vshll.u32 %v2106_v14, 16 }
  0x21   : > { %1609 = vmatpush3.bf16.msra.mxu1 %v1752_v27  ;;  %1570 = vmatprep.subr.bf16.mxu0 %v1753_v28  ;;  %v1771_v27 = vld [vmem:[%s2218_s1 + $0x110] sm:$0xff]   ;;  %v2027_v28 = vsel %vm1973_vm2, %v262_v7, %v266_v8  ;;  %v1785_v7 = vld [vmem:[%s2218_s1 + $0x128] sm:$0xff]  }
  0x22   : > { %1610 = vmatprep.subr.bf16.mxu1 %v1754_v29  ;;  %v276_v29 = vrot.slane %v275_v26, 4 }
  0x24   : > { %1571 = vmatpush3.bf16.msra.mxu0 %v1755_v30  ;;  %v1774_v30 = vld [vmem:[%s2218_s1 + $0x1d8] sm:$0xff]   ;;  %v2037_v32 = vsel %vm1973_vm2, %v276_v29, %v280_v24  ;;  %v1789_v24 = vld [vmem:[%s2218_s1 + $0x170] sm:$0xff]  }
  0x25   : > { %1611 = vmatpush3.bf16.msra.mxu1 %v1756_v31  ;;  %1636 = vmatprep.subr.bf16.mxu0 %v1759_v44  ;;  %v1773_v31 = vld [vmem:[%s2218_s1 + $0x158] sm:$0xff]   ;;  %v1372_v37 = vcombine.high %v2027_v28, %v2037_v32  ;;  %v1371_v38 = vcombine.low %v2027_v28, %v2037_v32  ;;  %v286_v44 = vshll.u32 %v2043_v35, 16  ;;  %v1790_v29 = vld [vmem:[%s2218_s1 + $0x1f0] sm:$0xff]  }
  0x26   : > { %1676 = vmatprep.subr.bf16.mxu1 %v1760_v57  ;;  %v302_v57 = vrot.slane %v300_v47, 5 }
  0x27   : > { %532 = vmatmul.mubr.bf16.vlgmr.msra.gmra.mrb[0].mxu0 %v1369_v9  ;;  %v288_v54 = vrot.slane %v286_v44, 5  ;;  %v1793_v44 = vld [vmem:[%s2218_s1 + $0x178] sm:$0xff]  }
  0x28   : > { %733 = vmatmul.mubr.bf16.vlgmr.msra.gmra.mrb[0].mxu1 %v1393_v39  ;;  %1637 = vmatpush3.bf16.msra.mxu0 %v1761_v3  ;;  %v1775_v39 = vld [vmem:[%s2218_s1 + $0x118] sm:$0xff]   ;;  %v303_v62 = vor.u32 %v302_v57, %v299_v56  ;;  %v1784_v3 = vld [vmem:[%s2218_s1 + $0x1e8] sm:$0xff]  }
  0x29   : > { %1677 = vmatpush3.bf16.msra.mxu1 %v1762_v0  ;;  %740 = vmatprep.mubr.bf16.mxu1 %v1396_v16  ;;  %v289_v61 = vor.u32 %v288_v54, %v285_v48  ;;  %v1795_v48 = vld [vmem:[%s2218_s1 + $0x138] sm:$0xff]   ;;  %v1450_v54 = vcombine.high %v1952_v34, %v1956_v36 }
  0x2a   : > { %1678 = vmatprep.subr.bf16.mxu1 %v1764_v4  ;;  %1638 = vmatprep.subr.bf16.mxu0 %v1763_v6  ;;  %v304_v1 = vrot.slane %v303_v62, 4 }
  0x2b   : > { %539 = vmatprep.mubr.bf16.mxu0 %v1372_v37  ;;  %v290_v0 = vrot.slane %v289_v61, 4  ;;  %v1791_v37 = vld [vmem:[%s2218_s1 + $0x130] sm:$0xff]  }
  0x2c   : > { %1639 = vmatpush3.bf16.msra.mxu0 %v1765_v17  ;;  %v2089_v6 = vsel %vm1973_vm2, %v304_v1, %v308_v59 }
  0x2d   : > { %1679 = vmatpush3.bf16.msra.mxu1 %v1766_v11  ;;  %1640 = vmatprep.subr.bf16.mxu0 %v1769_v22  ;;  %v2085_v4 = vsel %vm1973_vm2, %v290_v0, %v294_v55  ;;  %v2102_v11 = vld [vmem:[%s1941_s27 + $0x60] sm:$0xff]  ;;  %v334_v22 = vshll.u32 %v187_v15, 16  ;;  %v1452_v0 = vcombine.high %v2001_v12, %v2043_v35 }
  0x2e   : > { %1680 = vmatprep.subr.bf16.mxu1 %v1770_v23  ;;  %v1374_v8 = vcombine.high %v2085_v4, %v2089_v6  ;;  %v1373_v9 = vcombine.low %v2085_v4, %v2089_v6  ;;  %v311_v16 = vshrl.u32 %v2102_v11, 16  ;;  %v314_v17 = vshll.u32 %v2102_v11, 16  ;;  %v188_v55 = vld [vmem:[%s1941_s27 + $0x80] sm:$0xff] }
  0x2f   : > { %540 = vmatmul.mubr.bf16.gmra.mrb[4].mxu0 %v1371_v38  ;;  %v1400_v23 = vcombine.high %v2102_v11, %v2106_v14  ;;  %v336_v40 = vrot.slane %v334_v22, 5  ;;  %v1508_v56 = vcombine.high %v2037_v32, %v2085_v4  ;;  %v987_v57 = vshrl.u32 %v188_v55, 16 }
  0x30   : > { %741 = vmatmul.mubr.bf16.gmra.mrb[4].mxu1 %v1395_v19  ;;  %1641 = vmatpush3.bf16.msra.mxu0 %v1771_v27  ;;  %v1506_v19 = vcombine.high %v1990_v5, %v2027_v28  ;;  %v316_v26 = vrot.slane %v314_v17, 5  ;;  %v1399_v27 = vcombine.low %v2102_v11, %v2106_v14  ;;  %v990_v59 = vshll.u32 %v188_v55, 16 }
  0x31   : > { %1681 = vmatpush3.bf16.msra.mxu1 %v1772_v25  ;;  %1642 = vmatprep.subr.bf16.mxu0 %v1773_v31  ;;  %v313_v25 = vrot.slane %v311_v16, 4  ;;  %v327_v31 = vrot.slane %v325_v20, 4  ;;  %v989_v61 = vrot.slane %v987_v57, 4  ;;  %v1507_v1 = vcombine.low %v2037_v32, %v2085_v4 }
  0x32   : > { %1682 = vmatprep.subr.bf16.mxu1 %v1774_v30  ;;  %748 = vmatprep.mubr.bf16.mxu1 %v1398_v50  ;;  %v322_v30 = vrot.slane %v320_v18, 5  ;;  %v1796_v50 = vld [vmem:[%s2218_s1 + $0x1b8] sm:$0xff]   ;;  %v992_v62 = vrot.slane %v990_v59, 5  ;;  %v1453_v4 = vcombine.low %v2054_v41, %v2102_v11 }
  0x33   : > { %547 = vmatprep.mubr.bf16.mxu0 %v1374_v8  ;;  %v317_v38 = vor.u32 %v316_v26, %v313_v25 }
  0x34   : > { %1643 = vmatpush3.bf16.msra.mxu0 %v1775_v39 }
  0x35   : > { %1683 = vmatpush3.bf16.msra.mxu1 %v1776_v33  ;;  %1644 = vmatprep.subr.bf16.mxu0 %v1779_v52  ;;  %v330_v33 = vrot.slane %v328_v21, 5  ;;  %v318_v43 = vrot.slane %v317_v38, 4 }
  0x36   : > { %1684 = vmatprep.subr.bf16.mxu1 %v1780_v53 }
  0x37   : > { %548 = vmatmul.mubr.bf16.gmra.mrb[8].mxu0 %v1373_v9  ;;  %v331_v39 = vor.u32 %v330_v33, %v327_v31  ;;  %v323_v47 = vsel %vm1973_vm2, %v318_v43, %v322_v30 }
  0x38   : > { %749 = vmatmul.mubr.bf16.gmra.mrb[8].mxu1 %v1397_v51  ;;  %1645 = vmatpush3.bf16.msra.mxu0 %v1781_v60  ;;  %v1505_v51 = vcombine.low %v1990_v5, %v2027_v28  ;;  %v189_v60 = vld [vmem:[%s1941_s27 + $0x88] sm:$0x11]  ;;  %v993_v5 = vor.u32 %v992_v62, %v989_v61  ;;  %v1509_v9 = vcombine.low %v2089_v6, %v323_v47 }
  0x39   : > { %1685 = vmatpush3.bf16.msra.mxu1 %v1782_v63  ;;  %1646 = vmatprep.subr.bf16.mxu0 %v1783_v2  ;;  %v332_v45 = vrot.slane %v331_v39, 4  ;;  %v996_v28 = vshll.u32 %v189_v60, 16  ;;  %v1449_v63 = vcombine.low %v1952_v34, %v1956_v36  ;;  %v1510_v2 = vcombine.high %v2089_v6, %v323_v47 }
  0x3a   : > { %1686 = vmatprep.subr.bf16.mxu1 %v1784_v3  ;;  %756 = vmatprep.mubr.bf16.mxu1 %v1400_v23  ;;  %v994_v3 = vrot.slane %v993_v5, 4  ;;  %v1451_v34 = vcombine.low %v2001_v12, %v2043_v35  ;;  %v1454_v36 = vcombine.high %v2054_v41, %v2102_v11  ;;  %v1455_v12 = vcombine.low %v2106_v14, %v188_v55 }
  0x3b   : > { %v337_v49 = vsel %vm1973_vm2, %v332_v45, %v336_v40 }
  0x3c   : > { %1647 = vmatpush3.bf16.msra.mxu0 %v1785_v7  ;;  %v1376_v52 = vcombine.high %v323_v47, %v337_v49  ;;  %v1375_v53 = vcombine.low %v323_v47, %v337_v49  ;;  %v998_v7 = vrot.slane %v996_v28, 5 }
  0x3d   : > { %1687 = vmatpush3.bf16.msra.mxu1 %v1786_v10  ;;  %1648 = vmatprep.subr.bf16.mxu0 %v1789_v24  ;;  %v1456_v10 = vcombine.high %v2106_v14, %v188_v55 }
  0x3e   : > { %1688 = vmatprep.subr.bf16.mxu1 %v1790_v29  ;;  %555 = vmatprep.mubr.bf16.mxu0 %v1376_v52  ;;  %v999_v8 = vsel %vm1973_vm2, %v994_v3, %v998_v7 }
  0x3f   : > { %556 = vmatmul.mubr.bf16.gmra.mrb[12].mxu0 %v1375_v53  ;;  %v1512_v32 = vcombine.high %v337_v49, %v999_v8  ;;  %v1511_v58 = vcombine.low %v337_v49, %v999_v8 }
  0x40   : > { %757 = vmatmul.mubr.bf16.gmra.mrb[12].mxu1 %v1399_v27  ;;  %1649 = vmatpush3.bf16.msra.mxu0 %v1791_v37 }
  0x41   : > { %1179 = vmatprep.mubr.bf16.mxu1 %v1506_v19  ;;  %1689 = vmatpush3.bf16.msra.mxu1 %v1792_v42 }
  0x42   : > { %1650 = vmatprep.subr.bf16.mxu0 %v1793_v44  ;;  %1690 = vmatprep.subr.bf16.mxu1 %v1794_v46 }
  0x43   : > { %945 = vmatprep.mubr.bf16.mxu0 %v1450_v54 }
  0x44   : > { %1651 = vmatpush3.bf16.msra.mxu0 %v1795_v48 }
  0x45   : > { %1691 = vmatpush3.bf16.msra.mxu1 %v1796_v50 }
  0x47   : > { %946 = vmatmul.mubr.bf16.vlgmr.msra.gmra.mrb[16].mxu0 %v1449_v63 }
  0x48   : > { %1180 = vmatmul.mubr.bf16.vlgmr.msra.gmra.mrb[16].mxu1 %v1505_v51  ;;  %953 = vmatprep.mubr.bf16.mxu0 %v1452_v0 }
  0x49   : > { %1187 = vmatprep.mubr.bf16.mxu1 %v1508_v56 }
  0x4f   : > { %954 = vmatmul.mubr.bf16.gmra.mrb[20].mxu0 %v1451_v34 }
  0x50   : > { %1188 = vmatmul.mubr.bf16.gmra.mrb[20].mxu1 %v1507_v1  ;;  %961 = vmatprep.mubr.bf16.mxu0 %v1454_v36 }
  0x51   : > { %1195 = vmatprep.mubr.bf16.mxu1 %v1510_v2 }
  0x57   : > { %962 = vmatmul.mubr.bf16.gmra.mrb[24].mxu0 %v1453_v4 }
  0x58   : > { %1196 = vmatmul.mubr.bf16.gmra.mrb[24].mxu1 %v1509_v9  ;;  %969 = vmatprep.mubr.bf16.mxu0 %v1456_v10 }
  0x59   : > { %1203 = vmatprep.mubr.bf16.mxu1 %v1512_v32 }
  0x5f   : > { %970 = vmatmul.mubr.bf16.gmra.mrb[28].mxu0 %v1455_v12 }
  0x60   : > { %1204 = vmatmul.mubr.bf16.gmra.mrb[28].mxu1 %v1511_v58 }
  0xfa   : > { %v1572_v18 = vpop.f32.mrb[0].mxu0 }
  0xfb   : > { %v1612_v35 = vpop.f32.mrb[0].mxu1  ;;  %v1573_v19 = vpop.f32.mrb[1].mxu0 }
  0xfc   : > { %v1613_v13 = vpop.f32.mrb[1].mxu1  ;;  %v1574_v21 = vadd.f32 %v1573_v19, %v1572_v18  ;;  %v1575_v41 = vpop.f32.mrb[2].mxu0 }
  0xfd   : > { %v1614_v6 = vadd.f32 %v1613_v13, %v1612_v35  ;;  %v1615_v15 = vpop.f32.mrb[2].mxu1  ;;  %v1576_v22 = vpop.f32.mrb[3].mxu0 }
  0xfe   : > { %v1616_v16 = vpop.f32.mrb[3].mxu1  ;;  %v1577_v26 = vadd.f32 %v1576_v22, %v1575_v41  ;;  %v2188_v41 = vld [vmem:[%s2219_s2] ss:$0 sm:$0xff] }
  0xff   : > { %v1617_v17 = vadd.f32 %v1616_v16, %v1615_v15  ;;  %v735_v25 = vadd.f32 %v1614_v6, %v1574_v21 }
 0x101   : > { %v738_v29 = vadd.f32 %v1617_v17, %v1577_v26 }
 0x102   : > { %v1578_v30 = vpop.f32.mrb[4].mxu0 }
 0x103   : > { %v1618_v20 = vpop.f32.mrb[4].mxu1  ;;  %v1579_v31 = vpop.f32.mrb[5].mxu0 }
 0x104   : > { %v1619_v11 = vpop.f32.mrb[5].mxu1  ;;  %v1580_v33 = vadd.f32 %v1579_v31, %v1578_v30  ;;  %v1581_v37 = vpop.f32.mrb[6].mxu0 }
 0x105   : > { %v1620_v23 = vadd.f32 %v1619_v11, %v1618_v20  ;;  %v1621_v24 = vpop.f32.mrb[6].mxu1  ;;  %v1582_v39 = vpop.f32.mrb[7].mxu0 }
 0x106   : > { %v1622_v27 = vpop.f32.mrb[7].mxu1  ;;  %v1583_v43 = vadd.f32 %v1582_v39, %v1581_v37 }
 0x107   : > { %v1623_v14 = vadd.f32 %v1622_v27, %v1621_v24  ;;  %v2173_v42 = vadd.f32 %v1620_v23, %v1580_v33 }
 0x109   : > { %v2175_v47 = vadd.f32 %v1623_v14, %v1583_v43 }
 0x10a   : > { %v1584_v49 = vpop.f32.mrb[8].mxu0 }
 0x10b   : > { %v1624_v38 = vpop.f32.mrb[8].mxu1  ;;  %v1585_v50 = vpop.f32.mrb[9].mxu0 }
 0x10c   : > { %v1625_v40 = vpop.f32.mrb[9].mxu1  ;;  %v1586_v51 = vadd.f32 %v1585_v50, %v1584_v49  ;;  %v1587_v52 = vpop.f32.mrb[10].mxu0 }
 0x10d   : > { %v1626_v44 = vadd.f32 %v1625_v40, %v1624_v38  ;;  %v1627_v45 = vpop.f32.mrb[10].mxu1  ;;  %v1588_v54 = vpop.f32.mrb[11].mxu0 }
 0x10e   : > { %v1628_v46 = vpop.f32.mrb[11].mxu1  ;;  %v1589_v57 = vadd.f32 %v1588_v54, %v1587_v52 }
 0x10f   : > { %v1629_v48 = vadd.f32 %v1628_v46, %v1627_v45  ;;  %v2177_v56 = vadd.f32 %v1626_v44, %v1586_v51 }
 0x111   : > { %v2179_v62 = vadd.f32 %v1629_v48, %v1589_v57 }
 0x112   : > { %v1590_v28 = vpop.f32.mrb[12].mxu0 }
 0x113   : > { %v1630_v53 = vpop.f32.mrb[12].mxu1  ;;  %v1591_v63 = vpop.f32.mrb[13].mxu0 }
 0x114   : > { %v1631_v55 = vpop.f32.mrb[13].mxu1  ;;  %v1592_v1 = vadd.f32 %v1591_v63, %v1590_v28  ;;  %v1593_v2 = vpop.f32.mrb[14].mxu0 }
 0x115   : > { %v1632_v59 = vadd.f32 %v1631_v55, %v1630_v53  ;;  %v1633_v60 = vpop.f32.mrb[14].mxu1  ;;  %v1594_v7 = vpop.f32.mrb[15].mxu0 }
 0x116   : > { %v1634_v61 = vpop.f32.mrb[15].mxu1  ;;  %v1595_v9 = vadd.f32 %v1594_v7, %v1593_v2 }
 0x117   : > { %v1635_v5 = vadd.f32 %v1634_v61, %v1633_v60  ;;  %v2181_v36 = vadd.f32 %v1632_v59, %v1592_v1 }
 0x119   : > { %v2183_v10 = vadd.f32 %v1635_v5, %v1595_v9 }
 0x11a   : > { %v1652_v58 = vpop.f32.mrb[16].mxu0 }
 0x11b   : > { %v1692_v0 = vpop.f32.mrb[16].mxu1  ;;  %v1653_v12 = vpop.f32.mrb[17].mxu0 }
 0x11c   : > { %v1693_v3 = vpop.f32.mrb[17].mxu1  ;;  %v1654_v13 = vadd.f32 %v1653_v12, %v1652_v58  ;;  %v1655_v6 = vpop.f32.mrb[18].mxu0 }
 0x11d   : > { %v1694_v8 = vadd.f32 %v1693_v3, %v1692_v0  ;;  %v1695_v34 = vpop.f32.mrb[18].mxu1  ;;  %v1656_v16 = vpop.f32.mrb[19].mxu0 }
 0x11e   : > { %v1696_v32 = vpop.f32.mrb[19].mxu1  ;;  %v978_v19 = vadd.f32 %v1654_v13, %v735_v25  ;;  %v1657_v20 = vadd.f32 %v1656_v16, %v1655_v6 }
 0x11f   : > { %v1697_v4 = vadd.f32 %v1696_v32, %v1695_v34 }
 0x120   : > { %v1212_v22 = vadd.f32 %v1694_v8, %v978_v19  ;;  %v979_v23 = vadd.f32 %v1657_v20, %v738_v29 }
 0x122   : > { %v1226_v24 = vadd.f32 %v2188_v41, %v1212_v22  ;;  %v1213_v26 = vadd.f32 %v1697_v4, %v979_v23  ;;  %v1658_v27 = vpop.f32.mrb[20].mxu0 }
 0x123   : > { %v1698_v35 = vpop.f32.mrb[20].mxu1  ;;  %v1659_v14 = vpop.f32.mrb[21].mxu0 }
 0x124   : > { %v1699_v15 = vpop.f32.mrb[21].mxu1  ;;  %v1242_v31 = vmul.f32 0.2, %v1226_v24  ;;  %v1227_v25 = vadd.f32 %v2188_v41, %v1213_v26  ;;  %v1660_v33 = vadd.f32 %v1659_v14, %v1658_v27  ;;  %v1661_v37 = vpop.f32.mrb[22].mxu0  ;;  %vm1234_vm3 = vcmp.ge.f32.partialorder %v1226_v24, 0.0 }
 0x125   : > { %v1700_v17 = vadd.f32 %v1699_v15, %v1698_v35  ;;  %v1701_v18 = vpop.f32.mrb[22].mxu1  ;;  %v1662_v39 = vpop.f32.mrb[23].mxu0 }
 0x126   : > { %v1702_v21 = vpop.f32.mrb[23].mxu1  ;;  %vm1235_vm4 = vcmp.ge.f32.partialorder %v1227_v25, 0.0  ;;  %v1243_v44 = vmul.f32 0.2, %v1227_v25  ;;  %v980_v29 = vadd.f32 %v1660_v33, %v2173_v42  ;;  %v1663_v46 = vadd.f32 %v1662_v39, %v1661_v37 }
 0x127   : > { %v1703_v11 = vadd.f32 %v1702_v21, %v1701_v18  ;;  %v1250_v49 = vsel %vm1234_vm3, %v1226_v24, %v1242_v31 }
 0x128   : > { %v1251_v50 = vsel %vm1235_vm4, %v1227_v25, %v1243_v44  ;;  %v1214_v51 = vadd.f32 %v1700_v17, %v980_v29  ;;  %v981_v53 = vadd.f32 %v1663_v46, %v2175_v47 }
 0x129   : > { %v1536_v52 = vpack.c.bf16 %v1251_v50, %v1250_v49 }
 0x12a   : > { %v1228_v54 = vadd.f32 %v2188_v41, %v1214_v51  ;;  %v1664_v55 = vpop.f32.mrb[24].mxu0  ;;  %v1215_v42 = vadd.f32 %v1703_v11, %v981_v53 }
 0x12b   : > { %v1704_v30 = vpop.f32.mrb[24].mxu1  ;;  %1537 = vst [vmem:[%s2197_s28] sm:$0xff] %v1536_v52   ;;  %v1665_v57 = vpop.f32.mrb[25].mxu0 }
 0x12c   : > { %v1705_v38 = vpop.f32.mrb[25].mxu1  ;;  %v1666_v60 = vadd.f32 %v1665_v57, %v1664_v55  ;;  %v1667_v61 = vpop.f32.mrb[26].mxu0  ;;  %v1244_v28 = vmul.f32 0.2, %v1228_v54  ;;  %v1229_v63 = vadd.f32 %v2188_v41, %v1215_v42  ;;  %vm1236_vm5 = vcmp.ge.f32.partialorder %v1228_v54, 0.0 }
 0x12d   : > { %v1706_v40 = vadd.f32 %v1705_v38, %v1704_v30  ;;  %v1707_v43 = vpop.f32.mrb[26].mxu1  ;;  %v1668_v0 = vpop.f32.mrb[27].mxu0 }
 0x12e   : > { %v1708_v45 = vpop.f32.mrb[27].mxu1  ;;  %v982_v47 = vadd.f32 %v1666_v60, %v2177_v56  ;;  %v1669_v3 = vadd.f32 %v1668_v0, %v1667_v61  ;;  %vm1237_vm6 = vcmp.ge.f32.partialorder %v1229_v63, 0.0  ;;  %v1245_v8 = vmul.f32 0.2, %v1229_v63 }
 0x12f   : > { %v1709_v48 = vadd.f32 %v1708_v45, %v1707_v43  ;;  %v1252_v4 = vsel %vm1236_vm5, %v1228_v54, %v1244_v28 }
 0x130   : > { %v1216_v9 = vadd.f32 %v1706_v40, %v982_v47  ;;  %v983_v32 = vadd.f32 %v1669_v3, %v2179_v62  ;;  %v1253_v58 = vsel %vm1237_vm6, %v1229_v63, %v1245_v8 }
 0x131   : > { %v1541_v12 = vpack.c.bf16 %v1253_v58, %v1252_v4 }
 0x132   : > { %v1230_v35 = vadd.f32 %v2188_v41, %v1216_v9  ;;  %v1217_v13 = vadd.f32 %v1709_v48, %v983_v32  ;;  %v1670_v6 = vpop.f32.mrb[28].mxu0 }
 0x133   : > { %v1710_v59 = vpop.f32.mrb[28].mxu1  ;;  %v1671_v15 = vpop.f32.mrb[29].mxu0  ;;  %1553 = vst [vmem:[%s2197_s28 + $0x8] sm:$0xff] %v1541_v12  }
 0x134   : > { %v1711_v5 = vpop.f32.mrb[29].mxu1  ;;  %v1246_v16 = vmul.f32 0.2, %v1230_v35  ;;  %v1231_v56 = vadd.f32 %v2188_v41, %v1217_v13  ;;  %v1672_v17 = vadd.f32 %v1671_v15, %v1670_v6  ;;  %v1673_v18 = vpop.f32.mrb[30].mxu0  ;;  %vm1238_vm7 = vcmp.ge.f32.partialorder %v1230_v35, 0.0 }
 0x135   : > { %v1712_v1 = vadd.f32 %v1711_v5, %v1710_v59  ;;  %v1713_v2 = vpop.f32.mrb[30].mxu1  ;;  %v1674_v19 = vpop.f32.mrb[31].mxu0 }
 0x136   : > { %v1714_v7 = vpop.f32.mrb[31].mxu1  ;;  %vm1239_vm8 = vcmp.ge.f32.partialorder %v1231_v56, 0.0  ;;  %v1247_v20 = vmul.f32 0.2, %v1231_v56  ;;  %v984_v62 = vadd.f32 %v1672_v17, %v2181_v36  ;;  %v1675_v21 = vadd.f32 %v1674_v19, %v1673_v18 }
 0x137   : > { %v1715_v34 = vadd.f32 %v1714_v7, %v1713_v2  ;;  %v1254_v11 = vsel %vm1238_vm7, %v1230_v35, %v1246_v16 }
 0x138   : > { %v1255_v22 = vsel %vm1239_vm8, %v1231_v56, %v1247_v20  ;;  %v1218_v23 = vadd.f32 %v1712_v1, %v984_v62  ;;  %v985_v26 = vadd.f32 %v1675_v21, %v2183_v10 }
 0x139   : > { %v1546_v24 = vpack.c.bf16 %v1255_v22, %v1254_v11 }
 0x13a   : > { %v1232_v27 = vadd.f32 %v2188_v41, %v1218_v23  ;;  %v1219_v14 = vadd.f32 %v1715_v34, %v985_v26 }
 0x13b   : > { %1554 = vst [vmem:[%s2197_s28 + $0x10] sm:$0xff] %v1546_v24  }
 0x13c   : > { %v1248_v30 = vmul.f32 0.2, %v1232_v27  ;;  %v1233_v31 = vadd.f32 %v2188_v41, %v1219_v14  ;;  %vm1240_vm9 = vcmp.ge.f32.partialorder %v1232_v27, 0.0 }
 0x13e   : > { %vm1241_vm10 = vcmp.ge.f32.partialorder %v1233_v31, 0.0  ;;  %v1249_v25 = vmul.f32 0.2, %v1233_v31  ;;  %v1256_v33 = vsel %vm1240_vm9, %v1232_v27, %v1248_v30 }
 0x140   : > { %v1257_v36 = vsel %vm1241_vm10, %v1233_v31, %v1249_v25 }
 0x141   : > { %v1551_v37 = vpack.c.bf16 %v1257_v36, %v1256_v33 }
 0x143   : > { %1555 = vst [vmem:[%s2197_s28 + $0x18] sm:$0xff] %v1551_v37  }
 0x144 PF: > { %s13_s12 = sadd.s32 1, %s1811_s12  }
 0x145   : > { %p10_p4 = scmp.ge.s32.totalorder %s13_s12, 4  }
 0x147   :  { %12 = sbr.rel (!%p10_p4) target bundleno = 1 (0x1), region = 65 }

// kernel: discriminator_forward.5
= control target key start
LH: loop header
LB: loop body
LE: loop exit
PB: predicated region body
PF: predicated region fallthrough
CT: control target
= control target key end

     0   :  { %s11471_s12 = smov 0   ;;  %s14863_s0 = inlined_call_operand.vmem [shape: bf16[2,5,5,512], index: 0, kind: input, shape index: {}]   ;;  %s14864_s1 = inlined_call_operand.vmem [shape: bf16[4,512,256], index: 1, kind: input, shape index: {}]   ;;  %s14865_s2 = inlined_call_operand.vmem [shape: f32[1,256], index: 2, kind: input, shape index: {}]   ;;  %s14866_s3 = inlined_call_operand.vmem [shape: bf16[2,4,4,256], index: 3, kind: output, shape index: {}]  }
   0x1 LB: > { %s8044_s13 = sadd.s32 4294967295, %s11449_s12   ;;  %p8048_p0 = scmp.ge.s32.totalorder %s11449_s12, 1  ;;  %s11449_s12 = sphi %s11471_s12, %s13_s12  }
   0x2   : > { %p137_p1 = scmp.lt.s32.totalorder %s11449_s12, 3 }
   0x4   : > { %p138_p2 = pnand %p8048_p0, %p137_p1 }
   0x5   : > { %v9887_v0 = vld [vmem:[%s14864_s1 + $0x204] ss:$8 sps:$4 sm:$0xff] (!%p138_p2)   ;;  %v9891_v2 = vld [vmem:[%s14864_s1 + $0x200] ss:$8 sps:$4 sm:$0xff] (!%p138_p2)   ;;  %v9893_v4 = vld [vmem:[%s14864_s1 + $0x214] ss:$8 sps:$4 sm:$0xff] (!%p138_p2)  }
   0x6   : > { %141 = sbr.rel (%p138_p2) target bundleno = 1256 (0x4e8), region = 32  ;;  %v9889_v1 = vld [vmem:[%s14864_s1 + $0x304] ss:$8 sps:$4 sm:$0xff] (!%p138_p2)   ;;  %673 = vmatprep.subr.bf16.mxu0 (!%p138_p2), %v9887_v0  ;;  %v9892_v3 = vld [vmem:[%s14864_s1 + $0x300] ss:$8 sps:$4 sm:$0xff] (!%p138_p2)   ;;  %p161_p3 = scmp.lt.s32.totalorder (!%p138_p2), %s8044_s13, 1 }
   0x7   : > { %714 = vmatprep.subr.bf16.mxu1 (!%p138_p2), %v9889_v1  ;;  %674 = vmatpush1.bf16.msra.mxu0 (!%p138_p2), %v9891_v2  ;;  %v9895_v5 = vld [vmem:[%s14864_s1 + $0x314] ss:$8 sps:$4 sm:$0xff] (!%p138_p2)   ;;  %v9897_v6 = vld [vmem:[%s14864_s1 + $0x210] ss:$8 sps:$4 sm:$0xff] (!%p138_p2)   ;;  %v9899_v8 = vld [vmem:[%s14864_s1 + $0x224] ss:$8 sps:$4 sm:$0xff] (!%p138_p2)  }
   0x8   : > { %715 = vmatpush1.bf16.msra.mxu1 (!%p138_p2), %v9892_v3  ;;  %675 = vmatprep.subr.bf16.mxu0 (!%p138_p2), %v9893_v4  ;;  %v9898_v7 = vld [vmem:[%s14864_s1 + $0x310] ss:$8 sps:$4 sm:$0xff] (!%p138_p2)   ;;  %v9901_v9 = vld [vmem:[%s14864_s1 + $0x324] ss:$8 sps:$4 sm:$0xff] (!%p138_p2)   ;;  %v9903_v10 = vld [vmem:[%s14864_s1 + $0x220] ss:$8 sps:$4 sm:$0xff] (!%p138_p2)  }
   0x9   : > { %716 = vmatprep.subr.bf16.mxu1 (!%p138_p2), %v9895_v5  ;;  %v9904_v11 = vld [vmem:[%s14864_s1 + $0x320] ss:$8 sps:$4 sm:$0xff] (!%p138_p2)   ;;  %v9905_v12 = vld [vmem:[%s14864_s1 + $0x234] ss:$8 sps:$4 sm:$0xff] (!%p138_p2)   ;;  %v9909_v14 = vld [vmem:[%s14864_s1 + $0x230] ss:$8 sps:$4 sm:$0xff] (!%p138_p2)  }
   0xa   : > { %v9907_v13 = vld [vmem:[%s14864_s1 + $0x334] ss:$8 sps:$4 sm:$0xff] (!%p138_p2)   ;;  %v9910_v15 = vld [vmem:[%s14864_s1 + $0x330] ss:$8 sps:$4 sm:$0xff] (!%p138_p2)   ;;  %v9911_v16 = vld [vmem:[%s14864_s1 + $0x244] ss:$8 sps:$4 sm:$0xff] (!%p138_p2)  }
   0xb   : > { %676 = vmatpush1.bf16.msra.mxu0 (!%p138_p2), %v9897_v6  ;;  %v9913_v17 = vld [vmem:[%s14864_s1 + $0x344] ss:$8 sps:$4 sm:$0xff] (!%p138_p2)   ;;  %v9915_v18 = vld [vmem:[%s14864_s1 + $0x240] ss:$8 sps:$4 sm:$0xff] (!%p138_p2)   ;;  %v9917_v20 = vld [vmem:[%s14864_s1 + $0x254] ss:$8 sps:$4 sm:$0xff] (!%p138_p2)  }
   0xc   : > { %717 = vmatpush1.bf16.msra.mxu1 (!%p138_p2), %v9898_v7  ;;  %677 = vmatprep.subr.bf16.mxu0 (!%p138_p2), %v9899_v8  ;;  %v9916_v19 = vld [vmem:[%s14864_s1 + $0x340] ss:$8 sps:$4 sm:$0xff] (!%p138_p2)   ;;  %v9919_v21 = vld [vmem:[%s14864_s1 + $0x354] ss:$8 sps:$4 sm:$0xff] (!%p138_p2)   ;;  %v9921_v22 = vld [vmem:[%s14864_s1 + $0x250] ss:$8 sps:$4 sm:$0xff] (!%p138_p2)  }
   0xd   : > { %718 = vmatprep.subr.bf16.mxu1 %v9901_v9  ;;  %v9922_v23 = vld [vmem:[%s14864_s1 + $0x350] ss:$8 sps:$4 sm:$0xff]   ;;  %v9923_v24 = vld [vmem:[%s14864_s1 + $0x264] ss:$8 sps:$4 sm:$0xff]   ;;  %v9927_v26 = vld [vmem:[%s14864_s1 + $0x260] ss:$8 sps:$4 sm:$0xff]  }
   0xe   : > { %v9925_v25 = vld [vmem:[%s14864_s1 + $0x364] ss:$8 sps:$4 sm:$0xff]   ;;  %v9928_v27 = vld [vmem:[%s14864_s1 + $0x360] ss:$8 sps:$4 sm:$0xff]   ;;  %v9929_v28 = vld [vmem:[%s14864_s1 + $0x274] ss:$8 sps:$4 sm:$0xff]  }
   0xf   : > { %678 = vmatpush1.bf16.msra.mxu0 %v9903_v10  ;;  %v9931_v29 = vld [vmem:[%s14864_s1 + $0x374] ss:$8 sps:$4 sm:$0xff]   ;;  %v9933_v30 = vld [vmem:[%s14864_s1 + $0x270] ss:$8 sps:$4 sm:$0xff]   ;;  %v9935_v32 = vld [vmem:[%s14864_s1 + $0x284] ss:$8 sps:$4 sm:$0xff]  }
  0x10   : > { %719 = vmatpush1.bf16.msra.mxu1 %v9904_v11  ;;  %679 = vmatprep.subr.bf16.mxu0 %v9905_v12  ;;  %v9934_v31 = vld [vmem:[%s14864_s1 + $0x370] ss:$8 sps:$4 sm:$0xff]   ;;  %v9937_v33 = vld [vmem:[%s14864_s1 + $0x384] ss:$8 sps:$4 sm:$0xff]   ;;  %v9939_v34 = vld [vmem:[%s14864_s1 + $0x280] ss:$8 sps:$4 sm:$0xff]  }
  0x11   : > { %720 = vmatprep.subr.bf16.mxu1 %v9907_v13  ;;  %v9940_v35 = vld [vmem:[%s14864_s1 + $0x380] ss:$8 sps:$4 sm:$0xff]   ;;  %s14868_s13 = smov (!%p161_p3, %s8044_s13), 1  ;;  %v9941_v36 = vld [vmem:[%s14864_s1 + $0x294] ss:$8 sps:$4 sm:$0xff]  }
  0x12   : > { %v9943_v37 = vld [vmem:[%s14864_s1 + $0x394] ss:$8 sps:$4 sm:$0xff]   ;;  %v9945_v38 = vld [vmem:[%s14864_s1 + $0x290] ss:$8 sps:$4 sm:$0xff]   ;;  %s9878_s17 = smul.u32 80, %s14868_s13  ;;  %s9874_s14 = sshll.u32 %s14868_s13, 4 }
  0x13   : > { %680 = vmatpush1.bf16.msra.mxu0 %v9909_v14  ;;  %v9946_v39 = vld [vmem:[%s14864_s1 + $0x390] ss:$8 sps:$4 sm:$0xff]   ;;  %v9947_v40 = vld [vmem:[%s14864_s1 + $0x2a4] ss:$8 sps:$4 sm:$0xff]   ;;  %v9951_v42 = vld [vmem:[%s14864_s1 + $0x2a0] ss:$8 sps:$4 sm:$0xff]   ;;  %s13080_s22 = scalar_lea.vmem %s14866_s3, %s9874_s14 }
  0x14   : > { %721 = vmatpush1.bf16.msra.mxu1 %v9910_v15  ;;  %681 = vmatprep.subr.bf16.mxu0 %v9911_v16  ;;  %v9949_v41 = vld [vmem:[%s14864_s1 + $0x3a4] ss:$8 sps:$4 sm:$0xff]   ;;  %v9952_v43 = vld [vmem:[%s14864_s1 + $0x3a0] ss:$8 sps:$4 sm:$0xff]   ;;  %s11621_s30 = scalar_lea.vmem %s14863_s0, %s9878_s17  ;;  %v9953_v44 = vld [vmem:[%s14864_s1 + $0x2b4] ss:$8 sps:$4 sm:$0xff]  }
  0x15   : > { %722 = vmatprep.subr.bf16.mxu1 %v9913_v17  ;;  %v9955_v45 = vld [vmem:[%s14864_s1 + $0x3b4] ss:$8 sps:$4 sm:$0xff]   ;;  %v9957_v46 = vld [vmem:[%s14864_s1 + $0x2b0] ss:$8 sps:$4 sm:$0xff]   ;;  %v171_v47 = vld [vmem:[%s11621_s30] sm:$0x77] }
  0x16   : > { %v11633_v48 = vcombine.high %v171_v47, %v171_v47  ;;  %v172_v49 = vld [vmem:[%s11621_s30 + $0x8] sm:$0x77]  ;;  %v9958_v50 = vld [vmem:[%s14864_s1 + $0x3b0] ss:$8 sps:$4 sm:$0xff]   ;;  %v9965_v62 = vld [vmem:[%s14864_s1 + $0x2d4] ss:$8 sps:$4 sm:$0xff]   ;;  %v11663_v2 = vcombine.low %v171_v47, %v171_v47 }
  0x17   : > { %682 = vmatpush1.bf16.msra.mxu0 %v9915_v18  ;;  %v9959_v51 = vld [vmem:[%s14864_s1 + $0x2c4] ss:$8 sps:$4 sm:$0xff]   ;;  %v11642_v52 = vcombine.high %v172_v49, %v172_v49  ;;  %v9963_v59 = vld [vmem:[%s14864_s1 + $0x2c0] ss:$8 sps:$4 sm:$0xff]   ;;  %v9967_v63 = vld [vmem:[%s14864_s1 + $0x3d4] ss:$8 sps:$4 sm:$0xff]   ;;  %v11665_v3 = vcombine.low %v172_v49, %v172_v49 }
  0x18   : > { %723 = vmatpush1.bf16.msra.mxu1 %v9916_v19  ;;  %683 = vmatprep.subr.bf16.mxu0 %v9917_v20  ;;  %v9961_v53 = vld [vmem:[%s14864_s1 + $0x3c4] ss:$8 sps:$4 sm:$0xff]   ;;  %v329_v54 = vshrl.u32 %v11633_v48, 16  ;;  %v331_v55 = vshll.u32 %v11633_v48, 16  ;;  %v9964_v60 = vld [vmem:[%s14864_s1 + $0x3c0] ss:$8 sps:$4 sm:$0xff]  }
  0x19   : > { %724 = vmatprep.subr.bf16.mxu1 %v9919_v21  ;;  %v343_v56 = vshrl.u32 %v11642_v52, 16  ;;  %v345_v57 = vshll.u32 %v11642_v52, 16  ;;  %v9969_v4 = vld [vmem:[%s14864_s1 + $0x2d0] ss:$8 sps:$4 sm:$0xff]   ;;  %v9971_v6 = vld [vmem:[%s14864_s1 + $0x2e4] ss:$8 sps:$4 sm:$0xff]  }
  0x1a   : > { %v333_v58 = vrot.slane %v331_v55, 1  ;;  %v9970_v5 = vld [vmem:[%s14864_s1 + $0x3d0] ss:$8 sps:$4 sm:$0xff]   ;;  %v9973_v7 = vld [vmem:[%s14864_s1 + $0x3e4] ss:$8 sps:$4 sm:$0xff]   ;;  %v324_v8 = vshll.u32 %v11663_v2, 16 }
  0x1b   : > { %684 = vmatpush1.bf16.msra.mxu0 %v9921_v22  ;;  %v347_v61 = vrot.slane %v345_v57, 1  ;;  %v338_v9 = vshll.u32 %v11665_v3, 16  ;;  %v9975_v10 = vld [vmem:[%s14864_s1 + $0x2e0] ss:$8 sps:$4 sm:$0xff]   ;;  %v9977_v12 = vld [vmem:[%s14864_s1 + $0x2f4] ss:$8 sps:$4 sm:$0xff]  }
  0x1c   : > { %725 = vmatpush1.bf16.msra.mxu1 %v9922_v23  ;;  %685 = vmatprep.subr.bf16.mxu0 %v9923_v24  ;;  %v334_v0 = vor.u32 %v333_v58, %v329_v54  ;;  %v9976_v11 = vld [vmem:[%s14864_s1 + $0x3e0] ss:$8 sps:$4 sm:$0xff]   ;;  %v9979_v13 = vld [vmem:[%s14864_s1 + $0x3f4] ss:$8 sps:$4 sm:$0xff]   ;;  %v322_v14 = vshrl.u32 %v11663_v2, 16  ;;  %v326_v15 = vrot.slane %v324_v8, 1 }
  0x1d   : > { %726 = vmatprep.subr.bf16.mxu1 %v9925_v25  ;;  %v348_v1 = vor.u32 %v347_v61, %v343_v56  ;;  %v336_v16 = vshrl.u32 %v11665_v3, 16  ;;  %v340_v17 = vrot.slane %v338_v9, 1  ;;  %v9981_v18 = vld [vmem:[%s14864_s1 + $0x2f0] ss:$8 sps:$4 sm:$0xff]   ;;  %v9989_v20 = vld [vmem:[%s14864_s1 + $0x4] ss:$8 sps:$4 sm:$0xff]  }
  0x1e   : > { %705 = vmatprep.mubr.bf16.mxu0 %v334_v0  ;;  %v9982_v19 = vld [vmem:[%s14864_s1 + $0x3f0] ss:$8 sps:$4 sm:$0xff]   ;;  %v9992_v21 = vld [vmem:[%s14864_s1 + $0x104] ss:$8 sps:$4 sm:$0xff]   ;;  %v327_v22 = vor.u32 %v326_v15, %v322_v14  ;;  %v9987_v24 = vld [vmem:[%s14864_s1] ss:$8 sps:$4 sm:$0xff]  }
  0x1f   : > { %686 = vmatpush1.bf16.msra.mxu0 %v9927_v26  ;;  %746 = vmatprep.mubr.bf16.mxu1 %v348_v1  ;;  %v341_v23 = vor.u32 %v340_v17, %v336_v16  ;;  %v9990_v25 = vld [vmem:[%s14864_s1 + $0x100] ss:$8 sps:$4 sm:$0xff]   ;;  %v9995_v26 = vld [vmem:[%s14864_s1 + $0x14] ss:$8 sps:$4 sm:$0xff]   ;;  %v10028_v47 = vld [vmem:[%s14864_s1 + $0x164] ss:$8 sps:$4 sm:$0xff]  }
  0x20   : > { %727 = vmatpush1.bf16.msra.mxu1 %v9928_v27  ;;  %687 = vmatprep.subr.bf16.mxu0 %v9929_v28  ;;  %v9998_v27 = vld [vmem:[%s14864_s1 + $0x114] ss:$8 sps:$4 sm:$0xff]   ;;  %v9993_v28 = vld [vmem:[%s14864_s1 + $0x10] ss:$8 sps:$4 sm:$0xff]   ;;  %v10026_v49 = vld [vmem:[%s14864_s1 + $0x160] ss:$8 sps:$4 sm:$0xff]  }
  0x21   : > { %728 = vmatprep.subr.bf16.mxu1 %v9931_v29  ;;  %v9996_v29 = vld [vmem:[%s14864_s1 + $0x110] ss:$8 sps:$4 sm:$0xff]   ;;  %v10037_v54 = vld [vmem:[%s14864_s1 + $0x84] ss:$8 sps:$4 sm:$0xff]   ;;  %v10035_v56 = vld [vmem:[%s14864_s1 + $0x80] ss:$8 sps:$4 sm:$0xff]  }
  0x22   : > { %v10040_v55 = vld [vmem:[%s14864_s1 + $0x184] ss:$8 sps:$4 sm:$0xff]   ;;  %v10038_v57 = vld [vmem:[%s14864_s1 + $0x180] ss:$8 sps:$4 sm:$0xff]   ;;  %v10043_v58 = vld [vmem:[%s14864_s1 + $0x94] ss:$8 sps:$4 sm:$0xff]  }
  0x23   : > { %688 = vmatpush1.bf16.msra.mxu0 %v9933_v30  ;;  %v10001_v30 = vld [vmem:[%s14864_s1 + $0x24] ss:$8 sps:$4 sm:$0xff]   ;;  %v10044_v61 = vld [vmem:[%s14864_s1 + $0x190] ss:$8 sps:$4 sm:$0xff]   ;;  %v10047_v0 = vld [vmem:[%s14864_s1 + $0xa0] ss:$8 sps:$4 sm:$0xff]  }
  0x24   : > { %729 = vmatpush1.bf16.msra.mxu1 %v9934_v31  ;;  %689 = vmatprep.subr.bf16.mxu0 %v9935_v32  ;;  %v10004_v31 = vld [vmem:[%s14864_s1 + $0x124] ss:$8 sps:$4 sm:$0xff]   ;;  %v9999_v32 = vld [vmem:[%s14864_s1 + $0x20] ss:$8 sps:$4 sm:$0xff]   ;;  %v10065_v14 = vld [vmem:[%s14864_s1 + $0xd0] ss:$8 sps:$4 sm:$0xff]  }
  0x25   : > { %730 = vmatprep.subr.bf16.mxu1 %v9937_v33  ;;  %v10002_v33 = vld [vmem:[%s14864_s1 + $0x120] ss:$8 sps:$4 sm:$0xff]   ;;  %v10061_v8 = vld [vmem:[%s14864_s1 + $0xc4] ss:$8 sps:$4 sm:$0xff]   ;;  %v10068_v15 = vld [vmem:[%s14864_s1 + $0x1d0] ss:$8 sps:$4 sm:$0xff]  }
  0x26   : > { %v10050_v1 = vld [vmem:[%s14864_s1 + $0x1a0] ss:$8 sps:$4 sm:$0xff]   ;;  %v10064_v9 = vld [vmem:[%s14864_s1 + $0x1c4] ss:$8 sps:$4 sm:$0xff]  }
  0x27   : > { %690 = vmatpush1.bf16.msra.mxu0 %v9939_v34  ;;  %v10007_v34 = vld [vmem:[%s14864_s1 + $0x34] ss:$8 sps:$4 sm:$0xff]   ;;  %v10073_v16 = vld [vmem:[%s14864_s1 + $0xe4] ss:$8 sps:$4 sm:$0xff]  }
  0x28   : > { %731 = vmatpush1.bf16.msra.mxu1 %v9940_v35  ;;  %691 = vmatprep.subr.bf16.mxu0 %v9941_v36  ;;  %v10010_v35 = vld [vmem:[%s14864_s1 + $0x134] ss:$8 sps:$4 sm:$0xff]   ;;  %v10005_v36 = vld [vmem:[%s14864_s1 + $0x30] ss:$8 sps:$4 sm:$0xff]   ;;  %v10076_v17 = vld [vmem:[%s14864_s1 + $0x1e4] ss:$8 sps:$4 sm:$0xff]  }
  0x29   : > { %732 = vmatprep.subr.bf16.mxu1 %v9943_v37  ;;  %v10008_v37 = vld [vmem:[%s14864_s1 + $0x130] ss:$8 sps:$4 sm:$0xff]  }
  0x2b   : > { %692 = vmatpush1.bf16.msra.mxu0 %v9945_v38  ;;  %v10013_v38 = vld [vmem:[%s14864_s1 + $0x44] ss:$8 sps:$4 sm:$0xff]  }
  0x2c   : > { %733 = vmatpush1.bf16.msra.mxu1 %v9946_v39  ;;  %693 = vmatprep.subr.bf16.mxu0 %v9947_v40  ;;  %v10016_v39 = vld [vmem:[%s14864_s1 + $0x144] ss:$8 sps:$4 sm:$0xff]   ;;  %v10011_v40 = vld [vmem:[%s14864_s1 + $0x40] ss:$8 sps:$4 sm:$0xff]  }
  0x2d   : > { %734 = vmatprep.subr.bf16.mxu1 %v9949_v41  ;;  %v10014_v41 = vld [vmem:[%s14864_s1 + $0x140] ss:$8 sps:$4 sm:$0xff]  }
  0x2f   : > { %694 = vmatpush1.bf16.msra.mxu0 %v9951_v42  ;;  %v10019_v42 = vld [vmem:[%s14864_s1 + $0x54] ss:$8 sps:$4 sm:$0xff]  }
  0x30   : > { %735 = vmatpush1.bf16.msra.mxu1 %v9952_v43  ;;  %695 = vmatprep.subr.bf16.mxu0 %v9953_v44  ;;  %v10022_v43 = vld [vmem:[%s14864_s1 + $0x154] ss:$8 sps:$4 sm:$0xff]   ;;  %v10017_v44 = vld [vmem:[%s14864_s1 + $0x50] ss:$8 sps:$4 sm:$0xff]  }
  0x31   : > { %736 = vmatprep.subr.bf16.mxu1 %v9955_v45  ;;  %v10020_v45 = vld [vmem:[%s14864_s1 + $0x150] ss:$8 sps:$4 sm:$0xff]  }
  0x33   : > { %696 = vmatpush1.bf16.msra.mxu0 %v9957_v46  ;;  %v10025_v46 = vld [vmem:[%s14864_s1 + $0x64] ss:$8 sps:$4 sm:$0xff]  }
  0x34   : > { %737 = vmatpush1.bf16.msra.mxu1 %v9958_v50  ;;  %697 = vmatprep.subr.bf16.mxu0 %v9959_v51  ;;  %v10031_v50 = vld [vmem:[%s14864_s1 + $0x74] ss:$8 sps:$4 sm:$0xff]  }
  0x35   : > { %738 = vmatprep.subr.bf16.mxu1 %v9961_v53  ;;  %v10034_v51 = vld [vmem:[%s14864_s1 + $0x174] ss:$8 sps:$4 sm:$0xff]   ;;  %v10032_v53 = vld [vmem:[%s14864_s1 + $0x170] ss:$8 sps:$4 sm:$0xff]  }
  0x37   : > { %698 = vmatpush1.bf16.msra.mxu0 %v9963_v59  ;;  %v10046_v59 = vld [vmem:[%s14864_s1 + $0x194] ss:$8 sps:$4 sm:$0xff]  }
  0x38   : > { %739 = vmatpush1.bf16.msra.mxu1 %v9964_v60  ;;  %699 = vmatprep.subr.bf16.mxu0 %v9965_v62  ;;  %v10041_v60 = vld [vmem:[%s14864_s1 + $0x90] ss:$8 sps:$4 sm:$0xff]   ;;  %v10049_v62 = vld [vmem:[%s14864_s1 + $0xa4] ss:$8 sps:$4 sm:$0xff]  }
  0x39   : > { %740 = vmatprep.subr.bf16.mxu1 %v9967_v63  ;;  %v10052_v63 = vld [vmem:[%s14864_s1 + $0x1a4] ss:$8 sps:$4 sm:$0xff]  }
  0x3b   : > { %700 = vmatpush1.bf16.msra.mxu0 %v9969_v4  ;;  %v10055_v4 = vld [vmem:[%s14864_s1 + $0xb4] ss:$8 sps:$4 sm:$0xff]  }
  0x3c   : > { %741 = vmatpush1.bf16.msra.mxu1 %v9970_v5  ;;  %701 = vmatprep.subr.bf16.mxu0 %v9971_v6  ;;  %v10058_v5 = vld [vmem:[%s14864_s1 + $0x1b4] ss:$8 sps:$4 sm:$0xff]   ;;  %v10053_v6 = vld [vmem:[%s14864_s1 + $0xb0] ss:$8 sps:$4 sm:$0xff]  }
  0x3d   : > { %742 = vmatprep.subr.bf16.mxu1 %v9973_v7  ;;  %v10056_v7 = vld [vmem:[%s14864_s1 + $0x1b0] ss:$8 sps:$4 sm:$0xff]  }
  0x3f   : > { %702 = vmatpush1.bf16.msra.mxu0 %v9975_v10  ;;  %v10059_v10 = vld [vmem:[%s14864_s1 + $0xc0] ss:$8 sps:$4 sm:$0xff]  }
  0x40   : > { %743 = vmatpush1.bf16.msra.mxu1 %v9976_v11  ;;  %703 = vmatprep.subr.bf16.mxu0 %v9977_v12  ;;  %v10062_v11 = vld [vmem:[%s14864_s1 + $0x1c0] ss:$8 sps:$4 sm:$0xff]   ;;  %v10067_v12 = vld [vmem:[%s14864_s1 + $0xd4] ss:$8 sps:$4 sm:$0xff]  }
  0x41   : > { %744 = vmatprep.subr.bf16.mxu1 %v9979_v13  ;;  %v10070_v13 = vld [vmem:[%s14864_s1 + $0x1d4] ss:$8 sps:$4 sm:$0xff]  }
  0x43   : > { %704 = vmatpush1.bf16.msra.mxu0 %v9981_v18  ;;  %v10071_v18 = vld [vmem:[%s14864_s1 + $0xe0] ss:$8 sps:$4 sm:$0xff]  }
  0x44   : > { %745 = vmatpush1.bf16.msra.mxu1 %v9982_v19  ;;  %1079 = vmatprep.subr.bf16.mxu0 %v9989_v20  ;;  %v10074_v19 = vld [vmem:[%s14864_s1 + $0x1e0] ss:$8 sps:$4 sm:$0xff]   ;;  %v10079_v20 = vld [vmem:[%s14864_s1 + $0xf4] ss:$8 sps:$4 sm:$0xff]  }
  0x45   : > { %1120 = vmatprep.subr.bf16.mxu1 %v9992_v21  ;;  %v10082_v21 = vld [vmem:[%s14864_s1 + $0x1f4] ss:$8 sps:$4 sm:$0xff]  }
  0x46   : > { %706 = vmatmul.mubr.bf16.vlgmr.msra.gmra.mrb[0].mxu0 %v327_v22  ;;  %v10077_v22 = vld [vmem:[%s14864_s1 + $0xf0] ss:$8 sps:$4 sm:$0xff]  }
  0x47   : > { %747 = vmatmul.mubr.bf16.vlgmr.msra.gmra.mrb[0].mxu1 %v341_v23  ;;  %1080 = vmatpush1.bf16.msra.mxu0 %v9987_v24  ;;  %v10080_v23 = vld [vmem:[%s14864_s1 + $0x1f0] ss:$8 sps:$4 sm:$0xff]   ;;  %v10085_v24 = vld [vmem:[%s14864_s1 + $0x404] ss:$8 sps:$4 sm:$0xff]  }
  0x48   : > { %1121 = vmatpush1.bf16.msra.mxu1 %v9990_v25  ;;  %1081 = vmatprep.subr.bf16.mxu0 %v9995_v26  ;;  %v10088_v25 = vld [vmem:[%s14864_s1 + $0x504] ss:$8 sps:$4 sm:$0xff]   ;;  %v10083_v26 = vld [vmem:[%s14864_s1 + $0x400] ss:$8 sps:$4 sm:$0xff]  }
  0x49   : > { %1122 = vmatprep.subr.bf16.mxu1 %v9998_v27  ;;  %1111 = vmatprep.mubr.bf16.mxu0 %v11633_v48  ;;  %v10023_v48 = vld [vmem:[%s14864_s1 + $0x60] ss:$8 sps:$4 sm:$0xff]  }
  0x4a   : > { %1152 = vmatprep.mubr.bf16.mxu1 %v11642_v52  ;;  %v10029_v52 = vld [vmem:[%s14864_s1 + $0x70] ss:$8 sps:$4 sm:$0xff]   ;;  %v10086_v27 = vld [vmem:[%s14864_s1 + $0x500] ss:$8 sps:$4 sm:$0xff]  }
  0x4b   : > { %1082 = vmatpush1.bf16.msra.mxu0 %v9993_v28  ;;  %v10091_v28 = vld [vmem:[%s14864_s1 + $0x414] ss:$8 sps:$4 sm:$0xff]  }
  0x4c   : > { %1123 = vmatpush1.bf16.msra.mxu1 %v9996_v29  ;;  %1083 = vmatprep.subr.bf16.mxu0 %v10001_v30  ;;  %v10094_v29 = vld [vmem:[%s14864_s1 + $0x514] ss:$8 sps:$4 sm:$0xff]  }
  0x4d   : > { %1124 = vmatprep.subr.bf16.mxu1 %v10004_v31  ;;  %v11914_v30 = vld [vmem:[%s11621_s30 + $0x10] sm:$0x77]  ;;  %v11917_v31 = vld [vmem:[%s11621_s30 + $0x18] sm:$0x77] }
  0x4f   : > { %1084 = vmatpush1.bf16.msra.mxu0 %v9999_v32  ;;  %v10089_v32 = vld [vmem:[%s14864_s1 + $0x410] ss:$8 sps:$4 sm:$0xff]  }
  0x50   : > { %1125 = vmatpush1.bf16.msra.mxu1 %v10002_v33  ;;  %1085 = vmatprep.subr.bf16.mxu0 %v10007_v34  ;;  %v10092_v33 = vld [vmem:[%s14864_s1 + $0x510] ss:$8 sps:$4 sm:$0xff]   ;;  %v11929_v34 = vcombine.high %v11914_v30, %v11914_v30 }
  0x51   : > { %1126 = vmatprep.subr.bf16.mxu1 %v10010_v35  ;;  %v11933_v35 = vcombine.high %v11917_v31, %v11917_v31 }
  0x53   : > { %1086 = vmatpush1.bf16.msra.mxu0 %v10005_v36  ;;  %v10095_v36 = vld [vmem:[%s14864_s1 + $0x420] ss:$8 sps:$4 sm:$0xff]  }
  0x54   : > { %1127 = vmatpush1.bf16.msra.mxu1 %v10008_v37  ;;  %1087 = vmatprep.subr.bf16.mxu0 %v10013_v38  ;;  %v10098_v37 = vld [vmem:[%s14864_s1 + $0x520] ss:$8 sps:$4 sm:$0xff]   ;;  %v10103_v38 = vld [vmem:[%s14864_s1 + $0x434] ss:$8 sps:$4 sm:$0xff]  }
  0x55   : > { %1128 = vmatprep.subr.bf16.mxu1 %v10016_v39  ;;  %v10106_v39 = vld [vmem:[%s14864_s1 + $0x534] ss:$8 sps:$4 sm:$0xff]  }
  0x57   : > { %1088 = vmatpush1.bf16.msra.mxu0 %v10011_v40  ;;  %v10101_v40 = vld [vmem:[%s14864_s1 + $0x430] ss:$8 sps:$4 sm:$0xff]  }
  0x58   : > { %1129 = vmatpush1.bf16.msra.mxu1 %v10014_v41  ;;  %1089 = vmatprep.subr.bf16.mxu0 %v10019_v42  ;;  %v10104_v41 = vld [vmem:[%s14864_s1 + $0x530] ss:$8 sps:$4 sm:$0xff]   ;;  %v10109_v42 = vld [vmem:[%s14864_s1 + $0x444] ss:$8 sps:$4 sm:$0xff]  }
  0x59   : > { %1130 = vmatprep.subr.bf16.mxu1 %v10022_v43  ;;  %v10112_v43 = vld [vmem:[%s14864_s1 + $0x544] ss:$8 sps:$4 sm:$0xff]  }
  0x5b   : > { %1090 = vmatpush1.bf16.msra.mxu0 %v10017_v44  ;;  %v10107_v44 = vld [vmem:[%s14864_s1 + $0x440] ss:$8 sps:$4 sm:$0xff]  }
  0x5c   : > { %1131 = vmatpush1.bf16.msra.mxu1 %v10020_v45  ;;  %1091 = vmatprep.subr.bf16.mxu0 %v10025_v46  ;;  %v10110_v45 = vld [vmem:[%s14864_s1 + $0x540] ss:$8 sps:$4 sm:$0xff]   ;;  %v10115_v46 = vld [vmem:[%s14864_s1 + $0x454] ss:$8 sps:$4 sm:$0xff]  }
  0x5d   : > { %1132 = vmatprep.subr.bf16.mxu1 %v10028_v47  ;;  %v10118_v47 = vld [vmem:[%s14864_s1 + $0x554] ss:$8 sps:$4 sm:$0xff]  }
  0x5f   : > { %1092 = vmatpush1.bf16.msra.mxu0 %v10023_v48  ;;  %v10113_v48 = vld [vmem:[%s14864_s1 + $0x450] ss:$8 sps:$4 sm:$0xff]  }
  0x60   : > { %1133 = vmatpush1.bf16.msra.mxu1 %v10026_v49  ;;  %1093 = vmatprep.subr.bf16.mxu0 %v10031_v50  ;;  %v10116_v49 = vld [vmem:[%s14864_s1 + $0x550] ss:$8 sps:$4 sm:$0xff]   ;;  %v10121_v50 = vld [vmem:[%s14864_s1 + $0x464] ss:$8 sps:$4 sm:$0xff]  }
  0x61   : > { %1134 = vmatprep.subr.bf16.mxu1 %v10034_v51  ;;  %v10124_v51 = vld [vmem:[%s14864_s1 + $0x564] ss:$8 sps:$4 sm:$0xff]  }
  0x63   : > { %1094 = vmatpush1.bf16.msra.mxu0 %v10029_v52  ;;  %v10119_v52 = vld [vmem:[%s14864_s1 + $0x460] ss:$8 sps:$4 sm:$0xff]  }
  0x64   : > { %1135 = vmatpush1.bf16.msra.mxu1 %v10032_v53  ;;  %1095 = vmatprep.subr.bf16.mxu0 %v10037_v54  ;;  %v10122_v53 = vld [vmem:[%s14864_s1 + $0x560] ss:$8 sps:$4 sm:$0xff]   ;;  %v10127_v54 = vld [vmem:[%s14864_s1 + $0x474] ss:$8 sps:$4 sm:$0xff]  }
  0x65   : > { %1136 = vmatprep.subr.bf16.mxu1 %v10040_v55  ;;  %v10130_v55 = vld [vmem:[%s14864_s1 + $0x574] ss:$8 sps:$4 sm:$0xff]  }
  0x67   : > { %1096 = vmatpush1.bf16.msra.mxu0 %v10035_v56  ;;  %v10125_v56 = vld [vmem:[%s14864_s1 + $0x470] ss:$8 sps:$4 sm:$0xff]  }
  0x68   : > { %1137 = vmatpush1.bf16.msra.mxu1 %v10038_v57  ;;  %1097 = vmatprep.subr.bf16.mxu0 %v10043_v58  ;;  %v10128_v57 = vld [vmem:[%s14864_s1 + $0x570] ss:$8 sps:$4 sm:$0xff]   ;;  %v10133_v58 = vld [vmem:[%s14864_s1 + $0x484] ss:$8 sps:$4 sm:$0xff]  }
  0x69   : > { %1138 = vmatprep.subr.bf16.mxu1 %v10046_v59  ;;  %v10136_v59 = vld [vmem:[%s14864_s1 + $0x584] ss:$8 sps:$4 sm:$0xff]  }
  0x6b   : > { %1098 = vmatpush1.bf16.msra.mxu0 %v10041_v60  ;;  %v10131_v60 = vld [vmem:[%s14864_s1 + $0x480] ss:$8 sps:$4 sm:$0xff]  }
  0x6c   : > { %1139 = vmatpush1.bf16.msra.mxu1 %v10044_v61  ;;  %1099 = vmatprep.subr.bf16.mxu0 %v10049_v62  ;;  %v10134_v61 = vld [vmem:[%s14864_s1 + $0x580] ss:$8 sps:$4 sm:$0xff]   ;;  %v10139_v62 = vld [vmem:[%s14864_s1 + $0x494] ss:$8 sps:$4 sm:$0xff]  }
  0x6d   : > { %1140 = vmatprep.subr.bf16.mxu1 %v10052_v63  ;;  %v10142_v63 = vld [vmem:[%s14864_s1 + $0x594] ss:$8 sps:$4 sm:$0xff]  }
  0x6f   : > { %1100 = vmatpush1.bf16.msra.mxu0 %v10047_v0  ;;  %v10137_v0 = vld [vmem:[%s14864_s1 + $0x490] ss:$8 sps:$4 sm:$0xff]  }
  0x70   : > { %1141 = vmatpush1.bf16.msra.mxu1 %v10050_v1  ;;  %1101 = vmatprep.subr.bf16.mxu0 %v10055_v4  ;;  %v10140_v1 = vld [vmem:[%s14864_s1 + $0x590] ss:$8 sps:$4 sm:$0xff]   ;;  %v10145_v4 = vld [vmem:[%s14864_s1 + $0x4a4] ss:$8 sps:$4 sm:$0xff]  }
  0x71   : > { %1142 = vmatprep.subr.bf16.mxu1 %v10058_v5  ;;  %v10148_v5 = vld [vmem:[%s14864_s1 + $0x5a4] ss:$8 sps:$4 sm:$0xff]  }
  0x73   : > { %1102 = vmatpush1.bf16.msra.mxu0 %v10053_v6  ;;  %v10143_v6 = vld [vmem:[%s14864_s1 + $0x4a0] ss:$8 sps:$4 sm:$0xff]  }
  0x74   : > { %1143 = vmatpush1.bf16.msra.mxu1 %v10056_v7  ;;  %1103 = vmatprep.subr.bf16.mxu0 %v10061_v8  ;;  %v10146_v7 = vld [vmem:[%s14864_s1 + $0x5a0] ss:$8 sps:$4 sm:$0xff]   ;;  %v10151_v8 = vld [vmem:[%s14864_s1 + $0x4b4] ss:$8 sps:$4 sm:$0xff]  }
  0x75   : > { %1144 = vmatprep.subr.bf16.mxu1 %v10064_v9  ;;  %v10154_v9 = vld [vmem:[%s14864_s1 + $0x5b4] ss:$8 sps:$4 sm:$0xff]  }
  0x77   : > { %1104 = vmatpush1.bf16.msra.mxu0 %v10059_v10  ;;  %v10149_v10 = vld [vmem:[%s14864_s1 + $0x4b0] ss:$8 sps:$4 sm:$0xff]  }
  0x78   : > { %1145 = vmatpush1.bf16.msra.mxu1 %v10062_v11  ;;  %1105 = vmatprep.subr.bf16.mxu0 %v10067_v12  ;;  %v10152_v11 = vld [vmem:[%s14864_s1 + $0x5b0] ss:$8 sps:$4 sm:$0xff]   ;;  %v10157_v12 = vld [vmem:[%s14864_s1 + $0x4c4] ss:$8 sps:$4 sm:$0xff]  }
  0x79   : > { %1146 = vmatprep.subr.bf16.mxu1 %v10070_v13  ;;  %v10160_v13 = vld [vmem:[%s14864_s1 + $0x5c4] ss:$8 sps:$4 sm:$0xff]  }
  0x7b   : > { %1106 = vmatpush1.bf16.msra.mxu0 %v10065_v14  ;;  %v10155_v14 = vld [vmem:[%s14864_s1 + $0x4c0] ss:$8 sps:$4 sm:$0xff]  }
  0x7c   : > { %1147 = vmatpush1.bf16.msra.mxu1 %v10068_v15  ;;  %1107 = vmatprep.subr.bf16.mxu0 %v10073_v16  ;;  %v10158_v15 = vld [vmem:[%s14864_s1 + $0x5c0] ss:$8 sps:$4 sm:$0xff]   ;;  %v10163_v16 = vld [vmem:[%s14864_s1 + $0x4d4] ss:$8 sps:$4 sm:$0xff]  }
  0x7d   : > { %1148 = vmatprep.subr.bf16.mxu1 %v10076_v17  ;;  %v10166_v17 = vld [vmem:[%s14864_s1 + $0x5d4] ss:$8 sps:$4 sm:$0xff]  }
  0x7f   : > { %1108 = vmatpush1.bf16.msra.mxu0 %v10071_v18  ;;  %v10161_v18 = vld [vmem:[%s14864_s1 + $0x4d0] ss:$8 sps:$4 sm:$0xff]  }
  0x80   : > { %1149 = vmatpush1.bf16.msra.mxu1 %v10074_v19  ;;  %1109 = vmatprep.subr.bf16.mxu0 %v10079_v20  ;;  %v10164_v19 = vld [vmem:[%s14864_s1 + $0x5d0] ss:$8 sps:$4 sm:$0xff]   ;;  %v10169_v20 = vld [vmem:[%s14864_s1 + $0x4e4] ss:$8 sps:$4 sm:$0xff]  }
  0x81   : > { %1150 = vmatprep.subr.bf16.mxu1 %v10082_v21  ;;  %v10172_v21 = vld [vmem:[%s14864_s1 + $0x5e4] ss:$8 sps:$4 sm:$0xff]  }
  0x83   : > { %1110 = vmatpush1.bf16.msra.mxu0 %v10077_v22  ;;  %v10167_v22 = vld [vmem:[%s14864_s1 + $0x4e0] ss:$8 sps:$4 sm:$0xff]  }
  0x84   : > { %1151 = vmatpush1.bf16.msra.mxu1 %v10080_v23  ;;  %1560 = vmatprep.subr.bf16.mxu0 %v10085_v24  ;;  %v10170_v23 = vld [vmem:[%s14864_s1 + $0x5e0] ss:$8 sps:$4 sm:$0xff]   ;;  %v10175_v24 = vld [vmem:[%s14864_s1 + $0x4f4] ss:$8 sps:$4 sm:$0xff]  }
  0x85   : > { %1601 = vmatprep.subr.bf16.mxu1 %v10088_v25  ;;  %v10178_v25 = vld [vmem:[%s14864_s1 + $0x5f4] ss:$8 sps:$4 sm:$0xff]  }
  0x86   : > { %1112 = vmatmul.mubr.bf16.vlgmr.msra.gmra.mrb[4].mxu0 %v11663_v2  ;;  %v10097_v2 = vld [vmem:[%s14864_s1 + $0x424] ss:$8 sps:$4 sm:$0xff]  }
  0x87   : > { %1153 = vmatmul.mubr.bf16.vlgmr.msra.gmra.mrb[4].mxu1 %v11665_v3  ;;  %1561 = vmatpush1.bf16.msra.mxu0 %v10083_v26  ;;  %v10100_v3 = vld [vmem:[%s14864_s1 + $0x524] ss:$8 sps:$4 sm:$0xff]   ;;  %v1719_v26 = vshll.u32 %v11929_v34, 16 }
  0x88   : > { %1602 = vmatpush1.bf16.msra.mxu1 %v10086_v27  ;;  %1562 = vmatprep.subr.bf16.mxu0 %v10091_v28  ;;  %v1733_v27 = vshll.u32 %v11933_v35, 16  ;;  %v10173_v28 = vld [vmem:[%s14864_s1 + $0x4f0] ss:$8 sps:$4 sm:$0xff]  }
  0x89   : > { %1603 = vmatprep.subr.bf16.mxu1 %v10094_v29  ;;  %1592 = vmatprep.mubr.bf16.mxu0 %v11929_v34  ;;  %v10176_v29 = vld [vmem:[%s14864_s1 + $0x5f0] ss:$8 sps:$4 sm:$0xff]  }
  0x8a   : > { %1633 = vmatprep.mubr.bf16.mxu1 %v11933_v35 }
  0x8b   : > { %1563 = vmatpush1.bf16.msra.mxu0 %v10089_v32  ;;  %v10185_v32 = vld [vmem:[%s14864_s1 + $0x604] ss:$8 sps:$4 sm:$0xff]  }
  0x8c   : > { %1604 = vmatpush1.bf16.msra.mxu1 %v10092_v33  ;;  %1564 = vmatprep.subr.bf16.mxu0 %v10097_v2  ;;  %v10188_v33 = vld [vmem:[%s14864_s1 + $0x704] ss:$8 sps:$4 sm:$0xff]   ;;  %v1717_v2 = vshrl.u32 %v11929_v34, 16 }
  0x8d   : > { %1605 = vmatprep.subr.bf16.mxu1 %v10100_v3  ;;  %v1721_v3 = vrot.slane %v1719_v26, 1  ;;  %v10255_v26 = vld [vmem:[%s14864_s1 + $0x6c0] ss:$8 sps:$4 sm:$0xff]  }
  0x8f   : > { %1565 = vmatpush1.bf16.msra.mxu0 %v10095_v36  ;;  %v1731_v36 = vshrl.u32 %v11933_v35, 16 }
  0x90   : > { %1606 = vmatpush1.bf16.msra.mxu1 %v10098_v37  ;;  %1566 = vmatprep.subr.bf16.mxu0 %v10103_v38  ;;  %v1735_v37 = vrot.slane %v1733_v27, 1  ;;  %v12117_v38 = vcombine.low %v11914_v30, %v11914_v30  ;;  %v10194_v30 = vld [vmem:[%s14864_s1 + $0x714] ss:$8 sps:$4 sm:$0xff]   ;;  %v10258_v27 = vld [vmem:[%s14864_s1 + $0x7c0] ss:$8 sps:$4 sm:$0xff]  }
  0x91   : > { %1607 = vmatprep.subr.bf16.mxu1 %v10106_v39  ;;  %v12121_v39 = vcombine.low %v11917_v31, %v11917_v31  ;;  %v12135_v31 = vor.u32 %v1721_v3, %v1717_v2  ;;  %v10269_v2 = vld [vmem:[%s14864_s1 + $0x6e4] ss:$8 sps:$4 sm:$0xff]  }
  0x92   : > { %v10272_v3 = vld [vmem:[%s14864_s1 + $0x7e4] ss:$8 sps:$4 sm:$0xff]  }
  0x93   : > { %1567 = vmatpush1.bf16.msra.mxu0 %v10101_v40  ;;  %v10183_v40 = vld [vmem:[%s14864_s1 + $0x600] ss:$8 sps:$4 sm:$0xff]  }
  0x94   : > { %1608 = vmatpush1.bf16.msra.mxu1 %v10104_v41  ;;  %1568 = vmatprep.subr.bf16.mxu0 %v10109_v42  ;;  %v10186_v41 = vld [vmem:[%s14864_s1 + $0x700] ss:$8 sps:$4 sm:$0xff]   ;;  %v10191_v42 = vld [vmem:[%s14864_s1 + $0x614] ss:$8 sps:$4 sm:$0xff]  }
  0x95   : > { %1609 = vmatprep.subr.bf16.mxu1 %v10112_v43  ;;  %v12137_v43 = vor.u32 %v1735_v37, %v1731_v36  ;;  %v1712_v36 = vshll.u32 %v12117_v38, 16  ;;  %v10267_v37 = vld [vmem:[%s14864_s1 + $0x6e0] ss:$8 sps:$4 sm:$0xff]  }
  0x97   : > { %1569 = vmatpush1.bf16.msra.mxu0 %v10107_v44  ;;  %v10189_v44 = vld [vmem:[%s14864_s1 + $0x610] ss:$8 sps:$4 sm:$0xff]  }
  0x98   : > { %1610 = vmatpush1.bf16.msra.mxu1 %v10110_v45  ;;  %1570 = vmatprep.subr.bf16.mxu0 %v10115_v46  ;;  %v10192_v45 = vld [vmem:[%s14864_s1 + $0x710] ss:$8 sps:$4 sm:$0xff]   ;;  %v10197_v46 = vld [vmem:[%s14864_s1 + $0x624] ss:$8 sps:$4 sm:$0xff]  }
  0x99   : > { %1611 = vmatprep.subr.bf16.mxu1 %v10118_v47  ;;  %v10200_v47 = vld [vmem:[%s14864_s1 + $0x724] ss:$8 sps:$4 sm:$0xff]  }
  0x9b   : > { %1571 = vmatpush1.bf16.msra.mxu0 %v10113_v48  ;;  %v10195_v48 = vld [vmem:[%s14864_s1 + $0x620] ss:$8 sps:$4 sm:$0xff]  }
  0x9c   : > { %1612 = vmatpush1.bf16.msra.mxu1 %v10116_v49  ;;  %1572 = vmatprep.subr.bf16.mxu0 %v10121_v50  ;;  %v10198_v49 = vld [vmem:[%s14864_s1 + $0x720] ss:$8 sps:$4 sm:$0xff]   ;;  %v10203_v50 = vld [vmem:[%s14864_s1 + $0x634] ss:$8 sps:$4 sm:$0xff]  }
  0x9d   : > { %1613 = vmatprep.subr.bf16.mxu1 %v10124_v51  ;;  %v10206_v51 = vld [vmem:[%s14864_s1 + $0x734] ss:$8 sps:$4 sm:$0xff]  }
  0x9f   : > { %1573 = vmatpush1.bf16.msra.mxu0 %v10119_v52  ;;  %v10201_v52 = vld [vmem:[%s14864_s1 + $0x630] ss:$8 sps:$4 sm:$0xff]  }
  0xa0   : > { %1614 = vmatpush1.bf16.msra.mxu1 %v10122_v53  ;;  %1574 = vmatprep.subr.bf16.mxu0 %v10127_v54  ;;  %v10204_v53 = vld [vmem:[%s14864_s1 + $0x730] ss:$8 sps:$4 sm:$0xff]   ;;  %v10209_v54 = vld [vmem:[%s14864_s1 + $0x644] ss:$8 sps:$4 sm:$0xff]  }
  0xa1   : > { %1615 = vmatprep.subr.bf16.mxu1 %v10130_v55  ;;  %v10212_v55 = vld [vmem:[%s14864_s1 + $0x744] ss:$8 sps:$4 sm:$0xff]  }
  0xa3   : > { %1575 = vmatpush1.bf16.msra.mxu0 %v10125_v56  ;;  %v10207_v56 = vld [vmem:[%s14864_s1 + $0x640] ss:$8 sps:$4 sm:$0xff]  }
  0xa4   : > { %1616 = vmatpush1.bf16.msra.mxu1 %v10128_v57  ;;  %1576 = vmatprep.subr.bf16.mxu0 %v10133_v58  ;;  %v10210_v57 = vld [vmem:[%s14864_s1 + $0x740] ss:$8 sps:$4 sm:$0xff]   ;;  %v10215_v58 = vld [vmem:[%s14864_s1 + $0x654] ss:$8 sps:$4 sm:$0xff]  }
  0xa5   : > { %1617 = vmatprep.subr.bf16.mxu1 %v10136_v59  ;;  %v10218_v59 = vld [vmem:[%s14864_s1 + $0x754] ss:$8 sps:$4 sm:$0xff]  }
  0xa7   : > { %1577 = vmatpush1.bf16.msra.mxu0 %v10131_v60  ;;  %v10213_v60 = vld [vmem:[%s14864_s1 + $0x650] ss:$8 sps:$4 sm:$0xff]  }
  0xa8   : > { %1618 = vmatpush1.bf16.msra.mxu1 %v10134_v61  ;;  %1578 = vmatprep.subr.bf16.mxu0 %v10139_v62  ;;  %v10216_v61 = vld [vmem:[%s14864_s1 + $0x750] ss:$8 sps:$4 sm:$0xff]   ;;  %v10221_v62 = vld [vmem:[%s14864_s1 + $0x664] ss:$8 sps:$4 sm:$0xff]  }
  0xa9   : > { %1619 = vmatprep.subr.bf16.mxu1 %v10142_v63  ;;  %v10224_v63 = vld [vmem:[%s14864_s1 + $0x764] ss:$8 sps:$4 sm:$0xff]  }
  0xab   : > { %1579 = vmatpush1.bf16.msra.mxu0 %v10137_v0  ;;  %v10219_v0 = vld [vmem:[%s14864_s1 + $0x660] ss:$8 sps:$4 sm:$0xff]  }
  0xac   : > { %1620 = vmatpush1.bf16.msra.mxu1 %v10140_v1  ;;  %1580 = vmatprep.subr.bf16.mxu0 %v10145_v4  ;;  %v10222_v1 = vld [vmem:[%s14864_s1 + $0x760] ss:$8 sps:$4 sm:$0xff]   ;;  %v10227_v4 = vld [vmem:[%s14864_s1 + $0x674] ss:$8 sps:$4 sm:$0xff]  }
  0xad   : > { %1621 = vmatprep.subr.bf16.mxu1 %v10148_v5  ;;  %v10230_v5 = vld [vmem:[%s14864_s1 + $0x774] ss:$8 sps:$4 sm:$0xff]  }
  0xaf   : > { %1581 = vmatpush1.bf16.msra.mxu0 %v10143_v6  ;;  %v10225_v6 = vld [vmem:[%s14864_s1 + $0x670] ss:$8 sps:$4 sm:$0xff]  }
  0xb0   : > { %1622 = vmatpush1.bf16.msra.mxu1 %v10146_v7  ;;  %1582 = vmatprep.subr.bf16.mxu0 %v10151_v8  ;;  %v10228_v7 = vld [vmem:[%s14864_s1 + $0x770] ss:$8 sps:$4 sm:$0xff]   ;;  %v10233_v8 = vld [vmem:[%s14864_s1 + $0x684] ss:$8 sps:$4 sm:$0xff]  }
  0xb1   : > { %1623 = vmatprep.subr.bf16.mxu1 %v10154_v9  ;;  %v10236_v9 = vld [vmem:[%s14864_s1 + $0x784] ss:$8 sps:$4 sm:$0xff]  }
  0xb3   : > { %1583 = vmatpush1.bf16.msra.mxu0 %v10149_v10  ;;  %v10231_v10 = vld [vmem:[%s14864_s1 + $0x680] ss:$8 sps:$4 sm:$0xff]  }
  0xb4   : > { %1624 = vmatpush1.bf16.msra.mxu1 %v10152_v11  ;;  %1584 = vmatprep.subr.bf16.mxu0 %v10157_v12  ;;  %v10234_v11 = vld [vmem:[%s14864_s1 + $0x780] ss:$8 sps:$4 sm:$0xff]   ;;  %v10239_v12 = vld [vmem:[%s14864_s1 + $0x694] ss:$8 sps:$4 sm:$0xff]  }
  0xb5   : > { %1625 = vmatprep.subr.bf16.mxu1 %v10160_v13  ;;  %v10242_v13 = vld [vmem:[%s14864_s1 + $0x794] ss:$8 sps:$4 sm:$0xff]  }
  0xb7   : > { %1585 = vmatpush1.bf16.msra.mxu0 %v10155_v14  ;;  %v10237_v14 = vld [vmem:[%s14864_s1 + $0x690] ss:$8 sps:$4 sm:$0xff]  }
  0xb8   : > { %1626 = vmatpush1.bf16.msra.mxu1 %v10158_v15  ;;  %1586 = vmatprep.subr.bf16.mxu0 %v10163_v16  ;;  %v10240_v15 = vld [vmem:[%s14864_s1 + $0x790] ss:$8 sps:$4 sm:$0xff]   ;;  %v10245_v16 = vld [vmem:[%s14864_s1 + $0x6a4] ss:$8 sps:$4 sm:$0xff]  }
  0xb9   : > { %1627 = vmatprep.subr.bf16.mxu1 %v10166_v17  ;;  %v10248_v17 = vld [vmem:[%s14864_s1 + $0x7a4] ss:$8 sps:$4 sm:$0xff]  }
  0xbb   : > { %1587 = vmatpush1.bf16.msra.mxu0 %v10161_v18  ;;  %v10243_v18 = vld [vmem:[%s14864_s1 + $0x6a0] ss:$8 sps:$4 sm:$0xff]  }
  0xbc   : > { %1628 = vmatpush1.bf16.msra.mxu1 %v10164_v19  ;;  %1588 = vmatprep.subr.bf16.mxu0 %v10169_v20  ;;  %v10246_v19 = vld [vmem:[%s14864_s1 + $0x7a0] ss:$8 sps:$4 sm:$0xff]   ;;  %v10251_v20 = vld [vmem:[%s14864_s1 + $0x6b4] ss:$8 sps:$4 sm:$0xff]  }
  0xbd   : > { %1629 = vmatprep.subr.bf16.mxu1 %v10172_v21  ;;  %v10254_v21 = vld [vmem:[%s14864_s1 + $0x7b4] ss:$8 sps:$4 sm:$0xff]  }
  0xbf   : > { %1589 = vmatpush1.bf16.msra.mxu0 %v10167_v22  ;;  %v10249_v22 = vld [vmem:[%s14864_s1 + $0x6b0] ss:$8 sps:$4 sm:$0xff]  }
  0xc0   : > { %1630 = vmatpush1.bf16.msra.mxu1 %v10170_v23  ;;  %1590 = vmatprep.subr.bf16.mxu0 %v10175_v24  ;;  %v10252_v23 = vld [vmem:[%s14864_s1 + $0x7b0] ss:$8 sps:$4 sm:$0xff]   ;;  %v10257_v24 = vld [vmem:[%s14864_s1 + $0x6c4] ss:$8 sps:$4 sm:$0xff]  }
  0xc1   : > { %1631 = vmatprep.subr.bf16.mxu1 %v10178_v25  ;;  %v10260_v25 = vld [vmem:[%s14864_s1 + $0x7c4] ss:$8 sps:$4 sm:$0xff]  }
  0xc3   : > { %1591 = vmatpush1.bf16.msra.mxu0 %v10173_v28  ;;  %v10263_v28 = vld [vmem:[%s14864_s1 + $0x6d4] ss:$8 sps:$4 sm:$0xff]  }
  0xc4   : > { %1632 = vmatpush1.bf16.msra.mxu1 %v10176_v29  ;;  %2061 = vmatprep.subr.bf16.mxu0 %v10185_v32  ;;  %v10266_v29 = vld [vmem:[%s14864_s1 + $0x7d4] ss:$8 sps:$4 sm:$0xff]   ;;  %v10261_v32 = vld [vmem:[%s14864_s1 + $0x6d0] ss:$8 sps:$4 sm:$0xff]  }
  0xc5   : > { %2102 = vmatprep.subr.bf16.mxu1 %v10188_v33  ;;  %v10264_v33 = vld [vmem:[%s14864_s1 + $0x7d0] ss:$8 sps:$4 sm:$0xff]  }
  0xc6   : > { %1593 = vmatmul.mubr.bf16.vlgmr.msra.gmra.mrb[8].mxu0 %v12117_v38 }
  0xc7   : > { %1634 = vmatmul.mubr.bf16.vlgmr.msra.gmra.mrb[8].mxu1 %v12121_v39  ;;  %2062 = vmatpush1.bf16.msra.mxu0 %v10183_v40  ;;  %v10270_v40 = vld [vmem:[%s14864_s1 + $0x7e0] ss:$8 sps:$4 sm:$0xff]  }
  0xc8   : > { %2103 = vmatpush1.bf16.msra.mxu1 %v10186_v41  ;;  %2063 = vmatprep.subr.bf16.mxu0 %v10191_v42  ;;  %v1726_v41 = vshll.u32 %v12121_v39, 16  ;;  %v10275_v42 = vld [vmem:[%s14864_s1 + $0x6f4] ss:$8 sps:$4 sm:$0xff]  }
  0xc9   : > { %2104 = vmatprep.subr.bf16.mxu1 %v10194_v30  ;;  %2093 = vmatprep.mubr.bf16.mxu0 %v12135_v31  ;;  %v10278_v30 = vld [vmem:[%s14864_s1 + $0x7f4] ss:$8 sps:$4 sm:$0xff]  }
  0xca   : > { %2134 = vmatprep.mubr.bf16.mxu1 %v12137_v43 }
  0xcb   : > { %2064 = vmatpush1.bf16.msra.mxu0 %v10189_v44  ;;  %v1710_v44 = vshrl.u32 %v12117_v38, 16 }
  0xcc   : > { %2105 = vmatpush1.bf16.msra.mxu1 %v10192_v45  ;;  %2065 = vmatprep.subr.bf16.mxu0 %v10197_v46  ;;  %v1714_v45 = vrot.slane %v1712_v36, 1  ;;  %v1724_v46 = vshrl.u32 %v12121_v39, 16  ;;  %v10335_v36 = vld [vmem:[%s14864_s1 + $0x294] ss:$8 sps:$4 sm:$0xff]  }
  0xcd   : > { %2106 = vmatprep.subr.bf16.mxu1 %v10200_v47  ;;  %v10273_v47 = vld [vmem:[%s14864_s1 + $0x6f0] ss:$8 sps:$4 sm:$0xff]  }
  0xcf   : > { %2066 = vmatpush1.bf16.msra.mxu0 %v10195_v48  ;;  %v10276_v48 = vld [vmem:[%s14864_s1 + $0x7f0] ss:$8 sps:$4 sm:$0xff]  }
  0xd0   : > { %2107 = vmatpush1.bf16.msra.mxu1 %v10198_v49  ;;  %2067 = vmatprep.subr.bf16.mxu0 %v10203_v50  ;;  %v1728_v49 = vrot.slane %v1726_v41, 1  ;;  %v10281_v50 = vld [vmem:[%s14864_s1 + $0x204] ss:$8 sps:$4 sm:$0xff]   ;;  %v10336_v41 = vld [vmem:[%s14864_s1 + $0x390] ss:$8 sps:$4 sm:$0xff]  }
  0xd1   : > { %2108 = vmatprep.subr.bf16.mxu1 %v10206_v51  ;;  %v10284_v51 = vld [vmem:[%s14864_s1 + $0x304] ss:$8 sps:$4 sm:$0xff]  }
  0xd3   : > { %2068 = vmatpush1.bf16.msra.mxu0 %v10201_v52  ;;  %v12327_v52 = vor.u32 %v1714_v45, %v1710_v44  ;;  %v10339_v44 = vld [vmem:[%s14864_s1 + $0x2a0] ss:$8 sps:$4 sm:$0xff]  }
  0xd4   : > { %2109 = vmatpush1.bf16.msra.mxu1 %v10204_v53  ;;  %2069 = vmatprep.subr.bf16.mxu0 %v10209_v54  ;;  %v12329_v53 = vor.u32 %v1728_v49, %v1724_v46  ;;  %v10279_v54 = vld [vmem:[%s14864_s1 + $0x200] ss:$8 sps:$4 sm:$0xff]   ;;  %v10347_v46 = vld [vmem:[%s14864_s1 + $0x2b4] ss:$8 sps:$4 sm:$0xff]   ;;  %v10348_v49 = vld [vmem:[%s14864_s1 + $0x3b0] ss:$8 sps:$4 sm:$0xff]  }
  0xd5   : > { %2110 = vmatprep.subr.bf16.mxu1 %v10212_v55  ;;  %v10282_v55 = vld [vmem:[%s14864_s1 + $0x300] ss:$8 sps:$4 sm:$0xff]  }
  0xd6   : > { %v10342_v45 = vld [vmem:[%s14864_s1 + $0x3a0] ss:$8 sps:$4 sm:$0xff]  }
  0xd7   : > { %2070 = vmatpush1.bf16.msra.mxu0 %v10207_v56  ;;  %v10287_v56 = vld [vmem:[%s14864_s1 + $0x214] ss:$8 sps:$4 sm:$0xff]  }
  0xd8   : > { %2111 = vmatpush1.bf16.msra.mxu1 %v10210_v57  ;;  %2071 = vmatprep.subr.bf16.mxu0 %v10215_v58  ;;  %v10290_v57 = vld [vmem:[%s14864_s1 + $0x314] ss:$8 sps:$4 sm:$0xff]   ;;  %v10285_v58 = vld [vmem:[%s14864_s1 + $0x210] ss:$8 sps:$4 sm:$0xff]  }
  0xd9   : > { %2112 = vmatprep.subr.bf16.mxu1 %v10218_v59  ;;  %v10288_v59 = vld [vmem:[%s14864_s1 + $0x310] ss:$8 sps:$4 sm:$0xff]  }
  0xdb   : > { %2072 = vmatpush1.bf16.msra.mxu0 %v10213_v60  ;;  %v10293_v60 = vld [vmem:[%s14864_s1 + $0x224] ss:$8 sps:$4 sm:$0xff]  }
  0xdc   : > { %2113 = vmatpush1.bf16.msra.mxu1 %v10216_v61  ;;  %2073 = vmatprep.subr.bf16.mxu0 %v10221_v62  ;;  %v10296_v61 = vld [vmem:[%s14864_s1 + $0x324] ss:$8 sps:$4 sm:$0xff]   ;;  %v10291_v62 = vld [vmem:[%s14864_s1 + $0x220] ss:$8 sps:$4 sm:$0xff]  }
  0xdd   : > { %2114 = vmatprep.subr.bf16.mxu1 %v10224_v63  ;;  %v10294_v63 = vld [vmem:[%s14864_s1 + $0x320] ss:$8 sps:$4 sm:$0xff]  }
  0xdf   : > { %2074 = vmatpush1.bf16.msra.mxu0 %v10219_v0  ;;  %v10299_v0 = vld [vmem:[%s14864_s1 + $0x234] ss:$8 sps:$4 sm:$0xff]  }
  0xe0   : > { %2115 = vmatpush1.bf16.msra.mxu1 %v10222_v1  ;;  %2075 = vmatprep.subr.bf16.mxu0 %v10227_v4  ;;  %v10300_v1 = vld [vmem:[%s14864_s1 + $0x330] ss:$8 sps:$4 sm:$0xff]   ;;  %v10305_v4 = vld [vmem:[%s14864_s1 + $0x244] ss:$8 sps:$4 sm:$0xff]  }
  0xe1   : > { %2116 = vmatprep.subr.bf16.mxu1 %v10230_v5  ;;  %v10308_v5 = vld [vmem:[%s14864_s1 + $0x344] ss:$8 sps:$4 sm:$0xff]  }
  0xe3   : > { %2076 = vmatpush1.bf16.msra.mxu0 %v10225_v6  ;;  %v10303_v6 = vld [vmem:[%s14864_s1 + $0x240] ss:$8 sps:$4 sm:$0xff]  }
  0xe4   : > { %2117 = vmatpush1.bf16.msra.mxu1 %v10228_v7  ;;  %2077 = vmatprep.subr.bf16.mxu0 %v10233_v8  ;;  %v10306_v7 = vld [vmem:[%s14864_s1 + $0x340] ss:$8 sps:$4 sm:$0xff]   ;;  %v10311_v8 = vld [vmem:[%s14864_s1 + $0x254] ss:$8 sps:$4 sm:$0xff]  }
  0xe5   : > { %2118 = vmatprep.subr.bf16.mxu1 %v10236_v9  ;;  %v10314_v9 = vld [vmem:[%s14864_s1 + $0x354] ss:$8 sps:$4 sm:$0xff]  }
  0xe7   : > { %2078 = vmatpush1.bf16.msra.mxu0 %v10231_v10  ;;  %v10309_v10 = vld [vmem:[%s14864_s1 + $0x250] ss:$8 sps:$4 sm:$0xff]  }
  0xe8   : > { %2119 = vmatpush1.bf16.msra.mxu1 %v10234_v11  ;;  %2079 = vmatprep.subr.bf16.mxu0 %v10239_v12  ;;  %v10312_v11 = vld [vmem:[%s14864_s1 + $0x350] ss:$8 sps:$4 sm:$0xff]   ;;  %v10317_v12 = vld [vmem:[%s14864_s1 + $0x264] ss:$8 sps:$4 sm:$0xff]  }
  0xe9   : > { %2120 = vmatprep.subr.bf16.mxu1 %v10242_v13  ;;  %v10320_v13 = vld [vmem:[%s14864_s1 + $0x364] ss:$8 sps:$4 sm:$0xff]  }
  0xeb   : > { %2080 = vmatpush1.bf16.msra.mxu0 %v10237_v14 }
  0xec   : > { %2121 = vmatpush1.bf16.msra.mxu1 %v10240_v15  ;;  %2081 = vmatprep.subr.bf16.mxu0 %v10245_v16  ;;  %v10315_v16 = vld [vmem:[%s14864_s1 + $0x260] ss:$8 sps:$4 sm:$0xff]  }
  0xed   : > { %2122 = vmatprep.subr.bf16.mxu1 %v10248_v17  ;;  %v10318_v17 = vld [vmem:[%s14864_s1 + $0x360] ss:$8 sps:$4 sm:$0xff]  }
  0xef   : > { %2082 = vmatpush1.bf16.msra.mxu0 %v10243_v18 }
  0xf0   : > { %2123 = vmatpush1.bf16.msra.mxu1 %v10246_v19  ;;  %2083 = vmatprep.subr.bf16.mxu0 %v10251_v20 }
  0xf1   : > { %2124 = vmatprep.subr.bf16.mxu1 %v10254_v21 }
  0xf3   : > { %2084 = vmatpush1.bf16.msra.mxu0 %v10249_v22 }
  0xf4   : > { %2125 = vmatpush1.bf16.msra.mxu1 %v10252_v23  ;;  %2085 = vmatprep.subr.bf16.mxu0 %v10257_v24 }
  0xf5   : > { %2126 = vmatprep.subr.bf16.mxu1 %v10260_v25 }
  0xf7   : > { %2086 = vmatpush1.bf16.msra.mxu0 %v10255_v26  ;;  %v10323_v26 = vld [vmem:[%s14864_s1 + $0x274] ss:$8 sps:$4 sm:$0xff]  }
  0xf8   : > { %2127 = vmatpush1.bf16.msra.mxu1 %v10258_v27  ;;  %2087 = vmatprep.subr.bf16.mxu0 %v10263_v28  ;;  %v10326_v27 = vld [vmem:[%s14864_s1 + $0x374] ss:$8 sps:$4 sm:$0xff]   ;;  %v10321_v28 = vld [vmem:[%s14864_s1 + $0x270] ss:$8 sps:$4 sm:$0xff]  }
  0xf9   : > { %2128 = vmatprep.subr.bf16.mxu1 %v10266_v29  ;;  %v10324_v29 = vld [vmem:[%s14864_s1 + $0x370] ss:$8 sps:$4 sm:$0xff]  }
  0xfb   : > { %2088 = vmatpush1.bf16.msra.mxu0 %v10261_v32  ;;  %v10329_v32 = vld [vmem:[%s14864_s1 + $0x284] ss:$8 sps:$4 sm:$0xff]  }
  0xfc   : > { %2129 = vmatpush1.bf16.msra.mxu1 %v10264_v33  ;;  %2089 = vmatprep.subr.bf16.mxu0 %v10269_v2  ;;  %v10332_v33 = vld [vmem:[%s14864_s1 + $0x384] ss:$8 sps:$4 sm:$0xff]   ;;  %v10327_v2 = vld [vmem:[%s14864_s1 + $0x280] ss:$8 sps:$4 sm:$0xff]  }
  0xfd   : > { %2130 = vmatprep.subr.bf16.mxu1 %v10272_v3  ;;  %v10330_v3 = vld [vmem:[%s14864_s1 + $0x380] ss:$8 sps:$4 sm:$0xff]  }
  0xff   : > { %2090 = vmatpush1.bf16.msra.mxu0 %v10267_v37  ;;  %v10338_v37 = vld [vmem:[%s14864_s1 + $0x394] ss:$8 sps:$4 sm:$0xff]  }
 0x100   : > { %2131 = vmatpush1.bf16.msra.mxu1 %v10270_v40  ;;  %2091 = vmatprep.subr.bf16.mxu0 %v10275_v42  ;;  %v10333_v40 = vld [vmem:[%s14864_s1 + $0x290] ss:$8 sps:$4 sm:$0xff]   ;;  %v10341_v42 = vld [vmem:[%s14864_s1 + $0x2a4] ss:$8 sps:$4 sm:$0xff]  }
 0x101   : > { %2132 = vmatprep.subr.bf16.mxu1 %v10278_v30  ;;  %v10344_v30 = vld [vmem:[%s14864_s1 + $0x3a4] ss:$8 sps:$4 sm:$0xff]  }
 0x103   : > { %2092 = vmatpush1.bf16.msra.mxu0 %v10273_v47  ;;  %v10350_v47 = vld [vmem:[%s14864_s1 + $0x3b4] ss:$8 sps:$4 sm:$0xff]  }
 0x104   : > { %2133 = vmatpush1.bf16.msra.mxu1 %v10276_v48  ;;  %2626 = vmatprep.subr.bf16.mxu0 %v10281_v50  ;;  %v10345_v48 = vld [vmem:[%s14864_s1 + $0x2b0] ss:$8 sps:$4 sm:$0xff]   ;;  %v10353_v50 = vld [vmem:[%s14864_s1 + $0x2c4] ss:$8 sps:$4 sm:$0xff]  }
 0x105   : > { %2667 = vmatprep.subr.bf16.mxu1 %v10284_v51  ;;  %v10356_v51 = vld [vmem:[%s14864_s1 + $0x3c4] ss:$8 sps:$4 sm:$0xff]  }
 0x106   : > { %2094 = vmatmul.mubr.bf16.vlgmr.msra.gmra.mrb[12].mxu0 %v12327_v52 }
 0x107   : > { %2135 = vmatmul.mubr.bf16.vlgmr.msra.gmra.mrb[12].mxu1 %v12329_v53  ;;  %2627 = vmatpush1.bf16.msra.mxu0 %v10279_v54  ;;  %v10351_v54 = vld [vmem:[%s14864_s1 + $0x2c0] ss:$8 sps:$4 sm:$0xff]  }
 0x108   : > { %2668 = vmatpush1.bf16.msra.mxu1 %v10282_v55  ;;  %2628 = vmatprep.subr.bf16.mxu0 %v10287_v56  ;;  %v10354_v55 = vld [vmem:[%s14864_s1 + $0x3c0] ss:$8 sps:$4 sm:$0xff]   ;;  %v10359_v56 = vld [vmem:[%s14864_s1 + $0x2d4] ss:$8 sps:$4 sm:$0xff]  }
 0x109   : > { %2669 = vmatprep.subr.bf16.mxu1 %v10290_v57  ;;  %2658 = vmatprep.mubr.bf16.mxu0 %v12135_v31  ;;  %v10302_v31 = vld [vmem:[%s14864_s1 + $0x334] ss:$8 sps:$4 sm:$0xff]  }
 0x10a   : > { %2699 = vmatprep.mubr.bf16.mxu1 %v12137_v43  ;;  %v10297_v43 = vld [vmem:[%s14864_s1 + $0x230] ss:$8 sps:$4 sm:$0xff]   ;;  %v10362_v57 = vld [vmem:[%s14864_s1 + $0x3d4] ss:$8 sps:$4 sm:$0xff]  }
 0x10b   : > { %2629 = vmatpush1.bf16.msra.mxu0 %v10285_v58  ;;  %v10357_v58 = vld [vmem:[%s14864_s1 + $0x2d0] ss:$8 sps:$4 sm:$0xff]  }
 0x10c   : > { %2670 = vmatpush1.bf16.msra.mxu1 %v10288_v59  ;;  %2630 = vmatprep.subr.bf16.mxu0 %v10293_v60  ;;  %v10360_v59 = vld [vmem:[%s14864_s1 + $0x3d0] ss:$8 sps:$4 sm:$0xff]   ;;  %v10365_v60 = vld [vmem:[%s14864_s1 + $0x2e4] ss:$8 sps:$4 sm:$0xff]  }
 0x10d   : > { %2671 = vmatprep.subr.bf16.mxu1 %v10296_v61  ;;  %v10368_v61 = vld [vmem:[%s14864_s1 + $0x3e4] ss:$8 sps:$4 sm:$0xff]  }
 0x10f   : > { %2631 = vmatpush1.bf16.msra.mxu0 %v10291_v62  ;;  %v10363_v62 = vld [vmem:[%s14864_s1 + $0x2e0] ss:$8 sps:$4 sm:$0xff]  }
 0x110   : > { %2672 = vmatpush1.bf16.msra.mxu1 %v10294_v63  ;;  %2632 = vmatprep.subr.bf16.mxu0 %v10299_v0  ;;  %v10366_v63 = vld [vmem:[%s14864_s1 + $0x3e0] ss:$8 sps:$4 sm:$0xff]   ;;  %v10371_v0 = vld [vmem:[%s14864_s1 + $0x2f4] ss:$8 sps:$4 sm:$0xff]  }
 0x111   : > { %2673 = vmatprep.subr.bf16.mxu1 %v10302_v31  ;;  %v10374_v31 = vld [vmem:[%s14864_s1 + $0x3f4] ss:$8 sps:$4 sm:$0xff]  }
 0x113   : > { %2633 = vmatpush1.bf16.msra.mxu0 %v10297_v43  ;;  %v10369_v43 = vld [vmem:[%s14864_s1 + $0x2f0] ss:$8 sps:$4 sm:$0xff]  }
 0x114   : > { %2674 = vmatpush1.bf16.msra.mxu1 %v10300_v1  ;;  %2634 = vmatprep.subr.bf16.mxu0 %v10305_v4  ;;  %v10372_v1 = vld [vmem:[%s14864_s1 + $0x3f0] ss:$8 sps:$4 sm:$0xff]   ;;  %v10377_v4 = vld [vmem:[%s14864_s1 + $0x4] ss:$8 sps:$4 sm:$0xff]  }
 0x115   : > { %2675 = vmatprep.subr.bf16.mxu1 %v10308_v5  ;;  %v10380_v5 = vld [vmem:[%s14864_s1 + $0x104] ss:$8 sps:$4 sm:$0xff]  }
 0x117   : > { %2635 = vmatpush1.bf16.msra.mxu0 %v10303_v6  ;;  %v10375_v6 = vld [vmem:[%s14864_s1] ss:$8 sps:$4 sm:$0xff]  }
 0x118   : > { %2676 = vmatpush1.bf16.msra.mxu1 %v10306_v7  ;;  %2636 = vmatprep.subr.bf16.mxu0 %v10311_v8  ;;  %v10378_v7 = vld [vmem:[%s14864_s1 + $0x100] ss:$8 sps:$4 sm:$0xff]   ;;  %v10383_v8 = vld [vmem:[%s14864_s1 + $0x14] ss:$8 sps:$4 sm:$0xff]  }
 0x119   : > { %2677 = vmatprep.subr.bf16.mxu1 %v10314_v9  ;;  %v707_v14 = vpop.f32.mrb[0].mxu0  ;;  %v10386_v9 = vld [vmem:[%s14864_s1 + $0x114] ss:$8 sps:$4 sm:$0xff]  }
 0x11a   : > { %v748_v15 = vpop.f32.mrb[0].mxu1  ;;  %v709_v19 = vpop.f32.mrb[1].mxu0 }
 0x11b   : > { %v12413_v18 = vadd.f32 %v748_v15, %v707_v14  ;;  %v750_v20 = vpop.f32.mrb[1].mxu1  ;;  %v711_v22 = vpop.f32.mrb[2].mxu0  ;;  %2637 = vmatpush1.bf16.msra.mxu0 %v10309_v10  ;;  %v10381_v10 = vld [vmem:[%s14864_s1 + $0x10] ss:$8 sps:$4 sm:$0xff]   ;;  %v10395_v14 = vld [vmem:[%s14864_s1 + $0x34] ss:$8 sps:$4 sm:$0xff]  }
 0x11c   : > { %v12415_v21 = vadd.f32 %v750_v20, %v709_v19  ;;  %v752_v23 = vpop.f32.mrb[2].mxu1  ;;  %2678 = vmatpush1.bf16.msra.mxu1 %v10312_v11  ;;  %v712_v24 = vpop.f32.mrb[3].mxu0  ;;  %2638 = vmatprep.subr.bf16.mxu0 %v10317_v12  ;;  %v10384_v11 = vld [vmem:[%s14864_s1 + $0x110] ss:$8 sps:$4 sm:$0xff]   ;;  %v10389_v12 = vld [vmem:[%s14864_s1 + $0x24] ss:$8 sps:$4 sm:$0xff]  }
 0x11d   : > { %v753_v25 = vpop.f32.mrb[3].mxu1  ;;  %2679 = vmatprep.subr.bf16.mxu1 %v10320_v13  ;;  %v10390_v13 = vld [vmem:[%s14864_s1 + $0x120] ss:$8 sps:$4 sm:$0xff]   ;;  %v10396_v15 = vld [vmem:[%s14864_s1 + $0x130] ss:$8 sps:$4 sm:$0xff]  }
 0x11e   : > { %v10399_v19 = vld [vmem:[%s14864_s1 + $0x40] ss:$8 sps:$4 sm:$0xff]   ;;  %v10407_v22 = vld [vmem:[%s14864_s1 + $0x54] ss:$8 sps:$4 sm:$0xff]   ;;  %v10405_v24 = vld [vmem:[%s14864_s1 + $0x50] ss:$8 sps:$4 sm:$0xff]  }
 0x11f   : > { %2639 = vmatpush1.bf16.msra.mxu0 %v10315_v16  ;;  %v10401_v16 = vld [vmem:[%s14864_s1 + $0x44] ss:$8 sps:$4 sm:$0xff]   ;;  %v10402_v20 = vld [vmem:[%s14864_s1 + $0x140] ss:$8 sps:$4 sm:$0xff]   ;;  %v10410_v23 = vld [vmem:[%s14864_s1 + $0x154] ss:$8 sps:$4 sm:$0xff]  }
 0x120   : > { %2680 = vmatpush1.bf16.msra.mxu1 %v10318_v17  ;;  %2640 = vmatprep.subr.bf16.mxu0 %v10323_v26  ;;  %v10404_v17 = vld [vmem:[%s14864_s1 + $0x144] ss:$8 sps:$4 sm:$0xff]   ;;  %v10408_v25 = vld [vmem:[%s14864_s1 + $0x150] ss:$8 sps:$4 sm:$0xff]  }
 0x121   : > { %2681 = vmatprep.subr.bf16.mxu1 %v10326_v27  ;;  %v10413_v26 = vld [vmem:[%s14864_s1 + $0x64] ss:$8 sps:$4 sm:$0xff]  }
 0x122   : > { %v10416_v27 = vld [vmem:[%s14864_s1 + $0x164] ss:$8 sps:$4 sm:$0xff]  }
 0x123   : > { %2641 = vmatpush1.bf16.msra.mxu0 %v10321_v28 }
 0x124   : > { %2682 = vmatpush1.bf16.msra.mxu1 %v10324_v29  ;;  %2642 = vmatprep.subr.bf16.mxu0 %v10329_v32  ;;  %v10411_v32 = vld [vmem:[%s14864_s1 + $0x60] ss:$8 sps:$4 sm:$0xff]  }
 0x125   : > { %2683 = vmatprep.subr.bf16.mxu1 %v10332_v33 }
 0x127   : > { %2643 = vmatpush1.bf16.msra.mxu0 %v10327_v2 }
 0x128   : > { %2684 = vmatpush1.bf16.msra.mxu1 %v10330_v3  ;;  %2644 = vmatprep.subr.bf16.mxu0 %v10335_v36  ;;  %v10414_v36 = vld [vmem:[%s14864_s1 + $0x160] ss:$8 sps:$4 sm:$0xff]  }
 0x129   : > { %2685 = vmatprep.subr.bf16.mxu1 %v10338_v37 }
 0x12b   : > { %2645 = vmatpush1.bf16.msra.mxu0 %v10333_v40 }
 0x12c   : > { %2686 = vmatpush1.bf16.msra.mxu1 %v10336_v41  ;;  %2646 = vmatprep.subr.bf16.mxu0 %v10341_v42 }
 0x12d   : > { %2687 = vmatprep.subr.bf16.mxu1 %v10344_v30 }
 0x12f   : > { %2647 = vmatpush1.bf16.msra.mxu0 %v10339_v44 }
 0x130   : > { %2688 = vmatpush1.bf16.msra.mxu1 %v10342_v45  ;;  %2648 = vmatprep.subr.bf16.mxu0 %v10347_v46  ;;  %v10422_v45 = vld [vmem:[%s14864_s1 + $0x174] ss:$8 sps:$4 sm:$0xff]  }
 0x131   : > { %2689 = vmatprep.subr.bf16.mxu1 %v10350_v47  ;;  %v10420_v47 = vld [vmem:[%s14864_s1 + $0x170] ss:$8 sps:$4 sm:$0xff]  }
 0x133   : > { %2649 = vmatpush1.bf16.msra.mxu0 %v10345_v48  ;;  %v10425_v48 = vld [vmem:[%s14864_s1 + $0x84] ss:$8 sps:$4 sm:$0xff]  }
 0x134   : > { %2690 = vmatpush1.bf16.msra.mxu1 %v10348_v49  ;;  %2650 = vmatprep.subr.bf16.mxu0 %v10353_v50  ;;  %v10428_v49 = vld [vmem:[%s14864_s1 + $0x184] ss:$8 sps:$4 sm:$0xff]   ;;  %v10423_v50 = vld [vmem:[%s14864_s1 + $0x80] ss:$8 sps:$4 sm:$0xff]  }
 0x135   : > { %2691 = vmatprep.subr.bf16.mxu1 %v10356_v51  ;;  %v10426_v51 = vld [vmem:[%s14864_s1 + $0x180] ss:$8 sps:$4 sm:$0xff]  }
 0x137   : > { %2651 = vmatpush1.bf16.msra.mxu0 %v10351_v54  ;;  %v10431_v54 = vld [vmem:[%s14864_s1 + $0x94] ss:$8 sps:$4 sm:$0xff]  }
 0x138   : > { %2692 = vmatpush1.bf16.msra.mxu1 %v10354_v55  ;;  %2652 = vmatprep.subr.bf16.mxu0 %v10359_v56  ;;  %v10434_v55 = vld [vmem:[%s14864_s1 + $0x194] ss:$8 sps:$4 sm:$0xff]   ;;  %v10429_v56 = vld [vmem:[%s14864_s1 + $0x90] ss:$8 sps:$4 sm:$0xff]  }
 0x139   : > { %2693 = vmatprep.subr.bf16.mxu1 %v10362_v57  ;;  %v10432_v57 = vld [vmem:[%s14864_s1 + $0x190] ss:$8 sps:$4 sm:$0xff]  }
 0x13b   : > { %2653 = vmatpush1.bf16.msra.mxu0 %v10357_v58  ;;  %v10437_v58 = vld [vmem:[%s14864_s1 + $0xa4] ss:$8 sps:$4 sm:$0xff]  }
 0x13c   : > { %2694 = vmatpush1.bf16.msra.mxu1 %v10360_v59  ;;  %2654 = vmatprep.subr.bf16.mxu0 %v10365_v60  ;;  %v10440_v59 = vld [vmem:[%s14864_s1 + $0x1a4] ss:$8 sps:$4 sm:$0xff]   ;;  %v10435_v60 = vld [vmem:[%s14864_s1 + $0xa0] ss:$8 sps:$4 sm:$0xff]  }
 0x13d   : > { %2695 = vmatprep.subr.bf16.mxu1 %v10368_v61  ;;  %v10438_v61 = vld [vmem:[%s14864_s1 + $0x1a0] ss:$8 sps:$4 sm:$0xff]  }
 0x13f   : > { %2655 = vmatpush1.bf16.msra.mxu0 %v10363_v62  ;;  %v10443_v62 = vld [vmem:[%s14864_s1 + $0xb4] ss:$8 sps:$4 sm:$0xff]  }
 0x140   : > { %2696 = vmatpush1.bf16.msra.mxu1 %v10366_v63  ;;  %2656 = vmatprep.subr.bf16.mxu0 %v10371_v0  ;;  %v10446_v63 = vld [vmem:[%s14864_s1 + $0x1b4] ss:$8 sps:$4 sm:$0xff]   ;;  %v10441_v0 = vld [vmem:[%s14864_s1 + $0xb0] ss:$8 sps:$4 sm:$0xff]  }
 0x141   : > { %2697 = vmatprep.subr.bf16.mxu1 %v10374_v31  ;;  %v10444_v31 = vld [vmem:[%s14864_s1 + $0x1b0] ss:$8 sps:$4 sm:$0xff]  }
 0x143   : > { %2657 = vmatpush1.bf16.msra.mxu0 %v10369_v43  ;;  %v10449_v43 = vld [vmem:[%s14864_s1 + $0xc4] ss:$8 sps:$4 sm:$0xff]  }
 0x144   : > { %2698 = vmatpush1.bf16.msra.mxu1 %v10372_v1  ;;  %3028 = vmatprep.subr.bf16.mxu0 %v10377_v4  ;;  %v10452_v1 = vld [vmem:[%s14864_s1 + $0x1c4] ss:$8 sps:$4 sm:$0xff]   ;;  %v10447_v4 = vld [vmem:[%s14864_s1 + $0xc0] ss:$8 sps:$4 sm:$0xff]  }
 0x145   : > { %3069 = vmatprep.subr.bf16.mxu1 %v10380_v5  ;;  %v10450_v5 = vld [vmem:[%s14864_s1 + $0x1c0] ss:$8 sps:$4 sm:$0xff]  }
 0x146   : > { %2659 = vmatmul.mubr.bf16.vlgmr.msra.gmra.mrb[16].mxu0 %v12327_v52  ;;  %v10392_v52 = vld [vmem:[%s14864_s1 + $0x124] ss:$8 sps:$4 sm:$0xff]  }
 0x147   : > { %2700 = vmatmul.mubr.bf16.vlgmr.msra.gmra.mrb[16].mxu1 %v12329_v53  ;;  %3029 = vmatpush1.bf16.msra.mxu0 %v10375_v6  ;;  %v10387_v53 = vld [vmem:[%s14864_s1 + $0x20] ss:$8 sps:$4 sm:$0xff]   ;;  %v10455_v6 = vld [vmem:[%s14864_s1 + $0xd4] ss:$8 sps:$4 sm:$0xff]  }
 0x148   : > { %3070 = vmatpush1.bf16.msra.mxu1 %v10378_v7  ;;  %3030 = vmatprep.subr.bf16.mxu0 %v10383_v8  ;;  %v10458_v7 = vld [vmem:[%s14864_s1 + $0x1d4] ss:$8 sps:$4 sm:$0xff]   ;;  %v10453_v8 = vld [vmem:[%s14864_s1 + $0xd0] ss:$8 sps:$4 sm:$0xff]  }
 0x149   : > { %3071 = vmatprep.subr.bf16.mxu1 %v10386_v9  ;;  %3060 = vmatprep.mubr.bf16.mxu0 %v11929_v34  ;;  %v10398_v34 = vld [vmem:[%s14864_s1 + $0x134] ss:$8 sps:$4 sm:$0xff]   ;;  %v10456_v9 = vld [vmem:[%s14864_s1 + $0x1d0] ss:$8 sps:$4 sm:$0xff]  }
 0x14a   : > { %3101 = vmatprep.mubr.bf16.mxu1 %v11933_v35  ;;  %v10393_v35 = vld [vmem:[%s14864_s1 + $0x30] ss:$8 sps:$4 sm:$0xff]  }
 0x14b   : > { %3031 = vmatpush1.bf16.msra.mxu0 %v10381_v10  ;;  %v10461_v10 = vld [vmem:[%s14864_s1 + $0xe4] ss:$8 sps:$4 sm:$0xff]  }
 0x14c   : > { %3072 = vmatpush1.bf16.msra.mxu1 %v10384_v11  ;;  %3032 = vmatprep.subr.bf16.mxu0 %v10389_v12  ;;  %v10464_v11 = vld [vmem:[%s14864_s1 + $0x1e4] ss:$8 sps:$4 sm:$0xff]   ;;  %v10459_v12 = vld [vmem:[%s14864_s1 + $0xe0] ss:$8 sps:$4 sm:$0xff]  }
 0x14d   : > { %3073 = vmatprep.subr.bf16.mxu1 %v10392_v52  ;;  %v10462_v52 = vld [vmem:[%s14864_s1 + $0x1e0] ss:$8 sps:$4 sm:$0xff]  }
 0x14f   : > { %3033 = vmatpush1.bf16.msra.mxu0 %v10387_v53  ;;  %v10467_v53 = vld [vmem:[%s14864_s1 + $0xf4] ss:$8 sps:$4 sm:$0xff]  }
 0x150   : > { %3074 = vmatpush1.bf16.msra.mxu1 %v10390_v13  ;;  %3034 = vmatprep.subr.bf16.mxu0 %v10395_v14  ;;  %v10470_v13 = vld [vmem:[%s14864_s1 + $0x1f4] ss:$8 sps:$4 sm:$0xff]   ;;  %v10465_v14 = vld [vmem:[%s14864_s1 + $0xf0] ss:$8 sps:$4 sm:$0xff]  }
 0x151   : > { %3075 = vmatprep.subr.bf16.mxu1 %v10398_v34  ;;  %v10468_v34 = vld [vmem:[%s14864_s1 + $0x1f0] ss:$8 sps:$4 sm:$0xff]  }
 0x153   : > { %3035 = vmatpush1.bf16.msra.mxu0 %v10393_v35  ;;  %v10473_v35 = vld [vmem:[%s14864_s1 + $0x404] ss:$8 sps:$4 sm:$0xff]  }
 0x154   : > { %3076 = vmatpush1.bf16.msra.mxu1 %v10396_v15  ;;  %3036 = vmatprep.subr.bf16.mxu0 %v10401_v16  ;;  %v10476_v15 = vld [vmem:[%s14864_s1 + $0x504] ss:$8 sps:$4 sm:$0xff]   ;;  %v10471_v16 = vld [vmem:[%s14864_s1 + $0x400] ss:$8 sps:$4 sm:$0xff]  }
 0x155   : > { %3077 = vmatprep.subr.bf16.mxu1 %v10404_v17  ;;  %v10474_v17 = vld [vmem:[%s14864_s1 + $0x500] ss:$8 sps:$4 sm:$0xff]  }
 0x157   : > { %3037 = vmatpush1.bf16.msra.mxu0 %v10399_v19  ;;  %v12740_v19 = vld [vmem:[%s11621_s30 + $0x20] sm:$0x77] }
 0x158   : > { %3078 = vmatpush1.bf16.msra.mxu1 %v10402_v20  ;;  %3038 = vmatprep.subr.bf16.mxu0 %v10407_v22  ;;  %v12743_v20 = vld [vmem:[%s11621_s30 + $0x28] sm:$0x77]  ;;  %v10479_v22 = vld [vmem:[%s14864_s1 + $0x414] ss:$8 sps:$4 sm:$0xff]  }
 0x159   : > { %3079 = vmatprep.subr.bf16.mxu1 %v10410_v23  ;;  %v1113_v28 = vpop.f32.mrb[4].mxu0  ;;  %v10482_v23 = vld [vmem:[%s14864_s1 + $0x514] ss:$8 sps:$4 sm:$0xff]  }
 0x15a   : > { %v1154_v29 = vpop.f32.mrb[4].mxu1  ;;  %v1114_v33 = vadd.f32 %v1113_v28, %v12413_v18  ;;  %v1115_v2 = vpop.f32.mrb[5].mxu0  ;;  %v10419_v18 = vld [vmem:[%s14864_s1 + $0x74] ss:$8 sps:$4 sm:$0xff]   ;;  %v10485_v28 = vld [vmem:[%s14864_s1 + $0x424] ss:$8 sps:$4 sm:$0xff]  }
 0x15b   : > { %v1156_v3 = vpop.f32.mrb[5].mxu1  ;;  %v1116_v37 = vadd.f32 %v1115_v2, %v12415_v21  ;;  %v1117_v40 = vpop.f32.mrb[6].mxu0  ;;  %3039 = vmatpush1.bf16.msra.mxu0 %v10405_v24  ;;  %v10417_v21 = vld [vmem:[%s14864_s1 + $0x70] ss:$8 sps:$4 sm:$0xff]   ;;  %v12753_v24 = vcombine.high %v12740_v19, %v12740_v19 }
 0x15c   : > { %v1158_v41 = vpop.f32.mrb[6].mxu1  ;;  %3080 = vmatpush1.bf16.msra.mxu1 %v10408_v25  ;;  %v12615_v42 = vadd.f32 %v1154_v29, %v1114_v33  ;;  %v1118_v30 = vpop.f32.mrb[7].mxu0  ;;  %3040 = vmatprep.subr.bf16.mxu0 %v10413_v26  ;;  %v12757_v25 = vcombine.high %v12743_v20, %v12743_v20  ;;  %v10477_v26 = vld [vmem:[%s14864_s1 + $0x410] ss:$8 sps:$4 sm:$0xff]   ;;  %v10486_v29 = vld [vmem:[%s14864_s1 + $0x520] ss:$8 sps:$4 sm:$0xff]  }
 0x15d   : > { %v1159_v44 = vpop.f32.mrb[7].mxu1  ;;  %3081 = vmatprep.subr.bf16.mxu1 %v10416_v27  ;;  %v12623_v46 = vadd.f32 %v1156_v3, %v1116_v37  ;;  %v10480_v27 = vld [vmem:[%s14864_s1 + $0x510] ss:$8 sps:$4 sm:$0xff]   ;;  %v10494_v33 = vld [vmem:[%s14864_s1 + $0x534] ss:$8 sps:$4 sm:$0xff]  }
 0x15e   : > { %v10489_v2 = vld [vmem:[%s14864_s1 + $0x430] ss:$8 sps:$4 sm:$0xff]   ;;  %v10500_v37 = vld [vmem:[%s14864_s1 + $0x544] ss:$8 sps:$4 sm:$0xff]   ;;  %v10495_v40 = vld [vmem:[%s14864_s1 + $0x440] ss:$8 sps:$4 sm:$0xff]  }
 0x15f   : > { %3041 = vmatpush1.bf16.msra.mxu0 %v10411_v32  ;;  %v10491_v32 = vld [vmem:[%s14864_s1 + $0x434] ss:$8 sps:$4 sm:$0xff]   ;;  %v10492_v3 = vld [vmem:[%s14864_s1 + $0x530] ss:$8 sps:$4 sm:$0xff]   ;;  %v10498_v41 = vld [vmem:[%s14864_s1 + $0x540] ss:$8 sps:$4 sm:$0xff]  }
 0x160   : > { %3082 = vmatpush1.bf16.msra.mxu1 %v10414_v36  ;;  %3042 = vmatprep.subr.bf16.mxu0 %v10419_v18  ;;  %v10497_v36 = vld [vmem:[%s14864_s1 + $0x444] ss:$8 sps:$4 sm:$0xff]   ;;  %v10503_v30 = vld [vmem:[%s14864_s1 + $0x454] ss:$8 sps:$4 sm:$0xff]   ;;  %v10501_v18 = vld [vmem:[%s14864_s1 + $0x450] ss:$8 sps:$4 sm:$0xff]  }
 0x161   : > { %3083 = vmatprep.subr.bf16.mxu1 %v10422_v45  ;;  %v10506_v44 = vld [vmem:[%s14864_s1 + $0x554] ss:$8 sps:$4 sm:$0xff]   ;;  %v10504_v45 = vld [vmem:[%s14864_s1 + $0x550] ss:$8 sps:$4 sm:$0xff]  }
 0x163   : > { %3043 = vmatpush1.bf16.msra.mxu0 %v10417_v21  ;;  %v10509_v21 = vld [vmem:[%s14864_s1 + $0x464] ss:$8 sps:$4 sm:$0xff]  }
 0x164   : > { %3084 = vmatpush1.bf16.msra.mxu1 %v10420_v47  ;;  %3044 = vmatprep.subr.bf16.mxu0 %v10425_v48  ;;  %v10512_v47 = vld [vmem:[%s14864_s1 + $0x564] ss:$8 sps:$4 sm:$0xff]  }
 0x165   : > { %3085 = vmatprep.subr.bf16.mxu1 %v10428_v49 }
 0x167   : > { %3045 = vmatpush1.bf16.msra.mxu0 %v10423_v50  ;;  %v10507_v50 = vld [vmem:[%s14864_s1 + $0x460] ss:$8 sps:$4 sm:$0xff]  }
 0x168   : > { %3086 = vmatpush1.bf16.msra.mxu1 %v10426_v51  ;;  %3046 = vmatprep.subr.bf16.mxu0 %v10431_v54  ;;  %v10510_v51 = vld [vmem:[%s14864_s1 + $0x560] ss:$8 sps:$4 sm:$0xff]  }
 0x169   : > { %3087 = vmatprep.subr.bf16.mxu1 %v10434_v55 }
 0x16b   : > { %3047 = vmatpush1.bf16.msra.mxu0 %v10429_v56 }
 0x16c   : > { %3088 = vmatpush1.bf16.msra.mxu1 %v10432_v57  ;;  %3048 = vmatprep.subr.bf16.mxu0 %v10437_v58 }
 0x16d   : > { %3089 = vmatprep.subr.bf16.mxu1 %v10440_v59 }
 0x16f   : > { %3049 = vmatpush1.bf16.msra.mxu0 %v10435_v60 }
 0x170   : > { %3090 = vmatpush1.bf16.msra.mxu1 %v10438_v61  ;;  %3050 = vmatprep.subr.bf16.mxu0 %v10443_v62 }
 0x171   : > { %3091 = vmatprep.subr.bf16.mxu1 %v10446_v63  ;;  %v10515_v63 = vld [vmem:[%s14864_s1 + $0x474] ss:$8 sps:$4 sm:$0xff]  }
 0x173   : > { %3051 = vmatpush1.bf16.msra.mxu0 %v10441_v0  ;;  %v10518_v0 = vld [vmem:[%s14864_s1 + $0x574] ss:$8 sps:$4 sm:$0xff]  }
 0x174   : > { %3092 = vmatpush1.bf16.msra.mxu1 %v10444_v31  ;;  %3052 = vmatprep.subr.bf16.mxu0 %v10449_v43  ;;  %v10516_v43 = vld [vmem:[%s14864_s1 + $0x570] ss:$8 sps:$4 sm:$0xff]  }
 0x175   : > { %3093 = vmatprep.subr.bf16.mxu1 %v10452_v1  ;;  %v10521_v1 = vld [vmem:[%s14864_s1 + $0x484] ss:$8 sps:$4 sm:$0xff]  }
 0x177   : > { %3053 = vmatpush1.bf16.msra.mxu0 %v10447_v4  ;;  %v10519_v4 = vld [vmem:[%s14864_s1 + $0x480] ss:$8 sps:$4 sm:$0xff]  }
 0x178   : > { %3094 = vmatpush1.bf16.msra.mxu1 %v10450_v5  ;;  %3054 = vmatprep.subr.bf16.mxu0 %v10455_v6  ;;  %v10522_v5 = vld [vmem:[%s14864_s1 + $0x580] ss:$8 sps:$4 sm:$0xff]   ;;  %v10527_v6 = vld [vmem:[%s14864_s1 + $0x494] ss:$8 sps:$4 sm:$0xff]  }
 0x179   : > { %3095 = vmatprep.subr.bf16.mxu1 %v10458_v7  ;;  %v10530_v7 = vld [vmem:[%s14864_s1 + $0x594] ss:$8 sps:$4 sm:$0xff]  }
 0x17b   : > { %3055 = vmatpush1.bf16.msra.mxu0 %v10453_v8  ;;  %v10525_v8 = vld [vmem:[%s14864_s1 + $0x490] ss:$8 sps:$4 sm:$0xff]  }
 0x17c   : > { %3096 = vmatpush1.bf16.msra.mxu1 %v10456_v9  ;;  %3056 = vmatprep.subr.bf16.mxu0 %v10461_v10  ;;  %v10528_v9 = vld [vmem:[%s14864_s1 + $0x590] ss:$8 sps:$4 sm:$0xff]   ;;  %v10533_v10 = vld [vmem:[%s14864_s1 + $0x4a4] ss:$8 sps:$4 sm:$0xff]  }
 0x17d   : > { %3097 = vmatprep.subr.bf16.mxu1 %v10464_v11  ;;  %v10536_v11 = vld [vmem:[%s14864_s1 + $0x5a4] ss:$8 sps:$4 sm:$0xff]  }
 0x17f   : > { %3057 = vmatpush1.bf16.msra.mxu0 %v10459_v12  ;;  %v10531_v12 = vld [vmem:[%s14864_s1 + $0x4a0] ss:$8 sps:$4 sm:$0xff]  }
 0x180   : > { %3098 = vmatpush1.bf16.msra.mxu1 %v10462_v52  ;;  %3058 = vmatprep.subr.bf16.mxu0 %v10467_v53  ;;  %v10534_v52 = vld [vmem:[%s14864_s1 + $0x5a0] ss:$8 sps:$4 sm:$0xff]   ;;  %v10539_v53 = vld [vmem:[%s14864_s1 + $0x4b4] ss:$8 sps:$4 sm:$0xff]  }
 0x181   : > { %3099 = vmatprep.subr.bf16.mxu1 %v10470_v13  ;;  %v10542_v13 = vld [vmem:[%s14864_s1 + $0x5b4] ss:$8 sps:$4 sm:$0xff]  }
 0x183   : > { %3059 = vmatpush1.bf16.msra.mxu0 %v10465_v14  ;;  %v10537_v14 = vld [vmem:[%s14864_s1 + $0x4b0] ss:$8 sps:$4 sm:$0xff]  }
 0x184   : > { %3100 = vmatpush1.bf16.msra.mxu1 %v10468_v34  ;;  %3508 = vmatprep.subr.bf16.mxu0 %v10473_v35  ;;  %v10540_v34 = vld [vmem:[%s14864_s1 + $0x5b0] ss:$8 sps:$4 sm:$0xff]   ;;  %v10545_v35 = vld [vmem:[%s14864_s1 + $0x4c4] ss:$8 sps:$4 sm:$0xff]  }
 0x185   : > { %3549 = vmatprep.subr.bf16.mxu1 %v10476_v15  ;;  %v10548_v15 = vld [vmem:[%s14864_s1 + $0x5c4] ss:$8 sps:$4 sm:$0xff]  }
 0x186   : > { %3061 = vmatmul.mubr.bf16.vlgmr.msra.gmra.mrb[20].mxu0 %v12117_v38  ;;  %v10488_v38 = vld [vmem:[%s14864_s1 + $0x524] ss:$8 sps:$4 sm:$0xff]  }
 0x187   : > { %3102 = vmatmul.mubr.bf16.vlgmr.msra.gmra.mrb[20].mxu1 %v12121_v39  ;;  %3509 = vmatpush1.bf16.msra.mxu0 %v10471_v16  ;;  %v10483_v39 = vld [vmem:[%s14864_s1 + $0x420] ss:$8 sps:$4 sm:$0xff]  }
 0x188   : > { %3550 = vmatpush1.bf16.msra.mxu1 %v10474_v17  ;;  %3510 = vmatprep.subr.bf16.mxu0 %v10479_v22  ;;  %v10543_v16 = vld [vmem:[%s14864_s1 + $0x4c0] ss:$8 sps:$4 sm:$0xff]   ;;  %v10551_v22 = vld [vmem:[%s14864_s1 + $0x4d4] ss:$8 sps:$4 sm:$0xff]  }
 0x189   : > { %3551 = vmatprep.subr.bf16.mxu1 %v10482_v23  ;;  %3540 = vmatprep.mubr.bf16.mxu0 %v12753_v24  ;;  %v10546_v17 = vld [vmem:[%s14864_s1 + $0x5c0] ss:$8 sps:$4 sm:$0xff]   ;;  %v10554_v23 = vld [vmem:[%s14864_s1 + $0x5d4] ss:$8 sps:$4 sm:$0xff]  }
 0x18a   : > { %3581 = vmatprep.mubr.bf16.mxu1 %v12757_v25 }
 0x18b   : > { %3511 = vmatpush1.bf16.msra.mxu0 %v10477_v26  ;;  %v10549_v26 = vld [vmem:[%s14864_s1 + $0x4d0] ss:$8 sps:$4 sm:$0xff]  }
 0x18c   : > { %3552 = vmatpush1.bf16.msra.mxu1 %v10480_v27  ;;  %3512 = vmatprep.subr.bf16.mxu0 %v10485_v28  ;;  %v10552_v27 = vld [vmem:[%s14864_s1 + $0x5d0] ss:$8 sps:$4 sm:$0xff]   ;;  %v10557_v28 = vld [vmem:[%s14864_s1 + $0x4e4] ss:$8 sps:$4 sm:$0xff]  }
 0x18d   : > { %3553 = vmatprep.subr.bf16.mxu1 %v10488_v38  ;;  %v10560_v38 = vld [vmem:[%s14864_s1 + $0x5e4] ss:$8 sps:$4 sm:$0xff]  }
 0x18f   : > { %3513 = vmatpush1.bf16.msra.mxu0 %v10483_v39  ;;  %v10555_v39 = vld [vmem:[%s14864_s1 + $0x4e0] ss:$8 sps:$4 sm:$0xff]  }
 0x190   : > { %3554 = vmatpush1.bf16.msra.mxu1 %v10486_v29  ;;  %3514 = vmatprep.subr.bf16.mxu0 %v10491_v32  ;;  %v10558_v29 = vld [vmem:[%s14864_s1 + $0x5e0] ss:$8 sps:$4 sm:$0xff]   ;;  %v10563_v32 = vld [vmem:[%s14864_s1 + $0x4f4] ss:$8 sps:$4 sm:$0xff]  }
 0x191   : > { %3555 = vmatprep.subr.bf16.mxu1 %v10494_v33  ;;  %v10566_v33 = vld [vmem:[%s14864_s1 + $0x5f4] ss:$8 sps:$4 sm:$0xff]  }
 0x193   : > { %3515 = vmatpush1.bf16.msra.mxu0 %v10489_v2  ;;  %v3666_v2 = vshll.u32 %v12753_v24, 16 }
 0x194   : > { %3556 = vmatpush1.bf16.msra.mxu1 %v10492_v3  ;;  %3516 = vmatprep.subr.bf16.mxu0 %v10497_v36  ;;  %v3680_v3 = vshll.u32 %v12757_v25, 16  ;;  %v10561_v36 = vld [vmem:[%s14864_s1 + $0x4f0] ss:$8 sps:$4 sm:$0xff]  }
 0x195   : > { %3557 = vmatprep.subr.bf16.mxu1 %v10500_v37  ;;  %v10564_v37 = vld [vmem:[%s14864_s1 + $0x5f0] ss:$8 sps:$4 sm:$0xff]  }
 0x197   : > { %3517 = vmatpush1.bf16.msra.mxu0 %v10495_v40  ;;  %v10573_v40 = vld [vmem:[%s14864_s1 + $0x604] ss:$8 sps:$4 sm:$0xff]  }
 0x198   : > { %3558 = vmatpush1.bf16.msra.mxu1 %v10498_v41  ;;  %3518 = vmatprep.subr.bf16.mxu0 %v10503_v30  ;;  %v10576_v41 = vld [vmem:[%s14864_s1 + $0x704] ss:$8 sps:$4 sm:$0xff]   ;;  %v3664_v30 = vshrl.u32 %v12753_v24, 16 }
 0x199   : > { %3559 = vmatprep.subr.bf16.mxu1 %v10506_v44  ;;  %v1594_v48 = vpop.f32.mrb[8].mxu0  ;;  %v10571_v44 = vld [vmem:[%s14864_s1 + $0x600] ss:$8 sps:$4 sm:$0xff]  }
 0x19a   : > { %v1635_v49 = vpop.f32.mrb[8].mxu1  ;;  %v1596_v55 = vpop.f32.mrb[9].mxu0 }
 0x19b   : > { %v1636_v54 = vadd.f32 %v1635_v49, %v1594_v48  ;;  %v1637_v56 = vpop.f32.mrb[9].mxu1  ;;  %v1598_v58 = vpop.f32.mrb[10].mxu0  ;;  %3519 = vmatpush1.bf16.msra.mxu0 %v10501_v18  ;;  %v10574_v18 = vld [vmem:[%s14864_s1 + $0x700] ss:$8 sps:$4 sm:$0xff]   ;;  %v12961_v48 = vcombine.low %v12740_v19, %v12740_v19  ;;  %v12965_v49 = vcombine.low %v12743_v20, %v12743_v20  ;;  %v10577_v20 = vld [vmem:[%s14864_s1 + $0x610] ss:$8 sps:$4 sm:$0xff]  }
 0x19c   : > { %v1638_v57 = vadd.f32 %v1637_v56, %v1596_v55  ;;  %v1639_v59 = vpop.f32.mrb[10].mxu1  ;;  %3560 = vmatpush1.bf16.msra.mxu1 %v10504_v45  ;;  %v1599_v61 = vpop.f32.mrb[11].mxu0  ;;  %3520 = vmatprep.subr.bf16.mxu0 %v10509_v21  ;;  %v3668_v45 = vrot.slane %v3666_v2, 1  ;;  %v3678_v21 = vshrl.u32 %v12757_v25, 16  ;;  %v10580_v55 = vld [vmem:[%s14864_s1 + $0x710] ss:$8 sps:$4 sm:$0xff]  }
 0x19d   : > { %v12830_v60 = vadd.f32 %v1636_v54, %v12615_v42  ;;  %v1640_v62 = vpop.f32.mrb[11].mxu1  ;;  %3561 = vmatprep.subr.bf16.mxu1 %v10512_v47  ;;  %v10513_v42 = vld [vmem:[%s14864_s1 + $0x470] ss:$8 sps:$4 sm:$0xff]   ;;  %v3682_v47 = vrot.slane %v3680_v3, 1  ;;  %v10585_v56 = vld [vmem:[%s14864_s1 + $0x624] ss:$8 sps:$4 sm:$0xff]  }
 0x19e   : > { %v12839_v31 = vadd.f32 %v1638_v57, %v12623_v46  ;;  %v10524_v46 = vld [vmem:[%s14864_s1 + $0x584] ss:$8 sps:$4 sm:$0xff]   ;;  %v12973_v54 = vor.u32 %v3668_v45, %v3664_v30  ;;  %v10583_v58 = vld [vmem:[%s14864_s1 + $0x620] ss:$8 sps:$4 sm:$0xff]   ;;  %v10591_v61 = vld [vmem:[%s14864_s1 + $0x634] ss:$8 sps:$4 sm:$0xff]  }
 0x19f   : > { %3521 = vmatpush1.bf16.msra.mxu0 %v10507_v50  ;;  %v10579_v50 = vld [vmem:[%s14864_s1 + $0x614] ss:$8 sps:$4 sm:$0xff]   ;;  %v12975_v19 = vor.u32 %v3682_v47, %v3678_v21  ;;  %v10588_v57 = vld [vmem:[%s14864_s1 + $0x724] ss:$8 sps:$4 sm:$0xff]   ;;  %v10586_v59 = vld [vmem:[%s14864_s1 + $0x720] ss:$8 sps:$4 sm:$0xff]  }
 0x1a0   : > { %3562 = vmatpush1.bf16.msra.mxu1 %v10510_v51  ;;  %3522 = vmatprep.subr.bf16.mxu0 %v10515_v63  ;;  %v10582_v51 = vld [vmem:[%s14864_s1 + $0x714] ss:$8 sps:$4 sm:$0xff]   ;;  %v2146_v63 = vlaneseq  ;;  %v10613_v3 = vld [vmem:[%s14864_s1 + $0x670] ss:$8 sps:$4 sm:$0xff]   ;;  %v10619_v45 = vld [vmem:[%s14864_s1 + $0x680] ss:$8 sps:$4 sm:$0xff]  }
 0x1a1   : > { %3563 = vmatprep.subr.bf16.mxu1 %v10518_v0  ;;  %v10594_v62 = vld [vmem:[%s14864_s1 + $0x734] ss:$8 sps:$4 sm:$0xff]   ;;  %v10589_v0 = vld [vmem:[%s14864_s1 + $0x630] ss:$8 sps:$4 sm:$0xff]   ;;  %v10622_v21 = vld [vmem:[%s14864_s1 + $0x780] ss:$8 sps:$4 sm:$0xff]  }
 0x1a3   : > { %3523 = vmatpush1.bf16.msra.mxu0 %v10513_v42  ;;  %v10592_v42 = vld [vmem:[%s14864_s1 + $0x730] ss:$8 sps:$4 sm:$0xff]  }
 0x1a4   : > { %3564 = vmatpush1.bf16.msra.mxu1 %v10516_v43  ;;  %3524 = vmatprep.subr.bf16.mxu0 %v10521_v1  ;;  %v10597_v43 = vld [vmem:[%s14864_s1 + $0x644] ss:$8 sps:$4 sm:$0xff]  }
 0x1a5   : > { %3565 = vmatprep.subr.bf16.mxu1 %v10524_v46  ;;  %v10600_v1 = vld [vmem:[%s14864_s1 + $0x744] ss:$8 sps:$4 sm:$0xff]   ;;  %v2147_v46 = vshrl.u32 %v2146_v63, 7  ;;  %v10637_v63 = vld [vmem:[%s14864_s1 + $0x6b0] ss:$8 sps:$4 sm:$0xff]  }
 0x1a7   : > { %3525 = vmatpush1.bf16.msra.mxu0 %v10519_v4  ;;  %v10595_v4 = vld [vmem:[%s14864_s1 + $0x640] ss:$8 sps:$4 sm:$0xff]  }
 0x1a8   : > { %3566 = vmatpush1.bf16.msra.mxu1 %v10522_v5  ;;  %3526 = vmatprep.subr.bf16.mxu0 %v10527_v6  ;;  %v10598_v5 = vld [vmem:[%s14864_s1 + $0x740] ss:$8 sps:$4 sm:$0xff]   ;;  %v10603_v6 = vld [vmem:[%s14864_s1 + $0x654] ss:$8 sps:$4 sm:$0xff]  }
 0x1a9   : > { %3567 = vmatprep.subr.bf16.mxu1 %v10530_v7  ;;  %v10606_v7 = vld [vmem:[%s14864_s1 + $0x754] ss:$8 sps:$4 sm:$0xff]  }
 0x1ab   : > { %3527 = vmatpush1.bf16.msra.mxu0 %v10525_v8  ;;  %v181_v8 = vld [vmem:[%s14865_s2] sm:$0x3] }
 0x1ac   : > { %3568 = vmatpush1.bf16.msra.mxu1 %v10528_v9  ;;  %3528 = vmatprep.subr.bf16.mxu0 %v10533_v10  ;;  %v10601_v9 = vld [vmem:[%s14864_s1 + $0x650] ss:$8 sps:$4 sm:$0xff]  }
 0x1ad   : > { %3569 = vmatprep.subr.bf16.mxu1 %v10536_v11  ;;  %v10604_v10 = vld [vmem:[%s14864_s1 + $0x750] ss:$8 sps:$4 sm:$0xff]   ;;  %v2148_v11 = vsub.s32 0, %v2147_v46 }
 0x1af   : > { %3529 = vmatpush1.bf16.msra.mxu0 %v10531_v12  ;;  %v2152_v12 = vsub.s32 1, %v2147_v46  ;;  %v10646_v46 = vld [vmem:[%s14864_s1 + $0x7c0] ss:$8 sps:$4 sm:$0xff]  }
 0x1b0   : > { %3570 = vmatpush1.bf16.msra.mxu1 %v10534_v52  ;;  %3530 = vmatprep.subr.bf16.mxu0 %v10539_v53  ;;  %v10609_v52 = vld [vmem:[%s14864_s1 + $0x664] ss:$8 sps:$4 sm:$0xff]  }
 0x1b1   : > { %3571 = vmatprep.subr.bf16.mxu1 %v10542_v13  ;;  %v10612_v53 = vld [vmem:[%s14864_s1 + $0x764] ss:$8 sps:$4 sm:$0xff]  }
 0x1b3   : > { %3531 = vmatpush1.bf16.msra.mxu0 %v10537_v14 }
 0x1b4   : > { %3572 = vmatpush1.bf16.msra.mxu1 %v10540_v34  ;;  %3532 = vmatprep.subr.bf16.mxu0 %v10545_v35  ;;  %v10607_v34 = vld [vmem:[%s14864_s1 + $0x660] ss:$8 sps:$4 sm:$0xff]  }
 0x1b5   : > { %3573 = vmatprep.subr.bf16.mxu1 %v10548_v15  ;;  %v10610_v35 = vld [vmem:[%s14864_s1 + $0x760] ss:$8 sps:$4 sm:$0xff]  }
 0x1b7   : > { %3533 = vmatpush1.bf16.msra.mxu0 %v10543_v16  ;;  %v13050_v16 = vrot.slane %v181_v8, %v2148_v11  ;;  %v3673_v11 = vshll.u32 %v12965_v49, 16 }
 0x1b8   : > { %3574 = vmatpush1.bf16.msra.mxu1 %v10546_v17  ;;  %3534 = vmatprep.subr.bf16.mxu0 %v10551_v22 }
 0x1b9   : > { %3575 = vmatprep.subr.bf16.mxu1 %v10554_v23 }
 0x1bb   : > { %3535 = vmatpush1.bf16.msra.mxu0 %v10549_v26  ;;  %v13052_v26 = vrot.slane %v181_v8, %v2152_v12  ;;  %v10657_v8 = vld [vmem:[%s14864_s1 + $0x6e4] ss:$8 sps:$4 sm:$0xff]   ;;  %v10655_v12 = vld [vmem:[%s14864_s1 + $0x6e0] ss:$8 sps:$4 sm:$0xff]  }
 0x1bc   : > { %3576 = vmatpush1.bf16.msra.mxu1 %v10552_v27  ;;  %3536 = vmatprep.subr.bf16.mxu0 %v10557_v28 }
 0x1bd   : > { %3577 = vmatprep.subr.bf16.mxu1 %v10560_v38 }
 0x1bf   : > { %3537 = vmatpush1.bf16.msra.mxu0 %v10555_v39 }
 0x1c0   : > { %3578 = vmatpush1.bf16.msra.mxu1 %v10558_v29  ;;  %3538 = vmatprep.subr.bf16.mxu0 %v10563_v32  ;;  %v10615_v32 = vld [vmem:[%s14864_s1 + $0x674] ss:$8 sps:$4 sm:$0xff]  }
 0x1c1   : > { %3579 = vmatprep.subr.bf16.mxu1 %v10566_v33  ;;  %v10618_v33 = vld [vmem:[%s14864_s1 + $0x774] ss:$8 sps:$4 sm:$0xff]  }
 0x1c3   : > { %3539 = vmatpush1.bf16.msra.mxu0 %v10561_v36 }
 0x1c4   : > { %3580 = vmatpush1.bf16.msra.mxu1 %v10564_v37  ;;  %4008 = vmatprep.subr.bf16.mxu0 %v10573_v40  ;;  %v10616_v37 = vld [vmem:[%s14864_s1 + $0x770] ss:$8 sps:$4 sm:$0xff]   ;;  %v10621_v40 = vld [vmem:[%s14864_s1 + $0x684] ss:$8 sps:$4 sm:$0xff]  }
 0x1c5   : > { %4049 = vmatprep.subr.bf16.mxu1 %v10576_v41  ;;  %v10624_v41 = vld [vmem:[%s14864_s1 + $0x784] ss:$8 sps:$4 sm:$0xff]  }
 0x1c6   : > { %3541 = vmatmul.mubr.bf16.vlgmr.msra.gmra.mrb[24].mxu0 %v12961_v48 }
 0x1c7   : > { %3582 = vmatmul.mubr.bf16.vlgmr.msra.gmra.mrb[24].mxu1 %v12965_v49  ;;  %4009 = vmatpush1.bf16.msra.mxu0 %v10571_v44 }
 0x1c8   : > { %4050 = vmatpush1.bf16.msra.mxu1 %v10574_v18  ;;  %4010 = vmatprep.subr.bf16.mxu0 %v10579_v50  ;;  %v10627_v50 = vld [vmem:[%s14864_s1 + $0x694] ss:$8 sps:$4 sm:$0xff]  }
 0x1c9   : > { %4051 = vmatprep.subr.bf16.mxu1 %v10582_v51  ;;  %4040 = vmatprep.mubr.bf16.mxu0 %v12973_v54  ;;  %v10630_v51 = vld [vmem:[%s14864_s1 + $0x794] ss:$8 sps:$4 sm:$0xff]  }
 0x1ca   : > { %4081 = vmatprep.mubr.bf16.mxu1 %v12975_v19 }
 0x1cb   : > { %4011 = vmatpush1.bf16.msra.mxu0 %v10577_v20  ;;  %v10625_v20 = vld [vmem:[%s14864_s1 + $0x690] ss:$8 sps:$4 sm:$0xff]  }
 0x1cc   : > { %4052 = vmatpush1.bf16.msra.mxu1 %v10580_v55  ;;  %4012 = vmatprep.subr.bf16.mxu0 %v10585_v56  ;;  %v10628_v55 = vld [vmem:[%s14864_s1 + $0x790] ss:$8 sps:$4 sm:$0xff]   ;;  %v10633_v56 = vld [vmem:[%s14864_s1 + $0x6a4] ss:$8 sps:$4 sm:$0xff]  }
 0x1cd   : > { %4053 = vmatprep.subr.bf16.mxu1 %v10588_v57  ;;  %v10636_v57 = vld [vmem:[%s14864_s1 + $0x7a4] ss:$8 sps:$4 sm:$0xff]  }
 0x1cf   : > { %4013 = vmatpush1.bf16.msra.mxu0 %v10583_v58  ;;  %v10631_v58 = vld [vmem:[%s14864_s1 + $0x6a0] ss:$8 sps:$4 sm:$0xff]  }
 0x1d0   : > { %4054 = vmatpush1.bf16.msra.mxu1 %v10586_v59  ;;  %4014 = vmatprep.subr.bf16.mxu0 %v10591_v61  ;;  %v10634_v59 = vld [vmem:[%s14864_s1 + $0x7a0] ss:$8 sps:$4 sm:$0xff]   ;;  %v10639_v61 = vld [vmem:[%s14864_s1 + $0x6b4] ss:$8 sps:$4 sm:$0xff]  }
 0x1d1   : > { %4055 = vmatprep.subr.bf16.mxu1 %v10594_v62  ;;  %v10642_v62 = vld [vmem:[%s14864_s1 + $0x7b4] ss:$8 sps:$4 sm:$0xff]  }
 0x1d3   : > { %4015 = vmatpush1.bf16.msra.mxu0 %v10589_v0  ;;  %v10640_v0 = vld [vmem:[%s14864_s1 + $0x7b0] ss:$8 sps:$4 sm:$0xff]  }
 0x1d4   : > { %4056 = vmatpush1.bf16.msra.mxu1 %v10592_v42  ;;  %4016 = vmatprep.subr.bf16.mxu0 %v10597_v43  ;;  %v10645_v42 = vld [vmem:[%s14864_s1 + $0x6c4] ss:$8 sps:$4 sm:$0xff]  }
 0x1d5   : > { %4057 = vmatprep.subr.bf16.mxu1 %v10600_v1  ;;  %v10648_v43 = vld [vmem:[%s14864_s1 + $0x7c4] ss:$8 sps:$4 sm:$0xff]   ;;  %v10643_v1 = vld [vmem:[%s14864_s1 + $0x6c0] ss:$8 sps:$4 sm:$0xff]  }
 0x1d7   : > { %4017 = vmatpush1.bf16.msra.mxu0 %v10595_v4  ;;  %v10651_v4 = vld [vmem:[%s14864_s1 + $0x6d4] ss:$8 sps:$4 sm:$0xff]  }
 0x1d8   : > { %4058 = vmatpush1.bf16.msra.mxu1 %v10598_v5  ;;  %4018 = vmatprep.subr.bf16.mxu0 %v10603_v6  ;;  %v10654_v5 = vld [vmem:[%s14864_s1 + $0x7d4] ss:$8 sps:$4 sm:$0xff]   ;;  %v10649_v6 = vld [vmem:[%s14864_s1 + $0x6d0] ss:$8 sps:$4 sm:$0xff]  }
 0x1d9   : > { %4059 = vmatprep.subr.bf16.mxu1 %v10606_v7  ;;  %v2095_v13 = vpop.f32.mrb[12].mxu0  ;;  %v10652_v7 = vld [vmem:[%s14864_s1 + $0x7d0] ss:$8 sps:$4 sm:$0xff]  }
 0x1da   : > { %v2136_v14 = vpop.f32.mrb[12].mxu1  ;;  %v2097_v17 = vpop.f32.mrb[13].mxu0 }
 0x1db   : > { %v2137_v15 = vadd.f32 %v2136_v14, %v2095_v13  ;;  %v2138_v22 = vpop.f32.mrb[13].mxu1  ;;  %v2099_v27 = vpop.f32.mrb[14].mxu0  ;;  %4019 = vmatpush1.bf16.msra.mxu0 %v10601_v9  ;;  %v10660_v9 = vld [vmem:[%s14864_s1 + $0x7e4] ss:$8 sps:$4 sm:$0xff]   ;;  %v10666_v13 = vld [vmem:[%s14864_s1 + $0x7f4] ss:$8 sps:$4 sm:$0xff]  }
 0x1dc   : > { %v2139_v23 = vadd.f32 %v2138_v22, %v2097_v17  ;;  %v2140_v28 = vpop.f32.mrb[14].mxu1  ;;  %4060 = vmatpush1.bf16.msra.mxu1 %v10604_v10  ;;  %v2100_v39 = vpop.f32.mrb[15].mxu0  ;;  %4020 = vmatprep.subr.bf16.mxu0 %v10609_v52  ;;  %v3659_v10 = vshll.u32 %v12961_v48, 16  ;;  %v10658_v52 = vld [vmem:[%s14864_s1 + $0x7e0] ss:$8 sps:$4 sm:$0xff]   ;;  %v3657_v14 = vshrl.u32 %v12961_v48, 16 }
 0x1dd   : > { %v2143_v38 = vadd.f32 %v2137_v15, %v12830_v60  ;;  %v2141_v29 = vpop.f32.mrb[15].mxu1  ;;  %4061 = vmatprep.subr.bf16.mxu1 %v10612_v53  ;;  %v10663_v53 = vld [vmem:[%s14864_s1 + $0x6f4] ss:$8 sps:$4 sm:$0xff]   ;;  %v3675_v15 = vrot.slane %v3673_v11, 1  ;;  %v10661_v17 = vld [vmem:[%s14864_s1 + $0x6f0] ss:$8 sps:$4 sm:$0xff]  }
 0x1de   : > { %v2144_v2 = vadd.f32 %v2139_v23, %v12839_v31  ;;  %v10664_v22 = vld [vmem:[%s14864_s1 + $0x7f0] ss:$8 sps:$4 sm:$0xff]   ;;  %v10669_v23 = vld [vmem:[%s14864_s1 + $0x204] ss:$8 sps:$4 sm:$0xff]   ;;  %v10667_v28 = vld [vmem:[%s14864_s1 + $0x200] ss:$8 sps:$4 sm:$0xff]  }
 0x1df   : > { %v2156_v60 = vadd.f32 %v13050_v16, %v2143_v38  ;;  %4021 = vmatpush1.bf16.msra.mxu0 %v10607_v34  ;;  %v3661_v34 = vrot.slane %v3659_v10, 1  ;;  %v10672_v27 = vld [vmem:[%s14864_s1 + $0x304] ss:$8 sps:$4 sm:$0xff]   ;;  %v10670_v38 = vld [vmem:[%s14864_s1 + $0x300] ss:$8 sps:$4 sm:$0xff]  }
 0x1e0   : > { %v2157_v36 = vadd.f32 %v13052_v26, %v2144_v2  ;;  %4062 = vmatpush1.bf16.msra.mxu1 %v10610_v35  ;;  %4022 = vmatprep.subr.bf16.mxu0 %v10615_v32  ;;  %v3671_v35 = vshrl.u32 %v12965_v49, 16  ;;  %v10675_v32 = vld [vmem:[%s14864_s1 + $0x214] ss:$8 sps:$4 sm:$0xff]   ;;  %v10673_v2 = vld [vmem:[%s14864_s1 + $0x210] ss:$8 sps:$4 sm:$0xff]  }
 0x1e1   : > { %vm2158_vm0 = vcmp.ge.f32.partialorder %v2156_v60, 0.0  ;;  %v2160_v31 = vmul.f32 0.2, %v2156_v60  ;;  %4063 = vmatprep.subr.bf16.mxu1 %v10618_v33  ;;  %v13189_v39 = vor.u32 %v3661_v34, %v3657_v14  ;;  %v10678_v33 = vld [vmem:[%s14864_s1 + $0x314] ss:$8 sps:$4 sm:$0xff]  }
 0x1e2   : > { %vm2159_vm1 = vcmp.ge.f32.partialorder %v2157_v36, 0.0  ;;  %v2161_v30 = vmul.f32 0.2, %v2157_v36  ;;  %v13191_v29 = vor.u32 %v3675_v15, %v3671_v35  ;;  %v10715_v10 = vld [vmem:[%s14864_s1 + $0x280] ss:$8 sps:$4 sm:$0xff]  }
 0x1e3   : > { %v2162_v44 = vsel %vm2158_vm0, %v2156_v60, %v2160_v31  ;;  %4023 = vmatpush1.bf16.msra.mxu0 %v10613_v3  ;;  %v10676_v3 = vld [vmem:[%s14864_s1 + $0x310] ss:$8 sps:$4 sm:$0xff]   ;;  %v10681_v60 = vld [vmem:[%s14864_s1 + $0x224] ss:$8 sps:$4 sm:$0xff]   ;;  %v10687_v31 = vld [vmem:[%s14864_s1 + $0x234] ss:$8 sps:$4 sm:$0xff]  }
 0x1e4   : > { %v2163_v18 = vsel %vm2159_vm1, %v2157_v36, %v2161_v30  ;;  %4064 = vmatpush1.bf16.msra.mxu1 %v10616_v37  ;;  %4024 = vmatprep.subr.bf16.mxu0 %v10621_v40  ;;  %v10684_v36 = vld [vmem:[%s14864_s1 + $0x324] ss:$8 sps:$4 sm:$0xff]   ;;  %v10679_v37 = vld [vmem:[%s14864_s1 + $0x220] ss:$8 sps:$4 sm:$0xff]  }
 0x1e5   : > { %v8508_v47 = vpack.c.bf16 %v2163_v18, %v2162_v44  ;;  %4065 = vmatprep.subr.bf16.mxu1 %v10624_v41  ;;  %v10682_v40 = vld [vmem:[%s14864_s1 + $0x320] ss:$8 sps:$4 sm:$0xff]   ;;  %v10688_v41 = vld [vmem:[%s14864_s1 + $0x330] ss:$8 sps:$4 sm:$0xff]   ;;  %v10693_v30 = vld [vmem:[%s14864_s1 + $0x244] ss:$8 sps:$4 sm:$0xff]  }
 0x1e6   : > { %v10696_v44 = vld [vmem:[%s14864_s1 + $0x344] ss:$8 sps:$4 sm:$0xff]   ;;  %v10691_v18 = vld [vmem:[%s14864_s1 + $0x240] ss:$8 sps:$4 sm:$0xff]  }
 0x1e7   : > { %8509 = vst.sshfl [vmem:[%s13080_s22] sm:$0x33 pattern:$0x76325410] %v8508_v47  ;;  %4025 = vmatpush1.bf16.msra.mxu0 %v10619_v45  ;;  %v10694_v45 = vld [vmem:[%s14864_s1 + $0x340] ss:$8 sps:$4 sm:$0xff]  }
 0x1e8   : > { %4066 = vmatpush1.bf16.msra.mxu1 %v10622_v21  ;;  %4026 = vmatprep.subr.bf16.mxu0 %v10627_v50  ;;  %v10699_v21 = vld [vmem:[%s14864_s1 + $0x254] ss:$8 sps:$4 sm:$0xff]   ;;  %v10697_v50 = vld [vmem:[%s14864_s1 + $0x250] ss:$8 sps:$4 sm:$0xff]   ;;  %v10718_v11 = vld [vmem:[%s14864_s1 + $0x380] ss:$8 sps:$4 sm:$0xff]  }
 0x1e9   : > { %4067 = vmatprep.subr.bf16.mxu1 %v10630_v51  ;;  %v10702_v47 = vld [vmem:[%s14864_s1 + $0x354] ss:$8 sps:$4 sm:$0xff]   ;;  %v10700_v51 = vld [vmem:[%s14864_s1 + $0x350] ss:$8 sps:$4 sm:$0xff]   ;;  %v10729_v14 = vld [vmem:[%s14864_s1 + $0x2a4] ss:$8 sps:$4 sm:$0xff]  }
 0x1ea   : > { %v10732_v34 = vld [vmem:[%s14864_s1 + $0x3a4] ss:$8 sps:$4 sm:$0xff]   ;;  %v10727_v35 = vld [vmem:[%s14864_s1 + $0x2a0] ss:$8 sps:$4 sm:$0xff]  }
 0x1eb   : > { %4027 = vmatpush1.bf16.msra.mxu0 %v10625_v20  ;;  %v10705_v20 = vld [vmem:[%s14864_s1 + $0x264] ss:$8 sps:$4 sm:$0xff]   ;;  %v10730_v15 = vld [vmem:[%s14864_s1 + $0x3a0] ss:$8 sps:$4 sm:$0xff]  }
 0x1ec   : > { %4068 = vmatpush1.bf16.msra.mxu1 %v10628_v55  ;;  %4028 = vmatprep.subr.bf16.mxu0 %v10633_v56  ;;  %v10708_v55 = vld [vmem:[%s14864_s1 + $0x364] ss:$8 sps:$4 sm:$0xff]  }
 0x1ed   : > { %4069 = vmatprep.subr.bf16.mxu1 %v10636_v57 }
 0x1ef   : > { %4029 = vmatpush1.bf16.msra.mxu0 %v10631_v58  ;;  %v10703_v58 = vld [vmem:[%s14864_s1 + $0x260] ss:$8 sps:$4 sm:$0xff]  }
 0x1f0   : > { %4070 = vmatpush1.bf16.msra.mxu1 %v10634_v59  ;;  %4030 = vmatprep.subr.bf16.mxu0 %v10639_v61  ;;  %v10706_v59 = vld [vmem:[%s14864_s1 + $0x360] ss:$8 sps:$4 sm:$0xff]  }
 0x1f1   : > { %4071 = vmatprep.subr.bf16.mxu1 %v10642_v62 }
 0x1f3   : > { %4031 = vmatpush1.bf16.msra.mxu0 %v10637_v63 }
 0x1f4   : > { %4072 = vmatpush1.bf16.msra.mxu1 %v10640_v0  ;;  %4032 = vmatprep.subr.bf16.mxu0 %v10645_v42 }
 0x1f5   : > { %4073 = vmatprep.subr.bf16.mxu1 %v10648_v43 }
 0x1f7   : > { %4033 = vmatpush1.bf16.msra.mxu0 %v10643_v1 }
 0x1f8   : > { %4074 = vmatpush1.bf16.msra.mxu1 %v10646_v46  ;;  %4034 = vmatprep.subr.bf16.mxu0 %v10651_v4  ;;  %v10711_v4 = vld [vmem:[%s14864_s1 + $0x274] ss:$8 sps:$4 sm:$0xff]  }
 0x1f9   : > { %4075 = vmatprep.subr.bf16.mxu1 %v10654_v5  ;;  %v10714_v5 = vld [vmem:[%s14864_s1 + $0x374] ss:$8 sps:$4 sm:$0xff]  }
 0x1fb   : > { %4035 = vmatpush1.bf16.msra.mxu0 %v10649_v6  ;;  %v10709_v6 = vld [vmem:[%s14864_s1 + $0x270] ss:$8 sps:$4 sm:$0xff]  }
 0x1fc   : > { %4076 = vmatpush1.bf16.msra.mxu1 %v10652_v7  ;;  %4036 = vmatprep.subr.bf16.mxu0 %v10657_v8  ;;  %v10712_v7 = vld [vmem:[%s14864_s1 + $0x370] ss:$8 sps:$4 sm:$0xff]   ;;  %v10717_v8 = vld [vmem:[%s14864_s1 + $0x284] ss:$8 sps:$4 sm:$0xff]  }
 0x1fd   : > { %4077 = vmatprep.subr.bf16.mxu1 %v10660_v9  ;;  %v10720_v9 = vld [vmem:[%s14864_s1 + $0x384] ss:$8 sps:$4 sm:$0xff]  }
 0x1ff   : > { %4037 = vmatpush1.bf16.msra.mxu0 %v10655_v12  ;;  %v10723_v12 = vld [vmem:[%s14864_s1 + $0x294] ss:$8 sps:$4 sm:$0xff]  }
 0x200   : > { %4078 = vmatpush1.bf16.msra.mxu1 %v10658_v52  ;;  %4038 = vmatprep.subr.bf16.mxu0 %v10663_v53  ;;  %v10726_v52 = vld [vmem:[%s14864_s1 + $0x394] ss:$8 sps:$4 sm:$0xff]   ;;  %v10721_v53 = vld [vmem:[%s14864_s1 + $0x290] ss:$8 sps:$4 sm:$0xff]  }
 0x201   : > { %4079 = vmatprep.subr.bf16.mxu1 %v10666_v13  ;;  %v10724_v13 = vld [vmem:[%s14864_s1 + $0x390] ss:$8 sps:$4 sm:$0xff]  }
 0x203   : > { %4039 = vmatpush1.bf16.msra.mxu0 %v10661_v17  ;;  %v10735_v17 = vld [vmem:[%s14864_s1 + $0x2b4] ss:$8 sps:$4 sm:$0xff]  }
 0x204   : > { %4080 = vmatpush1.bf16.msra.mxu1 %v10664_v22  ;;  %4563 = vmatprep.subr.bf16.mxu0 %v10669_v23  ;;  %v10738_v22 = vld [vmem:[%s14864_s1 + $0x3b4] ss:$8 sps:$4 sm:$0xff]   ;;  %v10733_v23 = vld [vmem:[%s14864_s1 + $0x2b0] ss:$8 sps:$4 sm:$0xff]  }
 0x205   : > { %4604 = vmatprep.subr.bf16.mxu1 %v10672_v27  ;;  %v10736_v27 = vld [vmem:[%s14864_s1 + $0x3b0] ss:$8 sps:$4 sm:$0xff]  }
 0x206   : > { %4041 = vmatmul.mubr.bf16.vlgmr.msra.gmra.mrb[28].mxu0 %v13189_v39 }
 0x207   : > { %4082 = vmatmul.mubr.bf16.vlgmr.msra.gmra.mrb[28].mxu1 %v13191_v29  ;;  %4564 = vmatpush1.bf16.msra.mxu0 %v10667_v28  ;;  %v10741_v28 = vld [vmem:[%s14864_s1 + $0x2c4] ss:$8 sps:$4 sm:$0xff]  }
 0x208   : > { %4605 = vmatpush1.bf16.msra.mxu1 %v10670_v38  ;;  %4565 = vmatprep.subr.bf16.mxu0 %v10675_v32  ;;  %v10744_v38 = vld [vmem:[%s14864_s1 + $0x3c4] ss:$8 sps:$4 sm:$0xff]   ;;  %v10739_v32 = vld [vmem:[%s14864_s1 + $0x2c0] ss:$8 sps:$4 sm:$0xff]  }
 0x209   : > { %4606 = vmatprep.subr.bf16.mxu1 %v10678_v33  ;;  %4595 = vmatprep.mubr.bf16.mxu0 %v12973_v54  ;;  %v10690_v54 = vld [vmem:[%s14864_s1 + $0x334] ss:$8 sps:$4 sm:$0xff]   ;;  %v10742_v33 = vld [vmem:[%s14864_s1 + $0x3c0] ss:$8 sps:$4 sm:$0xff]  }
 0x20a   : > { %4636 = vmatprep.mubr.bf16.mxu1 %v12975_v19  ;;  %v10685_v19 = vld [vmem:[%s14864_s1 + $0x230] ss:$8 sps:$4 sm:$0xff]  }
 0x20b   : > { %4566 = vmatpush1.bf16.msra.mxu0 %v10673_v2  ;;  %v10747_v2 = vld [vmem:[%s14864_s1 + $0x2d4] ss:$8 sps:$4 sm:$0xff]  }
 0x20c   : > { %4607 = vmatpush1.bf16.msra.mxu1 %v10676_v3  ;;  %4567 = vmatprep.subr.bf16.mxu0 %v10681_v60  ;;  %v10750_v3 = vld [vmem:[%s14864_s1 + $0x3d4] ss:$8 sps:$4 sm:$0xff]   ;;  %v10745_v60 = vld [vmem:[%s14864_s1 + $0x2d0] ss:$8 sps:$4 sm:$0xff]  }
 0x20d   : > { %4608 = vmatprep.subr.bf16.mxu1 %v10684_v36  ;;  %v10748_v36 = vld [vmem:[%s14864_s1 + $0x3d0] ss:$8 sps:$4 sm:$0xff]  }
 0x20f   : > { %4568 = vmatpush1.bf16.msra.mxu0 %v10679_v37  ;;  %v10753_v37 = vld [vmem:[%s14864_s1 + $0x2e4] ss:$8 sps:$4 sm:$0xff]  }
 0x210   : > { %4609 = vmatpush1.bf16.msra.mxu1 %v10682_v40  ;;  %4569 = vmatprep.subr.bf16.mxu0 %v10687_v31  ;;  %v10756_v40 = vld [vmem:[%s14864_s1 + $0x3e4] ss:$8 sps:$4 sm:$0xff]   ;;  %v10751_v31 = vld [vmem:[%s14864_s1 + $0x2e0] ss:$8 sps:$4 sm:$0xff]  }
 0x211   : > { %4610 = vmatprep.subr.bf16.mxu1 %v10690_v54  ;;  %v10754_v54 = vld [vmem:[%s14864_s1 + $0x3e0] ss:$8 sps:$4 sm:$0xff]  }
 0x213   : > { %4570 = vmatpush1.bf16.msra.mxu0 %v10685_v19  ;;  %v10759_v19 = vld [vmem:[%s14864_s1 + $0x2f4] ss:$8 sps:$4 sm:$0xff]  }
 0x214   : > { %4611 = vmatpush1.bf16.msra.mxu1 %v10688_v41  ;;  %4571 = vmatprep.subr.bf16.mxu0 %v10693_v30  ;;  %v10762_v41 = vld [vmem:[%s14864_s1 + $0x3f4] ss:$8 sps:$4 sm:$0xff]   ;;  %v10757_v30 = vld [vmem:[%s14864_s1 + $0x2f0] ss:$8 sps:$4 sm:$0xff]  }
 0x215   : > { %4612 = vmatprep.subr.bf16.mxu1 %v10696_v44  ;;  %v10760_v44 = vld [vmem:[%s14864_s1 + $0x3f0] ss:$8 sps:$4 sm:$0xff]  }
 0x217   : > { %4572 = vmatpush1.bf16.msra.mxu0 %v10691_v18  ;;  %v10765_v18 = vld [vmem:[%s14864_s1 + $0x4] ss:$8 sps:$4 sm:$0xff]  }
 0x218   : > { %4613 = vmatpush1.bf16.msra.mxu1 %v10694_v45  ;;  %4573 = vmatprep.subr.bf16.mxu0 %v10699_v21  ;;  %v10768_v45 = vld [vmem:[%s14864_s1 + $0x104] ss:$8 sps:$4 sm:$0xff]   ;;  %v10763_v21 = vld [vmem:[%s14864_s1] ss:$8 sps:$4 sm:$0xff]  }
 0x219   : > { %4614 = vmatprep.subr.bf16.mxu1 %v10702_v47  ;;  %v2660_v56 = vpop.f32.mrb[16].mxu0  ;;  %v10766_v47 = vld [vmem:[%s14864_s1 + $0x100] ss:$8 sps:$4 sm:$0xff]  }
 0x21a   : > { %v2701_v57 = vpop.f32.mrb[16].mxu1  ;;  %v2662_v62 = vpop.f32.mrb[17].mxu0 }
 0x21b   : > { %v13269_v61 = vadd.f32 %v2701_v57, %v2660_v56  ;;  %v2703_v63 = vpop.f32.mrb[17].mxu1  ;;  %v2664_v42 = vpop.f32.mrb[18].mxu0  ;;  %4574 = vmatpush1.bf16.msra.mxu0 %v10697_v50  ;;  %v10771_v50 = vld [vmem:[%s14864_s1 + $0x14] ss:$8 sps:$4 sm:$0xff]   ;;  %v10777_v56 = vld [vmem:[%s14864_s1 + $0x24] ss:$8 sps:$4 sm:$0xff]  }
 0x21c   : > { %v13271_v0 = vadd.f32 %v2703_v63, %v2662_v62  ;;  %v2705_v43 = vpop.f32.mrb[18].mxu1  ;;  %4615 = vmatpush1.bf16.msra.mxu1 %v10700_v51  ;;  %v2665_v1 = vpop.f32.mrb[19].mxu0  ;;  %4575 = vmatprep.subr.bf16.mxu0 %v10705_v20  ;;  %v10774_v51 = vld [vmem:[%s14864_s1 + $0x114] ss:$8 sps:$4 sm:$0xff]   ;;  %v10769_v20 = vld [vmem:[%s14864_s1 + $0x10] ss:$8 sps:$4 sm:$0xff]  }
 0x21d   : > { %v2706_v46 = vpop.f32.mrb[19].mxu1  ;;  %4616 = vmatprep.subr.bf16.mxu1 %v10708_v55  ;;  %v10772_v55 = vld [vmem:[%s14864_s1 + $0x110] ss:$8 sps:$4 sm:$0xff]   ;;  %v10778_v57 = vld [vmem:[%s14864_s1 + $0x120] ss:$8 sps:$4 sm:$0xff]  }
 0x21e   : > { %v10789_v62 = vld [vmem:[%s14864_s1 + $0x44] ss:$8 sps:$4 sm:$0xff]   ;;  %v10787_v42 = vld [vmem:[%s14864_s1 + $0x40] ss:$8 sps:$4 sm:$0xff]   ;;  %v10795_v1 = vld [vmem:[%s14864_s1 + $0x54] ss:$8 sps:$4 sm:$0xff]  }
 0x21f   : > { %4576 = vmatpush1.bf16.msra.mxu0 %v10703_v58  ;;  %v10783_v58 = vld [vmem:[%s14864_s1 + $0x34] ss:$8 sps:$4 sm:$0xff]   ;;  %v10792_v63 = vld [vmem:[%s14864_s1 + $0x144] ss:$8 sps:$4 sm:$0xff]   ;;  %v10790_v43 = vld [vmem:[%s14864_s1 + $0x140] ss:$8 sps:$4 sm:$0xff]  }
 0x220   : > { %4617 = vmatpush1.bf16.msra.mxu1 %v10706_v59  ;;  %4577 = vmatprep.subr.bf16.mxu0 %v10711_v4  ;;  %v10784_v59 = vld [vmem:[%s14864_s1 + $0x130] ss:$8 sps:$4 sm:$0xff]   ;;  %v10798_v46 = vld [vmem:[%s14864_s1 + $0x154] ss:$8 sps:$4 sm:$0xff]  }
 0x221   : > { %4618 = vmatprep.subr.bf16.mxu1 %v10714_v5  ;;  %v10793_v4 = vld [vmem:[%s14864_s1 + $0x50] ss:$8 sps:$4 sm:$0xff]  }
 0x222   : > { %v10796_v5 = vld [vmem:[%s14864_s1 + $0x150] ss:$8 sps:$4 sm:$0xff]  }
 0x223   : > { %4578 = vmatpush1.bf16.msra.mxu0 %v10709_v6  ;;  %v10801_v6 = vld [vmem:[%s14864_s1 + $0x64] ss:$8 sps:$4 sm:$0xff]  }
 0x224   : > { %4619 = vmatpush1.bf16.msra.mxu1 %v10712_v7  ;;  %4579 = vmatprep.subr.bf16.mxu0 %v10717_v8  ;;  %v10804_v7 = vld [vmem:[%s14864_s1 + $0x164] ss:$8 sps:$4 sm:$0xff]  }
 0x225   : > { %4620 = vmatprep.subr.bf16.mxu1 %v10720_v9 }
 0x227   : > { %4580 = vmatpush1.bf16.msra.mxu0 %v10715_v10 }
 0x228   : > { %4621 = vmatpush1.bf16.msra.mxu1 %v10718_v11  ;;  %4581 = vmatprep.subr.bf16.mxu0 %v10723_v12 }
 0x229   : > { %4622 = vmatprep.subr.bf16.mxu1 %v10726_v52 }
 0x22b   : > { %4582 = vmatpush1.bf16.msra.mxu0 %v10721_v53 }
 0x22c   : > { %4623 = vmatpush1.bf16.msra.mxu1 %v10724_v13  ;;  %4583 = vmatprep.subr.bf16.mxu0 %v10729_v14  ;;  %v10799_v14 = vld [vmem:[%s14864_s1 + $0x60] ss:$8 sps:$4 sm:$0xff]  }
 0x22d   : > { %4624 = vmatprep.subr.bf16.mxu1 %v10732_v34  ;;  %v10802_v34 = vld [vmem:[%s14864_s1 + $0x160] ss:$8 sps:$4 sm:$0xff]  }
 0x22f   : > { %4584 = vmatpush1.bf16.msra.mxu0 %v10727_v35 }
 0x230   : > { %4625 = vmatpush1.bf16.msra.mxu1 %v10730_v15  ;;  %4585 = vmatprep.subr.bf16.mxu0 %v10735_v17  ;;  %v10810_v17 = vld [vmem:[%s14864_s1 + $0x174] ss:$8 sps:$4 sm:$0xff]  }
 0x231   : > { %4626 = vmatprep.subr.bf16.mxu1 %v10738_v22 }
 0x233   : > { %4586 = vmatpush1.bf16.msra.mxu0 %v10733_v23  ;;  %v10805_v23 = vld [vmem:[%s14864_s1 + $0x70] ss:$8 sps:$4 sm:$0xff]  }
 0x234   : > { %4627 = vmatpush1.bf16.msra.mxu1 %v10736_v27  ;;  %4587 = vmatprep.subr.bf16.mxu0 %v10741_v28  ;;  %v10808_v27 = vld [vmem:[%s14864_s1 + $0x170] ss:$8 sps:$4 sm:$0xff]   ;;  %v10813_v28 = vld [vmem:[%s14864_s1 + $0x84] ss:$8 sps:$4 sm:$0xff]  }
 0x235   : > { %4628 = vmatprep.subr.bf16.mxu1 %v10744_v38  ;;  %v10816_v38 = vld [vmem:[%s14864_s1 + $0x184] ss:$8 sps:$4 sm:$0xff]  }
 0x237   : > { %4588 = vmatpush1.bf16.msra.mxu0 %v10739_v32  ;;  %v10811_v32 = vld [vmem:[%s14864_s1 + $0x80] ss:$8 sps:$4 sm:$0xff]  }
 0x238   : > { %4629 = vmatpush1.bf16.msra.mxu1 %v10742_v33  ;;  %4589 = vmatprep.subr.bf16.mxu0 %v10747_v2  ;;  %v10814_v33 = vld [vmem:[%s14864_s1 + $0x180] ss:$8 sps:$4 sm:$0xff]   ;;  %v10819_v2 = vld [vmem:[%s14864_s1 + $0x94] ss:$8 sps:$4 sm:$0xff]  }
 0x239   : > { %4630 = vmatprep.subr.bf16.mxu1 %v10750_v3  ;;  %v10822_v3 = vld [vmem:[%s14864_s1 + $0x194] ss:$8 sps:$4 sm:$0xff]  }
 0x23b   : > { %4590 = vmatpush1.bf16.msra.mxu0 %v10745_v60  ;;  %v10817_v60 = vld [vmem:[%s14864_s1 + $0x90] ss:$8 sps:$4 sm:$0xff]  }
 0x23c   : > { %4631 = vmatpush1.bf16.msra.mxu1 %v10748_v36  ;;  %4591 = vmatprep.subr.bf16.mxu0 %v10753_v37  ;;  %v10820_v36 = vld [vmem:[%s14864_s1 + $0x190] ss:$8 sps:$4 sm:$0xff]   ;;  %v10825_v37 = vld [vmem:[%s14864_s1 + $0xa4] ss:$8 sps:$4 sm:$0xff]  }
 0x23d   : > { %4632 = vmatprep.subr.bf16.mxu1 %v10756_v40  ;;  %v10828_v40 = vld [vmem:[%s14864_s1 + $0x1a4] ss:$8 sps:$4 sm:$0xff]  }
 0x23f   : > { %4592 = vmatpush1.bf16.msra.mxu0 %v10751_v31  ;;  %v10823_v31 = vld [vmem:[%s14864_s1 + $0xa0] ss:$8 sps:$4 sm:$0xff]  }
 0x240   : > { %4633 = vmatpush1.bf16.msra.mxu1 %v10754_v54  ;;  %4593 = vmatprep.subr.bf16.mxu0 %v10759_v19  ;;  %v10826_v54 = vld [vmem:[%s14864_s1 + $0x1a0] ss:$8 sps:$4 sm:$0xff]   ;;  %v10831_v19 = vld [vmem:[%s14864_s1 + $0xb4] ss:$8 sps:$4 sm:$0xff]  }
 0x241   : > { %4634 = vmatprep.subr.bf16.mxu1 %v10762_v41  ;;  %v10834_v41 = vld [vmem:[%s14864_s1 + $0x1b4] ss:$8 sps:$4 sm:$0xff]  }
 0x243   : > { %4594 = vmatpush1.bf16.msra.mxu0 %v10757_v30  ;;  %v10829_v30 = vld [vmem:[%s14864_s1 + $0xb0] ss:$8 sps:$4 sm:$0xff]  }
 0x244   : > { %4635 = vmatpush1.bf16.msra.mxu1 %v10760_v44  ;;  %4965 = vmatprep.subr.bf16.mxu0 %v10765_v18  ;;  %v10832_v44 = vld [vmem:[%s14864_s1 + $0x1b0] ss:$8 sps:$4 sm:$0xff]   ;;  %v10837_v18 = vld [vmem:[%s14864_s1 + $0xc4] ss:$8 sps:$4 sm:$0xff]  }
 0x245   : > { %5006 = vmatprep.subr.bf16.mxu1 %v10768_v45  ;;  %v10840_v45 = vld [vmem:[%s14864_s1 + $0x1c4] ss:$8 sps:$4 sm:$0xff]  }
 0x246   : > { %4596 = vmatmul.mubr.bf16.vlgmr.msra.gmra.mrb[32].mxu0 %v13189_v39  ;;  %v10780_v39 = vld [vmem:[%s14864_s1 + $0x124] ss:$8 sps:$4 sm:$0xff]  }
 0x247   : > { %4637 = vmatmul.mubr.bf16.vlgmr.msra.gmra.mrb[32].mxu1 %v13191_v29  ;;  %4966 = vmatpush1.bf16.msra.mxu0 %v10763_v21  ;;  %v10775_v29 = vld [vmem:[%s14864_s1 + $0x20] ss:$8 sps:$4 sm:$0xff]  }
 0x248   : > { %5007 = vmatpush1.bf16.msra.mxu1 %v10766_v47  ;;  %4967 = vmatprep.subr.bf16.mxu0 %v10771_v50  ;;  %v10835_v21 = vld [vmem:[%s14864_s1 + $0xc0] ss:$8 sps:$4 sm:$0xff]   ;;  %v10843_v50 = vld [vmem:[%s14864_s1 + $0xd4] ss:$8 sps:$4 sm:$0xff]  }
 0x249   : > { %5008 = vmatprep.subr.bf16.mxu1 %v10774_v51  ;;  %4997 = vmatprep.mubr.bf16.mxu0 %v12753_v24  ;;  %v10786_v24 = vld [vmem:[%s14864_s1 + $0x134] ss:$8 sps:$4 sm:$0xff]   ;;  %v10838_v47 = vld [vmem:[%s14864_s1 + $0x1c0] ss:$8 sps:$4 sm:$0xff]  }
 0x24a   : > { %5038 = vmatprep.mubr.bf16.mxu1 %v12757_v25  ;;  %v10781_v25 = vld [vmem:[%s14864_s1 + $0x30] ss:$8 sps:$4 sm:$0xff]   ;;  %v10846_v51 = vld [vmem:[%s14864_s1 + $0x1d4] ss:$8 sps:$4 sm:$0xff]  }
 0x24b   : > { %4968 = vmatpush1.bf16.msra.mxu0 %v10769_v20  ;;  %v10841_v20 = vld [vmem:[%s14864_s1 + $0xd0] ss:$8 sps:$4 sm:$0xff]  }
 0x24c   : > { %5009 = vmatpush1.bf16.msra.mxu1 %v10772_v55  ;;  %4969 = vmatprep.subr.bf16.mxu0 %v10777_v56  ;;  %v10844_v55 = vld [vmem:[%s14864_s1 + $0x1d0] ss:$8 sps:$4 sm:$0xff]   ;;  %v10849_v56 = vld [vmem:[%s14864_s1 + $0xe4] ss:$8 sps:$4 sm:$0xff]  }
 0x24d   : > { %5010 = vmatprep.subr.bf16.mxu1 %v10780_v39  ;;  %v10852_v39 = vld [vmem:[%s14864_s1 + $0x1e4] ss:$8 sps:$4 sm:$0xff]  }
 0x24f   : > { %4970 = vmatpush1.bf16.msra.mxu0 %v10775_v29  ;;  %v10847_v29 = vld [vmem:[%s14864_s1 + $0xe0] ss:$8 sps:$4 sm:$0xff]  }
 0x250   : > { %5011 = vmatpush1.bf16.msra.mxu1 %v10778_v57  ;;  %4971 = vmatprep.subr.bf16.mxu0 %v10783_v58  ;;  %v10850_v57 = vld [vmem:[%s14864_s1 + $0x1e0] ss:$8 sps:$4 sm:$0xff]   ;;  %v10855_v58 = vld [vmem:[%s14864_s1 + $0xf4] ss:$8 sps:$4 sm:$0xff]  }
 0x251   : > { %5012 = vmatprep.subr.bf16.mxu1 %v10786_v24  ;;  %v10858_v24 = vld [vmem:[%s14864_s1 + $0x1f4] ss:$8 sps:$4 sm:$0xff]  }
 0x253   : > { %4972 = vmatpush1.bf16.msra.mxu0 %v10781_v25  ;;  %v10853_v25 = vld [vmem:[%s14864_s1 + $0xf0] ss:$8 sps:$4 sm:$0xff]  }
 0x254   : > { %5013 = vmatpush1.bf16.msra.mxu1 %v10784_v59  ;;  %4973 = vmatprep.subr.bf16.mxu0 %v10789_v62  ;;  %v10856_v59 = vld [vmem:[%s14864_s1 + $0x1f0] ss:$8 sps:$4 sm:$0xff]   ;;  %v10861_v62 = vld [vmem:[%s14864_s1 + $0x404] ss:$8 sps:$4 sm:$0xff]  }
 0x255   : > { %5014 = vmatprep.subr.bf16.mxu1 %v10792_v63  ;;  %v10864_v63 = vld [vmem:[%s14864_s1 + $0x504] ss:$8 sps:$4 sm:$0xff]  }
 0x257   : > { %4974 = vmatpush1.bf16.msra.mxu0 %v10787_v42  ;;  %v13590_v42 = vld [vmem:[%s11621_s30 + $0x30] sm:$0x77] }
 0x258   : > { %5015 = vmatpush1.bf16.msra.mxu1 %v10790_v43  ;;  %4975 = vmatprep.subr.bf16.mxu0 %v10795_v1  ;;  %v13593_v43 = vld [vmem:[%s11621_s30 + $0x38] sm:$0x77]  ;;  %v10859_v1 = vld [vmem:[%s14864_s1 + $0x400] ss:$8 sps:$4 sm:$0xff]  }
 0x259   : > { %5016 = vmatprep.subr.bf16.mxu1 %v10798_v46  ;;  %v3062_v8 = vpop.f32.mrb[20].mxu0  ;;  %v10862_v46 = vld [vmem:[%s14864_s1 + $0x500] ss:$8 sps:$4 sm:$0xff]  }
 0x25a   : > { %v3103_v9 = vpop.f32.mrb[20].mxu1  ;;  %v3063_v10 = vadd.f32 %v3062_v8, %v13269_v61  ;;  %v3064_v11 = vpop.f32.mrb[21].mxu0  ;;  %v10865_v8 = vld [vmem:[%s14864_s1 + $0x410] ss:$8 sps:$4 sm:$0xff]  }
 0x25b   : > { %v3105_v12 = vpop.f32.mrb[21].mxu1  ;;  %v3065_v52 = vadd.f32 %v3064_v11, %v13271_v0  ;;  %v3066_v53 = vpop.f32.mrb[22].mxu0  ;;  %4976 = vmatpush1.bf16.msra.mxu0 %v10793_v4  ;;  %v10807_v0 = vld [vmem:[%s14864_s1 + $0x74] ss:$8 sps:$4 sm:$0xff]   ;;  %v10874_v11 = vld [vmem:[%s14864_s1 + $0x520] ss:$8 sps:$4 sm:$0xff]  }
 0x25c   : > { %v3107_v13 = vpop.f32.mrb[22].mxu1  ;;  %5017 = vmatpush1.bf16.msra.mxu1 %v10796_v5  ;;  %v13471_v35 = vadd.f32 %v3103_v9, %v3063_v10  ;;  %v3067_v15 = vpop.f32.mrb[23].mxu0  ;;  %4977 = vmatprep.subr.bf16.mxu0 %v10801_v6  ;;  %v10867_v4 = vld [vmem:[%s14864_s1 + $0x414] ss:$8 sps:$4 sm:$0xff]   ;;  %v13609_v6 = vcombine.high %v13590_v42, %v13590_v42  ;;  %v10868_v9 = vld [vmem:[%s14864_s1 + $0x510] ss:$8 sps:$4 sm:$0xff]  }
 0x25d   : > { %v3108_v61 = vpop.f32.mrb[23].mxu1  ;;  %5018 = vmatprep.subr.bf16.mxu1 %v10804_v7  ;;  %v13479_v22 = vadd.f32 %v3105_v12, %v3065_v52  ;;  %v10870_v5 = vld [vmem:[%s14864_s1 + $0x514] ss:$8 sps:$4 sm:$0xff]   ;;  %v13613_v7 = vcombine.high %v13593_v43, %v13593_v43  ;;  %v10873_v10 = vld [vmem:[%s14864_s1 + $0x424] ss:$8 sps:$4 sm:$0xff]  }
 0x25e   : > { %v10879_v12 = vld [vmem:[%s14864_s1 + $0x434] ss:$8 sps:$4 sm:$0xff]   ;;  %v10877_v53 = vld [vmem:[%s14864_s1 + $0x430] ss:$8 sps:$4 sm:$0xff]   ;;  %v10883_v15 = vld [vmem:[%s14864_s1 + $0x440] ss:$8 sps:$4 sm:$0xff]  }
 0x25f   : > { %4978 = vmatpush1.bf16.msra.mxu0 %v10799_v14  ;;  %v10882_v52 = vld [vmem:[%s14864_s1 + $0x534] ss:$8 sps:$4 sm:$0xff]   ;;  %v10880_v13 = vld [vmem:[%s14864_s1 + $0x530] ss:$8 sps:$4 sm:$0xff]   ;;  %v10885_v14 = vld [vmem:[%s14864_s1 + $0x444] ss:$8 sps:$4 sm:$0xff]  }
 0x260   : > { %5019 = vmatpush1.bf16.msra.mxu1 %v10802_v34  ;;  %4979 = vmatprep.subr.bf16.mxu0 %v10807_v0  ;;  %v10888_v34 = vld [vmem:[%s14864_s1 + $0x544] ss:$8 sps:$4 sm:$0xff]   ;;  %v10886_v61 = vld [vmem:[%s14864_s1 + $0x540] ss:$8 sps:$4 sm:$0xff]   ;;  %v10891_v0 = vld [vmem:[%s14864_s1 + $0x454] ss:$8 sps:$4 sm:$0xff]  }
 0x261   : > { %5020 = vmatprep.subr.bf16.mxu1 %v10810_v17  ;;  %v10894_v17 = vld [vmem:[%s14864_s1 + $0x554] ss:$8 sps:$4 sm:$0xff]  }
 0x263   : > { %4980 = vmatpush1.bf16.msra.mxu0 %v10805_v23  ;;  %v10889_v23 = vld [vmem:[%s14864_s1 + $0x450] ss:$8 sps:$4 sm:$0xff]  }
 0x264   : > { %5021 = vmatpush1.bf16.msra.mxu1 %v10808_v27  ;;  %4981 = vmatprep.subr.bf16.mxu0 %v10813_v28  ;;  %v10892_v27 = vld [vmem:[%s14864_s1 + $0x550] ss:$8 sps:$4 sm:$0xff]   ;;  %v10897_v28 = vld [vmem:[%s14864_s1 + $0x464] ss:$8 sps:$4 sm:$0xff]  }
 0x265   : > { %5022 = vmatprep.subr.bf16.mxu1 %v10816_v38  ;;  %v10900_v38 = vld [vmem:[%s14864_s1 + $0x564] ss:$8 sps:$4 sm:$0xff]  }
 0x267   : > { %4982 = vmatpush1.bf16.msra.mxu0 %v10811_v32 }
 0x268   : > { %5023 = vmatpush1.bf16.msra.mxu1 %v10814_v33  ;;  %4983 = vmatprep.subr.bf16.mxu0 %v10819_v2 }
 0x269   : > { %5024 = vmatprep.subr.bf16.mxu1 %v10822_v3 }
 0x26b   : > { %4984 = vmatpush1.bf16.msra.mxu0 %v10817_v60 }
 0x26c   : > { %5025 = vmatpush1.bf16.msra.mxu1 %v10820_v36  ;;  %4985 = vmatprep.subr.bf16.mxu0 %v10825_v37 }
 0x26d   : > { %5026 = vmatprep.subr.bf16.mxu1 %v10828_v40 }
 0x26f   : > { %4986 = vmatpush1.bf16.msra.mxu0 %v10823_v31  ;;  %v10895_v31 = vld [vmem:[%s14864_s1 + $0x460] ss:$8 sps:$4 sm:$0xff]  }
 0x270   : > { %5027 = vmatpush1.bf16.msra.mxu1 %v10826_v54  ;;  %4987 = vmatprep.subr.bf16.mxu0 %v10831_v19  ;;  %v10898_v54 = vld [vmem:[%s14864_s1 + $0x560] ss:$8 sps:$4 sm:$0xff]  }
 0x271   : > { %5028 = vmatprep.subr.bf16.mxu1 %v10834_v41 }
 0x273   : > { %4988 = vmatpush1.bf16.msra.mxu0 %v10829_v30 }
 0x274   : > { %5029 = vmatpush1.bf16.msra.mxu1 %v10832_v44  ;;  %4989 = vmatprep.subr.bf16.mxu0 %v10837_v18  ;;  %v10903_v44 = vld [vmem:[%s14864_s1 + $0x474] ss:$8 sps:$4 sm:$0xff]  }
 0x275   : > { %5030 = vmatprep.subr.bf16.mxu1 %v10840_v45  ;;  %v10906_v18 = vld [vmem:[%s14864_s1 + $0x574] ss:$8 sps:$4 sm:$0xff]  }
 0x277   : > { %4990 = vmatpush1.bf16.msra.mxu0 %v10835_v21  ;;  %v10904_v21 = vld [vmem:[%s14864_s1 + $0x570] ss:$8 sps:$4 sm:$0xff]  }
 0x278   : > { %5031 = vmatpush1.bf16.msra.mxu1 %v10838_v47  ;;  %4991 = vmatprep.subr.bf16.mxu0 %v10843_v50  ;;  %v10909_v47 = vld [vmem:[%s14864_s1 + $0x484] ss:$8 sps:$4 sm:$0xff]   ;;  %v10907_v50 = vld [vmem:[%s14864_s1 + $0x480] ss:$8 sps:$4 sm:$0xff]  }
 0x279   : > { %5032 = vmatprep.subr.bf16.mxu1 %v10846_v51  ;;  %v10910_v51 = vld [vmem:[%s14864_s1 + $0x580] ss:$8 sps:$4 sm:$0xff]  }
 0x27b   : > { %4992 = vmatpush1.bf16.msra.mxu0 %v10841_v20  ;;  %v10915_v20 = vld [vmem:[%s14864_s1 + $0x494] ss:$8 sps:$4 sm:$0xff]  }
 0x27c   : > { %5033 = vmatpush1.bf16.msra.mxu1 %v10844_v55  ;;  %4993 = vmatprep.subr.bf16.mxu0 %v10849_v56  ;;  %v10918_v55 = vld [vmem:[%s14864_s1 + $0x594] ss:$8 sps:$4 sm:$0xff]   ;;  %v10913_v56 = vld [vmem:[%s14864_s1 + $0x490] ss:$8 sps:$4 sm:$0xff]  }
 0x27d   : > { %5034 = vmatprep.subr.bf16.mxu1 %v10852_v39  ;;  %v10916_v39 = vld [vmem:[%s14864_s1 + $0x590] ss:$8 sps:$4 sm:$0xff]  }
 0x27f   : > { %4994 = vmatpush1.bf16.msra.mxu0 %v10847_v29  ;;  %v10921_v29 = vld [vmem:[%s14864_s1 + $0x4a4] ss:$8 sps:$4 sm:$0xff]  }
 0x280   : > { %5035 = vmatpush1.bf16.msra.mxu1 %v10850_v57  ;;  %4995 = vmatprep.subr.bf16.mxu0 %v10855_v58  ;;  %v10924_v57 = vld [vmem:[%s14864_s1 + $0x5a4] ss:$8 sps:$4 sm:$0xff]   ;;  %v10919_v58 = vld [vmem:[%s14864_s1 + $0x4a0] ss:$8 sps:$4 sm:$0xff]  }
 0x281   : > { %5036 = vmatprep.subr.bf16.mxu1 %v10858_v24  ;;  %v10922_v24 = vld [vmem:[%s14864_s1 + $0x5a0] ss:$8 sps:$4 sm:$0xff]  }
 0x283   : > { %4996 = vmatpush1.bf16.msra.mxu0 %v10853_v25  ;;  %v10927_v25 = vld [vmem:[%s14864_s1 + $0x4b4] ss:$8 sps:$4 sm:$0xff]  }
 0x284   : > { %5037 = vmatpush1.bf16.msra.mxu1 %v10856_v59  ;;  %5445 = vmatprep.subr.bf16.mxu0 %v10861_v62  ;;  %v10930_v59 = vld [vmem:[%s14864_s1 + $0x5b4] ss:$8 sps:$4 sm:$0xff]   ;;  %v10925_v62 = vld [vmem:[%s14864_s1 + $0x4b0] ss:$8 sps:$4 sm:$0xff]  }
 0x285   : > { %5486 = vmatprep.subr.bf16.mxu1 %v10864_v63  ;;  %v10928_v63 = vld [vmem:[%s14864_s1 + $0x5b0] ss:$8 sps:$4 sm:$0xff]  }
 0x286   : > { %4998 = vmatmul.mubr.bf16.vlgmr.msra.gmra.mrb[36].mxu0 %v12961_v48  ;;  %v10876_v48 = vld [vmem:[%s14864_s1 + $0x524] ss:$8 sps:$4 sm:$0xff]  }
 0x287   : > { %5039 = vmatmul.mubr.bf16.vlgmr.msra.gmra.mrb[36].mxu1 %v12965_v49  ;;  %5446 = vmatpush1.bf16.msra.mxu0 %v10859_v1  ;;  %v10871_v49 = vld [vmem:[%s14864_s1 + $0x420] ss:$8 sps:$4 sm:$0xff]   ;;  %v10933_v1 = vld [vmem:[%s14864_s1 + $0x4c4] ss:$8 sps:$4 sm:$0xff]  }
 0x288   : > { %5487 = vmatpush1.bf16.msra.mxu1 %v10862_v46  ;;  %5447 = vmatprep.subr.bf16.mxu0 %v10867_v4  ;;  %v10936_v46 = vld [vmem:[%s14864_s1 + $0x5c4] ss:$8 sps:$4 sm:$0xff]   ;;  %v10931_v4 = vld [vmem:[%s14864_s1 + $0x4c0] ss:$8 sps:$4 sm:$0xff]  }
 0x289   : > { %5488 = vmatprep.subr.bf16.mxu1 %v10870_v5  ;;  %5477 = vmatprep.mubr.bf16.mxu0 %v13609_v6  ;;  %v10934_v5 = vld [vmem:[%s14864_s1 + $0x5c0] ss:$8 sps:$4 sm:$0xff]  }
 0x28a   : > { %5518 = vmatprep.mubr.bf16.mxu1 %v13613_v7 }
 0x28b   : > { %5448 = vmatpush1.bf16.msra.mxu0 %v10865_v8  ;;  %v10939_v8 = vld [vmem:[%s14864_s1 + $0x4d4] ss:$8 sps:$4 sm:$0xff]  }
 0x28c   : > { %5489 = vmatpush1.bf16.msra.mxu1 %v10868_v9  ;;  %5449 = vmatprep.subr.bf16.mxu0 %v10873_v10  ;;  %v10942_v9 = vld [vmem:[%s14864_s1 + $0x5d4] ss:$8 sps:$4 sm:$0xff]   ;;  %v10937_v10 = vld [vmem:[%s14864_s1 + $0x4d0] ss:$8 sps:$4 sm:$0xff]  }
 0x28d   : > { %5490 = vmatprep.subr.bf16.mxu1 %v10876_v48  ;;  %v10940_v48 = vld [vmem:[%s14864_s1 + $0x5d0] ss:$8 sps:$4 sm:$0xff]  }
 0x28f   : > { %5450 = vmatpush1.bf16.msra.mxu0 %v10871_v49  ;;  %v10945_v49 = vld [vmem:[%s14864_s1 + $0x4e4] ss:$8 sps:$4 sm:$0xff]  }
 0x290   : > { %5491 = vmatpush1.bf16.msra.mxu1 %v10874_v11  ;;  %5451 = vmatprep.subr.bf16.mxu0 %v10879_v12  ;;  %v10948_v11 = vld [vmem:[%s14864_s1 + $0x5e4] ss:$8 sps:$4 sm:$0xff]   ;;  %v10943_v12 = vld [vmem:[%s14864_s1 + $0x4e0] ss:$8 sps:$4 sm:$0xff]  }
 0x291   : > { %5492 = vmatprep.subr.bf16.mxu1 %v10882_v52  ;;  %v10946_v52 = vld [vmem:[%s14864_s1 + $0x5e0] ss:$8 sps:$4 sm:$0xff]  }
 0x293   : > { %5452 = vmatpush1.bf16.msra.mxu0 %v10877_v53  ;;  %v10951_v53 = vld [vmem:[%s14864_s1 + $0x4f4] ss:$8 sps:$4 sm:$0xff]  }
 0x294   : > { %5493 = vmatpush1.bf16.msra.mxu1 %v10880_v13  ;;  %5453 = vmatprep.subr.bf16.mxu0 %v10885_v14  ;;  %v10954_v13 = vld [vmem:[%s14864_s1 + $0x5f4] ss:$8 sps:$4 sm:$0xff]   ;;  %v5603_v14 = vshll.u32 %v13609_v6, 16 }
 0x295   : > { %5494 = vmatprep.subr.bf16.mxu1 %v10888_v34  ;;  %v5617_v34 = vshll.u32 %v13613_v7, 16 }
 0x297   : > { %5454 = vmatpush1.bf16.msra.mxu0 %v10883_v15  ;;  %v10949_v15 = vld [vmem:[%s14864_s1 + $0x4f0] ss:$8 sps:$4 sm:$0xff]  }
 0x298   : > { %5495 = vmatpush1.bf16.msra.mxu1 %v10886_v61  ;;  %5455 = vmatprep.subr.bf16.mxu0 %v10891_v0  ;;  %v10952_v61 = vld [vmem:[%s14864_s1 + $0x5f0] ss:$8 sps:$4 sm:$0xff]   ;;  %v10961_v0 = vld [vmem:[%s14864_s1 + $0x604] ss:$8 sps:$4 sm:$0xff]  }
 0x299   : > { %5496 = vmatprep.subr.bf16.mxu1 %v10894_v17  ;;  %v3542_v32 = vpop.f32.mrb[24].mxu0  ;;  %v10964_v17 = vld [vmem:[%s14864_s1 + $0x704] ss:$8 sps:$4 sm:$0xff]  }
 0x29a   : > { %v3583_v33 = vpop.f32.mrb[24].mxu1  ;;  %v3544_v3 = vpop.f32.mrb[25].mxu0 }
 0x29b   : > { %v3584_v2 = vadd.f32 %v3583_v33, %v3542_v32  ;;  %v3585_v60 = vpop.f32.mrb[25].mxu1  ;;  %v3546_v37 = vpop.f32.mrb[26].mxu0  ;;  %5456 = vmatpush1.bf16.msra.mxu0 %v10889_v23  ;;  %v5601_v23 = vshrl.u32 %v13609_v6, 16  ;;  %v13811_v32 = vcombine.low %v13590_v42, %v13590_v42  ;;  %v13815_v33 = vcombine.low %v13593_v43, %v13593_v43  ;;  %v10967_v42 = vld [vmem:[%s14864_s1 + $0x614] ss:$8 sps:$4 sm:$0xff]  }
 0x29c   : > { %v3586_v36 = vadd.f32 %v3585_v60, %v3544_v3  ;;  %v3587_v40 = vpop.f32.mrb[26].mxu1  ;;  %5497 = vmatpush1.bf16.msra.mxu1 %v10892_v27  ;;  %v3547_v41 = vpop.f32.mrb[27].mxu0  ;;  %5457 = vmatprep.subr.bf16.mxu0 %v10897_v28  ;;  %v5605_v27 = vrot.slane %v5603_v14, 1  ;;  %v5615_v28 = vshrl.u32 %v13613_v7, 16  ;;  %v10962_v3 = vld [vmem:[%s14864_s1 + $0x700] ss:$8 sps:$4 sm:$0xff]  }
 0x29d   : > { %v13686_v19 = vadd.f32 %v3584_v2, %v13471_v35  ;;  %v3588_v30 = vpop.f32.mrb[27].mxu1  ;;  %5498 = vmatprep.subr.bf16.mxu1 %v10900_v38  ;;  %v10901_v35 = vld [vmem:[%s14864_s1 + $0x470] ss:$8 sps:$4 sm:$0xff]   ;;  %v5619_v38 = vrot.slane %v5617_v34, 1  ;;  %v10959_v2 = vld [vmem:[%s14864_s1 + $0x600] ss:$8 sps:$4 sm:$0xff]  }
 0x29e   : > { %v13695_v45 = vadd.f32 %v3586_v36, %v13479_v22  ;;  %v10912_v22 = vld [vmem:[%s14864_s1 + $0x584] ss:$8 sps:$4 sm:$0xff]   ;;  %v10970_v43 = vld [vmem:[%s14864_s1 + $0x714] ss:$8 sps:$4 sm:$0xff]   ;;  %v13829_v60 = vor.u32 %v5605_v27, %v5601_v23  ;;  %v10965_v37 = vld [vmem:[%s14864_s1 + $0x610] ss:$8 sps:$4 sm:$0xff]  }
 0x29f   : > { %5458 = vmatpush1.bf16.msra.mxu0 %v10895_v31  ;;  %v13831_v36 = vor.u32 %v5619_v38, %v5615_v28  ;;  %v10968_v40 = vld [vmem:[%s14864_s1 + $0x710] ss:$8 sps:$4 sm:$0xff]   ;;  %v10973_v31 = vld [vmem:[%s14864_s1 + $0x624] ss:$8 sps:$4 sm:$0xff]   ;;  %v10971_v41 = vld [vmem:[%s14864_s1 + $0x620] ss:$8 sps:$4 sm:$0xff]  }
 0x2a0   : > { %5499 = vmatpush1.bf16.msra.mxu1 %v10898_v54  ;;  %5459 = vmatprep.subr.bf16.mxu0 %v10903_v44  ;;  %v10976_v54 = vld [vmem:[%s14864_s1 + $0x724] ss:$8 sps:$4 sm:$0xff]   ;;  %v10974_v30 = vld [vmem:[%s14864_s1 + $0x720] ss:$8 sps:$4 sm:$0xff]   ;;  %v10979_v44 = vld [vmem:[%s14864_s1 + $0x634] ss:$8 sps:$4 sm:$0xff]  }
 0x2a1   : > { %5500 = vmatprep.subr.bf16.mxu1 %v10906_v18  ;;  %v10982_v18 = vld [vmem:[%s14864_s1 + $0x734] ss:$8 sps:$4 sm:$0xff]   ;;  %v11012_v14 = vld [vmem:[%s14864_s1 + $0x784] ss:$8 sps:$4 sm:$0xff]   ;;  %v11013_v38 = vld [vmem:[%s14864_s1 + $0x690] ss:$8 sps:$4 sm:$0xff]  }
 0x2a2   : > { %v11015_v27 = vld [vmem:[%s14864_s1 + $0x694] ss:$8 sps:$4 sm:$0xff]  }
 0x2a3   : > { %5460 = vmatpush1.bf16.msra.mxu0 %v10901_v35  ;;  %v10977_v35 = vld [vmem:[%s14864_s1 + $0x630] ss:$8 sps:$4 sm:$0xff]   ;;  %v11018_v28 = vld [vmem:[%s14864_s1 + $0x794] ss:$8 sps:$4 sm:$0xff]  }
 0x2a4   : > { %5501 = vmatpush1.bf16.msra.mxu1 %v10904_v21  ;;  %5461 = vmatprep.subr.bf16.mxu0 %v10909_v47  ;;  %v10980_v21 = vld [vmem:[%s14864_s1 + $0x730] ss:$8 sps:$4 sm:$0xff]   ;;  %v10985_v47 = vld [vmem:[%s14864_s1 + $0x644] ss:$8 sps:$4 sm:$0xff]  }
 0x2a5   : > { %5502 = vmatprep.subr.bf16.mxu1 %v10912_v22  ;;  %v10988_v22 = vld [vmem:[%s14864_s1 + $0x744] ss:$8 sps:$4 sm:$0xff]  }
 0x2a7   : > { %5462 = vmatpush1.bf16.msra.mxu0 %v10907_v50  ;;  %v10983_v50 = vld [vmem:[%s14864_s1 + $0x640] ss:$8 sps:$4 sm:$0xff]  }
 0x2a8   : > { %5503 = vmatpush1.bf16.msra.mxu1 %v10910_v51  ;;  %5463 = vmatprep.subr.bf16.mxu0 %v10915_v20  ;;  %v10986_v51 = vld [vmem:[%s14864_s1 + $0x740] ss:$8 sps:$4 sm:$0xff]   ;;  %v10991_v20 = vld [vmem:[%s14864_s1 + $0x654] ss:$8 sps:$4 sm:$0xff]  }
 0x2a9   : > { %5504 = vmatprep.subr.bf16.mxu1 %v10918_v55  ;;  %v10994_v55 = vld [vmem:[%s14864_s1 + $0x754] ss:$8 sps:$4 sm:$0xff]  }
 0x2ab   : > { %5464 = vmatpush1.bf16.msra.mxu0 %v10913_v56  ;;  %v10989_v56 = vld [vmem:[%s14864_s1 + $0x650] ss:$8 sps:$4 sm:$0xff]  }
 0x2ac   : > { %5505 = vmatpush1.bf16.msra.mxu1 %v10916_v39  ;;  %5465 = vmatprep.subr.bf16.mxu0 %v10921_v29  ;;  %v10992_v39 = vld [vmem:[%s14864_s1 + $0x750] ss:$8 sps:$4 sm:$0xff]   ;;  %v10997_v29 = vld [vmem:[%s14864_s1 + $0x664] ss:$8 sps:$4 sm:$0xff]  }
 0x2ad   : > { %5506 = vmatprep.subr.bf16.mxu1 %v10924_v57  ;;  %v11000_v57 = vld [vmem:[%s14864_s1 + $0x764] ss:$8 sps:$4 sm:$0xff]  }
 0x2af   : > { %5466 = vmatpush1.bf16.msra.mxu0 %v10919_v58 }
 0x2b0   : > { %5507 = vmatpush1.bf16.msra.mxu1 %v10922_v24  ;;  %5467 = vmatprep.subr.bf16.mxu0 %v10927_v25 }
 0x2b1   : > { %5508 = vmatprep.subr.bf16.mxu1 %v10930_v59 }
 0x2b3   : > { %5468 = vmatpush1.bf16.msra.mxu0 %v10925_v62 }
 0x2b4   : > { %5509 = vmatpush1.bf16.msra.mxu1 %v10928_v63  ;;  %5469 = vmatprep.subr.bf16.mxu0 %v10933_v1 }
 0x2b5   : > { %5510 = vmatprep.subr.bf16.mxu1 %v10936_v46 }
 0x2b7   : > { %5470 = vmatpush1.bf16.msra.mxu0 %v10931_v4  ;;  %v10995_v4 = vld [vmem:[%s14864_s1 + $0x660] ss:$8 sps:$4 sm:$0xff]  }
 0x2b8   : > { %5511 = vmatpush1.bf16.msra.mxu1 %v10934_v5  ;;  %5471 = vmatprep.subr.bf16.mxu0 %v10939_v8  ;;  %v10998_v5 = vld [vmem:[%s14864_s1 + $0x760] ss:$8 sps:$4 sm:$0xff]  }
 0x2b9   : > { %5512 = vmatprep.subr.bf16.mxu1 %v10942_v9 }
 0x2bb   : > { %5472 = vmatpush1.bf16.msra.mxu0 %v10937_v10 }
 0x2bc   : > { %5513 = vmatpush1.bf16.msra.mxu1 %v10940_v48  ;;  %5473 = vmatprep.subr.bf16.mxu0 %v10945_v49  ;;  %v11003_v48 = vld [vmem:[%s14864_s1 + $0x674] ss:$8 sps:$4 sm:$0xff]  }
 0x2bd   : > { %5514 = vmatprep.subr.bf16.mxu1 %v10948_v11  ;;  %v11006_v49 = vld [vmem:[%s14864_s1 + $0x774] ss:$8 sps:$4 sm:$0xff]  }
 0x2bf   : > { %5474 = vmatpush1.bf16.msra.mxu0 %v10943_v12 }
 0x2c0   : > { %5515 = vmatpush1.bf16.msra.mxu1 %v10946_v52  ;;  %5475 = vmatprep.subr.bf16.mxu0 %v10951_v53  ;;  %v11004_v53 = vld [vmem:[%s14864_s1 + $0x770] ss:$8 sps:$4 sm:$0xff]  }
 0x2c1   : > { %5516 = vmatprep.subr.bf16.mxu1 %v10954_v13  ;;  %v11009_v13 = vld [vmem:[%s14864_s1 + $0x684] ss:$8 sps:$4 sm:$0xff]  }
 0x2c3   : > { %5476 = vmatpush1.bf16.msra.mxu0 %v10949_v15 }
 0x2c4   : > { %5517 = vmatpush1.bf16.msra.mxu1 %v10952_v61  ;;  %5945 = vmatprep.subr.bf16.mxu0 %v10961_v0  ;;  %v11007_v0 = vld [vmem:[%s14864_s1 + $0x680] ss:$8 sps:$4 sm:$0xff]  }
 0x2c5   : > { %5986 = vmatprep.subr.bf16.mxu1 %v10964_v17  ;;  %v11010_v17 = vld [vmem:[%s14864_s1 + $0x780] ss:$8 sps:$4 sm:$0xff]  }
 0x2c6   : > { %5478 = vmatmul.mubr.bf16.vlgmr.msra.gmra.mrb[40].mxu0 %v13811_v32 }
 0x2c7   : > { %5519 = vmatmul.mubr.bf16.vlgmr.msra.gmra.mrb[40].mxu1 %v13815_v33  ;;  %5946 = vmatpush1.bf16.msra.mxu0 %v10959_v2  ;;  %v11016_v2 = vld [vmem:[%s14864_s1 + $0x790] ss:$8 sps:$4 sm:$0xff]  }
 0x2c8   : > { %5987 = vmatpush1.bf16.msra.mxu1 %v10962_v3  ;;  %5947 = vmatprep.subr.bf16.mxu0 %v10967_v42  ;;  %v11021_v3 = vld [vmem:[%s14864_s1 + $0x6a4] ss:$8 sps:$4 sm:$0xff]  }
 0x2c9   : > { %5988 = vmatprep.subr.bf16.mxu1 %v10970_v43  ;;  %5977 = vmatprep.mubr.bf16.mxu0 %v13829_v60  ;;  %v11024_v42 = vld [vmem:[%s14864_s1 + $0x7a4] ss:$8 sps:$4 sm:$0xff]   ;;  %v11019_v43 = vld [vmem:[%s14864_s1 + $0x6a0] ss:$8 sps:$4 sm:$0xff]  }
 0x2ca   : > { %6018 = vmatprep.mubr.bf16.mxu1 %v13831_v36 }
 0x2cb   : > { %5948 = vmatpush1.bf16.msra.mxu0 %v10965_v37  ;;  %v11022_v37 = vld [vmem:[%s14864_s1 + $0x7a0] ss:$8 sps:$4 sm:$0xff]  }
 0x2cc   : > { %5989 = vmatpush1.bf16.msra.mxu1 %v10968_v40  ;;  %5949 = vmatprep.subr.bf16.mxu0 %v10973_v31  ;;  %v11027_v40 = vld [vmem:[%s14864_s1 + $0x6b4] ss:$8 sps:$4 sm:$0xff]  }
 0x2cd   : > { %5990 = vmatprep.subr.bf16.mxu1 %v10976_v54  ;;  %v11030_v31 = vld [vmem:[%s14864_s1 + $0x7b4] ss:$8 sps:$4 sm:$0xff]   ;;  %v11025_v54 = vld [vmem:[%s14864_s1 + $0x6b0] ss:$8 sps:$4 sm:$0xff]  }
 0x2cf   : > { %5950 = vmatpush1.bf16.msra.mxu0 %v10971_v41  ;;  %v11028_v41 = vld [vmem:[%s14864_s1 + $0x7b0] ss:$8 sps:$4 sm:$0xff]  }
 0x2d0   : > { %5991 = vmatpush1.bf16.msra.mxu1 %v10974_v30  ;;  %5951 = vmatprep.subr.bf16.mxu0 %v10979_v44  ;;  %v11033_v30 = vld [vmem:[%s14864_s1 + $0x6c4] ss:$8 sps:$4 sm:$0xff]  }
 0x2d1   : > { %5992 = vmatprep.subr.bf16.mxu1 %v10982_v18  ;;  %v11036_v44 = vld [vmem:[%s14864_s1 + $0x7c4] ss:$8 sps:$4 sm:$0xff]   ;;  %v11031_v18 = vld [vmem:[%s14864_s1 + $0x6c0] ss:$8 sps:$4 sm:$0xff]  }
 0x2d3   : > { %5952 = vmatpush1.bf16.msra.mxu0 %v10977_v35  ;;  %v11034_v35 = vld [vmem:[%s14864_s1 + $0x7c0] ss:$8 sps:$4 sm:$0xff]  }
 0x2d4   : > { %5993 = vmatpush1.bf16.msra.mxu1 %v10980_v21  ;;  %5953 = vmatprep.subr.bf16.mxu0 %v10985_v47  ;;  %v11039_v21 = vld [vmem:[%s14864_s1 + $0x6d4] ss:$8 sps:$4 sm:$0xff]  }
 0x2d5   : > { %5994 = vmatprep.subr.bf16.mxu1 %v10988_v22  ;;  %v11042_v47 = vld [vmem:[%s14864_s1 + $0x7d4] ss:$8 sps:$4 sm:$0xff]   ;;  %v11037_v22 = vld [vmem:[%s14864_s1 + $0x6d0] ss:$8 sps:$4 sm:$0xff]  }
 0x2d7   : > { %5954 = vmatpush1.bf16.msra.mxu0 %v10983_v50  ;;  %v11040_v50 = vld [vmem:[%s14864_s1 + $0x7d0] ss:$8 sps:$4 sm:$0xff]  }
 0x2d8   : > { %5995 = vmatpush1.bf16.msra.mxu1 %v10986_v51  ;;  %5955 = vmatprep.subr.bf16.mxu0 %v10991_v20  ;;  %v11045_v51 = vld [vmem:[%s14864_s1 + $0x6e4] ss:$8 sps:$4 sm:$0xff]  }
 0x2d9   : > { %5996 = vmatprep.subr.bf16.mxu1 %v10994_v55  ;;  %v4042_v58 = vpop.f32.mrb[28].mxu0  ;;  %v11048_v20 = vld [vmem:[%s14864_s1 + $0x7e4] ss:$8 sps:$4 sm:$0xff]   ;;  %v5596_v55 = vshll.u32 %v13811_v32, 16 }
 0x2da   : > { %v4083_v24 = vpop.f32.mrb[28].mxu1  ;;  %v4044_v59 = vpop.f32.mrb[29].mxu0 }
 0x2db   : > { %v4084_v25 = vadd.f32 %v4083_v24, %v4042_v58  ;;  %v4085_v62 = vpop.f32.mrb[29].mxu1  ;;  %v4046_v1 = vpop.f32.mrb[30].mxu0  ;;  %5956 = vmatpush1.bf16.msra.mxu0 %v10989_v56  ;;  %v5610_v56 = vshll.u32 %v13815_v33, 16  ;;  %v11054_v58 = vld [vmem:[%s14864_s1 + $0x7f4] ss:$8 sps:$4 sm:$0xff]   ;;  %v5594_v24 = vshrl.u32 %v13811_v32, 16 }
 0x2dc   : > { %v4086_v63 = vadd.f32 %v4085_v62, %v4044_v59  ;;  %v4087_v46 = vpop.f32.mrb[30].mxu1  ;;  %5997 = vmatpush1.bf16.msra.mxu1 %v10992_v39  ;;  %v4047_v9 = vpop.f32.mrb[31].mxu0  ;;  %5957 = vmatprep.subr.bf16.mxu0 %v10997_v29  ;;  %v11043_v39 = vld [vmem:[%s14864_s1 + $0x6e0] ss:$8 sps:$4 sm:$0xff]   ;;  %v5608_v59 = vshrl.u32 %v13815_v33, 16 }
 0x2dd   : > { %v4090_v8 = vadd.f32 %v4084_v25, %v13686_v19  ;;  %v4088_v10 = vpop.f32.mrb[31].mxu1  ;;  %5998 = vmatprep.subr.bf16.mxu1 %v11000_v57  ;;  %v11001_v19 = vld [vmem:[%s14864_s1 + $0x670] ss:$8 sps:$4 sm:$0xff]   ;;  %v11046_v29 = vld [vmem:[%s14864_s1 + $0x7e0] ss:$8 sps:$4 sm:$0xff]   ;;  %v5598_v25 = vrot.slane %v5596_v55, 1 }
 0x2de   : > { %v4091_v11 = vadd.f32 %v4086_v63, %v13695_v45  ;;  %v11051_v57 = vld [vmem:[%s14864_s1 + $0x6f4] ss:$8 sps:$4 sm:$0xff]   ;;  %v5612_v62 = vrot.slane %v5610_v56, 1  ;;  %v11049_v63 = vld [vmem:[%s14864_s1 + $0x6f0] ss:$8 sps:$4 sm:$0xff]  }
 0x2df   : > { %v4092_v12 = vadd.f32 %v4090_v8, %v13050_v16  ;;  %5958 = vmatpush1.bf16.msra.mxu0 %v10995_v4  ;;  %v11052_v1 = vld [vmem:[%s14864_s1 + $0x7f0] ss:$8 sps:$4 sm:$0xff]   ;;  %v11057_v46 = vld [vmem:[%s14864_s1 + $0x204] ss:$8 sps:$4 sm:$0xff]   ;;  %v11055_v9 = vld [vmem:[%s14864_s1 + $0x200] ss:$8 sps:$4 sm:$0xff]  }
 0x2e0   : > { %v4093_v52 = vadd.f32 %v4091_v11, %v13052_v26  ;;  %5999 = vmatpush1.bf16.msra.mxu1 %v10998_v5  ;;  %5959 = vmatprep.subr.bf16.mxu0 %v11003_v48  ;;  %v11060_v4 = vld [vmem:[%s14864_s1 + $0x304] ss:$8 sps:$4 sm:$0xff]   ;;  %v14026_v5 = vor.u32 %v5598_v25, %v5594_v24  ;;  %v14028_v8 = vor.u32 %v5612_v62, %v5608_v59  ;;  %v11058_v10 = vld [vmem:[%s14864_s1 + $0x300] ss:$8 sps:$4 sm:$0xff]   ;;  %v11063_v48 = vld [vmem:[%s14864_s1 + $0x214] ss:$8 sps:$4 sm:$0xff]  }
 0x2e1   : > { %vm4094_vm2 = vcmp.ge.f32.partialorder %v4092_v12, 0.0  ;;  %v4096_v45 = vmul.f32 0.2, %v4092_v12  ;;  %6000 = vmatprep.subr.bf16.mxu1 %v11006_v49  ;;  %v11066_v49 = vld [vmem:[%s14864_s1 + $0x314] ss:$8 sps:$4 sm:$0xff]  }
 0x2e2   : > { %vm4095_vm3 = vcmp.ge.f32.partialorder %v4093_v52, 0.0  ;;  %v4097_v34 = vmul.f32 0.2, %v4093_v52  ;;  %v11061_v11 = vld [vmem:[%s14864_s1 + $0x210] ss:$8 sps:$4 sm:$0xff]  }
 0x2e3   : > { %v4098_v15 = vsel %vm4094_vm2, %v4092_v12, %v4096_v45  ;;  %5960 = vmatpush1.bf16.msra.mxu0 %v11001_v19  ;;  %v11064_v12 = vld [vmem:[%s14864_s1 + $0x310] ss:$8 sps:$4 sm:$0xff]   ;;  %v11072_v19 = vld [vmem:[%s14864_s1 + $0x324] ss:$8 sps:$4 sm:$0xff]   ;;  %v11075_v45 = vld [vmem:[%s14864_s1 + $0x234] ss:$8 sps:$4 sm:$0xff]  }
 0x2e4   : > { %v4099_v61 = vsel %vm4095_vm3, %v4093_v52, %v4097_v34  ;;  %6001 = vmatpush1.bf16.msra.mxu1 %v11004_v53  ;;  %5961 = vmatprep.subr.bf16.mxu0 %v11009_v13  ;;  %v11069_v52 = vld [vmem:[%s14864_s1 + $0x224] ss:$8 sps:$4 sm:$0xff]   ;;  %v11067_v53 = vld [vmem:[%s14864_s1 + $0x220] ss:$8 sps:$4 sm:$0xff]  }
 0x2e5   : > { %v8962_v23 = vpack.c.bf16 %v4099_v61, %v4098_v15  ;;  %6002 = vmatprep.subr.bf16.mxu1 %v11012_v14  ;;  %v11070_v13 = vld [vmem:[%s14864_s1 + $0x320] ss:$8 sps:$4 sm:$0xff]   ;;  %v11076_v14 = vld [vmem:[%s14864_s1 + $0x330] ss:$8 sps:$4 sm:$0xff]   ;;  %v11081_v34 = vld [vmem:[%s14864_s1 + $0x244] ss:$8 sps:$4 sm:$0xff]  }
 0x2e6   : > { %v11084_v15 = vld [vmem:[%s14864_s1 + $0x344] ss:$8 sps:$4 sm:$0xff]   ;;  %v11079_v61 = vld [vmem:[%s14864_s1 + $0x240] ss:$8 sps:$4 sm:$0xff]  }
 0x2e7   : > { %9875 = vst.sshfl [vmem:[%s13080_s22 + $0x4] sm:$0x33 pattern:$0x76325410] %v8962_v23  ;;  %5962 = vmatpush1.bf16.msra.mxu0 %v11007_v0  ;;  %v11082_v0 = vld [vmem:[%s14864_s1 + $0x340] ss:$8 sps:$4 sm:$0xff]  }
 0x2e8   : > { %6003 = vmatpush1.bf16.msra.mxu1 %v11010_v17  ;;  %5963 = vmatprep.subr.bf16.mxu0 %v11015_v27  ;;  %v11087_v17 = vld [vmem:[%s14864_s1 + $0x254] ss:$8 sps:$4 sm:$0xff]   ;;  %v11085_v27 = vld [vmem:[%s14864_s1 + $0x250] ss:$8 sps:$4 sm:$0xff]   ;;  %v11103_v55 = vld [vmem:[%s14864_s1 + $0x280] ss:$8 sps:$4 sm:$0xff]  }
 0x2e9   : > { %6004 = vmatprep.subr.bf16.mxu1 %v11018_v28  ;;  %v11090_v23 = vld [vmem:[%s14864_s1 + $0x354] ss:$8 sps:$4 sm:$0xff]   ;;  %v11088_v28 = vld [vmem:[%s14864_s1 + $0x350] ss:$8 sps:$4 sm:$0xff]   ;;  %v11106_v56 = vld [vmem:[%s14864_s1 + $0x380] ss:$8 sps:$4 sm:$0xff]  }
 0x2ea   : > { %v11117_v24 = vld [vmem:[%s14864_s1 + $0x2a4] ss:$8 sps:$4 sm:$0xff]   ;;  %v11115_v59 = vld [vmem:[%s14864_s1 + $0x2a0] ss:$8 sps:$4 sm:$0xff]  }
 0x2eb   : > { %5964 = vmatpush1.bf16.msra.mxu0 %v11013_v38  ;;  %v11093_v38 = vld [vmem:[%s14864_s1 + $0x264] ss:$8 sps:$4 sm:$0xff]   ;;  %v11118_v62 = vld [vmem:[%s14864_s1 + $0x3a0] ss:$8 sps:$4 sm:$0xff]  }
 0x2ec   : > { %6005 = vmatpush1.bf16.msra.mxu1 %v11016_v2  ;;  %5965 = vmatprep.subr.bf16.mxu0 %v11021_v3  ;;  %v11096_v2 = vld [vmem:[%s14864_s1 + $0x364] ss:$8 sps:$4 sm:$0xff]  }
 0x2ed   : > { %6006 = vmatprep.subr.bf16.mxu1 %v11024_v42  ;;  %v11120_v25 = vld [vmem:[%s14864_s1 + $0x3a4] ss:$8 sps:$4 sm:$0xff]  }
 0x2ef   : > { %5966 = vmatpush1.bf16.msra.mxu0 %v11019_v43 }
 0x2f0   : > { %6007 = vmatpush1.bf16.msra.mxu1 %v11022_v37  ;;  %5967 = vmatprep.subr.bf16.mxu0 %v11027_v40 }
 0x2f1   : > { %6008 = vmatprep.subr.bf16.mxu1 %v11030_v31 }
 0x2f3   : > { %5968 = vmatpush1.bf16.msra.mxu0 %v11025_v54 }
 0x2f4   : > { %6009 = vmatpush1.bf16.msra.mxu1 %v11028_v41  ;;  %5969 = vmatprep.subr.bf16.mxu0 %v11033_v30  ;;  %v11091_v30 = vld [vmem:[%s14864_s1 + $0x260] ss:$8 sps:$4 sm:$0xff]  }
 0x2f5   : > { %6010 = vmatprep.subr.bf16.mxu1 %v11036_v44  ;;  %v11094_v44 = vld [vmem:[%s14864_s1 + $0x360] ss:$8 sps:$4 sm:$0xff]  }
 0x2f7   : > { %5970 = vmatpush1.bf16.msra.mxu0 %v11031_v18 }
 0x2f8   : > { %6011 = vmatpush1.bf16.msra.mxu1 %v11034_v35  ;;  %5971 = vmatprep.subr.bf16.mxu0 %v11039_v21  ;;  %v11099_v21 = vld [vmem:[%s14864_s1 + $0x274] ss:$8 sps:$4 sm:$0xff]  }
 0x2f9   : > { %6012 = vmatprep.subr.bf16.mxu1 %v11042_v47  ;;  %v11102_v47 = vld [vmem:[%s14864_s1 + $0x374] ss:$8 sps:$4 sm:$0xff]  }
 0x2fb   : > { %5972 = vmatpush1.bf16.msra.mxu0 %v11037_v22  ;;  %v11097_v22 = vld [vmem:[%s14864_s1 + $0x270] ss:$8 sps:$4 sm:$0xff]  }
 0x2fc   : > { %6013 = vmatpush1.bf16.msra.mxu1 %v11040_v50  ;;  %5973 = vmatprep.subr.bf16.mxu0 %v11045_v51  ;;  %v11100_v50 = vld [vmem:[%s14864_s1 + $0x370] ss:$8 sps:$4 sm:$0xff]   ;;  %v11105_v51 = vld [vmem:[%s14864_s1 + $0x284] ss:$8 sps:$4 sm:$0xff]  }
 0x2fd   : > { %6014 = vmatprep.subr.bf16.mxu1 %v11048_v20  ;;  %v11108_v20 = vld [vmem:[%s14864_s1 + $0x384] ss:$8 sps:$4 sm:$0xff]  }
 0x2ff   : > { %5974 = vmatpush1.bf16.msra.mxu0 %v11043_v39  ;;  %v11111_v39 = vld [vmem:[%s14864_s1 + $0x294] ss:$8 sps:$4 sm:$0xff]  }
 0x300   : > { %6015 = vmatpush1.bf16.msra.mxu1 %v11046_v29  ;;  %5975 = vmatprep.subr.bf16.mxu0 %v11051_v57  ;;  %v11114_v29 = vld [vmem:[%s14864_s1 + $0x394] ss:$8 sps:$4 sm:$0xff]   ;;  %v11109_v57 = vld [vmem:[%s14864_s1 + $0x290] ss:$8 sps:$4 sm:$0xff]  }
 0x301   : > { %6016 = vmatprep.subr.bf16.mxu1 %v11054_v58  ;;  %v11112_v58 = vld [vmem:[%s14864_s1 + $0x390] ss:$8 sps:$4 sm:$0xff]  }
 0x303   : > { %5976 = vmatpush1.bf16.msra.mxu0 %v11049_v63  ;;  %v11123_v63 = vld [vmem:[%s14864_s1 + $0x2b4] ss:$8 sps:$4 sm:$0xff]  }
 0x304   : > { %6017 = vmatpush1.bf16.msra.mxu1 %v11052_v1  ;;  %6500 = vmatprep.subr.bf16.mxu0 %v11057_v46  ;;  %v11126_v1 = vld [vmem:[%s14864_s1 + $0x3b4] ss:$8 sps:$4 sm:$0xff]   ;;  %v11121_v46 = vld [vmem:[%s14864_s1 + $0x2b0] ss:$8 sps:$4 sm:$0xff]  }
 0x305   : > { %6541 = vmatprep.subr.bf16.mxu1 %v11060_v4  ;;  %v11124_v4 = vld [vmem:[%s14864_s1 + $0x3b0] ss:$8 sps:$4 sm:$0xff]  }
 0x306   : > { %5978 = vmatmul.mubr.bf16.vlgmr.msra.gmra.mrb[44].mxu0 %v14026_v5 }
 0x307   : > { %6019 = vmatmul.mubr.bf16.vlgmr.msra.gmra.mrb[44].mxu1 %v14028_v8  ;;  %6501 = vmatpush1.bf16.msra.mxu0 %v11055_v9  ;;  %v11129_v9 = vld [vmem:[%s14864_s1 + $0x2c4] ss:$8 sps:$4 sm:$0xff]  }
 0x308   : > { %6542 = vmatpush1.bf16.msra.mxu1 %v11058_v10  ;;  %6502 = vmatprep.subr.bf16.mxu0 %v11063_v48  ;;  %v11132_v10 = vld [vmem:[%s14864_s1 + $0x3c4] ss:$8 sps:$4 sm:$0xff]   ;;  %v11127_v48 = vld [vmem:[%s14864_s1 + $0x2c0] ss:$8 sps:$4 sm:$0xff]  }
 0x309   : > { %6543 = vmatprep.subr.bf16.mxu1 %v11066_v49  ;;  %6532 = vmatprep.mubr.bf16.mxu0 %v13829_v60  ;;  %v11078_v60 = vld [vmem:[%s14864_s1 + $0x334] ss:$8 sps:$4 sm:$0xff]   ;;  %v11130_v49 = vld [vmem:[%s14864_s1 + $0x3c0] ss:$8 sps:$4 sm:$0xff]  }
 0x30a   : > { %6573 = vmatprep.mubr.bf16.mxu1 %v13831_v36  ;;  %v11073_v36 = vld [vmem:[%s14864_s1 + $0x230] ss:$8 sps:$4 sm:$0xff]  }
 0x30b   : > { %6503 = vmatpush1.bf16.msra.mxu0 %v11061_v11  ;;  %v11135_v11 = vld [vmem:[%s14864_s1 + $0x2d4] ss:$8 sps:$4 sm:$0xff]  }
 0x30c   : > { %6544 = vmatpush1.bf16.msra.mxu1 %v11064_v12  ;;  %6504 = vmatprep.subr.bf16.mxu0 %v11069_v52  ;;  %v11138_v12 = vld [vmem:[%s14864_s1 + $0x3d4] ss:$8 sps:$4 sm:$0xff]   ;;  %v11133_v52 = vld [vmem:[%s14864_s1 + $0x2d0] ss:$8 sps:$4 sm:$0xff]  }
 0x30d   : > { %6545 = vmatprep.subr.bf16.mxu1 %v11072_v19  ;;  %v11136_v19 = vld [vmem:[%s14864_s1 + $0x3d0] ss:$8 sps:$4 sm:$0xff]  }
 0x30f   : > { %6505 = vmatpush1.bf16.msra.mxu0 %v11067_v53  ;;  %v11141_v53 = vld [vmem:[%s14864_s1 + $0x2e4] ss:$8 sps:$4 sm:$0xff]  }
 0x310   : > { %6546 = vmatpush1.bf16.msra.mxu1 %v11070_v13  ;;  %6506 = vmatprep.subr.bf16.mxu0 %v11075_v45  ;;  %v11144_v13 = vld [vmem:[%s14864_s1 + $0x3e4] ss:$8 sps:$4 sm:$0xff]   ;;  %v11139_v45 = vld [vmem:[%s14864_s1 + $0x2e0] ss:$8 sps:$4 sm:$0xff]  }
 0x311   : > { %6547 = vmatprep.subr.bf16.mxu1 %v11078_v60  ;;  %v11142_v60 = vld [vmem:[%s14864_s1 + $0x3e0] ss:$8 sps:$4 sm:$0xff]  }
 0x313   : > { %6507 = vmatpush1.bf16.msra.mxu0 %v11073_v36  ;;  %v11147_v36 = vld [vmem:[%s14864_s1 + $0x2f4] ss:$8 sps:$4 sm:$0xff]  }
 0x314   : > { %6548 = vmatpush1.bf16.msra.mxu1 %v11076_v14  ;;  %6508 = vmatprep.subr.bf16.mxu0 %v11081_v34  ;;  %v11150_v14 = vld [vmem:[%s14864_s1 + $0x3f4] ss:$8 sps:$4 sm:$0xff]   ;;  %v11145_v34 = vld [vmem:[%s14864_s1 + $0x2f0] ss:$8 sps:$4 sm:$0xff]  }
 0x315   : > { %6549 = vmatprep.subr.bf16.mxu1 %v11084_v15  ;;  %v11148_v15 = vld [vmem:[%s14864_s1 + $0x3f0] ss:$8 sps:$4 sm:$0xff]  }
 0x317   : > { %6509 = vmatpush1.bf16.msra.mxu0 %v11079_v61  ;;  %v11153_v61 = vld [vmem:[%s14864_s1 + $0x4] ss:$8 sps:$4 sm:$0xff]  }
 0x318   : > { %6550 = vmatpush1.bf16.msra.mxu1 %v11082_v0  ;;  %6510 = vmatprep.subr.bf16.mxu0 %v11087_v17  ;;  %v11156_v0 = vld [vmem:[%s14864_s1 + $0x104] ss:$8 sps:$4 sm:$0xff]   ;;  %v11151_v17 = vld [vmem:[%s14864_s1] ss:$8 sps:$4 sm:$0xff]  }
 0x319   : > { %6551 = vmatprep.subr.bf16.mxu1 %v11090_v23  ;;  %v4597_v3 = vpop.f32.mrb[32].mxu0  ;;  %v11154_v23 = vld [vmem:[%s14864_s1 + $0x100] ss:$8 sps:$4 sm:$0xff]  }
 0x31a   : > { %v4638_v42 = vpop.f32.mrb[32].mxu1  ;;  %v4599_v37 = vpop.f32.mrb[33].mxu0 }
 0x31b   : > { %v14106_v43 = vadd.f32 %v4638_v42, %v4597_v3  ;;  %v4640_v40 = vpop.f32.mrb[33].mxu1  ;;  %v4601_v54 = vpop.f32.mrb[34].mxu0  ;;  %6511 = vmatpush1.bf16.msra.mxu0 %v11085_v27  ;;  %v11159_v27 = vld [vmem:[%s14864_s1 + $0x14] ss:$8 sps:$4 sm:$0xff]   ;;  %v11165_v3 = vld [vmem:[%s14864_s1 + $0x24] ss:$8 sps:$4 sm:$0xff]  }
 0x31c   : > { %v14108_v31 = vadd.f32 %v4640_v40, %v4599_v37  ;;  %v4642_v41 = vpop.f32.mrb[34].mxu1  ;;  %6552 = vmatpush1.bf16.msra.mxu1 %v11088_v28  ;;  %v4602_v18 = vpop.f32.mrb[35].mxu0  ;;  %6512 = vmatprep.subr.bf16.mxu0 %v11093_v38  ;;  %v11162_v28 = vld [vmem:[%s14864_s1 + $0x114] ss:$8 sps:$4 sm:$0xff]   ;;  %v11157_v38 = vld [vmem:[%s14864_s1 + $0x10] ss:$8 sps:$4 sm:$0xff]  }
 0x31d   : > { %v4643_v35 = vpop.f32.mrb[35].mxu1  ;;  %6553 = vmatprep.subr.bf16.mxu1 %v11096_v2  ;;  %v11160_v2 = vld [vmem:[%s14864_s1 + $0x110] ss:$8 sps:$4 sm:$0xff]   ;;  %v11166_v42 = vld [vmem:[%s14864_s1 + $0x120] ss:$8 sps:$4 sm:$0xff]  }
 0x31e   : > { %v11171_v37 = vld [vmem:[%s14864_s1 + $0x34] ss:$8 sps:$4 sm:$0xff]   ;;  %v11172_v40 = vld [vmem:[%s14864_s1 + $0x130] ss:$8 sps:$4 sm:$0xff]   ;;  %v11177_v54 = vld [vmem:[%s14864_s1 + $0x44] ss:$8 sps:$4 sm:$0xff]  }
 0x31f   : > { %6513 = vmatpush1.bf16.msra.mxu0 %v11091_v30  ;;  %v11180_v41 = vld [vmem:[%s14864_s1 + $0x144] ss:$8 sps:$4 sm:$0xff]   ;;  %v11175_v30 = vld [vmem:[%s14864_s1 + $0x40] ss:$8 sps:$4 sm:$0xff]   ;;  %v11183_v18 = vld [vmem:[%s14864_s1 + $0x54] ss:$8 sps:$4 sm:$0xff]  }
 0x320   : > { %6554 = vmatpush1.bf16.msra.mxu1 %v11094_v44  ;;  %6514 = vmatprep.subr.bf16.mxu0 %v11099_v21  ;;  %v11178_v44 = vld [vmem:[%s14864_s1 + $0x140] ss:$8 sps:$4 sm:$0xff]   ;;  %v11186_v35 = vld [vmem:[%s14864_s1 + $0x154] ss:$8 sps:$4 sm:$0xff]   ;;  %v11181_v21 = vld [vmem:[%s14864_s1 + $0x50] ss:$8 sps:$4 sm:$0xff]  }
 0x321   : > { %6555 = vmatprep.subr.bf16.mxu1 %v11102_v47  ;;  %v11184_v47 = vld [vmem:[%s14864_s1 + $0x150] ss:$8 sps:$4 sm:$0xff]  }
 0x323   : > { %6515 = vmatpush1.bf16.msra.mxu0 %v11097_v22  ;;  %v11189_v22 = vld [vmem:[%s14864_s1 + $0x64] ss:$8 sps:$4 sm:$0xff]  }
 0x324   : > { %6556 = vmatpush1.bf16.msra.mxu1 %v11100_v50  ;;  %6516 = vmatprep.subr.bf16.mxu0 %v11105_v51  ;;  %v11192_v50 = vld [vmem:[%s14864_s1 + $0x164] ss:$8 sps:$4 sm:$0xff]  }
 0x325   : > { %6557 = vmatprep.subr.bf16.mxu1 %v11108_v20 }
 0x327   : > { %6517 = vmatpush1.bf16.msra.mxu0 %v11103_v55 }
 0x328   : > { %6558 = vmatpush1.bf16.msra.mxu1 %v11106_v56  ;;  %6518 = vmatprep.subr.bf16.mxu0 %v11111_v39 }
 0x329   : > { %6559 = vmatprep.subr.bf16.mxu1 %v11114_v29 }
 0x32b   : > { %6519 = vmatpush1.bf16.msra.mxu0 %v11109_v57 }
 0x32c   : > { %6560 = vmatpush1.bf16.msra.mxu1 %v11112_v58  ;;  %6520 = vmatprep.subr.bf16.mxu0 %v11117_v24  ;;  %v11187_v24 = vld [vmem:[%s14864_s1 + $0x60] ss:$8 sps:$4 sm:$0xff]  }
 0x32d   : > { %6561 = vmatprep.subr.bf16.mxu1 %v11120_v25  ;;  %v11190_v25 = vld [vmem:[%s14864_s1 + $0x160] ss:$8 sps:$4 sm:$0xff]  }
 0x32f   : > { %6521 = vmatpush1.bf16.msra.mxu0 %v11115_v59 }
 0x330   : > { %6562 = vmatpush1.bf16.msra.mxu1 %v11118_v62  ;;  %6522 = vmatprep.subr.bf16.mxu0 %v11123_v63  ;;  %v11198_v63 = vld [vmem:[%s14864_s1 + $0x174] ss:$8 sps:$4 sm:$0xff]  }
 0x331   : > { %6563 = vmatprep.subr.bf16.mxu1 %v11126_v1 }
 0x333   : > { %6523 = vmatpush1.bf16.msra.mxu0 %v11121_v46  ;;  %v11193_v46 = vld [vmem:[%s14864_s1 + $0x70] ss:$8 sps:$4 sm:$0xff]  }
 0x334   : > { %6564 = vmatpush1.bf16.msra.mxu1 %v11124_v4  ;;  %6524 = vmatprep.subr.bf16.mxu0 %v11129_v9  ;;  %v11196_v4 = vld [vmem:[%s14864_s1 + $0x170] ss:$8 sps:$4 sm:$0xff]   ;;  %v11201_v9 = vld [vmem:[%s14864_s1 + $0x84] ss:$8 sps:$4 sm:$0xff]  }
 0x335   : > { %6565 = vmatprep.subr.bf16.mxu1 %v11132_v10  ;;  %v11204_v10 = vld [vmem:[%s14864_s1 + $0x184] ss:$8 sps:$4 sm:$0xff]  }
 0x337   : > { %6525 = vmatpush1.bf16.msra.mxu0 %v11127_v48  ;;  %v11199_v48 = vld [vmem:[%s14864_s1 + $0x80] ss:$8 sps:$4 sm:$0xff]  }
 0x338   : > { %6566 = vmatpush1.bf16.msra.mxu1 %v11130_v49  ;;  %6526 = vmatprep.subr.bf16.mxu0 %v11135_v11  ;;  %v11202_v49 = vld [vmem:[%s14864_s1 + $0x180] ss:$8 sps:$4 sm:$0xff]   ;;  %v11207_v11 = vld [vmem:[%s14864_s1 + $0x94] ss:$8 sps:$4 sm:$0xff]  }
 0x339   : > { %6567 = vmatprep.subr.bf16.mxu1 %v11138_v12  ;;  %v11210_v12 = vld [vmem:[%s14864_s1 + $0x194] ss:$8 sps:$4 sm:$0xff]  }
 0x33b   : > { %6527 = vmatpush1.bf16.msra.mxu0 %v11133_v52  ;;  %v11205_v52 = vld [vmem:[%s14864_s1 + $0x90] ss:$8 sps:$4 sm:$0xff]  }
 0x33c   : > { %6568 = vmatpush1.bf16.msra.mxu1 %v11136_v19  ;;  %6528 = vmatprep.subr.bf16.mxu0 %v11141_v53  ;;  %v11208_v19 = vld [vmem:[%s14864_s1 + $0x190] ss:$8 sps:$4 sm:$0xff]   ;;  %v11213_v53 = vld [vmem:[%s14864_s1 + $0xa4] ss:$8 sps:$4 sm:$0xff]  }
 0x33d   : > { %6569 = vmatprep.subr.bf16.mxu1 %v11144_v13  ;;  %v11216_v13 = vld [vmem:[%s14864_s1 + $0x1a4] ss:$8 sps:$4 sm:$0xff]  }
 0x33f   : > { %6529 = vmatpush1.bf16.msra.mxu0 %v11139_v45  ;;  %v11211_v45 = vld [vmem:[%s14864_s1 + $0xa0] ss:$8 sps:$4 sm:$0xff]  }
 0x340   : > { %6570 = vmatpush1.bf16.msra.mxu1 %v11142_v60  ;;  %6530 = vmatprep.subr.bf16.mxu0 %v11147_v36  ;;  %v11214_v60 = vld [vmem:[%s14864_s1 + $0x1a0] ss:$8 sps:$4 sm:$0xff]   ;;  %v11219_v36 = vld [vmem:[%s14864_s1 + $0xb4] ss:$8 sps:$4 sm:$0xff]  }
 0x341   : > { %6571 = vmatprep.subr.bf16.mxu1 %v11150_v14  ;;  %v11222_v14 = vld [vmem:[%s14864_s1 + $0x1b4] ss:$8 sps:$4 sm:$0xff]  }
 0x343   : > { %6531 = vmatpush1.bf16.msra.mxu0 %v11145_v34  ;;  %v11217_v34 = vld [vmem:[%s14864_s1 + $0xb0] ss:$8 sps:$4 sm:$0xff]  }
 0x344   : > { %6572 = vmatpush1.bf16.msra.mxu1 %v11148_v15  ;;  %6902 = vmatprep.subr.bf16.mxu0 %v11153_v61  ;;  %v11220_v15 = vld [vmem:[%s14864_s1 + $0x1b0] ss:$8 sps:$4 sm:$0xff]   ;;  %v11225_v61 = vld [vmem:[%s14864_s1 + $0xc4] ss:$8 sps:$4 sm:$0xff]  }
 0x345   : > { %6943 = vmatprep.subr.bf16.mxu1 %v11156_v0  ;;  %v11228_v0 = vld [vmem:[%s14864_s1 + $0x1c4] ss:$8 sps:$4 sm:$0xff]  }
 0x346   : > { %6533 = vmatmul.mubr.bf16.vlgmr.msra.gmra.mrb[48].mxu0 %v14026_v5  ;;  %v11168_v5 = vld [vmem:[%s14864_s1 + $0x124] ss:$8 sps:$4 sm:$0xff]  }
 0x347   : > { %6574 = vmatmul.mubr.bf16.vlgmr.msra.gmra.mrb[48].mxu1 %v14028_v8  ;;  %6903 = vmatpush1.bf16.msra.mxu0 %v11151_v17  ;;  %v11163_v8 = vld [vmem:[%s14864_s1 + $0x20] ss:$8 sps:$4 sm:$0xff]  }
 0x348   : > { %6944 = vmatpush1.bf16.msra.mxu1 %v11154_v23  ;;  %6904 = vmatprep.subr.bf16.mxu0 %v11159_v27  ;;  %v11223_v17 = vld [vmem:[%s14864_s1 + $0xc0] ss:$8 sps:$4 sm:$0xff]   ;;  %v11231_v27 = vld [vmem:[%s14864_s1 + $0xd4] ss:$8 sps:$4 sm:$0xff]  }
 0x349   : > { %6945 = vmatprep.subr.bf16.mxu1 %v11162_v28  ;;  %6934 = vmatprep.mubr.bf16.mxu0 %v13609_v6  ;;  %v11174_v6 = vld [vmem:[%s14864_s1 + $0x134] ss:$8 sps:$4 sm:$0xff]   ;;  %v11226_v23 = vld [vmem:[%s14864_s1 + $0x1c0] ss:$8 sps:$4 sm:$0xff]  }
 0x34a   : > { %6975 = vmatprep.mubr.bf16.mxu1 %v13613_v7  ;;  %v11169_v7 = vld [vmem:[%s14864_s1 + $0x30] ss:$8 sps:$4 sm:$0xff]   ;;  %v11234_v28 = vld [vmem:[%s14864_s1 + $0x1d4] ss:$8 sps:$4 sm:$0xff]  }
 0x34b   : > { %6905 = vmatpush1.bf16.msra.mxu0 %v11157_v38  ;;  %v11229_v38 = vld [vmem:[%s14864_s1 + $0xd0] ss:$8 sps:$4 sm:$0xff]  }
 0x34c   : > { %6946 = vmatpush1.bf16.msra.mxu1 %v11160_v2  ;;  %6906 = vmatprep.subr.bf16.mxu0 %v11165_v3  ;;  %v11232_v2 = vld [vmem:[%s14864_s1 + $0x1d0] ss:$8 sps:$4 sm:$0xff]   ;;  %v11237_v3 = vld [vmem:[%s14864_s1 + $0xe4] ss:$8 sps:$4 sm:$0xff]  }
 0x34d   : > { %6947 = vmatprep.subr.bf16.mxu1 %v11168_v5  ;;  %v11240_v5 = vld [vmem:[%s14864_s1 + $0x1e4] ss:$8 sps:$4 sm:$0xff]  }
 0x34f   : > { %6907 = vmatpush1.bf16.msra.mxu0 %v11163_v8  ;;  %v11235_v8 = vld [vmem:[%s14864_s1 + $0xe0] ss:$8 sps:$4 sm:$0xff]  }
 0x350   : > { %6948 = vmatpush1.bf16.msra.mxu1 %v11166_v42  ;;  %6908 = vmatprep.subr.bf16.mxu0 %v11171_v37  ;;  %v11238_v42 = vld [vmem:[%s14864_s1 + $0x1e0] ss:$8 sps:$4 sm:$0xff]   ;;  %v11243_v37 = vld [vmem:[%s14864_s1 + $0xf4] ss:$8 sps:$4 sm:$0xff]  }
 0x351   : > { %6949 = vmatprep.subr.bf16.mxu1 %v11174_v6  ;;  %v11246_v6 = vld [vmem:[%s14864_s1 + $0x1f4] ss:$8 sps:$4 sm:$0xff]  }
 0x353   : > { %6909 = vmatpush1.bf16.msra.mxu0 %v11169_v7  ;;  %v11241_v7 = vld [vmem:[%s14864_s1 + $0xf0] ss:$8 sps:$4 sm:$0xff]  }
 0x354   : > { %6950 = vmatpush1.bf16.msra.mxu1 %v11172_v40  ;;  %6910 = vmatprep.subr.bf16.mxu0 %v11177_v54  ;;  %v11244_v40 = vld [vmem:[%s14864_s1 + $0x1f0] ss:$8 sps:$4 sm:$0xff]   ;;  %v11249_v54 = vld [vmem:[%s14864_s1 + $0x404] ss:$8 sps:$4 sm:$0xff]  }
 0x355   : > { %6951 = vmatprep.subr.bf16.mxu1 %v11180_v41  ;;  %v11252_v41 = vld [vmem:[%s14864_s1 + $0x504] ss:$8 sps:$4 sm:$0xff]  }
 0x357   : > { %6911 = vmatpush1.bf16.msra.mxu0 %v11175_v30  ;;  %v14433_v30 = vld [vmem:[%s11621_s30 + $0x40] sm:$0x77] }
 0x358   : > { %6952 = vmatpush1.bf16.msra.mxu1 %v11178_v44  ;;  %6912 = vmatprep.subr.bf16.mxu0 %v11183_v18  ;;  %v14436_v44 = vld [vmem:[%s11621_s30 + $0x48] sm:$0x77] }
 0x359   : > { %6953 = vmatprep.subr.bf16.mxu1 %v11186_v35  ;;  %v4999_v51 = vpop.f32.mrb[36].mxu0  ;;  %v11247_v18 = vld [vmem:[%s14864_s1 + $0x400] ss:$8 sps:$4 sm:$0xff]  }
 0x35a   : > { %v5040_v20 = vpop.f32.mrb[36].mxu1  ;;  %v5000_v55 = vadd.f32 %v4999_v51, %v14106_v43  ;;  %v5001_v56 = vpop.f32.mrb[37].mxu0  ;;  %v11250_v35 = vld [vmem:[%s14864_s1 + $0x500] ss:$8 sps:$4 sm:$0xff]   ;;  %v11253_v51 = vld [vmem:[%s14864_s1 + $0x410] ss:$8 sps:$4 sm:$0xff]  }
 0x35b   : > { %v5042_v39 = vpop.f32.mrb[37].mxu1  ;;  %v5002_v29 = vadd.f32 %v5001_v56, %v14108_v31  ;;  %v5003_v57 = vpop.f32.mrb[38].mxu0  ;;  %6913 = vmatpush1.bf16.msra.mxu0 %v11181_v21  ;;  %v11195_v31 = vld [vmem:[%s14864_s1 + $0x74] ss:$8 sps:$4 sm:$0xff]   ;;  %v11262_v56 = vld [vmem:[%s14864_s1 + $0x520] ss:$8 sps:$4 sm:$0xff]  }
 0x35c   : > { %v5044_v58 = vpop.f32.mrb[38].mxu1  ;;  %6954 = vmatpush1.bf16.msra.mxu1 %v11184_v47  ;;  %v14314_v59 = vadd.f32 %v5040_v20, %v5000_v55  ;;  %v5004_v62 = vpop.f32.mrb[39].mxu0  ;;  %6914 = vmatprep.subr.bf16.mxu0 %v11189_v22  ;;  %v11255_v21 = vld [vmem:[%s14864_s1 + $0x414] ss:$8 sps:$4 sm:$0xff]   ;;  %v14452_v22 = vcombine.high %v14433_v30, %v14433_v30  ;;  %v11256_v20 = vld [vmem:[%s14864_s1 + $0x510] ss:$8 sps:$4 sm:$0xff]  }
 0x35d   : > { %v5045_v43 = vpop.f32.mrb[39].mxu1  ;;  %6955 = vmatprep.subr.bf16.mxu1 %v11192_v50  ;;  %v14322_v1 = vadd.f32 %v5042_v39, %v5002_v29  ;;  %v11258_v47 = vld [vmem:[%s14864_s1 + $0x514] ss:$8 sps:$4 sm:$0xff]   ;;  %v14456_v50 = vcombine.high %v14436_v44, %v14436_v44  ;;  %v11261_v55 = vld [vmem:[%s14864_s1 + $0x424] ss:$8 sps:$4 sm:$0xff]  }
 0x35e   : > { %v11267_v39 = vld [vmem:[%s14864_s1 + $0x434] ss:$8 sps:$4 sm:$0xff]   ;;  %v11265_v57 = vld [vmem:[%s14864_s1 + $0x430] ss:$8 sps:$4 sm:$0xff]   ;;  %v11271_v62 = vld [vmem:[%s14864_s1 + $0x440] ss:$8 sps:$4 sm:$0xff]  }
 0x35f   : > { %6915 = vmatpush1.bf16.msra.mxu0 %v11187_v24  ;;  %v11270_v29 = vld [vmem:[%s14864_s1 + $0x534] ss:$8 sps:$4 sm:$0xff]   ;;  %v11268_v58 = vld [vmem:[%s14864_s1 + $0x530] ss:$8 sps:$4 sm:$0xff]   ;;  %v11273_v24 = vld [vmem:[%s14864_s1 + $0x444] ss:$8 sps:$4 sm:$0xff]  }
 0x360   : > { %6956 = vmatpush1.bf16.msra.mxu1 %v11190_v25  ;;  %6916 = vmatprep.subr.bf16.mxu0 %v11195_v31  ;;  %v11276_v25 = vld [vmem:[%s14864_s1 + $0x544] ss:$8 sps:$4 sm:$0xff]   ;;  %v11274_v43 = vld [vmem:[%s14864_s1 + $0x540] ss:$8 sps:$4 sm:$0xff]   ;;  %v11279_v31 = vld [vmem:[%s14864_s1 + $0x454] ss:$8 sps:$4 sm:$0xff]  }
 0x361   : > { %6957 = vmatprep.subr.bf16.mxu1 %v11198_v63  ;;  %v11282_v63 = vld [vmem:[%s14864_s1 + $0x554] ss:$8 sps:$4 sm:$0xff]  }
 0x363   : > { %6917 = vmatpush1.bf16.msra.mxu0 %v11193_v46  ;;  %v11277_v46 = vld [vmem:[%s14864_s1 + $0x450] ss:$8 sps:$4 sm:$0xff]  }
 0x364   : > { %6958 = vmatpush1.bf16.msra.mxu1 %v11196_v4  ;;  %6918 = vmatprep.subr.bf16.mxu0 %v11201_v9  ;;  %v11280_v4 = vld [vmem:[%s14864_s1 + $0x550] ss:$8 sps:$4 sm:$0xff]   ;;  %v11285_v9 = vld [vmem:[%s14864_s1 + $0x464] ss:$8 sps:$4 sm:$0xff]  }
 0x365   : > { %6959 = vmatprep.subr.bf16.mxu1 %v11204_v10  ;;  %v11288_v10 = vld [vmem:[%s14864_s1 + $0x564] ss:$8 sps:$4 sm:$0xff]  }
 0x367   : > { %6919 = vmatpush1.bf16.msra.mxu0 %v11199_v48 }
 0x368   : > { %6960 = vmatpush1.bf16.msra.mxu1 %v11202_v49  ;;  %6920 = vmatprep.subr.bf16.mxu0 %v11207_v11 }
 0x369   : > { %6961 = vmatprep.subr.bf16.mxu1 %v11210_v12 }
 0x36b   : > { %6921 = vmatpush1.bf16.msra.mxu0 %v11205_v52 }
 0x36c   : > { %6962 = vmatpush1.bf16.msra.mxu1 %v11208_v19  ;;  %6922 = vmatprep.subr.bf16.mxu0 %v11213_v53 }
 0x36d   : > { %6963 = vmatprep.subr.bf16.mxu1 %v11216_v13 }
 0x36f   : > { %6923 = vmatpush1.bf16.msra.mxu0 %v11211_v45  ;;  %v11283_v45 = vld [vmem:[%s14864_s1 + $0x460] ss:$8 sps:$4 sm:$0xff]  }
 0x370   : > { %6964 = vmatpush1.bf16.msra.mxu1 %v11214_v60  ;;  %6924 = vmatprep.subr.bf16.mxu0 %v11219_v36  ;;  %v11286_v60 = vld [vmem:[%s14864_s1 + $0x560] ss:$8 sps:$4 sm:$0xff]  }
 0x371   : > { %6965 = vmatprep.subr.bf16.mxu1 %v11222_v14 }
 0x373   : > { %6925 = vmatpush1.bf16.msra.mxu0 %v11217_v34 }
 0x374   : > { %6966 = vmatpush1.bf16.msra.mxu1 %v11220_v15  ;;  %6926 = vmatprep.subr.bf16.mxu0 %v11225_v61  ;;  %v11291_v15 = vld [vmem:[%s14864_s1 + $0x474] ss:$8 sps:$4 sm:$0xff]  }
 0x375   : > { %6967 = vmatprep.subr.bf16.mxu1 %v11228_v0  ;;  %v11294_v61 = vld [vmem:[%s14864_s1 + $0x574] ss:$8 sps:$4 sm:$0xff]  }
 0x377   : > { %6927 = vmatpush1.bf16.msra.mxu0 %v11223_v17  ;;  %v11292_v17 = vld [vmem:[%s14864_s1 + $0x570] ss:$8 sps:$4 sm:$0xff]  }
 0x378   : > { %6968 = vmatpush1.bf16.msra.mxu1 %v11226_v23  ;;  %6928 = vmatprep.subr.bf16.mxu0 %v11231_v27  ;;  %v11297_v23 = vld [vmem:[%s14864_s1 + $0x484] ss:$8 sps:$4 sm:$0xff]   ;;  %v11295_v27 = vld [vmem:[%s14864_s1 + $0x480] ss:$8 sps:$4 sm:$0xff]  }
 0x379   : > { %6969 = vmatprep.subr.bf16.mxu1 %v11234_v28  ;;  %v11298_v28 = vld [vmem:[%s14864_s1 + $0x580] ss:$8 sps:$4 sm:$0xff]  }
 0x37b   : > { %6929 = vmatpush1.bf16.msra.mxu0 %v11229_v38  ;;  %v11303_v38 = vld [vmem:[%s14864_s1 + $0x494] ss:$8 sps:$4 sm:$0xff]  }
 0x37c   : > { %6970 = vmatpush1.bf16.msra.mxu1 %v11232_v2  ;;  %6930 = vmatprep.subr.bf16.mxu0 %v11237_v3  ;;  %v11306_v2 = vld [vmem:[%s14864_s1 + $0x594] ss:$8 sps:$4 sm:$0xff]   ;;  %v11301_v3 = vld [vmem:[%s14864_s1 + $0x490] ss:$8 sps:$4 sm:$0xff]  }
 0x37d   : > { %6971 = vmatprep.subr.bf16.mxu1 %v11240_v5  ;;  %v11304_v5 = vld [vmem:[%s14864_s1 + $0x590] ss:$8 sps:$4 sm:$0xff]  }
 0x37f   : > { %6931 = vmatpush1.bf16.msra.mxu0 %v11235_v8  ;;  %v11309_v8 = vld [vmem:[%s14864_s1 + $0x4a4] ss:$8 sps:$4 sm:$0xff]  }
 0x380   : > { %6972 = vmatpush1.bf16.msra.mxu1 %v11238_v42  ;;  %6932 = vmatprep.subr.bf16.mxu0 %v11243_v37  ;;  %v11312_v42 = vld [vmem:[%s14864_s1 + $0x5a4] ss:$8 sps:$4 sm:$0xff]   ;;  %v11307_v37 = vld [vmem:[%s14864_s1 + $0x4a0] ss:$8 sps:$4 sm:$0xff]  }
 0x381   : > { %6973 = vmatprep.subr.bf16.mxu1 %v11246_v6  ;;  %v11310_v6 = vld [vmem:[%s14864_s1 + $0x5a0] ss:$8 sps:$4 sm:$0xff]  }
 0x383   : > { %6933 = vmatpush1.bf16.msra.mxu0 %v11241_v7  ;;  %v11315_v7 = vld [vmem:[%s14864_s1 + $0x4b4] ss:$8 sps:$4 sm:$0xff]  }
 0x384   : > { %6974 = vmatpush1.bf16.msra.mxu1 %v11244_v40  ;;  %7382 = vmatprep.subr.bf16.mxu0 %v11249_v54  ;;  %v11318_v40 = vld [vmem:[%s14864_s1 + $0x5b4] ss:$8 sps:$4 sm:$0xff]   ;;  %v11313_v54 = vld [vmem:[%s14864_s1 + $0x4b0] ss:$8 sps:$4 sm:$0xff]  }
 0x385   : > { %7423 = vmatprep.subr.bf16.mxu1 %v11252_v41  ;;  %v11316_v41 = vld [vmem:[%s14864_s1 + $0x5b0] ss:$8 sps:$4 sm:$0xff]  }
 0x386   : > { %6935 = vmatmul.mubr.bf16.vlgmr.msra.gmra.mrb[52].mxu0 %v13811_v32  ;;  %v11264_v32 = vld [vmem:[%s14864_s1 + $0x524] ss:$8 sps:$4 sm:$0xff]  }
 0x387   : > { %6976 = vmatmul.mubr.bf16.vlgmr.msra.gmra.mrb[52].mxu1 %v13815_v33  ;;  %7383 = vmatpush1.bf16.msra.mxu0 %v11247_v18  ;;  %v11259_v33 = vld [vmem:[%s14864_s1 + $0x420] ss:$8 sps:$4 sm:$0xff]   ;;  %v11321_v18 = vld [vmem:[%s14864_s1 + $0x4c4] ss:$8 sps:$4 sm:$0xff]  }
 0x388   : > { %7424 = vmatpush1.bf16.msra.mxu1 %v11250_v35  ;;  %7384 = vmatprep.subr.bf16.mxu0 %v11255_v21  ;;  %v11324_v35 = vld [vmem:[%s14864_s1 + $0x5c4] ss:$8 sps:$4 sm:$0xff]   ;;  %v11319_v21 = vld [vmem:[%s14864_s1 + $0x4c0] ss:$8 sps:$4 sm:$0xff]  }
 0x389   : > { %7425 = vmatprep.subr.bf16.mxu1 %v11258_v47  ;;  %7414 = vmatprep.mubr.bf16.mxu0 %v14452_v22  ;;  %v11322_v47 = vld [vmem:[%s14864_s1 + $0x5c0] ss:$8 sps:$4 sm:$0xff]  }
 0x38a   : > { %7455 = vmatprep.mubr.bf16.mxu1 %v14456_v50 }
 0x38b   : > { %7385 = vmatpush1.bf16.msra.mxu0 %v11253_v51  ;;  %v11327_v51 = vld [vmem:[%s14864_s1 + $0x4d4] ss:$8 sps:$4 sm:$0xff]  }
 0x38c   : > { %7426 = vmatpush1.bf16.msra.mxu1 %v11256_v20  ;;  %7386 = vmatprep.subr.bf16.mxu0 %v11261_v55  ;;  %v11330_v20 = vld [vmem:[%s14864_s1 + $0x5d4] ss:$8 sps:$4 sm:$0xff]   ;;  %v11325_v55 = vld [vmem:[%s14864_s1 + $0x4d0] ss:$8 sps:$4 sm:$0xff]  }
 0x38d   : > { %7427 = vmatprep.subr.bf16.mxu1 %v11264_v32  ;;  %v11328_v32 = vld [vmem:[%s14864_s1 + $0x5d0] ss:$8 sps:$4 sm:$0xff]  }
 0x38f   : > { %7387 = vmatpush1.bf16.msra.mxu0 %v11259_v33  ;;  %v11333_v33 = vld [vmem:[%s14864_s1 + $0x4e4] ss:$8 sps:$4 sm:$0xff]  }
 0x390   : > { %7428 = vmatpush1.bf16.msra.mxu1 %v11262_v56  ;;  %7388 = vmatprep.subr.bf16.mxu0 %v11267_v39  ;;  %v11336_v56 = vld [vmem:[%s14864_s1 + $0x5e4] ss:$8 sps:$4 sm:$0xff]   ;;  %v11331_v39 = vld [vmem:[%s14864_s1 + $0x4e0] ss:$8 sps:$4 sm:$0xff]  }
 0x391   : > { %7429 = vmatprep.subr.bf16.mxu1 %v11270_v29  ;;  %v11334_v29 = vld [vmem:[%s14864_s1 + $0x5e0] ss:$8 sps:$4 sm:$0xff]  }
 0x393   : > { %7389 = vmatpush1.bf16.msra.mxu0 %v11265_v57  ;;  %v11339_v57 = vld [vmem:[%s14864_s1 + $0x4f4] ss:$8 sps:$4 sm:$0xff]  }
 0x394   : > { %7430 = vmatpush1.bf16.msra.mxu1 %v11268_v58  ;;  %7390 = vmatprep.subr.bf16.mxu0 %v11273_v24  ;;  %v11342_v58 = vld [vmem:[%s14864_s1 + $0x5f4] ss:$8 sps:$4 sm:$0xff]   ;;  %v7540_v24 = vshll.u32 %v14452_v22, 16 }
 0x395   : > { %7431 = vmatprep.subr.bf16.mxu1 %v11276_v25  ;;  %v7554_v25 = vshll.u32 %v14456_v50, 16 }
 0x397   : > { %7391 = vmatpush1.bf16.msra.mxu0 %v11271_v62  ;;  %v11337_v62 = vld [vmem:[%s14864_s1 + $0x4f0] ss:$8 sps:$4 sm:$0xff]  }
 0x398   : > { %7432 = vmatpush1.bf16.msra.mxu1 %v11274_v43  ;;  %7392 = vmatprep.subr.bf16.mxu0 %v11279_v31  ;;  %v11340_v43 = vld [vmem:[%s14864_s1 + $0x5f0] ss:$8 sps:$4 sm:$0xff]   ;;  %v11349_v31 = vld [vmem:[%s14864_s1 + $0x604] ss:$8 sps:$4 sm:$0xff]  }
 0x399   : > { %7433 = vmatprep.subr.bf16.mxu1 %v11282_v63  ;;  %v5479_v48 = vpop.f32.mrb[40].mxu0  ;;  %v11352_v63 = vld [vmem:[%s14864_s1 + $0x704] ss:$8 sps:$4 sm:$0xff]  }
 0x39a   : > { %v5520_v49 = vpop.f32.mrb[40].mxu1  ;;  %v5481_v12 = vpop.f32.mrb[41].mxu0 }
 0x39b   : > { %v5521_v11 = vadd.f32 %v5520_v49, %v5479_v48  ;;  %v5522_v52 = vpop.f32.mrb[41].mxu1  ;;  %v5483_v53 = vpop.f32.mrb[42].mxu0  ;;  %7393 = vmatpush1.bf16.msra.mxu0 %v11277_v46  ;;  %v7538_v46 = vshrl.u32 %v14452_v22, 16  ;;  %v14654_v48 = vcombine.low %v14433_v30, %v14433_v30  ;;  %v14658_v49 = vcombine.low %v14436_v44, %v14436_v44  ;;  %v11350_v22 = vld [vmem:[%s14864_s1 + $0x700] ss:$8 sps:$4 sm:$0xff]  }
 0x39c   : > { %v5523_v19 = vadd.f32 %v5522_v52, %v5481_v12  ;;  %v5524_v13 = vpop.f32.mrb[42].mxu1  ;;  %7434 = vmatpush1.bf16.msra.mxu1 %v11280_v4  ;;  %v5484_v14 = vpop.f32.mrb[43].mxu0  ;;  %7394 = vmatprep.subr.bf16.mxu0 %v11285_v9  ;;  %v7542_v4 = vrot.slane %v7540_v24, 1  ;;  %v7552_v9 = vshrl.u32 %v14456_v50, 16  ;;  %v11355_v30 = vld [vmem:[%s14864_s1 + $0x614] ss:$8 sps:$4 sm:$0xff]  }
 0x39d   : > { %v14529_v36 = vadd.f32 %v5521_v11, %v14314_v59  ;;  %v5525_v34 = vpop.f32.mrb[43].mxu1  ;;  %7435 = vmatprep.subr.bf16.mxu1 %v11288_v10  ;;  %v11289_v59 = vld [vmem:[%s14864_s1 + $0x470] ss:$8 sps:$4 sm:$0xff]   ;;  %v7556_v10 = vrot.slane %v7554_v25, 1  ;;  %v11347_v11 = vld [vmem:[%s14864_s1 + $0x600] ss:$8 sps:$4 sm:$0xff]  }
 0x39e   : > { %v14538_v0 = vadd.f32 %v5523_v19, %v14322_v1  ;;  %v11300_v1 = vld [vmem:[%s14864_s1 + $0x584] ss:$8 sps:$4 sm:$0xff]   ;;  %v11358_v44 = vld [vmem:[%s14864_s1 + $0x714] ss:$8 sps:$4 sm:$0xff]   ;;  %v7543_v50 = vor.u32 %v7542_v4, %v7538_v46  ;;  %v11353_v52 = vld [vmem:[%s14864_s1 + $0x610] ss:$8 sps:$4 sm:$0xff]  }
 0x39f   : > { %7395 = vmatpush1.bf16.msra.mxu0 %v11283_v45  ;;  %v7557_v12 = vor.u32 %v7556_v10, %v7552_v9  ;;  %v11356_v19 = vld [vmem:[%s14864_s1 + $0x710] ss:$8 sps:$4 sm:$0xff]   ;;  %v11361_v53 = vld [vmem:[%s14864_s1 + $0x624] ss:$8 sps:$4 sm:$0xff]   ;;  %v11359_v45 = vld [vmem:[%s14864_s1 + $0x620] ss:$8 sps:$4 sm:$0xff]  }
 0x3a0   : > { %7436 = vmatpush1.bf16.msra.mxu1 %v11286_v60  ;;  %7396 = vmatprep.subr.bf16.mxu0 %v11291_v15  ;;  %v11364_v13 = vld [vmem:[%s14864_s1 + $0x724] ss:$8 sps:$4 sm:$0xff]   ;;  %v11362_v60 = vld [vmem:[%s14864_s1 + $0x720] ss:$8 sps:$4 sm:$0xff]   ;;  %v11367_v14 = vld [vmem:[%s14864_s1 + $0x634] ss:$8 sps:$4 sm:$0xff]  }
 0x3a1   : > { %7437 = vmatprep.subr.bf16.mxu1 %v11294_v61  ;;  %v11370_v34 = vld [vmem:[%s14864_s1 + $0x734] ss:$8 sps:$4 sm:$0xff]   ;;  %v11365_v15 = vld [vmem:[%s14864_s1 + $0x630] ss:$8 sps:$4 sm:$0xff]   ;;  %v11409_v10 = vld [vmem:[%s14864_s1 + $0x6a4] ss:$8 sps:$4 sm:$0xff]  }
 0x3a2   : > { %v11368_v61 = vld [vmem:[%s14864_s1 + $0x730] ss:$8 sps:$4 sm:$0xff]   ;;  %v11406_v46 = vld [vmem:[%s14864_s1 + $0x794] ss:$8 sps:$4 sm:$0xff]  }
 0x3a3   : > { %7397 = vmatpush1.bf16.msra.mxu0 %v11289_v59  ;;  %v11373_v59 = vld [vmem:[%s14864_s1 + $0x644] ss:$8 sps:$4 sm:$0xff]   ;;  %v11401_v4 = vld [vmem:[%s14864_s1 + $0x690] ss:$8 sps:$4 sm:$0xff]  }
 0x3a4   : > { %7438 = vmatpush1.bf16.msra.mxu1 %v11292_v17  ;;  %7398 = vmatprep.subr.bf16.mxu0 %v11297_v23  ;;  %v11376_v17 = vld [vmem:[%s14864_s1 + $0x744] ss:$8 sps:$4 sm:$0xff]   ;;  %v11371_v23 = vld [vmem:[%s14864_s1 + $0x640] ss:$8 sps:$4 sm:$0xff]   ;;  %v11404_v9 = vld [vmem:[%s14864_s1 + $0x790] ss:$8 sps:$4 sm:$0xff]  }
 0x3a5   : > { %7439 = vmatprep.subr.bf16.mxu1 %v11300_v1  ;;  %v11374_v1 = vld [vmem:[%s14864_s1 + $0x740] ss:$8 sps:$4 sm:$0xff]  }
 0x3a7   : > { %7399 = vmatpush1.bf16.msra.mxu0 %v11295_v27  ;;  %v11379_v27 = vld [vmem:[%s14864_s1 + $0x654] ss:$8 sps:$4 sm:$0xff]  }
 0x3a8   : > { %7440 = vmatpush1.bf16.msra.mxu1 %v11298_v28  ;;  %7400 = vmatprep.subr.bf16.mxu0 %v11303_v38  ;;  %v11382_v28 = vld [vmem:[%s14864_s1 + $0x754] ss:$8 sps:$4 sm:$0xff]   ;;  %v11377_v38 = vld [vmem:[%s14864_s1 + $0x650] ss:$8 sps:$4 sm:$0xff]  }
 0x3a9   : > { %7441 = vmatprep.subr.bf16.mxu1 %v11306_v2  ;;  %v11380_v2 = vld [vmem:[%s14864_s1 + $0x750] ss:$8 sps:$4 sm:$0xff]  }
 0x3ab   : > { %7401 = vmatpush1.bf16.msra.mxu0 %v11301_v3  ;;  %v11385_v3 = vld [vmem:[%s14864_s1 + $0x664] ss:$8 sps:$4 sm:$0xff]  }
 0x3ac   : > { %7442 = vmatpush1.bf16.msra.mxu1 %v11304_v5  ;;  %7402 = vmatprep.subr.bf16.mxu0 %v11309_v8  ;;  %v11388_v5 = vld [vmem:[%s14864_s1 + $0x764] ss:$8 sps:$4 sm:$0xff]  }
 0x3ad   : > { %7443 = vmatprep.subr.bf16.mxu1 %v11312_v42 }
 0x3af   : > { %7403 = vmatpush1.bf16.msra.mxu0 %v11307_v37 }
 0x3b0   : > { %7444 = vmatpush1.bf16.msra.mxu1 %v11310_v6  ;;  %7404 = vmatprep.subr.bf16.mxu0 %v11315_v7 }
 0x3b1   : > { %7445 = vmatprep.subr.bf16.mxu1 %v11318_v40 }
 0x3b3   : > { %7405 = vmatpush1.bf16.msra.mxu0 %v11313_v54 }
 0x3b4   : > { %7446 = vmatpush1.bf16.msra.mxu1 %v11316_v41  ;;  %7406 = vmatprep.subr.bf16.mxu0 %v11321_v18  ;;  %v11383_v18 = vld [vmem:[%s14864_s1 + $0x660] ss:$8 sps:$4 sm:$0xff]  }
 0x3b5   : > { %7447 = vmatprep.subr.bf16.mxu1 %v11324_v35  ;;  %v11386_v35 = vld [vmem:[%s14864_s1 + $0x760] ss:$8 sps:$4 sm:$0xff]  }
 0x3b7   : > { %7407 = vmatpush1.bf16.msra.mxu0 %v11319_v21 }
 0x3b8   : > { %7448 = vmatpush1.bf16.msra.mxu1 %v11322_v47  ;;  %7408 = vmatprep.subr.bf16.mxu0 %v11327_v51 }
 0x3b9   : > { %7449 = vmatprep.subr.bf16.mxu1 %v11330_v20  ;;  %v11391_v20 = vld [vmem:[%s14864_s1 + $0x674] ss:$8 sps:$4 sm:$0xff]  }
 0x3bb   : > { %7409 = vmatpush1.bf16.msra.mxu0 %v11325_v55  ;;  %v11394_v55 = vld [vmem:[%s14864_s1 + $0x774] ss:$8 sps:$4 sm:$0xff]  }
 0x3bc   : > { %7450 = vmatpush1.bf16.msra.mxu1 %v11328_v32  ;;  %7410 = vmatprep.subr.bf16.mxu0 %v11333_v33 }
 0x3bd   : > { %7451 = vmatprep.subr.bf16.mxu1 %v11336_v56 }
 0x3bf   : > { %7411 = vmatpush1.bf16.msra.mxu0 %v11331_v39  ;;  %v11392_v39 = vld [vmem:[%s14864_s1 + $0x770] ss:$8 sps:$4 sm:$0xff]  }
 0x3c0   : > { %7452 = vmatpush1.bf16.msra.mxu1 %v11334_v29  ;;  %7412 = vmatprep.subr.bf16.mxu0 %v11339_v57  ;;  %v11397_v29 = vld [vmem:[%s14864_s1 + $0x684] ss:$8 sps:$4 sm:$0xff]  }
 0x3c1   : > { %7453 = vmatprep.subr.bf16.mxu1 %v11342_v58  ;;  %v11400_v57 = vld [vmem:[%s14864_s1 + $0x784] ss:$8 sps:$4 sm:$0xff]  }
 0x3c3   : > { %7413 = vmatpush1.bf16.msra.mxu0 %v11337_v62  ;;  %v11395_v62 = vld [vmem:[%s14864_s1 + $0x680] ss:$8 sps:$4 sm:$0xff]  }
 0x3c4   : > { %7454 = vmatpush1.bf16.msra.mxu1 %v11340_v43  ;;  %7882 = vmatprep.subr.bf16.mxu0 %v11349_v31  ;;  %v11398_v43 = vld [vmem:[%s14864_s1 + $0x780] ss:$8 sps:$4 sm:$0xff]  }
 0x3c5   : > { %7923 = vmatprep.subr.bf16.mxu1 %v11352_v63  ;;  %v11403_v63 = vld [vmem:[%s14864_s1 + $0x694] ss:$8 sps:$4 sm:$0xff]  }
 0x3c6   : > { %7415 = vmatmul.mubr.bf16.vlgmr.msra.gmra.mrb[56].mxu0 %v14654_v48 }
 0x3c7   : > { %7456 = vmatmul.mubr.bf16.vlgmr.msra.gmra.mrb[56].mxu1 %v14658_v49  ;;  %7883 = vmatpush1.bf16.msra.mxu0 %v11347_v11  ;;  %v11412_v11 = vld [vmem:[%s14864_s1 + $0x7a4] ss:$8 sps:$4 sm:$0xff]  }
 0x3c8   : > { %7924 = vmatpush1.bf16.msra.mxu1 %v11350_v22  ;;  %7884 = vmatprep.subr.bf16.mxu0 %v11355_v30  ;;  %v11407_v22 = vld [vmem:[%s14864_s1 + $0x6a0] ss:$8 sps:$4 sm:$0xff]  }
 0x3c9   : > { %7925 = vmatprep.subr.bf16.mxu1 %v11358_v44  ;;  %7914 = vmatprep.mubr.bf16.mxu0 %v7543_v50  ;;  %v11410_v30 = vld [vmem:[%s14864_s1 + $0x7a0] ss:$8 sps:$4 sm:$0xff]   ;;  %v11415_v44 = vld [vmem:[%s14864_s1 + $0x6b4] ss:$8 sps:$4 sm:$0xff]  }
 0x3ca   : > { %7955 = vmatprep.mubr.bf16.mxu1 %v7557_v12  ;;  %v11418_v50 = vld [vmem:[%s14864_s1 + $0x7b4] ss:$8 sps:$4 sm:$0xff]   ;;  %v11413_v12 = vld [vmem:[%s14864_s1 + $0x6b0] ss:$8 sps:$4 sm:$0xff]  }
 0x3cb   : > { %7885 = vmatpush1.bf16.msra.mxu0 %v11353_v52  ;;  %v11416_v52 = vld [vmem:[%s14864_s1 + $0x7b0] ss:$8 sps:$4 sm:$0xff]  }
 0x3cc   : > { %7926 = vmatpush1.bf16.msra.mxu1 %v11356_v19  ;;  %7886 = vmatprep.subr.bf16.mxu0 %v11361_v53  ;;  %v11421_v19 = vld [vmem:[%s14864_s1 + $0x6c4] ss:$8 sps:$4 sm:$0xff]  }
 0x3cd   : > { %7927 = vmatprep.subr.bf16.mxu1 %v11364_v13  ;;  %v11424_v53 = vld [vmem:[%s14864_s1 + $0x7c4] ss:$8 sps:$4 sm:$0xff]   ;;  %v11419_v13 = vld [vmem:[%s14864_s1 + $0x6c0] ss:$8 sps:$4 sm:$0xff]  }
 0x3cf   : > { %7887 = vmatpush1.bf16.msra.mxu0 %v11359_v45  ;;  %v11422_v45 = vld [vmem:[%s14864_s1 + $0x7c0] ss:$8 sps:$4 sm:$0xff]  }
 0x3d0   : > { %7928 = vmatpush1.bf16.msra.mxu1 %v11362_v60  ;;  %7888 = vmatprep.subr.bf16.mxu0 %v11367_v14  ;;  %v11427_v60 = vld [vmem:[%s14864_s1 + $0x6d4] ss:$8 sps:$4 sm:$0xff]  }
 0x3d1   : > { %7929 = vmatprep.subr.bf16.mxu1 %v11370_v34  ;;  %v11430_v14 = vld [vmem:[%s14864_s1 + $0x7d4] ss:$8 sps:$4 sm:$0xff]   ;;  %v11425_v34 = vld [vmem:[%s14864_s1 + $0x6d0] ss:$8 sps:$4 sm:$0xff]  }
 0x3d3   : > { %7889 = vmatpush1.bf16.msra.mxu0 %v11365_v15  ;;  %v11428_v15 = vld [vmem:[%s14864_s1 + $0x7d0] ss:$8 sps:$4 sm:$0xff]  }
 0x3d4   : > { %7930 = vmatpush1.bf16.msra.mxu1 %v11368_v61  ;;  %7890 = vmatprep.subr.bf16.mxu0 %v11373_v59  ;;  %v11433_v61 = vld [vmem:[%s14864_s1 + $0x6e4] ss:$8 sps:$4 sm:$0xff]  }
 0x3d5   : > { %7931 = vmatprep.subr.bf16.mxu1 %v11376_v17  ;;  %v11436_v59 = vld [vmem:[%s14864_s1 + $0x7e4] ss:$8 sps:$4 sm:$0xff]   ;;  %v7533_v17 = vshll.u32 %v14654_v48, 16 }
 0x3d7   : > { %7891 = vmatpush1.bf16.msra.mxu0 %v11371_v23  ;;  %v7547_v23 = vshll.u32 %v14658_v49, 16 }
 0x3d8   : > { %7932 = vmatpush1.bf16.msra.mxu1 %v11374_v1  ;;  %7892 = vmatprep.subr.bf16.mxu0 %v11379_v27  ;;  %v11431_v1 = vld [vmem:[%s14864_s1 + $0x6e0] ss:$8 sps:$4 sm:$0xff]  }
 0x3d9   : > { %7933 = vmatprep.subr.bf16.mxu1 %v11382_v28  ;;  %v5979_v8 = vpop.f32.mrb[44].mxu0  ;;  %v11434_v27 = vld [vmem:[%s14864_s1 + $0x7e0] ss:$8 sps:$4 sm:$0xff]   ;;  %v11439_v28 = vld [vmem:[%s14864_s1 + $0x6f4] ss:$8 sps:$4 sm:$0xff]  }
 0x3da   : > { %v6020_v42 = vpop.f32.mrb[44].mxu1  ;;  %v5981_v6 = vpop.f32.mrb[45].mxu0 }
 0x3db   : > { %v6021_v37 = vadd.f32 %v6020_v42, %v5979_v8  ;;  %v6022_v7 = vpop.f32.mrb[45].mxu1  ;;  %v5983_v54 = vpop.f32.mrb[46].mxu0  ;;  %7893 = vmatpush1.bf16.msra.mxu0 %v11377_v38  ;;  %v11442_v38 = vld [vmem:[%s14864_s1 + $0x7f4] ss:$8 sps:$4 sm:$0xff]   ;;  %v7549_v8 = vrot.slane %v7547_v23, 1 }
 0x3dc   : > { %v6023_v40 = vadd.f32 %v6022_v7, %v5981_v6  ;;  %v6024_v41 = vpop.f32.mrb[46].mxu1  ;;  %7934 = vmatpush1.bf16.msra.mxu1 %v11380_v2  ;;  %v5984_v47 = vpop.f32.mrb[47].mxu0  ;;  %7894 = vmatprep.subr.bf16.mxu0 %v11385_v3  ;;  %v7531_v2 = vshrl.u32 %v14654_v48, 16  ;;  %v7535_v3 = vrot.slane %v7533_v17, 1  ;;  %v11437_v42 = vld [vmem:[%s14864_s1 + $0x6f0] ss:$8 sps:$4 sm:$0xff]  }
 0x3dd   : > { %v6027_v21 = vadd.f32 %v6021_v37, %v14529_v36  ;;  %v6025_v51 = vpop.f32.mrb[47].mxu1  ;;  %7935 = vmatprep.subr.bf16.mxu1 %v11388_v5  ;;  %v11389_v36 = vld [vmem:[%s14864_s1 + $0x670] ss:$8 sps:$4 sm:$0xff]   ;;  %v7545_v5 = vshrl.u32 %v14658_v49, 16 }
 0x3de   : > { %v6028_v32 = vadd.f32 %v6023_v40, %v14538_v0  ;;  %v11440_v37 = vld [vmem:[%s14864_s1 + $0x7f0] ss:$8 sps:$4 sm:$0xff]   ;;  %v7536_v6 = vor.u32 %v7535_v3, %v7531_v2 }
 0x3df   : > { %v6029_v33 = vadd.f32 %v6027_v21, %v13050_v16  ;;  %7895 = vmatpush1.bf16.msra.mxu0 %v11383_v18  ;;  %v7550_v7 = vor.u32 %v7549_v8, %v7545_v5 }
 0x3e0   : > { %v6030_v56 = vadd.f32 %v6028_v32, %v13052_v26  ;;  %7936 = vmatpush1.bf16.msra.mxu1 %v11386_v35  ;;  %7896 = vmatprep.subr.bf16.mxu0 %v11391_v20 }
 0x3e1   : > { %vm6031_vm4 = vcmp.ge.f32.partialorder %v6029_v33, 0.0  ;;  %v6033_v0 = vmul.f32 0.2, %v6029_v33  ;;  %7937 = vmatprep.subr.bf16.mxu1 %v11394_v55 }
 0x3e2   : > { %vm6032_vm5 = vcmp.ge.f32.partialorder %v6030_v56, 0.0  ;;  %v6034_v58 = vmul.f32 0.2, %v6030_v56 }
 0x3e3   : > { %v6035_v24 = vsel %vm6031_vm4, %v6029_v33, %v6033_v0  ;;  %7897 = vmatpush1.bf16.msra.mxu0 %v11389_v36 }
 0x3e4   : > { %v6036_v25 = vsel %vm6032_vm5, %v6030_v56, %v6034_v58  ;;  %7938 = vmatpush1.bf16.msra.mxu1 %v11392_v39  ;;  %7898 = vmatprep.subr.bf16.mxu0 %v11397_v29 }
 0x3e5   : > { %v9416_v31 = vpack.c.bf16 %v6036_v25, %v6035_v24  ;;  %7939 = vmatprep.subr.bf16.mxu1 %v11400_v57 }
 0x3e7   : > { %9876 = vst.sshfl [vmem:[%s13080_s22 + $0x8] sm:$0x33 pattern:$0x76325410] %v9416_v31  ;;  %7899 = vmatpush1.bf16.msra.mxu0 %v11395_v62 }
 0x3e8   : > { %7940 = vmatpush1.bf16.msra.mxu1 %v11398_v43  ;;  %7900 = vmatprep.subr.bf16.mxu0 %v11403_v63 }
 0x3e9   : > { %7941 = vmatprep.subr.bf16.mxu1 %v11406_v46 }
 0x3eb   : > { %7901 = vmatpush1.bf16.msra.mxu0 %v11401_v4 }
 0x3ec   : > { %7942 = vmatpush1.bf16.msra.mxu1 %v11404_v9  ;;  %7902 = vmatprep.subr.bf16.mxu0 %v11409_v10 }
 0x3ed   : > { %7943 = vmatprep.subr.bf16.mxu1 %v11412_v11 }
 0x3ef   : > { %7903 = vmatpush1.bf16.msra.mxu0 %v11407_v22 }
 0x3f0   : > { %7944 = vmatpush1.bf16.msra.mxu1 %v11410_v30  ;;  %7904 = vmatprep.subr.bf16.mxu0 %v11415_v44 }
 0x3f1   : > { %7945 = vmatprep.subr.bf16.mxu1 %v11418_v50 }
 0x3f3   : > { %7905 = vmatpush1.bf16.msra.mxu0 %v11413_v12 }
 0x3f4   : > { %7946 = vmatpush1.bf16.msra.mxu1 %v11416_v52  ;;  %7906 = vmatprep.subr.bf16.mxu0 %v11421_v19 }
 0x3f5   : > { %7947 = vmatprep.subr.bf16.mxu1 %v11424_v53 }
 0x3f7   : > { %7907 = vmatpush1.bf16.msra.mxu0 %v11419_v13 }
 0x3f8   : > { %7948 = vmatpush1.bf16.msra.mxu1 %v11422_v45  ;;  %7908 = vmatprep.subr.bf16.mxu0 %v11427_v60 }
 0x3f9   : > { %7949 = vmatprep.subr.bf16.mxu1 %v11430_v14 }
 0x3fb   : > { %7909 = vmatpush1.bf16.msra.mxu0 %v11425_v34 }
 0x3fc   : > { %7950 = vmatpush1.bf16.msra.mxu1 %v11428_v15  ;;  %7910 = vmatprep.subr.bf16.mxu0 %v11433_v61 }
 0x3fd   : > { %7951 = vmatprep.subr.bf16.mxu1 %v11436_v59 }
 0x3ff   : > { %7911 = vmatpush1.bf16.msra.mxu0 %v11431_v1 }
 0x400   : > { %7952 = vmatpush1.bf16.msra.mxu1 %v11434_v27  ;;  %7912 = vmatprep.subr.bf16.mxu0 %v11439_v28 }
 0x401   : > { %7953 = vmatprep.subr.bf16.mxu1 %v11442_v38 }
 0x403   : > { %7913 = vmatpush1.bf16.msra.mxu0 %v11437_v42 }
 0x404   : > { %7954 = vmatpush1.bf16.msra.mxu1 %v11440_v37 }
 0x406   : > { %7915 = vmatmul.mubr.bf16.vlgmr.msra.gmra.mrb[60].mxu0 %v7536_v6 }
 0x407   : > { %7956 = vmatmul.mubr.bf16.vlgmr.msra.gmra.mrb[60].mxu1 %v7550_v7 }
 0x419   : > { %v6534_v48 = vpop.f32.mrb[48].mxu0 }
 0x41a   : > { %v6575_v49 = vpop.f32.mrb[48].mxu1  ;;  %v6536_v54 = vpop.f32.mrb[49].mxu0 }
 0x41b   : > { %v6576_v40 = vadd.f32 %v6575_v49, %v6534_v48  ;;  %v6577_v41 = vpop.f32.mrb[49].mxu1  ;;  %v6538_v35 = vpop.f32.mrb[50].mxu0 }
 0x41c   : > { %v6578_v18 = vadd.f32 %v6577_v41, %v6536_v54  ;;  %v6579_v21 = vpop.f32.mrb[50].mxu1  ;;  %v6539_v47 = vpop.f32.mrb[51].mxu0 }
 0x41d   : > { %v6580_v51 = vpop.f32.mrb[51].mxu1 }
 0x459   : > { %v6936_v20 = vpop.f32.mrb[52].mxu0 }
 0x45a   : > { %v6977_v55 = vpop.f32.mrb[52].mxu1  ;;  %v6937_v32 = vadd.f32 %v6936_v20, %v6576_v40  ;;  %v6938_v33 = vpop.f32.mrb[53].mxu0 }
 0x45b   : > { %v6979_v56 = vpop.f32.mrb[53].mxu1  ;;  %v6939_v36 = vadd.f32 %v6938_v33, %v6578_v18  ;;  %v6940_v39 = vpop.f32.mrb[54].mxu0 }
 0x45c   : > { %v6981_v29 = vpop.f32.mrb[54].mxu1  ;;  %v6978_v0 = vadd.f32 %v6977_v55, %v6937_v32  ;;  %v6941_v57 = vpop.f32.mrb[55].mxu0 }
 0x45d   : > { %v6982_v58 = vpop.f32.mrb[55].mxu1  ;;  %v6980_v24 = vadd.f32 %v6979_v56, %v6939_v36 }
 0x499   : > { %v7416_v25 = vpop.f32.mrb[56].mxu0 }
 0x49a   : > { %v7457_v62 = vpop.f32.mrb[56].mxu1  ;;  %v7418_v31 = vpop.f32.mrb[57].mxu0 }
 0x49b   : > { %v7458_v43 = vadd.f32 %v7457_v62, %v7416_v25  ;;  %v7459_v63 = vpop.f32.mrb[57].mxu1  ;;  %v7420_v4 = vpop.f32.mrb[58].mxu0 }
 0x49c   : > { %v7460_v46 = vadd.f32 %v7459_v63, %v7418_v31  ;;  %v7461_v9 = vpop.f32.mrb[58].mxu1  ;;  %v7421_v11 = vpop.f32.mrb[59].mxu0 }
 0x49d   : > { %v7464_v10 = vadd.f32 %v7458_v43, %v6978_v0  ;;  %v7462_v22 = vpop.f32.mrb[59].mxu1 }
 0x49e   : > { %v7465_v30 = vadd.f32 %v7460_v46, %v6980_v24 }
 0x4d9   : > { %v7916_v44 = vpop.f32.mrb[60].mxu0 }
 0x4da   : > { %v7957_v50 = vpop.f32.mrb[60].mxu1  ;;  %v7918_v52 = vpop.f32.mrb[61].mxu0 }
 0x4db   : > { %v7958_v12 = vadd.f32 %v7957_v50, %v7916_v44  ;;  %v7959_v19 = vpop.f32.mrb[61].mxu1  ;;  %v7920_v13 = vpop.f32.mrb[62].mxu0 }
 0x4dc   : > { %v7960_v53 = vadd.f32 %v7959_v19, %v7918_v52  ;;  %v7961_v45 = vpop.f32.mrb[62].mxu1  ;;  %v7921_v14 = vpop.f32.mrb[63].mxu0 }
 0x4dd   : > { %v7964_v60 = vadd.f32 %v7958_v12, %v7464_v10  ;;  %v7962_v34 = vpop.f32.mrb[63].mxu1 }
 0x4de   : > { %v7965_v15 = vadd.f32 %v7960_v53, %v7465_v30 }
 0x4df   : > { %v7966_v61 = vadd.f32 %v7964_v60, %v13050_v16 }
 0x4e0   : > { %v7967_v59 = vadd.f32 %v7965_v15, %v13052_v26 }
 0x4e1   : > { %vm7968_vm6 = vcmp.ge.f32.partialorder %v7966_v61, 0.0  ;;  %v7970_v17 = vmul.f32 0.2, %v7966_v61 }
 0x4e2   : > { %vm7969_vm7 = vcmp.ge.f32.partialorder %v7967_v59, 0.0  ;;  %v7971_v23 = vmul.f32 0.2, %v7967_v59 }
 0x4e3   : > { %v7972_v1 = vsel %vm7968_vm6, %v7966_v61, %v7970_v17 }
 0x4e4   : > { %v7973_v27 = vsel %vm7969_vm7, %v7967_v59, %v7971_v23 }
 0x4e5   : > { %v9870_v28 = vpack.c.bf16 %v7973_v27, %v7972_v1 }
 0x4e7   : > { %9877 = vst.sshfl [vmem:[%s13080_s22 + $0xc] sm:$0x33 pattern:$0x76325410] %v9870_v28 }
 0x4e8 PF: > { %s13_s12 = sadd.s32 1, %s11449_s12  }
 0x4e9   : > { %p10_p4 = scmp.ge.s32.totalorder %s13_s12, 4  }
 0x4eb   :  { %12 = sbr.rel (!%p10_p4) target bundleno = 1 (0x1), region = 68 }

</bundles_post_ra>
